<compile_context>
chip_gen: v6e
topology: v6e:2x2x1
jax: 0.10.0
libtpu: 0.0.40
codegen_flags: <defaults>
</compile_context>

<pallas_src>
import functools

import jax
import jax.numpy as jnp
from jax import lax
from jax.experimental import pallas as pl
from jax.experimental.pallas import tpu as pltpu

# ----------------------------- config ---------------------------------------
B = 2              # batch
T_IMG = 1          # images per sample
F_FRAMES = 1       # frames (must be 1)
C_IN, H_IN, W_IN = 3, 16, 16
PATCH = 8
N_PATCH = (H_IN // PATCH) * (W_IN // PATCH)          # 4 visual tokens / image

VIS_DIM = 32                                         # vis_dim
VIS_HEADS, VIS_DIM_HEAD = 4, 8

P_DEPTH, P_HEADS, P_DIM_HEAD, P_LATENTS, P_FF_MULT = 2, 4, 16, 8, 4

LANG_DIM = 32                                        # lang_dim (hidden_size)
L_LAYERS, L_HEADS, L_DIM_HEAD, L_FF_MULT = 2, 4, 8, 4
XA_HEADS, XA_DIM_HEAD = 4, 16

VOCAB = 64
T_TXT = 8
MEDIA_TOKEN_ID = 3
EOC_TOKEN_ID = 4
CROSS_ATTN_EVERY_N_LAYERS = 1

F32 = jnp.float32
BF16 = jnp.bfloat16
NEG_MAX = -3.4028235e38          # python float -> in-kernel literal
INV_SQRT2 = 0.7071067811865476

VMEM = pltpu.MemorySpace.VMEM


def _vs():
    return pl.BlockSpec(memory_space=VMEM)


# ----------------------- in-kernel math helpers ------------------------------
def _mm(a, w):
    """MXU matmul: bf16 operands, f32 accumulation (weights stored bf16)."""
    return jnp.dot(a.astype(BF16), w.astype(BF16), preferred_element_type=F32)


def _ln(x, g, b):
    mu = jnp.mean(x, axis=-1, keepdims=True)
    var = jnp.mean((x - mu) ** 2, axis=-1, keepdims=True)
    return (x - mu) * lax.rsqrt(var + 1e-5) * g + b


def _erf(x):
    # Abramowitz & Stegun 7.1.26 (|err| < 1.5e-7): only VPU ops + one EUP exp,
    # avoids depending on a native erf lowering in Mosaic.
    a1, a2, a3, a4, a5 = (0.254829592, -0.284496736, 1.421413741,
                          -1.453152027, 1.061405429)
    p = 0.3275911
    sgn = jnp.where(x < 0.0, -1.0, 1.0)
    ax = jnp.abs(x)
    t = 1.0 / (1.0 + p * ax)
    poly = ((((a5 * t + a4) * t + a3) * t + a2) * t + a1) * t
    return sgn * (1.0 - poly * jnp.exp(-ax * ax))


def _gelu(x):
    # exact (erf) GELU, matching torch nn.GELU default (erf via A&S poly)
    return 0.5 * x * (1.0 + _erf(x * INV_SQRT2))


def _idiv(x, d):
    """Integer divide by static d; power-of-two d uses a VPU shift."""
    if d & (d - 1) == 0:
        return jnp.right_shift(x, int(d).bit_length() - 1)
    return x // d


def _imod(x, d):
    if d & (d - 1) == 0:
        return jnp.bitwise_and(x, d - 1)
    return x % d


def _mha2d(q, k, v, heads, dh, keep=None, rowmul=None):
    """Multi-head attention, fully 2-D (rows flattened over batch).

    q: (nq, heads*dh), k/v: (nk, heads*dh).  keep: bool mask broadcastable to
    (nq, nk) (per-batch blocks / causal / media equality).  rowmul: (nq, 1)
    post-softmax multiplier (Flamingo's text-without-media zeroing).
    Returns (nq, heads*dh) f32.
    """
    scale = float(dh) ** -0.5
    outs = []
    for h in range(heads):
        lo = h * dh
        qh = q[:, lo:lo + dh] * scale
        kh = k[:, lo:lo + dh]
        vh = v[:, lo:lo + dh]
        s = lax.dot_general(qh, kh, (((1,), (1,)), ((), ())),
                            preferred_element_type=F32)        # (nq, nk)
        if keep is not None:
            s = jnp.where(keep, s, NEG_MAX)
        s = s - jnp.max(s, axis=-1, keepdims=True)
        p = jnp.exp(s)
        p = p * pl.reciprocal(jnp.sum(p, axis=-1, keepdims=True), approx=True)
        if rowmul is not None:
            p = p * rowmul
        outs.append(jnp.dot(p, vh, preferred_element_type=F32))
    return jnp.concatenate(outs, axis=-1)


# --------------------- shared in-kernel block bodies --------------------------
def _xattn_block(x, media, tt, ng, nb, wq, wkv, wo, agate,
                 fg, fb, w1, w2, fgate, *, b, t_txt, t_img, n_lat, heads, dh):
    """GatedCrossAttentionBlock: masked cross-attn (tanh gate) + FF (tanh gate)."""
    inner = heads * dh
    nq = b * t_txt
    nk_per = t_img * n_lat
    nk = b * nk_per
    xn = _ln(x, ng, nb)
    q = _mm(xn, wq)                                            # (nq, inner)
    kv = _mm(media, wkv)                                       # (nk, 2*inner)
    qi = lax.broadcasted_iota(jnp.int32, (nq, nk), 0)
    kj = lax.broadcasted_iota(jnp.int32, (nq, nk), 1)
    same_b = _idiv(qi, t_txt) == _idiv(kj, nk_per)
    media_time = _idiv(_imod(kj, nk_per), n_lat) + 1
    keep = jnp.logical_and(same_b, tt == media_time)   # only_attend_immediate
    rowmul = (tt != 0).astype(F32)                      # zero rows before media
    o = _mha2d(q, kv[:, :inner], kv[:, inner:], heads, dh,
               keep=keep, rowmul=rowmul)
    x = x + _mm(o, wo) * jnp.tanh(agate)
    hf = _ln(x, fg, fb)
    x = x + _mm(_gelu(_mm(hf, w1)), w2) * jnp.tanh(fgate)
    return x


def _decoder_block(x, am, l1g, l1b, wqkv, wo, fg, fb, w1, w2,
                   *, b, t, heads, dh):
    """One causal decoder layer: pre-LN self-attn + pre-LN MLP."""
    inner = heads * dh
    nq = b * t
    h = _ln(x, l1g, l1b)
    qkv = _mm(h, wqkv)
    qi = lax.broadcasted_iota(jnp.int32, (nq, nq), 0)
    kj = lax.broadcasted_iota(jnp.int32, (nq, nq), 1)
    same_b = _idiv(qi, t) == _idiv(kj, t)
    causal = _imod(qi, t) >= _imod(kj, t)
    keep = same_b & causal & (am > 0)              # am: (1, nq) key-padding mask
    o = _mha2d(qkv[:, :inner], qkv[:, inner:2 * inner], qkv[:, 2 * inner:],
               heads, dh, keep=keep)
    x = x + _mm(o, wo)
    hf = _ln(x, fg, fb)
    x = x + _mm(_gelu(_mm(hf, w1)), w2)
    return x


# ------------------------------ fused kernels --------------------------------
def _vision_kernel(patch_ref, pw_ref, pos_ref, ln1g_ref, ln1b_ref,
                   wqkv_ref, wo_ref, fg_ref, fb_ref, w1_ref, w2_ref,
                   lpg_ref, lpb_ref, o_ref, *, n_img, v, heads, dh):
    """Whole tiny ViT: patch-embed + pos -> attn block -> MLP block -> LN."""
    inner = heads * dh
    rows = n_img * v
    x = _mm(patch_ref[...], pw_ref[...]) + pos_ref[...]        # (rows, d)
    h = _ln(x, ln1g_ref[...], ln1b_ref[...])
    qkv = _mm(h, wqkv_ref[...])                                # (rows, 3*inner)
    # block-diagonal mask: patches attend only within their own image
    qi = lax.broadcasted_iota(jnp.int32, (rows, rows), 0)
    kj = lax.broadcasted_iota(jnp.int32, (rows, rows), 1)
    keep = _idiv(qi, v) == _idiv(kj, v)
    o = _mha2d(qkv[:, :inner], qkv[:, inner:2 * inner], qkv[:, 2 * inner:],
               heads, dh, keep=keep)
    x = x + _mm(o, wo_ref[...])
    hf = _ln(x, fg_ref[...], fb_ref[...])
    x = x + _mm(_gelu(_mm(hf, w1_ref[...])), w2_ref[...])
    o_ref[...] = _ln(x, lpg_ref[...], lpb_ref[...])


def _perceiver_kernel(x_ref, lat_ref, *refs, bt, v, n_lat, heads, dh, depth):
    """Whole PerceiverResampler: depth x (cross-attn + FF) + final LayerNorm.

    refs layout: depth * 11 per-layer params, final norm (g, b), output ref.
    Latents stay in VMEM (registers/vregs) across all layers.
    """
    o_ref = refs[-1]
    inner = heads * dh
    nx = bt * v
    nl = bt * n_lat
    nk = nx + nl
    x = x_ref[...]                                             # (nx, d) media
    lat = lat_ref[...]                                         # (nl, d) latents
    # same (b, T) group mask, hoisted out of the layer loop
    qi = lax.broadcasted_iota(jnp.int32, (nl, nk), 0)
    kj = lax.broadcasted_iota(jnp.int32, (nl, nk), 1)
    k_grp = jnp.where(kj < nx, _idiv(kj, v), _idiv(kj - nx, n_lat))
    keep = _idiv(qi, n_lat) == k_grp
    for l in range(depth):
        (nmg, nmb, nlg, nlb, wq, wkv, wo,
         fg, fb, w1, w2) = refs[l * 11:(l + 1) * 11]
        xn = _ln(x, nmg[...], nmb[...])
        ln_l = _ln(lat, nlg[...], nlb[...])
        q = _mm(ln_l, wq[...])                                 # (nl, inner)
        # to_kv(concat(x_normed, latents_normed)) == concat of the two matmuls
        kv = jnp.concatenate([_mm(xn, wkv[...]),
                              _mm(ln_l, wkv[...])], axis=0)    # (nk, 2*inner)
        o = _mha2d(q, kv[:, :inner], kv[:, inner:], heads, dh, keep=keep)
        lat = lat + _mm(o, wo[...])
        hf = _ln(lat, fg[...], fb[...])
        lat = lat + _mm(_gelu(_mm(hf, w1[...])), w2[...])
    ng, nb = refs[depth * 11], refs[depth * 11 + 1]
    o_ref[...] = _ln(lat, ng[...], nb[...])


def _flamingo_layer_kernel(x_ref, media_ref, tt_ref, am_ref,
                           xng, xnb, xwq, xwkv, xwo, xag,
                           xfg, xfb, xw1, xw2, xfgate,
                           l1g, l1b, dwqkv, dwo, dfg, dfb, dw1, dw2,
                           o_ref, *, b, t_txt, t_img, n_lat,
                           xa_heads, xa_dh, l_heads, l_dh):
    """One FlamingoLayer: gated cross-attn block then decoder block, fused."""
    x = x_ref[...]                                             # (b*t_txt, d)
    x = _xattn_block(x, media_ref[...], tt_ref[...],
                     xng[...], xnb[...], xwq[...], xwkv[...], xwo[...],
                     xag[...], xfg[...], xfb[...], xw1[...], xw2[...],
                     xfgate[...], b=b, t_txt=t_txt, t_img=t_img,
                     n_lat=n_lat, heads=xa_heads, dh=xa_dh)
    x = _decoder_block(x, am_ref[...],
                       l1g[...], l1b[...], dwqkv[...], dwo[...],
                       dfg[...], dfb[...], dw1[...], dw2[...],
                       b=b, t=t_txt, heads=l_heads, dh=l_dh)
    o_ref[...] = x


def _decoder_kernel(x_ref, am_ref, l1g_ref, l1b_ref, wqkv_ref, wo_ref,
                    fg_ref, fb_ref, w1_ref, w2_ref, o_ref, *, b, t, heads, dh):
    """Decoder-only layer (used when a layer has no gated cross-attn)."""
    o_ref[...] = _decoder_block(
        x_ref[...], am_ref[...], l1g_ref[...], l1b_ref[...], wqkv_ref[...],
        wo_ref[...], fg_ref[...], fb_ref[...], w1_ref[...], w2_ref[...],
        b=b, t=t, heads=heads, dh=dh)


def _head_kernel(x_ref, g_ref, bias_ref, w_ref, o_ref):
    h = _ln(x_ref[...], g_ref[...], bias_ref[...])
    o_ref[...] = _mm(h, w_ref[...])


# ------------------------------ wrappers -------------------------------------
def vision_encoder(patches2d, p):
    rows = patches2d.shape[0]
    n_img = rows // N_PATCH
    pos_tiled = jnp.tile(p["pos"], (n_img, 1))                 # (rows, d)
    kern = functools.partial(_vision_kernel, n_img=n_img, v=N_PATCH,
                             heads=VIS_HEADS, dh=VIS_DIM_HEAD)
    return pl.pallas_call(
        kern, out_shape=jax.ShapeDtypeStruct((rows, VIS_DIM), F32),
        in_specs=[_vs()] * 13, out_specs=_vs(),
    )(patches2d, p["patch_w"], pos_tiled,
      p["ln1_g"], p["ln1_b"], p["wqkv"], p["wo"],
      p["mlp"]["ln_g"], p["mlp"]["ln_b"], p["mlp"]["w1"], p["mlp"]["w2"],
      p["ln_post_g"], p["ln_post_b"])


def perceiver_resampler(vis_tokens, p):
    # vis_tokens: (b, T, F, v, d) -> latents (b, T, num_latents, d)
    b, t, f, v, d = vis_tokens.shape
    bt = b * t
    x2d = vis_tokens.reshape(bt * f * v, d)
    lat = jnp.tile(p["latents"], (bt, 1))                      # (bt*n_lat, d)
    flat = []
    for layer in p["layers"]:
        a, ff = layer["attn"], layer["ff"]
        flat += [a["norm_media_g"], a["norm_media_b"],
                 a["norm_latents_g"], a["norm_latents_b"],
                 a["wq"], a["wkv"], a["wo"],
                 ff["ln_g"], ff["ln_b"], ff["w1"], ff["w2"]]
    flat += [p["norm_g"], p["norm_b"]]
    kern = functools.partial(_perceiver_kernel, bt=bt, v=f * v,
                             n_lat=P_LATENTS, heads=P_HEADS, dh=P_DIM_HEAD,
                             depth=len(p["layers"]))
    lat = pl.pallas_call(
        kern, out_shape=jax.ShapeDtypeStruct((bt * P_LATENTS, d), F32),
        in_specs=[_vs()] * (2 + len(flat)), out_specs=_vs(),
    )(x2d, lat, *flat)
    return lat.reshape(b, t, P_LATENTS, d)


def flamingo_layer(x2d, media2d, tt_col, am_row, xp, dp,
                   *, b, t_txt, t_img, n_lat):
    a, ff = xp["attn"], xp["ff"]
    kern = functools.partial(_flamingo_layer_kernel, b=b, t_txt=t_txt,
                             t_img=t_img, n_lat=n_lat,
                             xa_heads=XA_HEADS, xa_dh=XA_DIM_HEAD,
                             l_heads=L_HEADS, l_dh=L_DIM_HEAD)
    return pl.pallas_call(
        kern, out_shape=jax.ShapeDtypeStruct(x2d.shape, F32),
        in_specs=[_vs()] * 23, out_specs=_vs(),
    )(x2d, media2d, tt_col, am_row,
      a["norm_g"], a["norm_b"], a["wq"], a["wkv"], a["wo"], xp["attn_gate"],
      ff["ln_g"], ff["ln_b"], ff["w1"], ff["w2"], xp["ff_gate"],
      dp["ln1_g"], dp["ln1_b"], dp["wqkv"], dp["wo"],
      dp["mlp"]["ln_g"], dp["mlp"]["ln_b"], dp["mlp"]["w1"], dp["mlp"]["w2"])


def decoder_layer(x2d, am_row, p, *, b, t):
    kern = functools.partial(_decoder_kernel, b=b, t=t,
                             heads=L_HEADS, dh=L_DIM_HEAD)
    return pl.pallas_call(
        kern, out_shape=jax.ShapeDtypeStruct(x2d.shape, F32),
        in_specs=[_vs()] * 10, out_specs=_vs(),
    )(x2d, am_row, p["ln1_g"], p["ln1_b"], p["wqkv"], p["wo"],
      p["mlp"]["ln_g"], p["mlp"]["ln_b"], p["mlp"]["w1"], p["mlp"]["w2"])


def lm_head(x2d, lp):
    nq = x2d.shape[0]
    return pl.pallas_call(
        _head_kernel, out_shape=jax.ShapeDtypeStruct((nq, VOCAB), F32),
        in_specs=[_vs()] * 4, out_specs=_vs(),
    )(x2d, lp["ln_f_g"], lp["ln_f_b"], lp["lm_head"])


# ------------------------------- Flamingo ------------------------------------
def flamingo_forward(params, vision_x, lang_x, attention_mask):
    """Mirrors Flamingo.forward: _encode_vision_x -> _condition_media_locations
    -> lang_encoder(...). Returns logits (labels/loss handling omitted)."""
    b, t_img, f, c, h, w = vision_x.shape
    assert f == 1, "Only single frame supported"

    # ---- _encode_vision_x (ViT patch stem as reshape + Pallas matmul) ------
    hp, wp = h // PATCH, w // PATCH
    n_img = b * t_img * f
    patches = vision_x.reshape(n_img, c, hp, PATCH, wp, PATCH)
    patches = patches.transpose(0, 2, 4, 1, 3, 5).reshape(
        n_img * hp * wp, c * PATCH * PATCH)
    vis_tok = vision_encoder(patches, params["vision"])        # (n_img*v, d)
    vis_tok = vis_tok.reshape(b, t_img, f, hp * wp, VIS_DIM)
    vis_x = perceiver_resampler(vis_tok, params["perceiver"])  # (b, T, n_lat, d)
    media2d = vis_x.reshape(b * t_img * P_LATENTS, VIS_DIM)

    # ---- _condition_media_locations ----------------------------------------
    media_locations = (lang_x == MEDIA_TOKEN_ID)
    text_time = jnp.cumsum(media_locations.astype(jnp.int32), axis=-1)
    tt_col = text_time.reshape(-1, 1)                          # (b*T_txt, 1)

    # ---- lang_encoder (FlamingoLayers: gated x-attn + decoder block) -------
    t_txt = lang_x.shape[1]
    lp = params["lang"]
    # TODO(synk): token-embedding gather stays in plain JAX (no clean tiny
    # Pallas equivalent); everything downstream runs in fused kernels.
    x = jnp.take(lp["tok_emb"], lang_x, axis=0) + lp["pos_emb"][:t_txt][None]
    x = x.reshape(b * t_txt, LANG_DIM)
    am_row = attention_mask.astype(jnp.int32).reshape(1, b * t_txt)
    for layer in lp["layers"]:
        if layer["xattn"] is not None:       # cross_attn_every_n_layers
            x = flamingo_layer(x, media2d, tt_col, am_row,
                               layer["xattn"], layer["dec"],
                               b=b, t_txt=t_txt, t_img=t_img, n_lat=P_LATENTS)
        else:
            x = decoder_layer(x, am_row, layer["dec"], b=b, t=t_txt)
    logits = lm_head(x, lp).reshape(b, t_txt, VOCAB)
    return logits


# ------------------------------ parameter init -------------------------------
def _init_params(key):
    keys = iter(jax.random.split(key, 64))

    def nrm(shape, scale=0.02, dtype=F32):
        return (scale * jax.random.normal(next(keys), shape, F32)).astype(dtype)

    def w(shape):                       # MXU weights stored bf16
        return nrm(shape, dtype=BF16)

    def ones(d):
        return jnp.ones((1, d), F32)

    def zeros(d):
        return jnp.zeros((1, d), F32)

    def ff_params(dim, mult):
        return dict(ln_g=ones(dim), ln_b=zeros(dim),
                    w1=w((dim, dim * mult)), w2=w((dim * mult, dim)))

    vision = dict(
        patch_w=w((C_IN * PATCH * PATCH, VIS_DIM)),
        pos=nrm((N_PATCH, VIS_DIM)),
        ln1_g=ones(VIS_DIM), ln1_b=zeros(VIS_DIM),
        wqkv=w((VIS_DIM, 3 * VIS_HEADS * VIS_DIM_HEAD)),
        wo=w((VIS_HEADS * VIS_DIM_HEAD, VIS_DIM)),
        mlp=ff_params(VIS_DIM, 4),
        ln_post_g=ones(VIS_DIM), ln_post_b=zeros(VIS_DIM),
    )

    p_inner = P_HEADS * P_DIM_HEAD
    perceiver = dict(
        latents=jax.random.normal(next(keys), (P_LATENTS, VIS_DIM), F32),
        layers=[dict(
            attn=dict(norm_media_g=ones(VIS_DIM), norm_media_b=zeros(VIS_DIM),
                      norm_latents_g=ones(VIS_DIM), norm_latents_b=zeros(VIS_DIM),
                      wq=w((VIS_DIM, p_inner)), wkv=w((VIS_DIM, 2 * p_inner)),
                      wo=w((p_inner, VIS_DIM))),
            ff=ff_params(VIS_DIM, P_FF_MULT),
        ) for _ in range(P_DEPTH)],
        norm_g=ones(VIS_DIM), norm_b=zeros(VIS_DIM),
    )

    xa_inner = XA_HEADS * XA_DIM_HEAD
    l_inner = L_HEADS * L_DIM_HEAD

    def xattn_params():
        # attn_gate / ff_gate init to 0.0 (tanh(0)=0) exactly as in the module.
        return dict(
            attn=dict(norm_g=ones(LANG_DIM), norm_b=zeros(LANG_DIM),
                      wq=w((LANG_DIM, xa_inner)),
                      wkv=w((VIS_DIM, 2 * xa_inner)),
                      wo=w((xa_inner, LANG_DIM))),
            attn_gate=jnp.zeros((1, 1), F32),
            ff=ff_params(LANG_DIM, L_FF_MULT),
            ff_gate=jnp.zeros((1, 1), F32),
        )

    def dec_params():
        return dict(ln1_g=ones(LANG_DIM), ln1_b=zeros(LANG_DIM),
                    wqkv=w((LANG_DIM, 3 * l_inner)), wo=w((l_inner, LANG_DIM)),
                    mlp=ff_params(LANG_DIM, L_FF_MULT))

    lang = dict(
        tok_emb=nrm((VOCAB, LANG_DIM)),
        pos_emb=nrm((2 * T_TXT, LANG_DIM)),
        layers=[dict(
            xattn=xattn_params() if (i + 1) % CROSS_ATTN_EVERY_N_LAYERS == 0 else None,
            dec=dec_params(),
        ) for i in range(L_LAYERS)],
        ln_f_g=ones(LANG_DIM), ln_f_b=zeros(LANG_DIM),
        lm_head=w((LANG_DIM, VOCAB)),
    )

    return dict(vision=vision, perceiver=perceiver, lang=lang)


# ---------------------------------- main -------------------------------------
if __name__ == "__main__":
    key = jax.random.PRNGKey(0)
    k_param, k_vis, k_txt = jax.random.split(key, 3)

    params = _init_params(k_param)

    vision_x = jax.random.normal(
        k_vis, (B, T_IMG, F_FRAMES, C_IN, H_IN, W_IN), F32)
    lang_x = jax.random.randint(k_txt, (B, T_TXT), 5, VOCAB, dtype=jnp.int32)
    lang_x = lang_x.at[:, 0].set(MEDIA_TOKEN_ID)          # <image> token
    lang_x = lang_x.at[:, -1].set(EOC_TOKEN_ID)           # <|endofchunk|>
    attention_mask = jnp.ones((B, T_TXT), jnp.int32)

    logits = jax.jit(flamingo_forward)(params, vision_x, lang_x, attention_mask)
    jax.block_until_ready(logits)
    assert logits.shape == (B, T_TXT, VOCAB)
    assert bool(jnp.all(jnp.isfinite(logits)))
    print("KERNEL_OK")
</pallas_src>

<mosaic_0001>
module attributes {stable_mosaic.version = 11 : i64} {
  func.func @_perceiver_kernel(%arg0: memref<8x32xf32, #tpu.memory_space<vmem>>, %arg1: memref<16x32xf32, #tpu.memory_space<vmem>>, %arg2: memref<1x32xf32, #tpu.memory_space<vmem>>, %arg3: memref<1x32xf32, #tpu.memory_space<vmem>>, %arg4: memref<1x32xf32, #tpu.memory_space<vmem>>, %arg5: memref<1x32xf32, #tpu.memory_space<vmem>>, %arg6: memref<32x64xbf16, #tpu.memory_space<vmem>>, %arg7: memref<32x128xbf16, #tpu.memory_space<vmem>>, %arg8: memref<64x32xbf16, #tpu.memory_space<vmem>>, %arg9: memref<1x32xf32, #tpu.memory_space<vmem>>, %arg10: memref<1x32xf32, #tpu.memory_space<vmem>>, %arg11: memref<32x128xbf16, #tpu.memory_space<vmem>>, %arg12: memref<128x32xbf16, #tpu.memory_space<vmem>>, %arg13: memref<1x32xf32, #tpu.memory_space<vmem>>, %arg14: memref<1x32xf32, #tpu.memory_space<vmem>>, %arg15: memref<1x32xf32, #tpu.memory_space<vmem>>, %arg16: memref<1x32xf32, #tpu.memory_space<vmem>>, %arg17: memref<32x64xbf16, #tpu.memory_space<vmem>>, %arg18: memref<32x128xbf16, #tpu.memory_space<vmem>>, %arg19: memref<64x32xbf16, #tpu.memory_space<vmem>>, %arg20: memref<1x32xf32, #tpu.memory_space<vmem>>, %arg21: memref<1x32xf32, #tpu.memory_space<vmem>>, %arg22: memref<32x128xbf16, #tpu.memory_space<vmem>>, %arg23: memref<128x32xbf16, #tpu.memory_space<vmem>>, %arg24: memref<1x32xf32, #tpu.memory_space<vmem>>, %arg25: memref<1x32xf32, #tpu.memory_space<vmem>>, %arg26: memref<16x32xf32, #tpu.memory_space<vmem>>) attributes {dimension_semantics = [], scalar_prefetch = 0 : i64, scratch_operands = 0 : i64, tpu.core_type = #tpu.core_type<tc>} {
    %c0 = arith.constant 0 : index
    %c0_0 = arith.constant 0 : index
    %0 = vector.load %arg0[%c0, %c0_0] : memref<8x32xf32, #tpu.memory_space<vmem>>, vector<8x32xf32>
    %c0_1 = arith.constant 0 : index
    %c0_2 = arith.constant 0 : index
    %1 = vector.load %arg1[%c0_1, %c0_2] : memref<16x32xf32, #tpu.memory_space<vmem>>, vector<16x32xf32>
    %2 = tpu.iota {dimensions = array<i32: 0>} : vector<16x24xi32>
    %3 = tpu.iota {dimensions = array<i32: 1>} : vector<16x24xi32>
    %c8_i32 = arith.constant 8 : i32
    %4 = vector.broadcast %c8_i32 : i32 to vector<16x24xi32>
    %5 = arith.cmpi slt, %3, %4 : vector<16x24xi32>
    %c2_i32 = arith.constant 2 : i32
    %6 = vector.broadcast %c2_i32 : i32 to vector<16x24xi32>
    %7 = arith.shrsi %3, %6 : vector<16x24xi32>
    %c8_i32_3 = arith.constant 8 : i32
    %8 = vector.broadcast %c8_i32_3 : i32 to vector<16x24xi32>
    %9 = arith.subi %3, %8 : vector<16x24xi32>
    %c3_i32 = arith.constant 3 : i32
    %10 = vector.broadcast %c3_i32 : i32 to vector<16x24xi32>
    %11 = arith.shrsi %9, %10 : vector<16x24xi32>
    %12 = arith.select %5, %7, %11 : vector<16x24xi1>, vector<16x24xi32>
    %c3_i32_4 = arith.constant 3 : i32
    %13 = vector.broadcast %c3_i32_4 : i32 to vector<16x24xi32>
    %14 = arith.shrsi %2, %13 : vector<16x24xi32>
    %15 = arith.cmpi eq, %14, %12 : vector<16x24xi32>
    %c0_5 = arith.constant 0 : index
    %c0_6 = arith.constant 0 : index
    %16 = vector.load %arg2[%c0_5, %c0_6] : memref<1x32xf32, #tpu.memory_space<vmem>>, vector<1x32xf32>
    %c0_7 = arith.constant 0 : index
    %c0_8 = arith.constant 0 : index
    %17 = vector.load %arg3[%c0_7, %c0_8] : memref<1x32xf32, #tpu.memory_space<vmem>>, vector<1x32xf32>
    %cst = arith.constant dense<0.000000e+00> : vector<8xf32>
    %18 = vector.multi_reduction <add>, %0, %cst [1] : vector<8x32xf32> to vector<8xf32>
    %19 = vector.shape_cast %18 : vector<8xf32> to vector<8x1xf32>
    %cst_9 = arith.constant 3.200000e+01 : f32
    %20 = vector.broadcast %cst_9 : f32 to vector<8x1xf32>
    %21 = arith.divf %19, %20 : vector<8x1xf32>
    %22 = vector.broadcast %21 : vector<8x1xf32> to vector<8x32xf32>
    %23 = arith.subf %0, %22 : vector<8x32xf32>
    %24 = arith.mulf %23, %23 : vector<8x32xf32>
    %cst_10 = arith.constant dense<0.000000e+00> : vector<8xf32>
    %25 = vector.multi_reduction <add>, %24, %cst_10 [1] : vector<8x32xf32> to vector<8xf32>
    %26 = vector.shape_cast %25 : vector<8xf32> to vector<8x1xf32>
    %cst_11 = arith.constant 3.200000e+01 : f32
    %27 = vector.broadcast %cst_11 : f32 to vector<8x1xf32>
    %28 = arith.divf %26, %27 : vector<8x1xf32>
    %29 = vector.broadcast %21 : vector<8x1xf32> to vector<8x32xf32>
    %30 = arith.subf %0, %29 : vector<8x32xf32>
    %cst_12 = arith.constant 9.99999974E-6 : f32
    %31 = vector.broadcast %cst_12 : f32 to vector<8x1xf32>
    %32 = arith.addf %28, %31 : vector<8x1xf32>
    %33 = math.rsqrt %32 : vector<8x1xf32>
    %34 = vector.broadcast %33 : vector<8x1xf32> to vector<8x32xf32>
    %35 = arith.mulf %30, %34 : vector<8x32xf32>
    %36 = vector.broadcast %16 : vector<1x32xf32> to vector<8x32xf32>
    %37 = arith.mulf %35, %36 : vector<8x32xf32>
    %38 = vector.broadcast %17 : vector<1x32xf32> to vector<8x32xf32>
    %39 = arith.addf %37, %38 : vector<8x32xf32>
    %c0_13 = arith.constant 0 : index
    %c0_14 = arith.constant 0 : index
    %40 = vector.load %arg4[%c0_13, %c0_14] : memref<1x32xf32, #tpu.memory_space<vmem>>, vector<1x32xf32>
    %c0_15 = arith.constant 0 : index
    %c0_16 = arith.constant 0 : index
    %41 = vector.load %arg5[%c0_15, %c0_16] : memref<1x32xf32, #tpu.memory_space<vmem>>, vector<1x32xf32>
    %cst_17 = arith.constant dense<0.000000e+00> : vector<16xf32>
    %42 = vector.multi_reduction <add>, %1, %cst_17 [1] : vector<16x32xf32> to vector<16xf32>
    %43 = vector.shape_cast %42 : vector<16xf32> to vector<16x1xf32>
    %cst_18 = arith.constant 3.200000e+01 : f32
    %44 = vector.broadcast %cst_18 : f32 to vector<16x1xf32>
    %45 = arith.divf %43, %44 : vector<16x1xf32>
    %46 = vector.broadcast %45 : vector<16x1xf32> to vector<16x32xf32>
    %47 = arith.subf %1, %46 : vector<16x32xf32>
    %48 = arith.mulf %47, %47 : vector<16x32xf32>
    %cst_19 = arith.constant dense<0.000000e+00> : vector<16xf32>
    %49 = vector.multi_reduction <add>, %48, %cst_19 [1] : vector<16x32xf32> to vector<16xf32>
    %50 = vector.shape_cast %49 : vector<16xf32> to vector<16x1xf32>
    %cst_20 = arith.constant 3.200000e+01 : f32
    %51 = vector.broadcast %cst_20 : f32 to vector<16x1xf32>
    %52 = arith.divf %50, %51 : vector<16x1xf32>
    %53 = vector.broadcast %45 : vector<16x1xf32> to vector<16x32xf32>
    %54 = arith.subf %1, %53 : vector<16x32xf32>
    %cst_21 = arith.constant 9.99999974E-6 : f32
    %55 = vector.broadcast %cst_21 : f32 to vector<16x1xf32>
    %56 = arith.addf %52, %55 : vector<16x1xf32>
    %57 = math.rsqrt %56 : vector<16x1xf32>
    %58 = vector.broadcast %57 : vector<16x1xf32> to vector<16x32xf32>
    %59 = arith.mulf %54, %58 : vector<16x32xf32>
    %60 = vector.broadcast %40 : vector<1x32xf32> to vector<16x32xf32>
    %61 = arith.mulf %59, %60 : vector<16x32xf32>
    %62 = vector.broadcast %41 : vector<1x32xf32> to vector<16x32xf32>
    %63 = arith.addf %61, %62 : vector<16x32xf32>
    %c0_22 = arith.constant 0 : index
    %c0_23 = arith.constant 0 : index
    %64 = vector.load %arg6[%c0_22, %c0_23] : memref<32x64xbf16, #tpu.memory_space<vmem>>, vector<32x64xbf16>
    %65 = arith.truncf %63 : vector<16x32xf32> to vector<16x32xbf16>
    %cst_24 = arith.constant dense<0.000000e+00> : vector<16x64xf32>
    %66 = tpu.matmul %65, %64, %cst_24 {dimension_numbers = #tpu.dot_dimension_numbers<[1], [0], [0], [1], [0, 0, 1, 1], [], []>} : vector<16x32xbf16>, vector<32x64xbf16>, vector<16x64xf32> -> vector<16x64xf32>
    %c0_25 = arith.constant 0 : index
    %c0_26 = arith.constant 0 : index
    %67 = vector.load %arg7[%c0_25, %c0_26] : memref<32x128xbf16, #tpu.memory_space<vmem>>, vector<32x128xbf16>
    %68 = arith.truncf %39 : vector<8x32xf32> to vector<8x32xbf16>
    %cst_27 = arith.constant dense<0.000000e+00> : vector<8x128xf32>
    %69 = tpu.matmul %68, %67, %cst_27 {dimension_numbers = #tpu.dot_dimension_numbers<[1], [0], [0], [1], [0, 0, 1, 1], [], []>} : vector<8x32xbf16>, vector<32x128xbf16>, vector<8x128xf32> -> vector<8x128xf32>
    %c0_28 = arith.constant 0 : index
    %c0_29 = arith.constant 0 : index
    %70 = vector.load %arg7[%c0_28, %c0_29] : memref<32x128xbf16, #tpu.memory_space<vmem>>, vector<32x128xbf16>
    %71 = arith.truncf %63 : vector<16x32xf32> to vector<16x32xbf16>
    %cst_30 = arith.constant dense<0.000000e+00> : vector<16x128xf32>
    %72 = tpu.matmul %71, %70, %cst_30 {dimension_numbers = #tpu.dot_dimension_numbers<[1], [0], [0], [1], [0, 0, 1, 1], [], []>} : vector<16x32xbf16>, vector<32x128xbf16>, vector<16x128xf32> -> vector<16x128xf32>
    %73 = tpu.concatenate %69, %72 in 0 : vector<8x128xf32>, vector<16x128xf32> -> vector<24x128xf32>
    %74 = vector.extract_strided_slice %73 {offsets = [0, 0], sizes = [24, 64], strides = [1, 1]} : vector<24x128xf32> to vector<24x64xf32>
    %75 = vector.extract_strided_slice %73 {offsets = [0, 64], sizes = [24, 64], strides = [1, 1]} : vector<24x128xf32> to vector<24x64xf32>
    %76 = vector.extract_strided_slice %66 {offsets = [0, 0], sizes = [16, 16], strides = [1, 1]} : vector<16x64xf32> to vector<16x16xf32>
    %cst_31 = arith.constant 2.500000e-01 : f32
    %77 = vector.broadcast %cst_31 : f32 to vector<16x16xf32>
    %78 = arith.mulf %76, %77 : vector<16x16xf32>
    %79 = vector.extract_strided_slice %74 {offsets = [0, 0], sizes = [24, 16], strides = [1, 1]} : vector<24x64xf32> to vector<24x16xf32>
    %80 = vector.extract_strided_slice %75 {offsets = [0, 0], sizes = [24, 16], strides = [1, 1]} : vector<24x64xf32> to vector<24x16xf32>
    %cst_32 = arith.constant dense<0.000000e+00> : vector<16x24xf32>
    %81 = tpu.matmul %78, %79, %cst_32 {dimension_numbers = #tpu.dot_dimension_numbers<[1], [1], [0], [0], [0, 0, 1, 0], [], []>} : vector<16x16xf32>, vector<24x16xf32>, vector<16x24xf32> -> vector<16x24xf32>
    %cst_33 = arith.constant -3.40282347E+38 : f32
    %82 = vector.broadcast %cst_33 : f32 to vector<16x24xf32>
    %83 = arith.select %15, %81, %82 : vector<16x24xi1>, vector<16x24xf32>
    %cst_34 = arith.constant dense<0xFF800000> : vector<16xf32>
    %84 = vector.multi_reduction <maximumf>, %83, %cst_34 [1] : vector<16x24xf32> to vector<16xf32>
    %85 = vector.shape_cast %84 : vector<16xf32> to vector<16x1xf32>
    %86 = vector.broadcast %85 : vector<16x1xf32> to vector<16x24xf32>
    %87 = arith.subf %83, %86 : vector<16x24xf32>
    %88 = math.exp %87 : vector<16x24xf32>
    %cst_35 = arith.constant dense<0.000000e+00> : vector<16xf32>
    %89 = vector.multi_reduction <add>, %88, %cst_35 [1] : vector<16x24xf32> to vector<16xf32>
    %90 = vector.shape_cast %89 : vector<16xf32> to vector<16x1xf32>
    %91 = tpu.reciprocal %90 {approx = true} : vector<16x1xf32> -> vector<16x1xf32>
    %92 = vector.broadcast %91 : vector<16x1xf32> to vector<16x24xf32>
    %93 = arith.mulf %88, %92 : vector<16x24xf32>
    %cst_36 = arith.constant dense<0.000000e+00> : vector<16x16xf32>
    %94 = tpu.matmul %93, %80, %cst_36 {dimension_numbers = #tpu.dot_dimension_numbers<[1], [0], [0], [1], [0, 0, 1, 1], [], []>} : vector<16x24xf32>, vector<24x16xf32>, vector<16x16xf32> -> vector<16x16xf32>
    %95 = vector.extract_strided_slice %66 {offsets = [0, 16], sizes = [16, 16], strides = [1, 1]} : vector<16x64xf32> to vector<16x16xf32>
    %cst_37 = arith.constant 2.500000e-01 : f32
    %96 = vector.broadcast %cst_37 : f32 to vector<16x16xf32>
    %97 = arith.mulf %95, %96 : vector<16x16xf32>
    %98 = vector.extract_strided_slice %74 {offsets = [0, 16], sizes = [24, 16], strides = [1, 1]} : vector<24x64xf32> to vector<24x16xf32>
    %99 = vector.extract_strided_slice %75 {offsets = [0, 16], sizes = [24, 16], strides = [1, 1]} : vector<24x64xf32> to vector<24x16xf32>
    %cst_38 = arith.constant dense<0.000000e+00> : vector<16x24xf32>
    %100 = tpu.matmul %97, %98, %cst_38 {dimension_numbers = #tpu.dot_dimension_numbers<[1], [1], [0], [0], [0, 0, 1, 0], [], []>} : vector<16x16xf32>, vector<24x16xf32>, vector<16x24xf32> -> vector<16x24xf32>
    %cst_39 = arith.constant -3.40282347E+38 : f32
    %101 = vector.broadcast %cst_39 : f32 to vector<16x24xf32>
    %102 = arith.select %15, %100, %101 : vector<16x24xi1>, vector<16x24xf32>
    %cst_40 = arith.constant dense<0xFF800000> : vector<16xf32>
    %103 = vector.multi_reduction <maximumf>, %102, %cst_40 [1] : vector<16x24xf32> to vector<16xf32>
    %104 = vector.shape_cast %103 : vector<16xf32> to vector<16x1xf32>
    %105 = vector.broadcast %104 : vector<16x1xf32> to vector<16x24xf32>
    %106 = arith.subf %102, %105 : vector<16x24xf32>
    %107 = math.exp %106 : vector<16x24xf32>
    %cst_41 = arith.constant dense<0.000000e+00> : vector<16xf32>
    %108 = vector.multi_reduction <add>, %107, %cst_41 [1] : vector<16x24xf32> to vector<16xf32>
    %109 = vector.shape_cast %108 : vector<16xf32> to vector<16x1xf32>
    %110 = tpu.reciprocal %109 {approx = true} : vector<16x1xf32> -> vector<16x1xf32>
    %111 = vector.broadcast %110 : vector<16x1xf32> to vector<16x24xf32>
    %112 = arith.mulf %107, %111 : vector<16x24xf32>
    %cst_42 = arith.constant dense<0.000000e+00> : vector<16x16xf32>
    %113 = tpu.matmul %112, %99, %cst_42 {dimension_numbers = #tpu.dot_dimension_numbers<[1], [0], [0], [1], [0, 0, 1, 1], [], []>} : vector<16x24xf32>, vector<24x16xf32>, vector<16x16xf32> -> vector<16x16xf32>
    %114 = vector.extract_strided_slice %66 {offsets = [0, 32], sizes = [16, 16], strides = [1, 1]} : vector<16x64xf32> to vector<16x16xf32>
    %cst_43 = arith.constant 2.500000e-01 : f32
    %115 = vector.broadcast %cst_43 : f32 to vector<16x16xf32>
    %116 = arith.mulf %114, %115 : vector<16x16xf32>
    %117 = vector.extract_strided_slice %74 {offsets = [0, 32], sizes = [24, 16], strides = [1, 1]} : vector<24x64xf32> to vector<24x16xf32>
    %118 = vector.extract_strided_slice %75 {offsets = [0, 32], sizes = [24, 16], strides = [1, 1]} : vector<24x64xf32> to vector<24x16xf32>
    %cst_44 = arith.constant dense<0.000000e+00> : vector<16x24xf32>
    %119 = tpu.matmul %116, %117, %cst_44 {dimension_numbers = #tpu.dot_dimension_numbers<[1], [1], [0], [0], [0, 0, 1, 0], [], []>} : vector<16x16xf32>, vector<24x16xf32>, vector<16x24xf32> -> vector<16x24xf32>
    %cst_45 = arith.constant -3.40282347E+38 : f32
    %120 = vector.broadcast %cst_45 : f32 to vector<16x24xf32>
    %121 = arith.select %15, %119, %120 : vector<16x24xi1>, vector<16x24xf32>
    %cst_46 = arith.constant dense<0xFF800000> : vector<16xf32>
    %122 = vector.multi_reduction <maximumf>, %121, %cst_46 [1] : vector<16x24xf32> to vector<16xf32>
    %123 = vector.shape_cast %122 : vector<16xf32> to vector<16x1xf32>
    %124 = vector.broadcast %123 : vector<16x1xf32> to vector<16x24xf32>
    %125 = arith.subf %121, %124 : vector<16x24xf32>
    %126 = math.exp %125 : vector<16x24xf32>
    %cst_47 = arith.constant dense<0.000000e+00> : vector<16xf32>
    %127 = vector.multi_reduction <add>, %126, %cst_47 [1] : vector<16x24xf32> to vector<16xf32>
    %128 = vector.shape_cast %127 : vector<16xf32> to vector<16x1xf32>
    %129 = tpu.reciprocal %128 {approx = true} : vector<16x1xf32> -> vector<16x1xf32>
    %130 = vector.broadcast %129 : vector<16x1xf32> to vector<16x24xf32>
    %131 = arith.mulf %126, %130 : vector<16x24xf32>
    %cst_48 = arith.constant dense<0.000000e+00> : vector<16x16xf32>
    %132 = tpu.matmul %131, %118, %cst_48 {dimension_numbers = #tpu.dot_dimension_numbers<[1], [0], [0], [1], [0, 0, 1, 1], [], []>} : vector<16x24xf32>, vector<24x16xf32>, vector<16x16xf32> -> vector<16x16xf32>
    %133 = vector.extract_strided_slice %66 {offsets = [0, 48], sizes = [16, 16], strides = [1, 1]} : vector<16x64xf32> to vector<16x16xf32>
    %cst_49 = arith.constant 2.500000e-01 : f32
    %134 = vector.broadcast %cst_49 : f32 to vector<16x16xf32>
    %135 = arith.mulf %133, %134 : vector<16x16xf32>
    %136 = vector.extract_strided_slice %74 {offsets = [0, 48], sizes = [24, 16], strides = [1, 1]} : vector<24x64xf32> to vector<24x16xf32>
    %137 = vector.extract_strided_slice %75 {offsets = [0, 48], sizes = [24, 16], strides = [1, 1]} : vector<24x64xf32> to vector<24x16xf32>
    %cst_50 = arith.constant dense<0.000000e+00> : vector<16x24xf32>
    %138 = tpu.matmul %135, %136, %cst_50 {dimension_numbers = #tpu.dot_dimension_numbers<[1], [1], [0], [0], [0, 0, 1, 0], [], []>} : vector<16x16xf32>, vector<24x16xf32>, vector<16x24xf32> -> vector<16x24xf32>
    %cst_51 = arith.constant -3.40282347E+38 : f32
    %139 = vector.broadcast %cst_51 : f32 to vector<16x24xf32>
    %140 = arith.select %15, %138, %139 : vector<16x24xi1>, vector<16x24xf32>
    %cst_52 = arith.constant dense<0xFF800000> : vector<16xf32>
    %141 = vector.multi_reduction <maximumf>, %140, %cst_52 [1] : vector<16x24xf32> to vector<16xf32>
    %142 = vector.shape_cast %141 : vector<16xf32> to vector<16x1xf32>
    %143 = vector.broadcast %142 : vector<16x1xf32> to vector<16x24xf32>
    %144 = arith.subf %140, %143 : vector<16x24xf32>
    %145 = math.exp %144 : vector<16x24xf32>
    %cst_53 = arith.constant dense<0.000000e+00> : vector<16xf32>
    %146 = vector.multi_reduction <add>, %145, %cst_53 [1] : vector<16x24xf32> to vector<16xf32>
    %147 = vector.shape_cast %146 : vector<16xf32> to vector<16x1xf32>
    %148 = tpu.reciprocal %147 {approx = true} : vector<16x1xf32> -> vector<16x1xf32>
    %149 = vector.broadcast %148 : vector<16x1xf32> to vector<16x24xf32>
    %150 = arith.mulf %145, %149 : vector<16x24xf32>
    %cst_54 = arith.constant dense<0.000000e+00> : vector<16x16xf32>
    %151 = tpu.matmul %150, %137, %cst_54 {dimension_numbers = #tpu.dot_dimension_numbers<[1], [0], [0], [1], [0, 0, 1, 1], [], []>} : vector<16x24xf32>, vector<24x16xf32>, vector<16x16xf32> -> vector<16x16xf32>
    %152 = tpu.concatenate %94, %113, %132, %151 in 1 : vector<16x16xf32>, vector<16x16xf32>, vector<16x16xf32>, vector<16x16xf32> -> vector<16x64xf32>
    %c0_55 = arith.constant 0 : index
    %c0_56 = arith.constant 0 : index
    %153 = vector.load %arg8[%c0_55, %c0_56] : memref<64x32xbf16, #tpu.memory_space<vmem>>, vector<64x32xbf16>
    %154 = arith.truncf %152 : vector<16x64xf32> to vector<16x64xbf16>
    %cst_57 = arith.constant dense<0.000000e+00> : vector<16x32xf32>
    %155 = tpu.matmul %154, %153, %cst_57 {dimension_numbers = #tpu.dot_dimension_numbers<[1], [0], [0], [1], [0, 0, 1, 1], [], []>} : vector<16x64xbf16>, vector<64x32xbf16>, vector<16x32xf32> -> vector<16x32xf32>
    %156 = arith.addf %1, %155 : vector<16x32xf32>
    %c0_58 = arith.constant 0 : index
    %c0_59 = arith.constant 0 : index
    %157 = vector.load %arg9[%c0_58, %c0_59] : memref<1x32xf32, #tpu.memory_space<vmem>>, vector<1x32xf32>
    %c0_60 = arith.constant 0 : index
    %c0_61 = arith.constant 0 : index
    %158 = vector.load %arg10[%c0_60, %c0_61] : memref<1x32xf32, #tpu.memory_space<vmem>>, vector<1x32xf32>
    %cst_62 = arith.constant dense<0.000000e+00> : vector<16xf32>
    %159 = vector.multi_reduction <add>, %156, %cst_62 [1] : vector<16x32xf32> to vector<16xf32>
    %160 = vector.shape_cast %159 : vector<16xf32> to vector<16x1xf32>
    %cst_63 = arith.constant 3.200000e+01 : f32
    %161 = vector.broadcast %cst_63 : f32 to vector<16x1xf32>
    %162 = arith.divf %160, %161 : vector<16x1xf32>
    %163 = vector.broadcast %162 : vector<16x1xf32> to vector<16x32xf32>
    %164 = arith.subf %156, %163 : vector<16x32xf32>
    %165 = arith.mulf %164, %164 : vector<16x32xf32>
    %cst_64 = arith.constant dense<0.000000e+00> : vector<16xf32>
    %166 = vector.multi_reduction <add>, %165, %cst_64 [1] : vector<16x32xf32> to vector<16xf32>
    %167 = vector.shape_cast %166 : vector<16xf32> to vector<16x1xf32>
    %cst_65 = arith.constant 3.200000e+01 : f32
    %168 = vector.broadcast %cst_65 : f32 to vector<16x1xf32>
    %169 = arith.divf %167, %168 : vector<16x1xf32>
    %170 = vector.broadcast %162 : vector<16x1xf32> to vector<16x32xf32>
    %171 = arith.subf %156, %170 : vector<16x32xf32>
    %cst_66 = arith.constant 9.99999974E-6 : f32
    %172 = vector.broadcast %cst_66 : f32 to vector<16x1xf32>
    %173 = arith.addf %169, %172 : vector<16x1xf32>
    %174 = math.rsqrt %173 : vector<16x1xf32>
    %175 = vector.broadcast %174 : vector<16x1xf32> to vector<16x32xf32>
    %176 = arith.mulf %171, %175 : vector<16x32xf32>
    %177 = vector.broadcast %157 : vector<1x32xf32> to vector<16x32xf32>
    %178 = arith.mulf %176, %177 : vector<16x32xf32>
    %179 = vector.broadcast %158 : vector<1x32xf32> to vector<16x32xf32>
    %180 = arith.addf %178, %179 : vector<16x32xf32>
    %c0_67 = arith.constant 0 : index
    %c0_68 = arith.constant 0 : index
    %181 = vector.load %arg11[%c0_67, %c0_68] : memref<32x128xbf16, #tpu.memory_space<vmem>>, vector<32x128xbf16>
    %182 = arith.truncf %180 : vector<16x32xf32> to vector<16x32xbf16>
    %cst_69 = arith.constant dense<0.000000e+00> : vector<16x128xf32>
    %183 = tpu.matmul %182, %181, %cst_69 {dimension_numbers = #tpu.dot_dimension_numbers<[1], [0], [0], [1], [0, 0, 1, 1], [], []>} : vector<16x32xbf16>, vector<32x128xbf16>, vector<16x128xf32> -> vector<16x128xf32>
    %cst_70 = arith.constant 5.000000e-01 : f32
    %184 = vector.broadcast %cst_70 : f32 to vector<16x128xf32>
    %185 = arith.mulf %184, %183 : vector<16x128xf32>
    %cst_71 = arith.constant 0.707106769 : f32
    %186 = vector.broadcast %cst_71 : f32 to vector<16x128xf32>
    %187 = arith.mulf %183, %186 : vector<16x128xf32>
    %cst_72 = arith.constant 0.000000e+00 : f32
    %188 = vector.broadcast %cst_72 : f32 to vector<16x128xf32>
    %189 = arith.cmpf olt, %187, %188 : vector<16x128xf32>
    %cst_73 = arith.constant -1.000000e+00 : f32
    %cst_74 = arith.constant 1.000000e+00 : f32
    %190 = vector.broadcast %cst_73 : f32 to vector<16x128xf32>
    %191 = vector.broadcast %cst_74 : f32 to vector<16x128xf32>
    %192 = arith.select %189, %190, %191 : vector<16x128xi1>, vector<16x128xf32>
    %193 = math.absf %187 : vector<16x128xf32>
    %cst_75 = arith.constant 0.327591091 : f32
    %194 = vector.broadcast %cst_75 : f32 to vector<16x128xf32>
    %195 = arith.mulf %194, %193 : vector<16x128xf32>
    %cst_76 = arith.constant 1.000000e+00 : f32
    %196 = vector.broadcast %cst_76 : f32 to vector<16x128xf32>
    %197 = arith.addf %196, %195 : vector<16x128xf32>
    %cst_77 = arith.constant 1.000000e+00 : f32
    %198 = vector.broadcast %cst_77 : f32 to vector<16x128xf32>
    %199 = arith.divf %198, %197 : vector<16x128xf32>
    %cst_78 = arith.constant 1.06140542 : f32
    %200 = vector.broadcast %cst_78 : f32 to vector<16x128xf32>
    %201 = arith.mulf %200, %199 : vector<16x128xf32>
    %cst_79 = arith.constant -1.45315206 : f32
    %202 = vector.broadcast %cst_79 : f32 to vector<16x128xf32>
    %203 = arith.addf %201, %202 : vector<16x128xf32>
    %204 = arith.mulf %203, %199 : vector<16x128xf32>
    %cst_80 = arith.constant 1.42141378 : f32
    %205 = vector.broadcast %cst_80 : f32 to vector<16x128xf32>
    %206 = arith.addf %204, %205 : vector<16x128xf32>
    %207 = arith.mulf %206, %199 : vector<16x128xf32>
    %cst_81 = arith.constant -0.284496725 : f32
    %208 = vector.broadcast %cst_81 : f32 to vector<16x128xf32>
    %209 = arith.addf %207, %208 : vector<16x128xf32>
    %210 = arith.mulf %209, %199 : vector<16x128xf32>
    %cst_82 = arith.constant 0.254829586 : f32
    %211 = vector.broadcast %cst_82 : f32 to vector<16x128xf32>
    %212 = arith.addf %210, %211 : vector<16x128xf32>
    %213 = arith.mulf %212, %199 : vector<16x128xf32>
    %cst_83 = arith.constant 0.000000e+00 : f32
    %214 = vector.broadcast %cst_83 : f32 to vector<16x128xf32>
    %215 = arith.subf %214, %193 : vector<16x128xf32>
    %216 = arith.mulf %215, %193 : vector<16x128xf32>
    %217 = math.exp %216 : vector<16x128xf32>
    %218 = arith.mulf %213, %217 : vector<16x128xf32>
    %cst_84 = arith.constant 1.000000e+00 : f32
    %219 = vector.broadcast %cst_84 : f32 to vector<16x128xf32>
    %220 = arith.subf %219, %218 : vector<16x128xf32>
    %221 = arith.mulf %192, %220 : vector<16x128xf32>
    %cst_85 = arith.constant 1.000000e+00 : f32
    %222 = vector.broadcast %cst_85 : f32 to vector<16x128xf32>
    %223 = arith.addf %222, %221 : vector<16x128xf32>
    %224 = arith.mulf %185, %223 : vector<16x128xf32>
    %c0_86 = arith.constant 0 : index
    %c0_87 = arith.constant 0 : index
    %225 = vector.load %arg12[%c0_86, %c0_87] : memref<128x32xbf16, #tpu.memory_space<vmem>>, vector<128x32xbf16>
    %226 = arith.truncf %224 : vector<16x128xf32> to vector<16x128xbf16>
    %cst_88 = arith.constant dense<0.000000e+00> : vector<16x32xf32>
    %227 = tpu.matmul %226, %225, %cst_88 {dimension_numbers = #tpu.dot_dimension_numbers<[1], [0], [0], [1], [0, 0, 1, 1], [], []>} : vector<16x128xbf16>, vector<128x32xbf16>, vector<16x32xf32> -> vector<16x32xf32>
    %228 = arith.addf %156, %227 : vector<16x32xf32>
    %c0_89 = arith.constant 0 : index
    %c0_90 = arith.constant 0 : index
    %229 = vector.load %arg13[%c0_89, %c0_90] : memref<1x32xf32, #tpu.memory_space<vmem>>, vector<1x32xf32>
    %c0_91 = arith.constant 0 : index
    %c0_92 = arith.constant 0 : index
    %230 = vector.load %arg14[%c0_91, %c0_92] : memref<1x32xf32, #tpu.memory_space<vmem>>, vector<1x32xf32>
    %cst_93 = arith.constant dense<0.000000e+00> : vector<8xf32>
    %231 = vector.multi_reduction <add>, %0, %cst_93 [1] : vector<8x32xf32> to vector<8xf32>
    %232 = vector.shape_cast %231 : vector<8xf32> to vector<8x1xf32>
    %cst_94 = arith.constant 3.200000e+01 : f32
    %233 = vector.broadcast %cst_94 : f32 to vector<8x1xf32>
    %234 = arith.divf %232, %233 : vector<8x1xf32>
    %235 = vector.broadcast %234 : vector<8x1xf32> to vector<8x32xf32>
    %236 = arith.subf %0, %235 : vector<8x32xf32>
    %237 = arith.mulf %236, %236 : vector<8x32xf32>
    %cst_95 = arith.constant dense<0.000000e+00> : vector<8xf32>
    %238 = vector.multi_reduction <add>, %237, %cst_95 [1] : vector<8x32xf32> to vector<8xf32>
    %239 = vector.shape_cast %238 : vector<8xf32> to vector<8x1xf32>
    %cst_96 = arith.constant 3.200000e+01 : f32
    %240 = vector.broadcast %cst_96 : f32 to vector<8x1xf32>
    %241 = arith.divf %239, %240 : vector<8x1xf32>
    %242 = vector.broadcast %234 : vector<8x1xf32> to vector<8x32xf32>
    %243 = arith.subf %0, %242 : vector<8x32xf32>
    %cst_97 = arith.constant 9.99999974E-6 : f32
    %244 = vector.broadcast %cst_97 : f32 to vector<8x1xf32>
    %245 = arith.addf %241, %244 : vector<8x1xf32>
    %246 = math.rsqrt %245 : vector<8x1xf32>
    %247 = vector.broadcast %246 : vector<8x1xf32> to vector<8x32xf32>
    %248 = arith.mulf %243, %247 : vector<8x32xf32>
    %249 = vector.broadcast %229 : vector<1x32xf32> to vector<8x32xf32>
    %250 = arith.mulf %248, %249 : vector<8x32xf32>
    %251 = vector.broadcast %230 : vector<1x32xf32> to vector<8x32xf32>
    %252 = arith.addf %250, %251 : vector<8x32xf32>
    %c0_98 = arith.constant 0 : index
    %c0_99 = arith.constant 0 : index
    %253 = vector.load %arg15[%c0_98, %c0_99] : memref<1x32xf32, #tpu.memory_space<vmem>>, vector<1x32xf32>
    %c0_100 = arith.constant 0 : index
    %c0_101 = arith.constant 0 : index
    %254 = vector.load %arg16[%c0_100, %c0_101] : memref<1x32xf32, #tpu.memory_space<vmem>>, vector<1x32xf32>
    %cst_102 = arith.constant dense<0.000000e+00> : vector<16xf32>
    %255 = vector.multi_reduction <add>, %228, %cst_102 [1] : vector<16x32xf32> to vector<16xf32>
    %256 = vector.shape_cast %255 : vector<16xf32> to vector<16x1xf32>
    %cst_103 = arith.constant 3.200000e+01 : f32
    %257 = vector.broadcast %cst_103 : f32 to vector<16x1xf32>
    %258 = arith.divf %256, %257 : vector<16x1xf32>
    %259 = vector.broadcast %258 : vector<16x1xf32> to vector<16x32xf32>
    %260 = arith.subf %228, %259 : vector<16x32xf32>
    %261 = arith.mulf %260, %260 : vector<16x32xf32>
    %cst_104 = arith.constant dense<0.000000e+00> : vector<16xf32>
    %262 = vector.multi_reduction <add>, %261, %cst_104 [1] : vector<16x32xf32> to vector<16xf32>
    %263 = vector.shape_cast %262 : vector<16xf32> to vector<16x1xf32>
    %cst_105 = arith.constant 3.200000e+01 : f32
    %264 = vector.broadcast %cst_105 : f32 to vector<16x1xf32>
    %265 = arith.divf %263, %264 : vector<16x1xf32>
    %266 = vector.broadcast %258 : vector<16x1xf32> to vector<16x32xf32>
    %267 = arith.subf %228, %266 : vector<16x32xf32>
    %cst_106 = arith.constant 9.99999974E-6 : f32
    %268 = vector.broadcast %cst_106 : f32 to vector<16x1xf32>
    %269 = arith.addf %265, %268 : vector<16x1xf32>
    %270 = math.rsqrt %269 : vector<16x1xf32>
    %271 = vector.broadcast %270 : vector<16x1xf32> to vector<16x32xf32>
    %272 = arith.mulf %267, %271 : vector<16x32xf32>
    %273 = vector.broadcast %253 : vector<1x32xf32> to vector<16x32xf32>
    %274 = arith.mulf %272, %273 : vector<16x32xf32>
    %275 = vector.broadcast %254 : vector<1x32xf32> to vector<16x32xf32>
    %276 = arith.addf %274, %275 : vector<16x32xf32>
    %c0_107 = arith.constant 0 : index
    %c0_108 = arith.constant 0 : index
    %277 = vector.load %arg17[%c0_107, %c0_108] : memref<32x64xbf16, #tpu.memory_space<vmem>>, vector<32x64xbf16>
    %278 = arith.truncf %276 : vector<16x32xf32> to vector<16x32xbf16>
    %cst_109 = arith.constant dense<0.000000e+00> : vector<16x64xf32>
    %279 = tpu.matmul %278, %277, %cst_109 {dimension_numbers = #tpu.dot_dimension_numbers<[1], [0], [0], [1], [0, 0, 1, 1], [], []>} : vector<16x32xbf16>, vector<32x64xbf16>, vector<16x64xf32> -> vector<16x64xf32>
    %c0_110 = arith.constant 0 : index
    %c0_111 = arith.constant 0 : index
    %280 = vector.load %arg18[%c0_110, %c0_111] : memref<32x128xbf16, #tpu.memory_space<vmem>>, vector<32x128xbf16>
    %281 = arith.truncf %252 : vector<8x32xf32> to vector<8x32xbf16>
    %cst_112 = arith.constant dense<0.000000e+00> : vector<8x128xf32>
    %282 = tpu.matmul %281, %280, %cst_112 {dimension_numbers = #tpu.dot_dimension_numbers<[1], [0], [0], [1], [0, 0, 1, 1], [], []>} : vector<8x32xbf16>, vector<32x128xbf16>, vector<8x128xf32> -> vector<8x128xf32>
    %c0_113 = arith.constant 0 : index
    %c0_114 = arith.constant 0 : index
    %283 = vector.load %arg18[%c0_113, %c0_114] : memref<32x128xbf16, #tpu.memory_space<vmem>>, vector<32x128xbf16>
    %284 = arith.truncf %276 : vector<16x32xf32> to vector<16x32xbf16>
    %cst_115 = arith.constant dense<0.000000e+00> : vector<16x128xf32>
    %285 = tpu.matmul %284, %283, %cst_115 {dimension_numbers = #tpu.dot_dimension_numbers<[1], [0], [0], [1], [0, 0, 1, 1], [], []>} : vector<16x32xbf16>, vector<32x128xbf16>, vector<16x128xf32> -> vector<16x128xf32>
    %286 = tpu.concatenate %282, %285 in 0 : vector<8x128xf32>, vector<16x128xf32> -> vector<24x128xf32>
    %287 = vector.extract_strided_slice %286 {offsets = [0, 0], sizes = [24, 64], strides = [1, 1]} : vector<24x128xf32> to vector<24x64xf32>
    %288 = vector.extract_strided_slice %286 {offsets = [0, 64], sizes = [24, 64], strides = [1, 1]} : vector<24x128xf32> to vector<24x64xf32>
    %289 = vector.extract_strided_slice %279 {offsets = [0, 0], sizes = [16, 16], strides = [1, 1]} : vector<16x64xf32> to vector<16x16xf32>
    %cst_116 = arith.constant 2.500000e-01 : f32
    %290 = vector.broadcast %cst_116 : f32 to vector<16x16xf32>
    %291 = arith.mulf %289, %290 : vector<16x16xf32>
    %292 = vector.extract_strided_slice %287 {offsets = [0, 0], sizes = [24, 16], strides = [1, 1]} : vector<24x64xf32> to vector<24x16xf32>
    %293 = vector.extract_strided_slice %288 {offsets = [0, 0], sizes = [24, 16], strides = [1, 1]} : vector<24x64xf32> to vector<24x16xf32>
    %cst_117 = arith.constant dense<0.000000e+00> : vector<16x24xf32>
    %294 = tpu.matmul %291, %292, %cst_117 {dimension_numbers = #tpu.dot_dimension_numbers<[1], [1], [0], [0], [0, 0, 1, 0], [], []>} : vector<16x16xf32>, vector<24x16xf32>, vector<16x24xf32> -> vector<16x24xf32>
    %cst_118 = arith.constant -3.40282347E+38 : f32
    %295 = vector.broadcast %cst_118 : f32 to vector<16x24xf32>
    %296 = arith.select %15, %294, %295 : vector<16x24xi1>, vector<16x24xf32>
    %cst_119 = arith.constant dense<0xFF800000> : vector<16xf32>
    %297 = vector.multi_reduction <maximumf>, %296, %cst_119 [1] : vector<16x24xf32> to vector<16xf32>
    %298 = vector.shape_cast %297 : vector<16xf32> to vector<16x1xf32>
    %299 = vector.broadcast %298 : vector<16x1xf32> to vector<16x24xf32>
    %300 = arith.subf %296, %299 : vector<16x24xf32>
    %301 = math.exp %300 : vector<16x24xf32>
    %cst_120 = arith.constant dense<0.000000e+00> : vector<16xf32>
    %302 = vector.multi_reduction <add>, %301, %cst_120 [1] : vector<16x24xf32> to vector<16xf32>
    %303 = vector.shape_cast %302 : vector<16xf32> to vector<16x1xf32>
    %304 = tpu.reciprocal %303 {approx = true} : vector<16x1xf32> -> vector<16x1xf32>
    %305 = vector.broadcast %304 : vector<16x1xf32> to vector<16x24xf32>
    %306 = arith.mulf %301, %305 : vector<16x24xf32>
    %cst_121 = arith.constant dense<0.000000e+00> : vector<16x16xf32>
    %307 = tpu.matmul %306, %293, %cst_121 {dimension_numbers = #tpu.dot_dimension_numbers<[1], [0], [0], [1], [0, 0, 1, 1], [], []>} : vector<16x24xf32>, vector<24x16xf32>, vector<16x16xf32> -> vector<16x16xf32>
    %308 = vector.extract_strided_slice %279 {offsets = [0, 16], sizes = [16, 16], strides = [1, 1]} : vector<16x64xf32> to vector<16x16xf32>
    %cst_122 = arith.constant 2.500000e-01 : f32
    %309 = vector.broadcast %cst_122 : f32 to vector<16x16xf32>
    %310 = arith.mulf %308, %309 : vector<16x16xf32>
    %311 = vector.extract_strided_slice %287 {offsets = [0, 16], sizes = [24, 16], strides = [1, 1]} : vector<24x64xf32> to vector<24x16xf32>
    %312 = vector.extract_strided_slice %288 {offsets = [0, 16], sizes = [24, 16], strides = [1, 1]} : vector<24x64xf32> to vector<24x16xf32>
    %cst_123 = arith.constant dense<0.000000e+00> : vector<16x24xf32>
    %313 = tpu.matmul %310, %311, %cst_123 {dimension_numbers = #tpu.dot_dimension_numbers<[1], [1], [0], [0], [0, 0, 1, 0], [], []>} : vector<16x16xf32>, vector<24x16xf32>, vector<16x24xf32> -> vector<16x24xf32>
    %cst_124 = arith.constant -3.40282347E+38 : f32
    %314 = vector.broadcast %cst_124 : f32 to vector<16x24xf32>
    %315 = arith.select %15, %313, %314 : vector<16x24xi1>, vector<16x24xf32>
    %cst_125 = arith.constant dense<0xFF800000> : vector<16xf32>
    %316 = vector.multi_reduction <maximumf>, %315, %cst_125 [1] : vector<16x24xf32> to vector<16xf32>
    %317 = vector.shape_cast %316 : vector<16xf32> to vector<16x1xf32>
    %318 = vector.broadcast %317 : vector<16x1xf32> to vector<16x24xf32>
    %319 = arith.subf %315, %318 : vector<16x24xf32>
    %320 = math.exp %319 : vector<16x24xf32>
    %cst_126 = arith.constant dense<0.000000e+00> : vector<16xf32>
    %321 = vector.multi_reduction <add>, %320, %cst_126 [1] : vector<16x24xf32> to vector<16xf32>
    %322 = vector.shape_cast %321 : vector<16xf32> to vector<16x1xf32>
    %323 = tpu.reciprocal %322 {approx = true} : vector<16x1xf32> -> vector<16x1xf32>
    %324 = vector.broadcast %323 : vector<16x1xf32> to vector<16x24xf32>
    %325 = arith.mulf %320, %324 : vector<16x24xf32>
    %cst_127 = arith.constant dense<0.000000e+00> : vector<16x16xf32>
    %326 = tpu.matmul %325, %312, %cst_127 {dimension_numbers = #tpu.dot_dimension_numbers<[1], [0], [0], [1], [0, 0, 1, 1], [], []>} : vector<16x24xf32>, vector<24x16xf32>, vector<16x16xf32> -> vector<16x16xf32>
    %327 = vector.extract_strided_slice %279 {offsets = [0, 32], sizes = [16, 16], strides = [1, 1]} : vector<16x64xf32> to vector<16x16xf32>
    %cst_128 = arith.constant 2.500000e-01 : f32
    %328 = vector.broadcast %cst_128 : f32 to vector<16x16xf32>
    %329 = arith.mulf %327, %328 : vector<16x16xf32>
    %330 = vector.extract_strided_slice %287 {offsets = [0, 32], sizes = [24, 16], strides = [1, 1]} : vector<24x64xf32> to vector<24x16xf32>
    %331 = vector.extract_strided_slice %288 {offsets = [0, 32], sizes = [24, 16], strides = [1, 1]} : vector<24x64xf32> to vector<24x16xf32>
    %cst_129 = arith.constant dense<0.000000e+00> : vector<16x24xf32>
    %332 = tpu.matmul %329, %330, %cst_129 {dimension_numbers = #tpu.dot_dimension_numbers<[1], [1], [0], [0], [0, 0, 1, 0], [], []>} : vector<16x16xf32>, vector<24x16xf32>, vector<16x24xf32> -> vector<16x24xf32>
    %cst_130 = arith.constant -3.40282347E+38 : f32
    %333 = vector.broadcast %cst_130 : f32 to vector<16x24xf32>
    %334 = arith.select %15, %332, %333 : vector<16x24xi1>, vector<16x24xf32>
    %cst_131 = arith.constant dense<0xFF800000> : vector<16xf32>
    %335 = vector.multi_reduction <maximumf>, %334, %cst_131 [1] : vector<16x24xf32> to vector<16xf32>
    %336 = vector.shape_cast %335 : vector<16xf32> to vector<16x1xf32>
    %337 = vector.broadcast %336 : vector<16x1xf32> to vector<16x24xf32>
    %338 = arith.subf %334, %337 : vector<16x24xf32>
    %339 = math.exp %338 : vector<16x24xf32>
    %cst_132 = arith.constant dense<0.000000e+00> : vector<16xf32>
    %340 = vector.multi_reduction <add>, %339, %cst_132 [1] : vector<16x24xf32> to vector<16xf32>
    %341 = vector.shape_cast %340 : vector<16xf32> to vector<16x1xf32>
    %342 = tpu.reciprocal %341 {approx = true} : vector<16x1xf32> -> vector<16x1xf32>
    %343 = vector.broadcast %342 : vector<16x1xf32> to vector<16x24xf32>
    %344 = arith.mulf %339, %343 : vector<16x24xf32>
    %cst_133 = arith.constant dense<0.000000e+00> : vector<16x16xf32>
    %345 = tpu.matmul %344, %331, %cst_133 {dimension_numbers = #tpu.dot_dimension_numbers<[1], [0], [0], [1], [0, 0, 1, 1], [], []>} : vector<16x24xf32>, vector<24x16xf32>, vector<16x16xf32> -> vector<16x16xf32>
    %346 = vector.extract_strided_slice %279 {offsets = [0, 48], sizes = [16, 16], strides = [1, 1]} : vector<16x64xf32> to vector<16x16xf32>
    %cst_134 = arith.constant 2.500000e-01 : f32
    %347 = vector.broadcast %cst_134 : f32 to vector<16x16xf32>
    %348 = arith.mulf %346, %347 : vector<16x16xf32>
    %349 = vector.extract_strided_slice %287 {offsets = [0, 48], sizes = [24, 16], strides = [1, 1]} : vector<24x64xf32> to vector<24x16xf32>
    %350 = vector.extract_strided_slice %288 {offsets = [0, 48], sizes = [24, 16], strides = [1, 1]} : vector<24x64xf32> to vector<24x16xf32>
    %cst_135 = arith.constant dense<0.000000e+00> : vector<16x24xf32>
    %351 = tpu.matmul %348, %349, %cst_135 {dimension_numbers = #tpu.dot_dimension_numbers<[1], [1], [0], [0], [0, 0, 1, 0], [], []>} : vector<16x16xf32>, vector<24x16xf32>, vector<16x24xf32> -> vector<16x24xf32>
    %cst_136 = arith.constant -3.40282347E+38 : f32
    %352 = vector.broadcast %cst_136 : f32 to vector<16x24xf32>
    %353 = arith.select %15, %351, %352 : vector<16x24xi1>, vector<16x24xf32>
    %cst_137 = arith.constant dense<0xFF800000> : vector<16xf32>
    %354 = vector.multi_reduction <maximumf>, %353, %cst_137 [1] : vector<16x24xf32> to vector<16xf32>
    %355 = vector.shape_cast %354 : vector<16xf32> to vector<16x1xf32>
    %356 = vector.broadcast %355 : vector<16x1xf32> to vector<16x24xf32>
    %357 = arith.subf %353, %356 : vector<16x24xf32>
    %358 = math.exp %357 : vector<16x24xf32>
    %cst_138 = arith.constant dense<0.000000e+00> : vector<16xf32>
    %359 = vector.multi_reduction <add>, %358, %cst_138 [1] : vector<16x24xf32> to vector<16xf32>
    %360 = vector.shape_cast %359 : vector<16xf32> to vector<16x1xf32>
    %361 = tpu.reciprocal %360 {approx = true} : vector<16x1xf32> -> vector<16x1xf32>
    %362 = vector.broadcast %361 : vector<16x1xf32> to vector<16x24xf32>
    %363 = arith.mulf %358, %362 : vector<16x24xf32>
    %cst_139 = arith.constant dense<0.000000e+00> : vector<16x16xf32>
    %364 = tpu.matmul %363, %350, %cst_139 {dimension_numbers = #tpu.dot_dimension_numbers<[1], [0], [0], [1], [0, 0, 1, 1], [], []>} : vector<16x24xf32>, vector<24x16xf32>, vector<16x16xf32> -> vector<16x16xf32>
    %365 = tpu.concatenate %307, %326, %345, %364 in 1 : vector<16x16xf32>, vector<16x16xf32>, vector<16x16xf32>, vector<16x16xf32> -> vector<16x64xf32>
    %c0_140 = arith.constant 0 : index
    %c0_141 = arith.constant 0 : index
    %366 = vector.load %arg19[%c0_140, %c0_141] : memref<64x32xbf16, #tpu.memory_space<vmem>>, vector<64x32xbf16>
    %367 = arith.truncf %365 : vector<16x64xf32> to vector<16x64xbf16>
    %cst_142 = arith.constant dense<0.000000e+00> : vector<16x32xf32>
    %368 = tpu.matmul %367, %366, %cst_142 {dimension_numbers = #tpu.dot_dimension_numbers<[1], [0], [0], [1], [0, 0, 1, 1], [], []>} : vector<16x64xbf16>, vector<64x32xbf16>, vector<16x32xf32> -> vector<16x32xf32>
    %369 = arith.addf %228, %368 : vector<16x32xf32>
    %c0_143 = arith.constant 0 : index
    %c0_144 = arith.constant 0 : index
    %370 = vector.load %arg20[%c0_143, %c0_144] : memref<1x32xf32, #tpu.memory_space<vmem>>, vector<1x32xf32>
    %c0_145 = arith.constant 0 : index
    %c0_146 = arith.constant 0 : index
    %371 = vector.load %arg21[%c0_145, %c0_146] : memref<1x32xf32, #tpu.memory_space<vmem>>, vector<1x32xf32>
    %cst_147 = arith.constant dense<0.000000e+00> : vector<16xf32>
    %372 = vector.multi_reduction <add>, %369, %cst_147 [1] : vector<16x32xf32> to vector<16xf32>
    %373 = vector.shape_cast %372 : vector<16xf32> to vector<16x1xf32>
    %cst_148 = arith.constant 3.200000e+01 : f32
    %374 = vector.broadcast %cst_148 : f32 to vector<16x1xf32>
    %375 = arith.divf %373, %374 : vector<16x1xf32>
    %376 = vector.broadcast %375 : vector<16x1xf32> to vector<16x32xf32>
    %377 = arith.subf %369, %376 : vector<16x32xf32>
    %378 = arith.mulf %377, %377 : vector<16x32xf32>
    %cst_149 = arith.constant dense<0.000000e+00> : vector<16xf32>
    %379 = vector.multi_reduction <add>, %378, %cst_149 [1] : vector<16x32xf32> to vector<16xf32>
    %380 = vector.shape_cast %379 : vector<16xf32> to vector<16x1xf32>
    %cst_150 = arith.constant 3.200000e+01 : f32
    %381 = vector.broadcast %cst_150 : f32 to vector<16x1xf32>
    %382 = arith.divf %380, %381 : vector<16x1xf32>
    %383 = vector.broadcast %375 : vector<16x1xf32> to vector<16x32xf32>
    %384 = arith.subf %369, %383 : vector<16x32xf32>
    %cst_151 = arith.constant 9.99999974E-6 : f32
    %385 = vector.broadcast %cst_151 : f32 to vector<16x1xf32>
    %386 = arith.addf %382, %385 : vector<16x1xf32>
    %387 = math.rsqrt %386 : vector<16x1xf32>
    %388 = vector.broadcast %387 : vector<16x1xf32> to vector<16x32xf32>
    %389 = arith.mulf %384, %388 : vector<16x32xf32>
    %390 = vector.broadcast %370 : vector<1x32xf32> to vector<16x32xf32>
    %391 = arith.mulf %389, %390 : vector<16x32xf32>
    %392 = vector.broadcast %371 : vector<1x32xf32> to vector<16x32xf32>
    %393 = arith.addf %391, %392 : vector<16x32xf32>
    %c0_152 = arith.constant 0 : index
    %c0_153 = arith.constant 0 : index
    %394 = vector.load %arg22[%c0_152, %c0_153] : memref<32x128xbf16, #tpu.memory_space<vmem>>, vector<32x128xbf16>
    %395 = arith.truncf %393 : vector<16x32xf32> to vector<16x32xbf16>
    %cst_154 = arith.constant dense<0.000000e+00> : vector<16x128xf32>
    %396 = tpu.matmul %395, %394, %cst_154 {dimension_numbers = #tpu.dot_dimension_numbers<[1], [0], [0], [1], [0, 0, 1, 1], [], []>} : vector<16x32xbf16>, vector<32x128xbf16>, vector<16x128xf32> -> vector<16x128xf32>
    %cst_155 = arith.constant 5.000000e-01 : f32
    %397 = vector.broadcast %cst_155 : f32 to vector<16x128xf32>
    %398 = arith.mulf %397, %396 : vector<16x128xf32>
    %cst_156 = arith.constant 0.707106769 : f32
    %399 = vector.broadcast %cst_156 : f32 to vector<16x128xf32>
    %400 = arith.mulf %396, %399 : vector<16x128xf32>
    %cst_157 = arith.constant 0.000000e+00 : f32
    %401 = vector.broadcast %cst_157 : f32 to vector<16x128xf32>
    %402 = arith.cmpf olt, %400, %401 : vector<16x128xf32>
    %cst_158 = arith.constant -1.000000e+00 : f32
    %cst_159 = arith.constant 1.000000e+00 : f32
    %403 = vector.broadcast %cst_158 : f32 to vector<16x128xf32>
    %404 = vector.broadcast %cst_159 : f32 to vector<16x128xf32>
    %405 = arith.select %402, %403, %404 : vector<16x128xi1>, vector<16x128xf32>
    %406 = math.absf %400 : vector<16x128xf32>
    %cst_160 = arith.constant 0.327591091 : f32
    %407 = vector.broadcast %cst_160 : f32 to vector<16x128xf32>
    %408 = arith.mulf %407, %406 : vector<16x128xf32>
    %cst_161 = arith.constant 1.000000e+00 : f32
    %409 = vector.broadcast %cst_161 : f32 to vector<16x128xf32>
    %410 = arith.addf %409, %408 : vector<16x128xf32>
    %cst_162 = arith.constant 1.000000e+00 : f32
    %411 = vector.broadcast %cst_162 : f32 to vector<16x128xf32>
    %412 = arith.divf %411, %410 : vector<16x128xf32>
    %cst_163 = arith.constant 1.06140542 : f32
    %413 = vector.broadcast %cst_163 : f32 to vector<16x128xf32>
    %414 = arith.mulf %413, %412 : vector<16x128xf32>
    %cst_164 = arith.constant -1.45315206 : f32
    %415 = vector.broadcast %cst_164 : f32 to vector<16x128xf32>
    %416 = arith.addf %414, %415 : vector<16x128xf32>
    %417 = arith.mulf %416, %412 : vector<16x128xf32>
    %cst_165 = arith.constant 1.42141378 : f32
    %418 = vector.broadcast %cst_165 : f32 to vector<16x128xf32>
    %419 = arith.addf %417, %418 : vector<16x128xf32>
    %420 = arith.mulf %419, %412 : vector<16x128xf32>
    %cst_166 = arith.constant -0.284496725 : f32
    %421 = vector.broadcast %cst_166 : f32 to vector<16x128xf32>
    %422 = arith.addf %420, %421 : vector<16x128xf32>
    %423 = arith.mulf %422, %412 : vector<16x128xf32>
    %cst_167 = arith.constant 0.254829586 : f32
    %424 = vector.broadcast %cst_167 : f32 to vector<16x128xf32>
    %425 = arith.addf %423, %424 : vector<16x128xf32>
    %426 = arith.mulf %425, %412 : vector<16x128xf32>
    %cst_168 = arith.constant 0.000000e+00 : f32
    %427 = vector.broadcast %cst_168 : f32 to vector<16x128xf32>
    %428 = arith.subf %427, %406 : vector<16x128xf32>
    %429 = arith.mulf %428, %406 : vector<16x128xf32>
    %430 = math.exp %429 : vector<16x128xf32>
    %431 = arith.mulf %426, %430 : vector<16x128xf32>
    %cst_169 = arith.constant 1.000000e+00 : f32
    %432 = vector.broadcast %cst_169 : f32 to vector<16x128xf32>
    %433 = arith.subf %432, %431 : vector<16x128xf32>
    %434 = arith.mulf %405, %433 : vector<16x128xf32>
    %cst_170 = arith.constant 1.000000e+00 : f32
    %435 = vector.broadcast %cst_170 : f32 to vector<16x128xf32>
    %436 = arith.addf %435, %434 : vector<16x128xf32>
    %437 = arith.mulf %398, %436 : vector<16x128xf32>
    %c0_171 = arith.constant 0 : index
    %c0_172 = arith.constant 0 : index
    %438 = vector.load %arg23[%c0_171, %c0_172] : memref<128x32xbf16, #tpu.memory_space<vmem>>, vector<128x32xbf16>
    %439 = arith.truncf %437 : vector<16x128xf32> to vector<16x128xbf16>
    %cst_173 = arith.constant dense<0.000000e+00> : vector<16x32xf32>
    %440 = tpu.matmul %439, %438, %cst_173 {dimension_numbers = #tpu.dot_dimension_numbers<[1], [0], [0], [1], [0, 0, 1, 1], [], []>} : vector<16x128xbf16>, vector<128x32xbf16>, vector<16x32xf32> -> vector<16x32xf32>
    %441 = arith.addf %369, %440 : vector<16x32xf32>
    %c0_174 = arith.constant 0 : index
    %c0_175 = arith.constant 0 : index
    %442 = vector.load %arg24[%c0_174, %c0_175] : memref<1x32xf32, #tpu.memory_space<vmem>>, vector<1x32xf32>
    %c0_176 = arith.constant 0 : index
    %c0_177 = arith.constant 0 : index
    %443 = vector.load %arg25[%c0_176, %c0_177] : memref<1x32xf32, #tpu.memory_space<vmem>>, vector<1x32xf32>
    %cst_178 = arith.constant dense<0.000000e+00> : vector<16xf32>
    %444 = vector.multi_reduction <add>, %441, %cst_178 [1] : vector<16x32xf32> to vector<16xf32>
    %445 = vector.shape_cast %444 : vector<16xf32> to vector<16x1xf32>
    %cst_179 = arith.constant 3.200000e+01 : f32
    %446 = vector.broadcast %cst_179 : f32 to vector<16x1xf32>
    %447 = arith.divf %445, %446 : vector<16x1xf32>
    %448 = vector.broadcast %447 : vector<16x1xf32> to vector<16x32xf32>
    %449 = arith.subf %441, %448 : vector<16x32xf32>
    %450 = arith.mulf %449, %449 : vector<16x32xf32>
    %cst_180 = arith.constant dense<0.000000e+00> : vector<16xf32>
    %451 = vector.multi_reduction <add>, %450, %cst_180 [1] : vector<16x32xf32> to vector<16xf32>
    %452 = vector.shape_cast %451 : vector<16xf32> to vector<16x1xf32>
    %cst_181 = arith.constant 3.200000e+01 : f32
    %453 = vector.broadcast %cst_181 : f32 to vector<16x1xf32>
    %454 = arith.divf %452, %453 : vector<16x1xf32>
    %455 = vector.broadcast %447 : vector<16x1xf32> to vector<16x32xf32>
    %456 = arith.subf %441, %455 : vector<16x32xf32>
    %cst_182 = arith.constant 9.99999974E-6 : f32
    %457 = vector.broadcast %cst_182 : f32 to vector<16x1xf32>
    %458 = arith.addf %454, %457 : vector<16x1xf32>
    %459 = math.rsqrt %458 : vector<16x1xf32>
    %460 = vector.broadcast %459 : vector<16x1xf32> to vector<16x32xf32>
    %461 = arith.mulf %456, %460 : vector<16x32xf32>
    %462 = vector.broadcast %442 : vector<1x32xf32> to vector<16x32xf32>
    %463 = arith.mulf %461, %462 : vector<16x32xf32>
    %464 = vector.broadcast %443 : vector<1x32xf32> to vector<16x32xf32>
    %465 = arith.addf %463, %464 : vector<16x32xf32>
    %c0_183 = arith.constant 0 : index
    %c0_184 = arith.constant 0 : index
    %466 = vector.load %arg26[%c0_183, %c0_184] : memref<16x32xf32, #tpu.memory_space<vmem>>, vector<16x32xf32>
    tpu.vector_store %arg26[%c0_183, %c0_184], %465 {strides = array<i32>} : memref<16x32xf32, #tpu.memory_space<vmem>>, vector<16x32xf32>,
    return
  }
}

module attributes {stable_mosaic.version = 11 : i64} {
  func.func @_vision_kernel(%arg0: memref<8x192xf32, #tpu.memory_space<vmem>>, %arg1: memref<192x32xbf16, #tpu.memory_space<vmem>>, %arg2: memref<8x32xf32, #tpu.memory_space<vmem>>, %arg3: memref<1x32xf32, #tpu.memory_space<vmem>>, %arg4: memref<1x32xf32, #tpu.memory_space<vmem>>, %arg5: memref<32x96xbf16, #tpu.memory_space<vmem>>, %arg6: memref<32x32xbf16, #tpu.memory_space<vmem>>, %arg7: memref<1x32xf32, #tpu.memory_space<vmem>>, %arg8: memref<1x32xf32, #tpu.memory_space<vmem>>, %arg9: memref<32x128xbf16, #tpu.memory_space<vmem>>, %arg10: memref<128x32xbf16, #tpu.memory_space<vmem>>, %arg11: memref<1x32xf32, #tpu.memory_space<vmem>>, %arg12: memref<1x32xf32, #tpu.memory_space<vmem>>, %arg13: memref<8x32xf32, #tpu.memory_space<vmem>>) attributes {dimension_semantics = [], scalar_prefetch = 0 : i64, scratch_operands = 0 : i64, tpu.core_type = #tpu.core_type<tc>} {
    %c0 = arith.constant 0 : index
    %c0_0 = arith.constant 0 : index
    %0 = vector.load %arg0[%c0, %c0_0] : memref<8x192xf32, #tpu.memory_space<vmem>>, vector<8x192xf32>
    %c0_1 = arith.constant 0 : index
    %c0_2 = arith.constant 0 : index
    %1 = vector.load %arg1[%c0_1, %c0_2] : memref<192x32xbf16, #tpu.memory_space<vmem>>, vector<192x32xbf16>
    %2 = arith.truncf %0 : vector<8x192xf32> to vector<8x192xbf16>
    %cst = arith.constant dense<0.000000e+00> : vector<8x32xf32>
    %3 = tpu.matmul %2, %1, %cst {dimension_numbers = #tpu.dot_dimension_numbers<[1], [0], [0], [1], [0, 0, 1, 1], [], []>} : vector<8x192xbf16>, vector<192x32xbf16>, vector<8x32xf32> -> vector<8x32xf32>
    %c0_3 = arith.constant 0 : index
    %c0_4 = arith.constant 0 : index
    %4 = vector.load %arg2[%c0_3, %c0_4] : memref<8x32xf32, #tpu.memory_space<vmem>>, vector<8x32xf32>
    %5 = arith.addf %3, %4 : vector<8x32xf32>
    %c0_5 = arith.constant 0 : index
    %c0_6 = arith.constant 0 : index
    %6 = vector.load %arg3[%c0_5, %c0_6] : memref<1x32xf32, #tpu.memory_space<vmem>>, vector<1x32xf32>
    %c0_7 = arith.constant 0 : index
    %c0_8 = arith.constant 0 : index
    %7 = vector.load %arg4[%c0_7, %c0_8] : memref<1x32xf32, #tpu.memory_space<vmem>>, vector<1x32xf32>
    %cst_9 = arith.constant dense<0.000000e+00> : vector<8xf32>
    %8 = vector.multi_reduction <add>, %5, %cst_9 [1] : vector<8x32xf32> to vector<8xf32>
    %9 = vector.shape_cast %8 : vector<8xf32> to vector<8x1xf32>
    %cst_10 = arith.constant 3.200000e+01 : f32
    %10 = vector.broadcast %cst_10 : f32 to vector<8x1xf32>
    %11 = arith.divf %9, %10 : vector<8x1xf32>
    %12 = vector.broadcast %11 : vector<8x1xf32> to vector<8x32xf32>
    %13 = arith.subf %5, %12 : vector<8x32xf32>
    %14 = arith.mulf %13, %13 : vector<8x32xf32>
    %cst_11 = arith.constant dense<0.000000e+00> : vector<8xf32>
    %15 = vector.multi_reduction <add>, %14, %cst_11 [1] : vector<8x32xf32> to vector<8xf32>
    %16 = vector.shape_cast %15 : vector<8xf32> to vector<8x1xf32>
    %cst_12 = arith.constant 3.200000e+01 : f32
    %17 = vector.broadcast %cst_12 : f32 to vector<8x1xf32>
    %18 = arith.divf %16, %17 : vector<8x1xf32>
    %19 = vector.broadcast %11 : vector<8x1xf32> to vector<8x32xf32>
    %20 = arith.subf %5, %19 : vector<8x32xf32>
    %cst_13 = arith.constant 9.99999974E-6 : f32
    %21 = vector.broadcast %cst_13 : f32 to vector<8x1xf32>
    %22 = arith.addf %18, %21 : vector<8x1xf32>
    %23 = math.rsqrt %22 : vector<8x1xf32>
    %24 = vector.broadcast %23 : vector<8x1xf32> to vector<8x32xf32>
    %25 = arith.mulf %20, %24 : vector<8x32xf32>
    %26 = vector.broadcast %6 : vector<1x32xf32> to vector<8x32xf32>
    %27 = arith.mulf %25, %26 : vector<8x32xf32>
    %28 = vector.broadcast %7 : vector<1x32xf32> to vector<8x32xf32>
    %29 = arith.addf %27, %28 : vector<8x32xf32>
    %c0_14 = arith.constant 0 : index
    %c0_15 = arith.constant 0 : index
    %30 = vector.load %arg5[%c0_14, %c0_15] : memref<32x96xbf16, #tpu.memory_space<vmem>>, vector<32x96xbf16>
    %31 = arith.truncf %29 : vector<8x32xf32> to vector<8x32xbf16>
    %cst_16 = arith.constant dense<0.000000e+00> : vector<8x96xf32>
    %32 = tpu.matmul %31, %30, %cst_16 {dimension_numbers = #tpu.dot_dimension_numbers<[1], [0], [0], [1], [0, 0, 1, 1], [], []>} : vector<8x32xbf16>, vector<32x96xbf16>, vector<8x96xf32> -> vector<8x96xf32>
    %33 = tpu.iota {dimensions = array<i32: 0>} : vector<8x8xi32>
    %34 = tpu.iota {dimensions = array<i32: 1>} : vector<8x8xi32>
    %c2_i32 = arith.constant 2 : i32
    %35 = vector.broadcast %c2_i32 : i32 to vector<8x8xi32>
    %36 = arith.shrsi %33, %35 : vector<8x8xi32>
    %c2_i32_17 = arith.constant 2 : i32
    %37 = vector.broadcast %c2_i32_17 : i32 to vector<8x8xi32>
    %38 = arith.shrsi %34, %37 : vector<8x8xi32>
    %39 = arith.cmpi eq, %36, %38 : vector<8x8xi32>
    %40 = vector.extract_strided_slice %32 {offsets = [0, 0], sizes = [8, 32], strides = [1, 1]} : vector<8x96xf32> to vector<8x32xf32>
    %41 = vector.extract_strided_slice %32 {offsets = [0, 32], sizes = [8, 32], strides = [1, 1]} : vector<8x96xf32> to vector<8x32xf32>
    %42 = vector.extract_strided_slice %32 {offsets = [0, 64], sizes = [8, 32], strides = [1, 1]} : vector<8x96xf32> to vector<8x32xf32>
    %43 = vector.extract_strided_slice %40 {offsets = [0, 0], sizes = [8, 8], strides = [1, 1]} : vector<8x32xf32> to vector<8x8xf32>
    %cst_18 = arith.constant 0.353553385 : f32
    %44 = vector.broadcast %cst_18 : f32 to vector<8x8xf32>
    %45 = arith.mulf %43, %44 : vector<8x8xf32>
    %46 = vector.extract_strided_slice %41 {offsets = [0, 0], sizes = [8, 8], strides = [1, 1]} : vector<8x32xf32> to vector<8x8xf32>
    %47 = vector.extract_strided_slice %42 {offsets = [0, 0], sizes = [8, 8], strides = [1, 1]} : vector<8x32xf32> to vector<8x8xf32>
    %cst_19 = arith.constant dense<0.000000e+00> : vector<8x8xf32>
    %48 = tpu.matmul %45, %46, %cst_19 {dimension_numbers = #tpu.dot_dimension_numbers<[1], [1], [0], [0], [0, 0, 1, 0], [], []>} : vector<8x8xf32>, vector<8x8xf32>, vector<8x8xf32> -> vector<8x8xf32>
    %cst_20 = arith.constant -3.40282347E+38 : f32
    %49 = vector.broadcast %cst_20 : f32 to vector<8x8xf32>
    %50 = arith.select %39, %48, %49 : vector<8x8xi1>, vector<8x8xf32>
    %cst_21 = arith.constant dense<0xFF800000> : vector<8xf32>
    %51 = vector.multi_reduction <maximumf>, %50, %cst_21 [1] : vector<8x8xf32> to vector<8xf32>
    %52 = vector.shape_cast %51 : vector<8xf32> to vector<8x1xf32>
    %53 = vector.broadcast %52 : vector<8x1xf32> to vector<8x8xf32>
    %54 = arith.subf %50, %53 : vector<8x8xf32>
    %55 = math.exp %54 : vector<8x8xf32>
    %cst_22 = arith.constant dense<0.000000e+00> : vector<8xf32>
    %56 = vector.multi_reduction <add>, %55, %cst_22 [1] : vector<8x8xf32> to vector<8xf32>
    %57 = vector.shape_cast %56 : vector<8xf32> to vector<8x1xf32>
    %58 = tpu.reciprocal %57 {approx = true} : vector<8x1xf32> -> vector<8x1xf32>
    %59 = vector.broadcast %58 : vector<8x1xf32> to vector<8x8xf32>
    %60 = arith.mulf %55, %59 : vector<8x8xf32>
    %cst_23 = arith.constant dense<0.000000e+00> : vector<8x8xf32>
    %61 = tpu.matmul %60, %47, %cst_23 {dimension_numbers = #tpu.dot_dimension_numbers<[1], [0], [0], [1], [0, 0, 1, 1], [], []>} : vector<8x8xf32>, vector<8x8xf32>, vector<8x8xf32> -> vector<8x8xf32>
    %62 = vector.extract_strided_slice %40 {offsets = [0, 8], sizes = [8, 8], strides = [1, 1]} : vector<8x32xf32> to vector<8x8xf32>
    %cst_24 = arith.constant 0.353553385 : f32
    %63 = vector.broadcast %cst_24 : f32 to vector<8x8xf32>
    %64 = arith.mulf %62, %63 : vector<8x8xf32>
    %65 = vector.extract_strided_slice %41 {offsets = [0, 8], sizes = [8, 8], strides = [1, 1]} : vector<8x32xf32> to vector<8x8xf32>
    %66 = vector.extract_strided_slice %42 {offsets = [0, 8], sizes = [8, 8], strides = [1, 1]} : vector<8x32xf32> to vector<8x8xf32>
    %cst_25 = arith.constant dense<0.000000e+00> : vector<8x8xf32>
    %67 = tpu.matmul %64, %65, %cst_25 {dimension_numbers = #tpu.dot_dimension_numbers<[1], [1], [0], [0], [0, 0, 1, 0], [], []>} : vector<8x8xf32>, vector<8x8xf32>, vector<8x8xf32> -> vector<8x8xf32>
    %cst_26 = arith.constant -3.40282347E+38 : f32
    %68 = vector.broadcast %cst_26 : f32 to vector<8x8xf32>
    %69 = arith.select %39, %67, %68 : vector<8x8xi1>, vector<8x8xf32>
    %cst_27 = arith.constant dense<0xFF800000> : vector<8xf32>
    %70 = vector.multi_reduction <maximumf>, %69, %cst_27 [1] : vector<8x8xf32> to vector<8xf32>
    %71 = vector.shape_cast %70 : vector<8xf32> to vector<8x1xf32>
    %72 = vector.broadcast %71 : vector<8x1xf32> to vector<8x8xf32>
    %73 = arith.subf %69, %72 : vector<8x8xf32>
    %74 = math.exp %73 : vector<8x8xf32>
    %cst_28 = arith.constant dense<0.000000e+00> : vector<8xf32>
    %75 = vector.multi_reduction <add>, %74, %cst_28 [1] : vector<8x8xf32> to vector<8xf32>
    %76 = vector.shape_cast %75 : vector<8xf32> to vector<8x1xf32>
    %77 = tpu.reciprocal %76 {approx = true} : vector<8x1xf32> -> vector<8x1xf32>
    %78 = vector.broadcast %77 : vector<8x1xf32> to vector<8x8xf32>
    %79 = arith.mulf %74, %78 : vector<8x8xf32>
    %cst_29 = arith.constant dense<0.000000e+00> : vector<8x8xf32>
    %80 = tpu.matmul %79, %66, %cst_29 {dimension_numbers = #tpu.dot_dimension_numbers<[1], [0], [0], [1], [0, 0, 1, 1], [], []>} : vector<8x8xf32>, vector<8x8xf32>, vector<8x8xf32> -> vector<8x8xf32>
    %81 = vector.extract_strided_slice %40 {offsets = [0, 16], sizes = [8, 8], strides = [1, 1]} : vector<8x32xf32> to vector<8x8xf32>
    %cst_30 = arith.constant 0.353553385 : f32
    %82 = vector.broadcast %cst_30 : f32 to vector<8x8xf32>
    %83 = arith.mulf %81, %82 : vector<8x8xf32>
    %84 = vector.extract_strided_slice %41 {offsets = [0, 16], sizes = [8, 8], strides = [1, 1]} : vector<8x32xf32> to vector<8x8xf32>
    %85 = vector.extract_strided_slice %42 {offsets = [0, 16], sizes = [8, 8], strides = [1, 1]} : vector<8x32xf32> to vector<8x8xf32>
    %cst_31 = arith.constant dense<0.000000e+00> : vector<8x8xf32>
    %86 = tpu.matmul %83, %84, %cst_31 {dimension_numbers = #tpu.dot_dimension_numbers<[1], [1], [0], [0], [0, 0, 1, 0], [], []>} : vector<8x8xf32>, vector<8x8xf32>, vector<8x8xf32> -> vector<8x8xf32>
    %cst_32 = arith.constant -3.40282347E+38 : f32
    %87 = vector.broadcast %cst_32 : f32 to vector<8x8xf32>
    %88 = arith.select %39, %86, %87 : vector<8x8xi1>, vector<8x8xf32>
    %cst_33 = arith.constant dense<0xFF800000> : vector<8xf32>
    %89 = vector.multi_reduction <maximumf>, %88, %cst_33 [1] : vector<8x8xf32> to vector<8xf32>
    %90 = vector.shape_cast %89 : vector<8xf32> to vector<8x1xf32>
    %91 = vector.broadcast %90 : vector<8x1xf32> to vector<8x8xf32>
    %92 = arith.subf %88, %91 : vector<8x8xf32>
    %93 = math.exp %92 : vector<8x8xf32>
    %cst_34 = arith.constant dense<0.000000e+00> : vector<8xf32>
    %94 = vector.multi_reduction <add>, %93, %cst_34 [1] : vector<8x8xf32> to vector<8xf32>
    %95 = vector.shape_cast %94 : vector<8xf32> to vector<8x1xf32>
    %96 = tpu.reciprocal %95 {approx = true} : vector<8x1xf32> -> vector<8x1xf32>
    %97 = vector.broadcast %96 : vector<8x1xf32> to vector<8x8xf32>
    %98 = arith.mulf %93, %97 : vector<8x8xf32>
    %cst_35 = arith.constant dense<0.000000e+00> : vector<8x8xf32>
    %99 = tpu.matmul %98, %85, %cst_35 {dimension_numbers = #tpu.dot_dimension_numbers<[1], [0], [0], [1], [0, 0, 1, 1], [], []>} : vector<8x8xf32>, vector<8x8xf32>, vector<8x8xf32> -> vector<8x8xf32>
    %100 = vector.extract_strided_slice %40 {offsets = [0, 24], sizes = [8, 8], strides = [1, 1]} : vector<8x32xf32> to vector<8x8xf32>
    %cst_36 = arith.constant 0.353553385 : f32
    %101 = vector.broadcast %cst_36 : f32 to vector<8x8xf32>
    %102 = arith.mulf %100, %101 : vector<8x8xf32>
    %103 = vector.extract_strided_slice %41 {offsets = [0, 24], sizes = [8, 8], strides = [1, 1]} : vector<8x32xf32> to vector<8x8xf32>
    %104 = vector.extract_strided_slice %42 {offsets = [0, 24], sizes = [8, 8], strides = [1, 1]} : vector<8x32xf32> to vector<8x8xf32>
    %cst_37 = arith.constant dense<0.000000e+00> : vector<8x8xf32>
    %105 = tpu.matmul %102, %103, %cst_37 {dimension_numbers = #tpu.dot_dimension_numbers<[1], [1], [0], [0], [0, 0, 1, 0], [], []>} : vector<8x8xf32>, vector<8x8xf32>, vector<8x8xf32> -> vector<8x8xf32>
    %cst_38 = arith.constant -3.40282347E+38 : f32
    %106 = vector.broadcast %cst_38 : f32 to vector<8x8xf32>
    %107 = arith.select %39, %105, %106 : vector<8x8xi1>, vector<8x8xf32>
    %cst_39 = arith.constant dense<0xFF800000> : vector<8xf32>
    %108 = vector.multi_reduction <maximumf>, %107, %cst_39 [1] : vector<8x8xf32> to vector<8xf32>
    %109 = vector.shape_cast %108 : vector<8xf32> to vector<8x1xf32>
    %110 = vector.broadcast %109 : vector<8x1xf32> to vector<8x8xf32>
    %111 = arith.subf %107, %110 : vector<8x8xf32>
    %112 = math.exp %111 : vector<8x8xf32>
    %cst_40 = arith.constant dense<0.000000e+00> : vector<8xf32>
    %113 = vector.multi_reduction <add>, %112, %cst_40 [1] : vector<8x8xf32> to vector<8xf32>
    %114 = vector.shape_cast %113 : vector<8xf32> to vector<8x1xf32>
    %115 = tpu.reciprocal %114 {approx = true} : vector<8x1xf32> -> vector<8x1xf32>
    %116 = vector.broadcast %115 : vector<8x1xf32> to vector<8x8xf32>
    %117 = arith.mulf %112, %116 : vector<8x8xf32>
    %cst_41 = arith.constant dense<0.000000e+00> : vector<8x8xf32>
    %118 = tpu.matmul %117, %104, %cst_41 {dimension_numbers = #tpu.dot_dimension_numbers<[1], [0], [0], [1], [0, 0, 1, 1], [], []>} : vector<8x8xf32>, vector<8x8xf32>, vector<8x8xf32> -> vector<8x8xf32>
    %119 = tpu.concatenate %61, %80, %99, %118 in 1 : vector<8x8xf32>, vector<8x8xf32>, vector<8x8xf32>, vector<8x8xf32> -> vector<8x32xf32>
    %c0_42 = arith.constant 0 : index
    %c0_43 = arith.constant 0 : index
    %120 = vector.load %arg6[%c0_42, %c0_43] : memref<32x32xbf16, #tpu.memory_space<vmem>>, vector<32x32xbf16>
    %121 = arith.truncf %119 : vector<8x32xf32> to vector<8x32xbf16>
    %cst_44 = arith.constant dense<0.000000e+00> : vector<8x32xf32>
    %122 = tpu.matmul %121, %120, %cst_44 {dimension_numbers = #tpu.dot_dimension_numbers<[1], [0], [0], [1], [0, 0, 1, 1], [], []>} : vector<8x32xbf16>, vector<32x32xbf16>, vector<8x32xf32> -> vector<8x32xf32>
    %123 = arith.addf %5, %122 : vector<8x32xf32>
    %c0_45 = arith.constant 0 : index
    %c0_46 = arith.constant 0 : index
    %124 = vector.load %arg7[%c0_45, %c0_46] : memref<1x32xf32, #tpu.memory_space<vmem>>, vector<1x32xf32>
    %c0_47 = arith.constant 0 : index
    %c0_48 = arith.constant 0 : index
    %125 = vector.load %arg8[%c0_47, %c0_48] : memref<1x32xf32, #tpu.memory_space<vmem>>, vector<1x32xf32>
    %cst_49 = arith.constant dense<0.000000e+00> : vector<8xf32>
    %126 = vector.multi_reduction <add>, %123, %cst_49 [1] : vector<8x32xf32> to vector<8xf32>
    %127 = vector.shape_cast %126 : vector<8xf32> to vector<8x1xf32>
    %cst_50 = arith.constant 3.200000e+01 : f32
    %128 = vector.broadcast %cst_50 : f32 to vector<8x1xf32>
    %129 = arith.divf %127, %128 : vector<8x1xf32>
    %130 = vector.broadcast %129 : vector<8x1xf32> to vector<8x32xf32>
    %131 = arith.subf %123, %130 : vector<8x32xf32>
    %132 = arith.mulf %131, %131 : vector<8x32xf32>
    %cst_51 = arith.constant dense<0.000000e+00> : vector<8xf32>
    %133 = vector.multi_reduction <add>, %132, %cst_51 [1] : vector<8x32xf32> to vector<8xf32>
    %134 = vector.shape_cast %133 : vector<8xf32> to vector<8x1xf32>
    %cst_52 = arith.constant 3.200000e+01 : f32
    %135 = vector.broadcast %cst_52 : f32 to vector<8x1xf32>
    %136 = arith.divf %134, %135 : vector<8x1xf32>
    %137 = vector.broadcast %129 : vector<8x1xf32> to vector<8x32xf32>
    %138 = arith.subf %123, %137 : vector<8x32xf32>
    %cst_53 = arith.constant 9.99999974E-6 : f32
    %139 = vector.broadcast %cst_53 : f32 to vector<8x1xf32>
    %140 = arith.addf %136, %139 : vector<8x1xf32>
    %141 = math.rsqrt %140 : vector<8x1xf32>
    %142 = vector.broadcast %141 : vector<8x1xf32> to vector<8x32xf32>
    %143 = arith.mulf %138, %142 : vector<8x32xf32>
    %144 = vector.broadcast %124 : vector<1x32xf32> to vector<8x32xf32>
    %145 = arith.mulf %143, %144 : vector<8x32xf32>
    %146 = vector.broadcast %125 : vector<1x32xf32> to vector<8x32xf32>
    %147 = arith.addf %145, %146 : vector<8x32xf32>
    %c0_54 = arith.constant 0 : index
    %c0_55 = arith.constant 0 : index
    %148 = vector.load %arg9[%c0_54, %c0_55] : memref<32x128xbf16, #tpu.memory_space<vmem>>, vector<32x128xbf16>
    %149 = arith.truncf %147 : vector<8x32xf32> to vector<8x32xbf16>
    %cst_56 = arith.constant dense<0.000000e+00> : vector<8x128xf32>
    %150 = tpu.matmul %149, %148, %cst_56 {dimension_numbers = #tpu.dot_dimension_numbers<[1], [0], [0], [1], [0, 0, 1, 1], [], []>} : vector<8x32xbf16>, vector<32x128xbf16>, vector<8x128xf32> -> vector<8x128xf32>
    %cst_57 = arith.constant 5.000000e-01 : f32
    %151 = vector.broadcast %cst_57 : f32 to vector<8x128xf32>
    %152 = arith.mulf %151, %150 : vector<8x128xf32>
    %cst_58 = arith.constant 0.707106769 : f32
    %153 = vector.broadcast %cst_58 : f32 to vector<8x128xf32>
    %154 = arith.mulf %150, %153 : vector<8x128xf32>
    %cst_59 = arith.constant 0.000000e+00 : f32
    %155 = vector.broadcast %cst_59 : f32 to vector<8x128xf32>
    %156 = arith.cmpf olt, %154, %155 : vector<8x128xf32>
    %cst_60 = arith.constant -1.000000e+00 : f32
    %cst_61 = arith.constant 1.000000e+00 : f32
    %157 = vector.broadcast %cst_60 : f32 to vector<8x128xf32>
    %158 = vector.broadcast %cst_61 : f32 to vector<8x128xf32>
    %159 = arith.select %156, %157, %158 : vector<8x128xi1>, vector<8x128xf32>
    %160 = math.absf %154 : vector<8x128xf32>
    %cst_62 = arith.constant 0.327591091 : f32
    %161 = vector.broadcast %cst_62 : f32 to vector<8x128xf32>
    %162 = arith.mulf %161, %160 : vector<8x128xf32>
    %cst_63 = arith.constant 1.000000e+00 : f32
    %163 = vector.broadcast %cst_63 : f32 to vector<8x128xf32>
    %164 = arith.addf %163, %162 : vector<8x128xf32>
    %cst_64 = arith.constant 1.000000e+00 : f32
    %165 = vector.broadcast %cst_64 : f32 to vector<8x128xf32>
    %166 = arith.divf %165, %164 : vector<8x128xf32>
    %cst_65 = arith.constant 1.06140542 : f32
    %167 = vector.broadcast %cst_65 : f32 to vector<8x128xf32>
    %168 = arith.mulf %167, %166 : vector<8x128xf32>
    %cst_66 = arith.constant -1.45315206 : f32
    %169 = vector.broadcast %cst_66 : f32 to vector<8x128xf32>
    %170 = arith.addf %168, %169 : vector<8x128xf32>
    %171 = arith.mulf %170, %166 : vector<8x128xf32>
    %cst_67 = arith.constant 1.42141378 : f32
    %172 = vector.broadcast %cst_67 : f32 to vector<8x128xf32>
    %173 = arith.addf %171, %172 : vector<8x128xf32>
    %174 = arith.mulf %173, %166 : vector<8x128xf32>
    %cst_68 = arith.constant -0.284496725 : f32
    %175 = vector.broadcast %cst_68 : f32 to vector<8x128xf32>
    %176 = arith.addf %174, %175 : vector<8x128xf32>
    %177 = arith.mulf %176, %166 : vector<8x128xf32>
    %cst_69 = arith.constant 0.254829586 : f32
    %178 = vector.broadcast %cst_69 : f32 to vector<8x128xf32>
    %179 = arith.addf %177, %178 : vector<8x128xf32>
    %180 = arith.mulf %179, %166 : vector<8x128xf32>
    %cst_70 = arith.constant 0.000000e+00 : f32
    %181 = vector.broadcast %cst_70 : f32 to vector<8x128xf32>
    %182 = arith.subf %181, %160 : vector<8x128xf32>
    %183 = arith.mulf %182, %160 : vector<8x128xf32>
    %184 = math.exp %183 : vector<8x128xf32>
    %185 = arith.mulf %180, %184 : vector<8x128xf32>
    %cst_71 = arith.constant 1.000000e+00 : f32
    %186 = vector.broadcast %cst_71 : f32 to vector<8x128xf32>
    %187 = arith.subf %186, %185 : vector<8x128xf32>
    %188 = arith.mulf %159, %187 : vector<8x128xf32>
    %cst_72 = arith.constant 1.000000e+00 : f32
    %189 = vector.broadcast %cst_72 : f32 to vector<8x128xf32>
    %190 = arith.addf %189, %188 : vector<8x128xf32>
    %191 = arith.mulf %152, %190 : vector<8x128xf32>
    %c0_73 = arith.constant 0 : index
    %c0_74 = arith.constant 0 : index
    %192 = vector.load %arg10[%c0_73, %c0_74] : memref<128x32xbf16, #tpu.memory_space<vmem>>, vector<128x32xbf16>
    %193 = arith.truncf %191 : vector<8x128xf32> to vector<8x128xbf16>
    %cst_75 = arith.constant dense<0.000000e+00> : vector<8x32xf32>
    %194 = tpu.matmul %193, %192, %cst_75 {dimension_numbers = #tpu.dot_dimension_numbers<[1], [0], [0], [1], [0, 0, 1, 1], [], []>} : vector<8x128xbf16>, vector<128x32xbf16>, vector<8x32xf32> -> vector<8x32xf32>
    %195 = arith.addf %123, %194 : vector<8x32xf32>
    %c0_76 = arith.constant 0 : index
    %c0_77 = arith.constant 0 : index
    %196 = vector.load %arg11[%c0_76, %c0_77] : memref<1x32xf32, #tpu.memory_space<vmem>>, vector<1x32xf32>
    %c0_78 = arith.constant 0 : index
    %c0_79 = arith.constant 0 : index
    %197 = vector.load %arg12[%c0_78, %c0_79] : memref<1x32xf32, #tpu.memory_space<vmem>>, vector<1x32xf32>
    %cst_80 = arith.constant dense<0.000000e+00> : vector<8xf32>
    %198 = vector.multi_reduction <add>, %195, %cst_80 [1] : vector<8x32xf32> to vector<8xf32>
    %199 = vector.shape_cast %198 : vector<8xf32> to vector<8x1xf32>
    %cst_81 = arith.constant 3.200000e+01 : f32
    %200 = vector.broadcast %cst_81 : f32 to vector<8x1xf32>
    %201 = arith.divf %199, %200 : vector<8x1xf32>
    %202 = vector.broadcast %201 : vector<8x1xf32> to vector<8x32xf32>
    %203 = arith.subf %195, %202 : vector<8x32xf32>
    %204 = arith.mulf %203, %203 : vector<8x32xf32>
    %cst_82 = arith.constant dense<0.000000e+00> : vector<8xf32>
    %205 = vector.multi_reduction <add>, %204, %cst_82 [1] : vector<8x32xf32> to vector<8xf32>
    %206 = vector.shape_cast %205 : vector<8xf32> to vector<8x1xf32>
    %cst_83 = arith.constant 3.200000e+01 : f32
    %207 = vector.broadcast %cst_83 : f32 to vector<8x1xf32>
    %208 = arith.divf %206, %207 : vector<8x1xf32>
    %209 = vector.broadcast %201 : vector<8x1xf32> to vector<8x32xf32>
    %210 = arith.subf %195, %209 : vector<8x32xf32>
    %cst_84 = arith.constant 9.99999974E-6 : f32
    %211 = vector.broadcast %cst_84 : f32 to vector<8x1xf32>
    %212 = arith.addf %208, %211 : vector<8x1xf32>
    %213 = math.rsqrt %212 : vector<8x1xf32>
    %214 = vector.broadcast %213 : vector<8x1xf32> to vector<8x32xf32>
    %215 = arith.mulf %210, %214 : vector<8x32xf32>
    %216 = vector.broadcast %196 : vector<1x32xf32> to vector<8x32xf32>
    %217 = arith.mulf %215, %216 : vector<8x32xf32>
    %218 = vector.broadcast %197 : vector<1x32xf32> to vector<8x32xf32>
    %219 = arith.addf %217, %218 : vector<8x32xf32>
    %c0_85 = arith.constant 0 : index
    %c0_86 = arith.constant 0 : index
    %220 = vector.load %arg13[%c0_85, %c0_86] : memref<8x32xf32, #tpu.memory_space<vmem>>, vector<8x32xf32>
    tpu.vector_store %arg13[%c0_85, %c0_86], %219 {strides = array<i32>} : memref<8x32xf32, #tpu.memory_space<vmem>>, vector<8x32xf32>,
    return
  }
}

module attributes {stable_mosaic.version = 11 : i64} {
  func.func @_head_kernel(%arg0: memref<16x32xf32, #tpu.memory_space<vmem>>, %arg1: memref<1x32xf32, #tpu.memory_space<vmem>>, %arg2: memref<1x32xf32, #tpu.memory_space<vmem>>, %arg3: memref<32x64xbf16, #tpu.memory_space<vmem>>, %arg4: memref<16x64xf32, #tpu.memory_space<vmem>>) attributes {dimension_semantics = [], scalar_prefetch = 0 : i64, scratch_operands = 0 : i64, tpu.core_type = #tpu.core_type<tc>} {
    %c0 = arith.constant 0 : index
    %c0_0 = arith.constant 0 : index
    %0 = vector.load %arg0[%c0, %c0_0] : memref<16x32xf32, #tpu.memory_space<vmem>>, vector<16x32xf32>
    %c0_1 = arith.constant 0 : index
    %c0_2 = arith.constant 0 : index
    %1 = vector.load %arg1[%c0_1, %c0_2] : memref<1x32xf32, #tpu.memory_space<vmem>>, vector<1x32xf32>
    %c0_3 = arith.constant 0 : index
    %c0_4 = arith.constant 0 : index
    %2 = vector.load %arg2[%c0_3, %c0_4] : memref<1x32xf32, #tpu.memory_space<vmem>>, vector<1x32xf32>
    %cst = arith.constant dense<0.000000e+00> : vector<16xf32>
    %3 = vector.multi_reduction <add>, %0, %cst [1] : vector<16x32xf32> to vector<16xf32>
    %4 = vector.shape_cast %3 : vector<16xf32> to vector<16x1xf32>
    %cst_5 = arith.constant 3.200000e+01 : f32
    %5 = vector.broadcast %cst_5 : f32 to vector<16x1xf32>
    %6 = arith.divf %4, %5 : vector<16x1xf32>
    %7 = vector.broadcast %6 : vector<16x1xf32> to vector<16x32xf32>
    %8 = arith.subf %0, %7 : vector<16x32xf32>
    %9 = arith.mulf %8, %8 : vector<16x32xf32>
    %cst_6 = arith.constant dense<0.000000e+00> : vector<16xf32>
    %10 = vector.multi_reduction <add>, %9, %cst_6 [1] : vector<16x32xf32> to vector<16xf32>
    %11 = vector.shape_cast %10 : vector<16xf32> to vector<16x1xf32>
    %cst_7 = arith.constant 3.200000e+01 : f32
    %12 = vector.broadcast %cst_7 : f32 to vector<16x1xf32>
    %13 = arith.divf %11, %12 : vector<16x1xf32>
    %14 = vector.broadcast %6 : vector<16x1xf32> to vector<16x32xf32>
    %15 = arith.subf %0, %14 : vector<16x32xf32>
    %cst_8 = arith.constant 9.99999974E-6 : f32
    %16 = vector.broadcast %cst_8 : f32 to vector<16x1xf32>
    %17 = arith.addf %13, %16 : vector<16x1xf32>
    %18 = math.rsqrt %17 : vector<16x1xf32>
    %19 = vector.broadcast %18 : vector<16x1xf32> to vector<16x32xf32>
    %20 = arith.mulf %15, %19 : vector<16x32xf32>
    %21 = vector.broadcast %1 : vector<1x32xf32> to vector<16x32xf32>
    %22 = arith.mulf %20, %21 : vector<16x32xf32>
    %23 = vector.broadcast %2 : vector<1x32xf32> to vector<16x32xf32>
    %24 = arith.addf %22, %23 : vector<16x32xf32>
    %c0_9 = arith.constant 0 : index
    %c0_10 = arith.constant 0 : index
    %25 = vector.load %arg3[%c0_9, %c0_10] : memref<32x64xbf16, #tpu.memory_space<vmem>>, vector<32x64xbf16>
    %26 = arith.truncf %24 : vector<16x32xf32> to vector<16x32xbf16>
    %cst_11 = arith.constant dense<0.000000e+00> : vector<16x64xf32>
    %27 = tpu.matmul %26, %25, %cst_11 {dimension_numbers = #tpu.dot_dimension_numbers<[1], [0], [0], [1], [0, 0, 1, 1], [], []>} : vector<16x32xbf16>, vector<32x64xbf16>, vector<16x64xf32> -> vector<16x64xf32>
    %c0_12 = arith.constant 0 : index
    %c0_13 = arith.constant 0 : index
    %28 = vector.load %arg4[%c0_12, %c0_13] : memref<16x64xf32, #tpu.memory_space<vmem>>, vector<16x64xf32>
    tpu.vector_store %arg4[%c0_12, %c0_13], %27 {strides = array<i32>} : memref<16x64xf32, #tpu.memory_space<vmem>>, vector<16x64xf32>,
    return
  }
}

module attributes {stable_mosaic.version = 11 : i64} {
  func.func @_flamingo_layer_kernel(%arg0: memref<16x32xf32, #tpu.memory_space<vmem>>, %arg1: memref<16x32xf32, #tpu.memory_space<vmem>>, %arg2: memref<16x1xi32, #tpu.memory_space<vmem>>, %arg3: memref<1x16xi32, #tpu.memory_space<vmem>>, %arg4: memref<1x32xf32, #tpu.memory_space<vmem>>, %arg5: memref<1x32xf32, #tpu.memory_space<vmem>>, %arg6: memref<32x64xbf16, #tpu.memory_space<vmem>>, %arg7: memref<32x128xbf16, #tpu.memory_space<vmem>>, %arg8: memref<64x32xbf16, #tpu.memory_space<vmem>>, %arg9: memref<1x1xf32, #tpu.memory_space<vmem>>, %arg10: memref<1x32xf32, #tpu.memory_space<vmem>>, %arg11: memref<1x32xf32, #tpu.memory_space<vmem>>, %arg12: memref<32x128xbf16, #tpu.memory_space<vmem>>, %arg13: memref<128x32xbf16, #tpu.memory_space<vmem>>, %arg14: memref<1x1xf32, #tpu.memory_space<vmem>>, %arg15: memref<1x32xf32, #tpu.memory_space<vmem>>, %arg16: memref<1x32xf32, #tpu.memory_space<vmem>>, %arg17: memref<32x96xbf16, #tpu.memory_space<vmem>>, %arg18: memref<32x32xbf16, #tpu.memory_space<vmem>>, %arg19: memref<1x32xf32, #tpu.memory_space<vmem>>, %arg20: memref<1x32xf32, #tpu.memory_space<vmem>>, %arg21: memref<32x128xbf16, #tpu.memory_space<vmem>>, %arg22: memref<128x32xbf16, #tpu.memory_space<vmem>>, %arg23: memref<16x32xf32, #tpu.memory_space<vmem>>) attributes {dimension_semantics = [], scalar_prefetch = 0 : i64, scratch_operands = 0 : i64, tpu.core_type = #tpu.core_type<tc>} {
    %c0 = arith.constant 0 : index
    %c0_0 = arith.constant 0 : index
    %0 = vector.load %arg0[%c0, %c0_0] : memref<16x32xf32, #tpu.memory_space<vmem>>, vector<16x32xf32>
    %c0_1 = arith.constant 0 : index
    %c0_2 = arith.constant 0 : index
    %1 = vector.load %arg1[%c0_1, %c0_2] : memref<16x32xf32, #tpu.memory_space<vmem>>, vector<16x32xf32>
    %c0_3 = arith.constant 0 : index
    %c0_4 = arith.constant 0 : index
    %2 = vector.load %arg2[%c0_3, %c0_4] : memref<16x1xi32, #tpu.memory_space<vmem>>, vector<16x1xi32>
    %c0_5 = arith.constant 0 : index
    %c0_6 = arith.constant 0 : index
    %3 = vector.load %arg4[%c0_5, %c0_6] : memref<1x32xf32, #tpu.memory_space<vmem>>, vector<1x32xf32>
    %c0_7 = arith.constant 0 : index
    %c0_8 = arith.constant 0 : index
    %4 = vector.load %arg5[%c0_7, %c0_8] : memref<1x32xf32, #tpu.memory_space<vmem>>, vector<1x32xf32>
    %c0_9 = arith.constant 0 : index
    %c0_10 = arith.constant 0 : index
    %5 = vector.load %arg6[%c0_9, %c0_10] : memref<32x64xbf16, #tpu.memory_space<vmem>>, vector<32x64xbf16>
    %c0_11 = arith.constant 0 : index
    %c0_12 = arith.constant 0 : index
    %6 = vector.load %arg7[%c0_11, %c0_12] : memref<32x128xbf16, #tpu.memory_space<vmem>>, vector<32x128xbf16>
    %c0_13 = arith.constant 0 : index
    %c0_14 = arith.constant 0 : index
    %7 = vector.load %arg8[%c0_13, %c0_14] : memref<64x32xbf16, #tpu.memory_space<vmem>>, vector<64x32xbf16>
    %c0_15 = arith.constant 0 : index
    %c0_16 = arith.constant 0 : index
    %8 = vector.load %arg9[%c0_15, %c0_16] : memref<1x1xf32, #tpu.memory_space<vmem>>, vector<1x1xf32>
    %c0_17 = arith.constant 0 : index
    %c0_18 = arith.constant 0 : index
    %9 = vector.load %arg10[%c0_17, %c0_18] : memref<1x32xf32, #tpu.memory_space<vmem>>, vector<1x32xf32>
    %c0_19 = arith.constant 0 : index
    %c0_20 = arith.constant 0 : index
    %10 = vector.load %arg11[%c0_19, %c0_20] : memref<1x32xf32, #tpu.memory_space<vmem>>, vector<1x32xf32>
    %c0_21 = arith.constant 0 : index
    %c0_22 = arith.constant 0 : index
    %11 = vector.load %arg12[%c0_21, %c0_22] : memref<32x128xbf16, #tpu.memory_space<vmem>>, vector<32x128xbf16>
    %c0_23 = arith.constant 0 : index
    %c0_24 = arith.constant 0 : index
    %12 = vector.load %arg13[%c0_23, %c0_24] : memref<128x32xbf16, #tpu.memory_space<vmem>>, vector<128x32xbf16>
    %c0_25 = arith.constant 0 : index
    %c0_26 = arith.constant 0 : index
    %13 = vector.load %arg14[%c0_25, %c0_26] : memref<1x1xf32, #tpu.memory_space<vmem>>, vector<1x1xf32>
    %cst = arith.constant dense<0.000000e+00> : vector<16xf32>
    %14 = vector.multi_reduction <add>, %0, %cst [1] : vector<16x32xf32> to vector<16xf32>
    %15 = vector.shape_cast %14 : vector<16xf32> to vector<16x1xf32>
    %cst_27 = arith.constant 3.200000e+01 : f32
    %16 = vector.broadcast %cst_27 : f32 to vector<16x1xf32>
    %17 = arith.divf %15, %16 : vector<16x1xf32>
    %18 = vector.broadcast %17 : vector<16x1xf32> to vector<16x32xf32>
    %19 = arith.subf %0, %18 : vector<16x32xf32>
    %20 = arith.mulf %19, %19 : vector<16x32xf32>
    %cst_28 = arith.constant dense<0.000000e+00> : vector<16xf32>
    %21 = vector.multi_reduction <add>, %20, %cst_28 [1] : vector<16x32xf32> to vector<16xf32>
    %22 = vector.shape_cast %21 : vector<16xf32> to vector<16x1xf32>
    %cst_29 = arith.constant 3.200000e+01 : f32
    %23 = vector.broadcast %cst_29 : f32 to vector<16x1xf32>
    %24 = arith.divf %22, %23 : vector<16x1xf32>
    %25 = vector.broadcast %17 : vector<16x1xf32> to vector<16x32xf32>
    %26 = arith.subf %0, %25 : vector<16x32xf32>
    %cst_30 = arith.constant 9.99999974E-6 : f32
    %27 = vector.broadcast %cst_30 : f32 to vector<16x1xf32>
    %28 = arith.addf %24, %27 : vector<16x1xf32>
    %29 = math.rsqrt %28 : vector<16x1xf32>
    %30 = vector.broadcast %29 : vector<16x1xf32> to vector<16x32xf32>
    %31 = arith.mulf %26, %30 : vector<16x32xf32>
    %32 = vector.broadcast %3 : vector<1x32xf32> to vector<16x32xf32>
    %33 = arith.mulf %31, %32 : vector<16x32xf32>
    %34 = vector.broadcast %4 : vector<1x32xf32> to vector<16x32xf32>
    %35 = arith.addf %33, %34 : vector<16x32xf32>
    %36 = arith.truncf %35 : vector<16x32xf32> to vector<16x32xbf16>
    %cst_31 = arith.constant dense<0.000000e+00> : vector<16x64xf32>
    %37 = tpu.matmul %36, %5, %cst_31 {dimension_numbers = #tpu.dot_dimension_numbers<[1], [0], [0], [1], [0, 0, 1, 1], [], []>} : vector<16x32xbf16>, vector<32x64xbf16>, vector<16x64xf32> -> vector<16x64xf32>
    %38 = arith.truncf %1 : vector<16x32xf32> to vector<16x32xbf16>
    %cst_32 = arith.constant dense<0.000000e+00> : vector<16x128xf32>
    %39 = tpu.matmul %38, %6, %cst_32 {dimension_numbers = #tpu.dot_dimension_numbers<[1], [0], [0], [1], [0, 0, 1, 1], [], []>} : vector<16x32xbf16>, vector<32x128xbf16>, vector<16x128xf32> -> vector<16x128xf32>
    %40 = tpu.iota {dimensions = array<i32: 0>} : vector<16x16xi32>
    %41 = tpu.iota {dimensions = array<i32: 1>} : vector<16x16xi32>
    %c3_i32 = arith.constant 3 : i32
    %42 = vector.broadcast %c3_i32 : i32 to vector<16x16xi32>
    %43 = arith.shrsi %40, %42 : vector<16x16xi32>
    %c3_i32_33 = arith.constant 3 : i32
    %44 = vector.broadcast %c3_i32_33 : i32 to vector<16x16xi32>
    %45 = arith.shrsi %41, %44 : vector<16x16xi32>
    %46 = arith.cmpi eq, %43, %45 : vector<16x16xi32>
    %c7_i32 = arith.constant 7 : i32
    %47 = vector.broadcast %c7_i32 : i32 to vector<16x16xi32>
    %48 = arith.andi %41, %47 : vector<16x16xi32>
    %c3_i32_34 = arith.constant 3 : i32
    %49 = vector.broadcast %c3_i32_34 : i32 to vector<16x16xi32>
    %50 = arith.shrsi %48, %49 : vector<16x16xi32>
    %c1_i32 = arith.constant 1 : i32
    %51 = vector.broadcast %c1_i32 : i32 to vector<16x16xi32>
    %52 = arith.addi %50, %51 : vector<16x16xi32>
    %53 = vector.broadcast %2 : vector<16x1xi32> to vector<16x16xi32>
    %54 = arith.cmpi eq, %53, %52 : vector<16x16xi32>
    %55 = arith.andi %46, %54 : vector<16x16xi1>
    %c0_i32 = arith.constant 0 : i32
    %56 = vector.broadcast %c0_i32 : i32 to vector<16x1xi32>
    %57 = arith.cmpi ne, %2, %56 : vector<16x1xi32>
    %58 = arith.extui %57 : vector<16x1xi1> to vector<16x1xi32>
    %59 = arith.sitofp %58 : vector<16x1xi32> to vector<16x1xf32>
    %60 = vector.extract_strided_slice %39 {offsets = [0, 0], sizes = [16, 64], strides = [1, 1]} : vector<16x128xf32> to vector<16x64xf32>
    %61 = vector.extract_strided_slice %39 {offsets = [0, 64], sizes = [16, 64], strides = [1, 1]} : vector<16x128xf32> to vector<16x64xf32>
    %62 = vector.extract_strided_slice %37 {offsets = [0, 0], sizes = [16, 16], strides = [1, 1]} : vector<16x64xf32> to vector<16x16xf32>
    %cst_35 = arith.constant 2.500000e-01 : f32
    %63 = vector.broadcast %cst_35 : f32 to vector<16x16xf32>
    %64 = arith.mulf %62, %63 : vector<16x16xf32>
    %65 = vector.extract_strided_slice %60 {offsets = [0, 0], sizes = [16, 16], strides = [1, 1]} : vector<16x64xf32> to vector<16x16xf32>
    %66 = vector.extract_strided_slice %61 {offsets = [0, 0], sizes = [16, 16], strides = [1, 1]} : vector<16x64xf32> to vector<16x16xf32>
    %cst_36 = arith.constant dense<0.000000e+00> : vector<16x16xf32>
    %67 = tpu.matmul %64, %65, %cst_36 {dimension_numbers = #tpu.dot_dimension_numbers<[1], [1], [0], [0], [0, 0, 1, 0], [], []>} : vector<16x16xf32>, vector<16x16xf32>, vector<16x16xf32> -> vector<16x16xf32>
    %cst_37 = arith.constant -3.40282347E+38 : f32
    %68 = vector.broadcast %cst_37 : f32 to vector<16x16xf32>
    %69 = arith.select %55, %67, %68 : vector<16x16xi1>, vector<16x16xf32>
    %cst_38 = arith.constant dense<0xFF800000> : vector<16xf32>
    %70 = vector.multi_reduction <maximumf>, %69, %cst_38 [1] : vector<16x16xf32> to vector<16xf32>
    %71 = vector.shape_cast %70 : vector<16xf32> to vector<16x1xf32>
    %72 = vector.broadcast %71 : vector<16x1xf32> to vector<16x16xf32>
    %73 = arith.subf %69, %72 : vector<16x16xf32>
    %74 = math.exp %73 : vector<16x16xf32>
    %cst_39 = arith.constant dense<0.000000e+00> : vector<16xf32>
    %75 = vector.multi_reduction <add>, %74, %cst_39 [1] : vector<16x16xf32> to vector<16xf32>
    %76 = vector.shape_cast %75 : vector<16xf32> to vector<16x1xf32>
    %77 = tpu.reciprocal %76 {approx = true} : vector<16x1xf32> -> vector<16x1xf32>
    %78 = vector.broadcast %77 : vector<16x1xf32> to vector<16x16xf32>
    %79 = arith.mulf %74, %78 : vector<16x16xf32>
    %80 = vector.broadcast %59 : vector<16x1xf32> to vector<16x16xf32>
    %81 = arith.mulf %79, %80 : vector<16x16xf32>
    %cst_40 = arith.constant dense<0.000000e+00> : vector<16x16xf32>
    %82 = tpu.matmul %81, %66, %cst_40 {dimension_numbers = #tpu.dot_dimension_numbers<[1], [0], [0], [1], [0, 0, 1, 1], [], []>} : vector<16x16xf32>, vector<16x16xf32>, vector<16x16xf32> -> vector<16x16xf32>
    %83 = vector.extract_strided_slice %37 {offsets = [0, 16], sizes = [16, 16], strides = [1, 1]} : vector<16x64xf32> to vector<16x16xf32>
    %cst_41 = arith.constant 2.500000e-01 : f32
    %84 = vector.broadcast %cst_41 : f32 to vector<16x16xf32>
    %85 = arith.mulf %83, %84 : vector<16x16xf32>
    %86 = vector.extract_strided_slice %60 {offsets = [0, 16], sizes = [16, 16], strides = [1, 1]} : vector<16x64xf32> to vector<16x16xf32>
    %87 = vector.extract_strided_slice %61 {offsets = [0, 16], sizes = [16, 16], strides = [1, 1]} : vector<16x64xf32> to vector<16x16xf32>
    %cst_42 = arith.constant dense<0.000000e+00> : vector<16x16xf32>
    %88 = tpu.matmul %85, %86, %cst_42 {dimension_numbers = #tpu.dot_dimension_numbers<[1], [1], [0], [0], [0, 0, 1, 0], [], []>} : vector<16x16xf32>, vector<16x16xf32>, vector<16x16xf32> -> vector<16x16xf32>
    %cst_43 = arith.constant -3.40282347E+38 : f32
    %89 = vector.broadcast %cst_43 : f32 to vector<16x16xf32>
    %90 = arith.select %55, %88, %89 : vector<16x16xi1>, vector<16x16xf32>
    %cst_44 = arith.constant dense<0xFF800000> : vector<16xf32>
    %91 = vector.multi_reduction <maximumf>, %90, %cst_44 [1] : vector<16x16xf32> to vector<16xf32>
    %92 = vector.shape_cast %91 : vector<16xf32> to vector<16x1xf32>
    %93 = vector.broadcast %92 : vector<16x1xf32> to vector<16x16xf32>
    %94 = arith.subf %90, %93 : vector<16x16xf32>
    %95 = math.exp %94 : vector<16x16xf32>
    %cst_45 = arith.constant dense<0.000000e+00> : vector<16xf32>
    %96 = vector.multi_reduction <add>, %95, %cst_45 [1] : vector<16x16xf32> to vector<16xf32>
    %97 = vector.shape_cast %96 : vector<16xf32> to vector<16x1xf32>
    %98 = tpu.reciprocal %97 {approx = true} : vector<16x1xf32> -> vector<16x1xf32>
    %99 = vector.broadcast %98 : vector<16x1xf32> to vector<16x16xf32>
    %100 = arith.mulf %95, %99 : vector<16x16xf32>
    %101 = vector.broadcast %59 : vector<16x1xf32> to vector<16x16xf32>
    %102 = arith.mulf %100, %101 : vector<16x16xf32>
    %cst_46 = arith.constant dense<0.000000e+00> : vector<16x16xf32>
    %103 = tpu.matmul %102, %87, %cst_46 {dimension_numbers = #tpu.dot_dimension_numbers<[1], [0], [0], [1], [0, 0, 1, 1], [], []>} : vector<16x16xf32>, vector<16x16xf32>, vector<16x16xf32> -> vector<16x16xf32>
    %104 = vector.extract_strided_slice %37 {offsets = [0, 32], sizes = [16, 16], strides = [1, 1]} : vector<16x64xf32> to vector<16x16xf32>
    %cst_47 = arith.constant 2.500000e-01 : f32
    %105 = vector.broadcast %cst_47 : f32 to vector<16x16xf32>
    %106 = arith.mulf %104, %105 : vector<16x16xf32>
    %107 = vector.extract_strided_slice %60 {offsets = [0, 32], sizes = [16, 16], strides = [1, 1]} : vector<16x64xf32> to vector<16x16xf32>
    %108 = vector.extract_strided_slice %61 {offsets = [0, 32], sizes = [16, 16], strides = [1, 1]} : vector<16x64xf32> to vector<16x16xf32>
    %cst_48 = arith.constant dense<0.000000e+00> : vector<16x16xf32>
    %109 = tpu.matmul %106, %107, %cst_48 {dimension_numbers = #tpu.dot_dimension_numbers<[1], [1], [0], [0], [0, 0, 1, 0], [], []>} : vector<16x16xf32>, vector<16x16xf32>, vector<16x16xf32> -> vector<16x16xf32>
    %cst_49 = arith.constant -3.40282347E+38 : f32
    %110 = vector.broadcast %cst_49 : f32 to vector<16x16xf32>
    %111 = arith.select %55, %109, %110 : vector<16x16xi1>, vector<16x16xf32>
    %cst_50 = arith.constant dense<0xFF800000> : vector<16xf32>
    %112 = vector.multi_reduction <maximumf>, %111, %cst_50 [1] : vector<16x16xf32> to vector<16xf32>
    %113 = vector.shape_cast %112 : vector<16xf32> to vector<16x1xf32>
    %114 = vector.broadcast %113 : vector<16x1xf32> to vector<16x16xf32>
    %115 = arith.subf %111, %114 : vector<16x16xf32>
    %116 = math.exp %115 : vector<16x16xf32>
    %cst_51 = arith.constant dense<0.000000e+00> : vector<16xf32>
    %117 = vector.multi_reduction <add>, %116, %cst_51 [1] : vector<16x16xf32> to vector<16xf32>
    %118 = vector.shape_cast %117 : vector<16xf32> to vector<16x1xf32>
    %119 = tpu.reciprocal %118 {approx = true} : vector<16x1xf32> -> vector<16x1xf32>
    %120 = vector.broadcast %119 : vector<16x1xf32> to vector<16x16xf32>
    %121 = arith.mulf %116, %120 : vector<16x16xf32>
    %122 = vector.broadcast %59 : vector<16x1xf32> to vector<16x16xf32>
    %123 = arith.mulf %121, %122 : vector<16x16xf32>
    %cst_52 = arith.constant dense<0.000000e+00> : vector<16x16xf32>
    %124 = tpu.matmul %123, %108, %cst_52 {dimension_numbers = #tpu.dot_dimension_numbers<[1], [0], [0], [1], [0, 0, 1, 1], [], []>} : vector<16x16xf32>, vector<16x16xf32>, vector<16x16xf32> -> vector<16x16xf32>
    %125 = vector.extract_strided_slice %37 {offsets = [0, 48], sizes = [16, 16], strides = [1, 1]} : vector<16x64xf32> to vector<16x16xf32>
    %cst_53 = arith.constant 2.500000e-01 : f32
    %126 = vector.broadcast %cst_53 : f32 to vector<16x16xf32>
    %127 = arith.mulf %125, %126 : vector<16x16xf32>
    %128 = vector.extract_strided_slice %60 {offsets = [0, 48], sizes = [16, 16], strides = [1, 1]} : vector<16x64xf32> to vector<16x16xf32>
    %129 = vector.extract_strided_slice %61 {offsets = [0, 48], sizes = [16, 16], strides = [1, 1]} : vector<16x64xf32> to vector<16x16xf32>
    %cst_54 = arith.constant dense<0.000000e+00> : vector<16x16xf32>
    %130 = tpu.matmul %127, %128, %cst_54 {dimension_numbers = #tpu.dot_dimension_numbers<[1], [1], [0], [0], [0, 0, 1, 0], [], []>} : vector<16x16xf32>, vector<16x16xf32>, vector<16x16xf32> -> vector<16x16xf32>
    %cst_55 = arith.constant -3.40282347E+38 : f32
    %131 = vector.broadcast %cst_55 : f32 to vector<16x16xf32>
    %132 = arith.select %55, %130, %131 : vector<16x16xi1>, vector<16x16xf32>
    %cst_56 = arith.constant dense<0xFF800000> : vector<16xf32>
    %133 = vector.multi_reduction <maximumf>, %132, %cst_56 [1] : vector<16x16xf32> to vector<16xf32>
    %134 = vector.shape_cast %133 : vector<16xf32> to vector<16x1xf32>
    %135 = vector.broadcast %134 : vector<16x1xf32> to vector<16x16xf32>
    %136 = arith.subf %132, %135 : vector<16x16xf32>
    %137 = math.exp %136 : vector<16x16xf32>
    %cst_57 = arith.constant dense<0.000000e+00> : vector<16xf32>
    %138 = vector.multi_reduction <add>, %137, %cst_57 [1] : vector<16x16xf32> to vector<16xf32>
    %139 = vector.shape_cast %138 : vector<16xf32> to vector<16x1xf32>
    %140 = tpu.reciprocal %139 {approx = true} : vector<16x1xf32> -> vector<16x1xf32>
    %141 = vector.broadcast %140 : vector<16x1xf32> to vector<16x16xf32>
    %142 = arith.mulf %137, %141 : vector<16x16xf32>
    %143 = vector.broadcast %59 : vector<16x1xf32> to vector<16x16xf32>
    %144 = arith.mulf %142, %143 : vector<16x16xf32>
    %cst_58 = arith.constant dense<0.000000e+00> : vector<16x16xf32>
    %145 = tpu.matmul %144, %129, %cst_58 {dimension_numbers = #tpu.dot_dimension_numbers<[1], [0], [0], [1], [0, 0, 1, 1], [], []>} : vector<16x16xf32>, vector<16x16xf32>, vector<16x16xf32> -> vector<16x16xf32>
    %146 = tpu.concatenate %82, %103, %124, %145 in 1 : vector<16x16xf32>, vector<16x16xf32>, vector<16x16xf32>, vector<16x16xf32> -> vector<16x64xf32>
    %147 = arith.truncf %146 : vector<16x64xf32> to vector<16x64xbf16>
    %cst_59 = arith.constant dense<0.000000e+00> : vector<16x32xf32>
    %148 = tpu.matmul %147, %7, %cst_59 {dimension_numbers = #tpu.dot_dimension_numbers<[1], [0], [0], [1], [0, 0, 1, 1], [], []>} : vector<16x64xbf16>, vector<64x32xbf16>, vector<16x32xf32> -> vector<16x32xf32>
    %149 = math.tanh %8 : vector<1x1xf32>
    %150 = vector.broadcast %149 : vector<1x1xf32> to vector<16x32xf32>
    %151 = arith.mulf %148, %150 : vector<16x32xf32>
    %152 = arith.addf %0, %151 : vector<16x32xf32>
    %cst_60 = arith.constant dense<0.000000e+00> : vector<16xf32>
    %153 = vector.multi_reduction <add>, %152, %cst_60 [1] : vector<16x32xf32> to vector<16xf32>
    %154 = vector.shape_cast %153 : vector<16xf32> to vector<16x1xf32>
    %cst_61 = arith.constant 3.200000e+01 : f32
    %155 = vector.broadcast %cst_61 : f32 to vector<16x1xf32>
    %156 = arith.divf %154, %155 : vector<16x1xf32>
    %157 = vector.broadcast %156 : vector<16x1xf32> to vector<16x32xf32>
    %158 = arith.subf %152, %157 : vector<16x32xf32>
    %159 = arith.mulf %158, %158 : vector<16x32xf32>
    %cst_62 = arith.constant dense<0.000000e+00> : vector<16xf32>
    %160 = vector.multi_reduction <add>, %159, %cst_62 [1] : vector<16x32xf32> to vector<16xf32>
    %161 = vector.shape_cast %160 : vector<16xf32> to vector<16x1xf32>
    %cst_63 = arith.constant 3.200000e+01 : f32
    %162 = vector.broadcast %cst_63 : f32 to vector<16x1xf32>
    %163 = arith.divf %161, %162 : vector<16x1xf32>
    %164 = vector.broadcast %156 : vector<16x1xf32> to vector<16x32xf32>
    %165 = arith.subf %152, %164 : vector<16x32xf32>
    %cst_64 = arith.constant 9.99999974E-6 : f32
    %166 = vector.broadcast %cst_64 : f32 to vector<16x1xf32>
    %167 = arith.addf %163, %166 : vector<16x1xf32>
    %168 = math.rsqrt %167 : vector<16x1xf32>
    %169 = vector.broadcast %168 : vector<16x1xf32> to vector<16x32xf32>
    %170 = arith.mulf %165, %169 : vector<16x32xf32>
    %171 = vector.broadcast %9 : vector<1x32xf32> to vector<16x32xf32>
    %172 = arith.mulf %170, %171 : vector<16x32xf32>
    %173 = vector.broadcast %10 : vector<1x32xf32> to vector<16x32xf32>
    %174 = arith.addf %172, %173 : vector<16x32xf32>
    %175 = arith.truncf %174 : vector<16x32xf32> to vector<16x32xbf16>
    %cst_65 = arith.constant dense<0.000000e+00> : vector<16x128xf32>
    %176 = tpu.matmul %175, %11, %cst_65 {dimension_numbers = #tpu.dot_dimension_numbers<[1], [0], [0], [1], [0, 0, 1, 1], [], []>} : vector<16x32xbf16>, vector<32x128xbf16>, vector<16x128xf32> -> vector<16x128xf32>
    %cst_66 = arith.constant 5.000000e-01 : f32
    %177 = vector.broadcast %cst_66 : f32 to vector<16x128xf32>
    %178 = arith.mulf %177, %176 : vector<16x128xf32>
    %cst_67 = arith.constant 0.707106769 : f32
    %179 = vector.broadcast %cst_67 : f32 to vector<16x128xf32>
    %180 = arith.mulf %176, %179 : vector<16x128xf32>
    %cst_68 = arith.constant 0.000000e+00 : f32
    %181 = vector.broadcast %cst_68 : f32 to vector<16x128xf32>
    %182 = arith.cmpf olt, %180, %181 : vector<16x128xf32>
    %cst_69 = arith.constant -1.000000e+00 : f32
    %cst_70 = arith.constant 1.000000e+00 : f32
    %183 = vector.broadcast %cst_69 : f32 to vector<16x128xf32>
    %184 = vector.broadcast %cst_70 : f32 to vector<16x128xf32>
    %185 = arith.select %182, %183, %184 : vector<16x128xi1>, vector<16x128xf32>
    %186 = math.absf %180 : vector<16x128xf32>
    %cst_71 = arith.constant 0.327591091 : f32
    %187 = vector.broadcast %cst_71 : f32 to vector<16x128xf32>
    %188 = arith.mulf %187, %186 : vector<16x128xf32>
    %cst_72 = arith.constant 1.000000e+00 : f32
    %189 = vector.broadcast %cst_72 : f32 to vector<16x128xf32>
    %190 = arith.addf %189, %188 : vector<16x128xf32>
    %cst_73 = arith.constant 1.000000e+00 : f32
    %191 = vector.broadcast %cst_73 : f32 to vector<16x128xf32>
    %192 = arith.divf %191, %190 : vector<16x128xf32>
    %cst_74 = arith.constant 1.06140542 : f32
    %193 = vector.broadcast %cst_74 : f32 to vector<16x128xf32>
    %194 = arith.mulf %193, %192 : vector<16x128xf32>
    %cst_75 = arith.constant -1.45315206 : f32
    %195 = vector.broadcast %cst_75 : f32 to vector<16x128xf32>
    %196 = arith.addf %194, %195 : vector<16x128xf32>
    %197 = arith.mulf %196, %192 : vector<16x128xf32>
    %cst_76 = arith.constant 1.42141378 : f32
    %198 = vector.broadcast %cst_76 : f32 to vector<16x128xf32>
    %199 = arith.addf %197, %198 : vector<16x128xf32>
    %200 = arith.mulf %199, %192 : vector<16x128xf32>
    %cst_77 = arith.constant -0.284496725 : f32
    %201 = vector.broadcast %cst_77 : f32 to vector<16x128xf32>
    %202 = arith.addf %200, %201 : vector<16x128xf32>
    %203 = arith.mulf %202, %192 : vector<16x128xf32>
    %cst_78 = arith.constant 0.254829586 : f32
    %204 = vector.broadcast %cst_78 : f32 to vector<16x128xf32>
    %205 = arith.addf %203, %204 : vector<16x128xf32>
    %206 = arith.mulf %205, %192 : vector<16x128xf32>
    %cst_79 = arith.constant 0.000000e+00 : f32
    %207 = vector.broadcast %cst_79 : f32 to vector<16x128xf32>
    %208 = arith.subf %207, %186 : vector<16x128xf32>
    %209 = arith.mulf %208, %186 : vector<16x128xf32>
    %210 = math.exp %209 : vector<16x128xf32>
    %211 = arith.mulf %206, %210 : vector<16x128xf32>
    %cst_80 = arith.constant 1.000000e+00 : f32
    %212 = vector.broadcast %cst_80 : f32 to vector<16x128xf32>
    %213 = arith.subf %212, %211 : vector<16x128xf32>
    %214 = arith.mulf %185, %213 : vector<16x128xf32>
    %cst_81 = arith.constant 1.000000e+00 : f32
    %215 = vector.broadcast %cst_81 : f32 to vector<16x128xf32>
    %216 = arith.addf %215, %214 : vector<16x128xf32>
    %217 = arith.mulf %178, %216 : vector<16x128xf32>
    %218 = arith.truncf %217 : vector<16x128xf32> to vector<16x128xbf16>
    %cst_82 = arith.constant dense<0.000000e+00> : vector<16x32xf32>
    %219 = tpu.matmul %218, %12, %cst_82 {dimension_numbers = #tpu.dot_dimension_numbers<[1], [0], [0], [1], [0, 0, 1, 1], [], []>} : vector<16x128xbf16>, vector<128x32xbf16>, vector<16x32xf32> -> vector<16x32xf32>
    %220 = math.tanh %13 : vector<1x1xf32>
    %221 = vector.broadcast %220 : vector<1x1xf32> to vector<16x32xf32>
    %222 = arith.mulf %219, %221 : vector<16x32xf32>
    %223 = arith.addf %152, %222 : vector<16x32xf32>
    %c0_83 = arith.constant 0 : index
    %c0_84 = arith.constant 0 : index
    %224 = vector.load %arg3[%c0_83, %c0_84] : memref<1x16xi32, #tpu.memory_space<vmem>>, vector<1x16xi32>
    %c0_85 = arith.constant 0 : index
    %c0_86 = arith.constant 0 : index
    %225 = vector.load %arg15[%c0_85, %c0_86] : memref<1x32xf32, #tpu.memory_space<vmem>>, vector<1x32xf32>
    %c0_87 = arith.constant 0 : index
    %c0_88 = arith.constant 0 : index
    %226 = vector.load %arg16[%c0_87, %c0_88] : memref<1x32xf32, #tpu.memory_space<vmem>>, vector<1x32xf32>
    %c0_89 = arith.constant 0 : index
    %c0_90 = arith.constant 0 : index
    %227 = vector.load %arg17[%c0_89, %c0_90] : memref<32x96xbf16, #tpu.memory_space<vmem>>, vector<32x96xbf16>
    %c0_91 = arith.constant 0 : index
    %c0_92 = arith.constant 0 : index
    %228 = vector.load %arg18[%c0_91, %c0_92] : memref<32x32xbf16, #tpu.memory_space<vmem>>, vector<32x32xbf16>
    %c0_93 = arith.constant 0 : index
    %c0_94 = arith.constant 0 : index
    %229 = vector.load %arg19[%c0_93, %c0_94] : memref<1x32xf32, #tpu.memory_space<vmem>>, vector<1x32xf32>
    %c0_95 = arith.constant 0 : index
    %c0_96 = arith.constant 0 : index
    %230 = vector.load %arg20[%c0_95, %c0_96] : memref<1x32xf32, #tpu.memory_space<vmem>>, vector<1x32xf32>
    %c0_97 = arith.constant 0 : index
    %c0_98 = arith.constant 0 : index
    %231 = vector.load %arg21[%c0_97, %c0_98] : memref<32x128xbf16, #tpu.memory_space<vmem>>, vector<32x128xbf16>
    %c0_99 = arith.constant 0 : index
    %c0_100 = arith.constant 0 : index
    %232 = vector.load %arg22[%c0_99, %c0_100] : memref<128x32xbf16, #tpu.memory_space<vmem>>, vector<128x32xbf16>
    %cst_101 = arith.constant dense<0.000000e+00> : vector<16xf32>
    %233 = vector.multi_reduction <add>, %223, %cst_101 [1] : vector<16x32xf32> to vector<16xf32>
    %234 = vector.shape_cast %233 : vector<16xf32> to vector<16x1xf32>
    %cst_102 = arith.constant 3.200000e+01 : f32
    %235 = vector.broadcast %cst_102 : f32 to vector<16x1xf32>
    %236 = arith.divf %234, %235 : vector<16x1xf32>
    %237 = vector.broadcast %236 : vector<16x1xf32> to vector<16x32xf32>
    %238 = arith.subf %223, %237 : vector<16x32xf32>
    %239 = arith.mulf %238, %238 : vector<16x32xf32>
    %cst_103 = arith.constant dense<0.000000e+00> : vector<16xf32>
    %240 = vector.multi_reduction <add>, %239, %cst_103 [1] : vector<16x32xf32> to vector<16xf32>
    %241 = vector.shape_cast %240 : vector<16xf32> to vector<16x1xf32>
    %cst_104 = arith.constant 3.200000e+01 : f32
    %242 = vector.broadcast %cst_104 : f32 to vector<16x1xf32>
    %243 = arith.divf %241, %242 : vector<16x1xf32>
    %244 = vector.broadcast %236 : vector<16x1xf32> to vector<16x32xf32>
    %245 = arith.subf %223, %244 : vector<16x32xf32>
    %cst_105 = arith.constant 9.99999974E-6 : f32
    %246 = vector.broadcast %cst_105 : f32 to vector<16x1xf32>
    %247 = arith.addf %243, %246 : vector<16x1xf32>
    %248 = math.rsqrt %247 : vector<16x1xf32>
    %249 = vector.broadcast %248 : vector<16x1xf32> to vector<16x32xf32>
    %250 = arith.mulf %245, %249 : vector<16x32xf32>
    %251 = vector.broadcast %225 : vector<1x32xf32> to vector<16x32xf32>
    %252 = arith.mulf %250, %251 : vector<16x32xf32>
    %253 = vector.broadcast %226 : vector<1x32xf32> to vector<16x32xf32>
    %254 = arith.addf %252, %253 : vector<16x32xf32>
    %255 = arith.truncf %254 : vector<16x32xf32> to vector<16x32xbf16>
    %cst_106 = arith.constant dense<0.000000e+00> : vector<16x96xf32>
    %256 = tpu.matmul %255, %227, %cst_106 {dimension_numbers = #tpu.dot_dimension_numbers<[1], [0], [0], [1], [0, 0, 1, 1], [], []>} : vector<16x32xbf16>, vector<32x96xbf16>, vector<16x96xf32> -> vector<16x96xf32>
    %257 = tpu.iota {dimensions = array<i32: 0>} : vector<16x16xi32>
    %258 = tpu.iota {dimensions = array<i32: 1>} : vector<16x16xi32>
    %c3_i32_107 = arith.constant 3 : i32
    %259 = vector.broadcast %c3_i32_107 : i32 to vector<16x16xi32>
    %260 = arith.shrsi %257, %259 : vector<16x16xi32>
    %c3_i32_108 = arith.constant 3 : i32
    %261 = vector.broadcast %c3_i32_108 : i32 to vector<16x16xi32>
    %262 = arith.shrsi %258, %261 : vector<16x16xi32>
    %263 = arith.cmpi eq, %260, %262 : vector<16x16xi32>
    %c7_i32_109 = arith.constant 7 : i32
    %264 = vector.broadcast %c7_i32_109 : i32 to vector<16x16xi32>
    %265 = arith.andi %257, %264 : vector<16x16xi32>
    %c7_i32_110 = arith.constant 7 : i32
    %266 = vector.broadcast %c7_i32_110 : i32 to vector<16x16xi32>
    %267 = arith.andi %258, %266 : vector<16x16xi32>
    %268 = arith.cmpi sge, %265, %267 : vector<16x16xi32>
    %269 = arith.andi %263, %268 : vector<16x16xi1>
    %c0_i32_111 = arith.constant 0 : i32
    %270 = vector.broadcast %c0_i32_111 : i32 to vector<1x16xi32>
    %271 = arith.cmpi sgt, %224, %270 : vector<1x16xi32>
    %272 = vector.broadcast %271 : vector<1x16xi1> to vector<16x16xi1>
    %273 = arith.andi %269, %272 : vector<16x16xi1>
    %274 = vector.extract_strided_slice %256 {offsets = [0, 0], sizes = [16, 32], strides = [1, 1]} : vector<16x96xf32> to vector<16x32xf32>
    %275 = vector.extract_strided_slice %256 {offsets = [0, 32], sizes = [16, 32], strides = [1, 1]} : vector<16x96xf32> to vector<16x32xf32>
    %276 = vector.extract_strided_slice %256 {offsets = [0, 64], sizes = [16, 32], strides = [1, 1]} : vector<16x96xf32> to vector<16x32xf32>
    %277 = vector.extract_strided_slice %274 {offsets = [0, 0], sizes = [16, 8], strides = [1, 1]} : vector<16x32xf32> to vector<16x8xf32>
    %cst_112 = arith.constant 0.353553385 : f32
    %278 = vector.broadcast %cst_112 : f32 to vector<16x8xf32>
    %279 = arith.mulf %277, %278 : vector<16x8xf32>
    %280 = vector.extract_strided_slice %275 {offsets = [0, 0], sizes = [16, 8], strides = [1, 1]} : vector<16x32xf32> to vector<16x8xf32>
    %281 = vector.extract_strided_slice %276 {offsets = [0, 0], sizes = [16, 8], strides = [1, 1]} : vector<16x32xf32> to vector<16x8xf32>
    %cst_113 = arith.constant dense<0.000000e+00> : vector<16x16xf32>
    %282 = tpu.matmul %279, %280, %cst_113 {dimension_numbers = #tpu.dot_dimension_numbers<[1], [1], [0], [0], [0, 0, 1, 0], [], []>} : vector<16x8xf32>, vector<16x8xf32>, vector<16x16xf32> -> vector<16x16xf32>
    %cst_114 = arith.constant -3.40282347E+38 : f32
    %283 = vector.broadcast %cst_114 : f32 to vector<16x16xf32>
    %284 = arith.select %273, %282, %283 : vector<16x16xi1>, vector<16x16xf32>
    %cst_115 = arith.constant dense<0xFF800000> : vector<16xf32>
    %285 = vector.multi_reduction <maximumf>, %284, %cst_115 [1] : vector<16x16xf32> to vector<16xf32>
    %286 = vector.shape_cast %285 : vector<16xf32> to vector<16x1xf32>
    %287 = vector.broadcast %286 : vector<16x1xf32> to vector<16x16xf32>
    %288 = arith.subf %284, %287 : vector<16x16xf32>
    %289 = math.exp %288 : vector<16x16xf32>
    %cst_116 = arith.constant dense<0.000000e+00> : vector<16xf32>
    %290 = vector.multi_reduction <add>, %289, %cst_116 [1] : vector<16x16xf32> to vector<16xf32>
    %291 = vector.shape_cast %290 : vector<16xf32> to vector<16x1xf32>
    %292 = tpu.reciprocal %291 {approx = true} : vector<16x1xf32> -> vector<16x1xf32>
    %293 = vector.broadcast %292 : vector<16x1xf32> to vector<16x16xf32>
    %294 = arith.mulf %289, %293 : vector<16x16xf32>
    %cst_117 = arith.constant dense<0.000000e+00> : vector<16x8xf32>
    %295 = tpu.matmul %294, %281, %cst_117 {dimension_numbers = #tpu.dot_dimension_numbers<[1], [0], [0], [1], [0, 0, 1, 1], [], []>} : vector<16x16xf32>, vector<16x8xf32>, vector<16x8xf32> -> vector<16x8xf32>
    %296 = vector.extract_strided_slice %274 {offsets = [0, 8], sizes = [16, 8], strides = [1, 1]} : vector<16x32xf32> to vector<16x8xf32>
    %cst_118 = arith.constant 0.353553385 : f32
    %297 = vector.broadcast %cst_118 : f32 to vector<16x8xf32>
    %298 = arith.mulf %296, %297 : vector<16x8xf32>
    %299 = vector.extract_strided_slice %275 {offsets = [0, 8], sizes = [16, 8], strides = [1, 1]} : vector<16x32xf32> to vector<16x8xf32>
    %300 = vector.extract_strided_slice %276 {offsets = [0, 8], sizes = [16, 8], strides = [1, 1]} : vector<16x32xf32> to vector<16x8xf32>
    %cst_119 = arith.constant dense<0.000000e+00> : vector<16x16xf32>
    %301 = tpu.matmul %298, %299, %cst_119 {dimension_numbers = #tpu.dot_dimension_numbers<[1], [1], [0], [0], [0, 0, 1, 0], [], []>} : vector<16x8xf32>, vector<16x8xf32>, vector<16x16xf32> -> vector<16x16xf32>
    %cst_120 = arith.constant -3.40282347E+38 : f32
    %302 = vector.broadcast %cst_120 : f32 to vector<16x16xf32>
    %303 = arith.select %273, %301, %302 : vector<16x16xi1>, vector<16x16xf32>
    %cst_121 = arith.constant dense<0xFF800000> : vector<16xf32>
    %304 = vector.multi_reduction <maximumf>, %303, %cst_121 [1] : vector<16x16xf32> to vector<16xf32>
    %305 = vector.shape_cast %304 : vector<16xf32> to vector<16x1xf32>
    %306 = vector.broadcast %305 : vector<16x1xf32> to vector<16x16xf32>
    %307 = arith.subf %303, %306 : vector<16x16xf32>
    %308 = math.exp %307 : vector<16x16xf32>
    %cst_122 = arith.constant dense<0.000000e+00> : vector<16xf32>
    %309 = vector.multi_reduction <add>, %308, %cst_122 [1] : vector<16x16xf32> to vector<16xf32>
    %310 = vector.shape_cast %309 : vector<16xf32> to vector<16x1xf32>
    %311 = tpu.reciprocal %310 {approx = true} : vector<16x1xf32> -> vector<16x1xf32>
    %312 = vector.broadcast %311 : vector<16x1xf32> to vector<16x16xf32>
    %313 = arith.mulf %308, %312 : vector<16x16xf32>
    %cst_123 = arith.constant dense<0.000000e+00> : vector<16x8xf32>
    %314 = tpu.matmul %313, %300, %cst_123 {dimension_numbers = #tpu.dot_dimension_numbers<[1], [0], [0], [1], [0, 0, 1, 1], [], []>} : vector<16x16xf32>, vector<16x8xf32>, vector<16x8xf32> -> vector<16x8xf32>
    %315 = vector.extract_strided_slice %274 {offsets = [0, 16], sizes = [16, 8], strides = [1, 1]} : vector<16x32xf32> to vector<16x8xf32>
    %cst_124 = arith.constant 0.353553385 : f32
    %316 = vector.broadcast %cst_124 : f32 to vector<16x8xf32>
    %317 = arith.mulf %315, %316 : vector<16x8xf32>
    %318 = vector.extract_strided_slice %275 {offsets = [0, 16], sizes = [16, 8], strides = [1, 1]} : vector<16x32xf32> to vector<16x8xf32>
    %319 = vector.extract_strided_slice %276 {offsets = [0, 16], sizes = [16, 8], strides = [1, 1]} : vector<16x32xf32> to vector<16x8xf32>
    %cst_125 = arith.constant dense<0.000000e+00> : vector<16x16xf32>
    %320 = tpu.matmul %317, %318, %cst_125 {dimension_numbers = #tpu.dot_dimension_numbers<[1], [1], [0], [0], [0, 0, 1, 0], [], []>} : vector<16x8xf32>, vector<16x8xf32>, vector<16x16xf32> -> vector<16x16xf32>
    %cst_126 = arith.constant -3.40282347E+38 : f32
    %321 = vector.broadcast %cst_126 : f32 to vector<16x16xf32>
    %322 = arith.select %273, %320, %321 : vector<16x16xi1>, vector<16x16xf32>
    %cst_127 = arith.constant dense<0xFF800000> : vector<16xf32>
    %323 = vector.multi_reduction <maximumf>, %322, %cst_127 [1] : vector<16x16xf32> to vector<16xf32>
    %324 = vector.shape_cast %323 : vector<16xf32> to vector<16x1xf32>
    %325 = vector.broadcast %324 : vector<16x1xf32> to vector<16x16xf32>
    %326 = arith.subf %322, %325 : vector<16x16xf32>
    %327 = math.exp %326 : vector<16x16xf32>
    %cst_128 = arith.constant dense<0.000000e+00> : vector<16xf32>
    %328 = vector.multi_reduction <add>, %327, %cst_128 [1] : vector<16x16xf32> to vector<16xf32>
    %329 = vector.shape_cast %328 : vector<16xf32> to vector<16x1xf32>
    %330 = tpu.reciprocal %329 {approx = true} : vector<16x1xf32> -> vector<16x1xf32>
    %331 = vector.broadcast %330 : vector<16x1xf32> to vector<16x16xf32>
    %332 = arith.mulf %327, %331 : vector<16x16xf32>
    %cst_129 = arith.constant dense<0.000000e+00> : vector<16x8xf32>
    %333 = tpu.matmul %332, %319, %cst_129 {dimension_numbers = #tpu.dot_dimension_numbers<[1], [0], [0], [1], [0, 0, 1, 1], [], []>} : vector<16x16xf32>, vector<16x8xf32>, vector<16x8xf32> -> vector<16x8xf32>
    %334 = vector.extract_strided_slice %274 {offsets = [0, 24], sizes = [16, 8], strides = [1, 1]} : vector<16x32xf32> to vector<16x8xf32>
    %cst_130 = arith.constant 0.353553385 : f32
    %335 = vector.broadcast %cst_130 : f32 to vector<16x8xf32>
    %336 = arith.mulf %334, %335 : vector<16x8xf32>
    %337 = vector.extract_strided_slice %275 {offsets = [0, 24], sizes = [16, 8], strides = [1, 1]} : vector<16x32xf32> to vector<16x8xf32>
    %338 = vector.extract_strided_slice %276 {offsets = [0, 24], sizes = [16, 8], strides = [1, 1]} : vector<16x32xf32> to vector<16x8xf32>
    %cst_131 = arith.constant dense<0.000000e+00> : vector<16x16xf32>
    %339 = tpu.matmul %336, %337, %cst_131 {dimension_numbers = #tpu.dot_dimension_numbers<[1], [1], [0], [0], [0, 0, 1, 0], [], []>} : vector<16x8xf32>, vector<16x8xf32>, vector<16x16xf32> -> vector<16x16xf32>
    %cst_132 = arith.constant -3.40282347E+38 : f32
    %340 = vector.broadcast %cst_132 : f32 to vector<16x16xf32>
    %341 = arith.select %273, %339, %340 : vector<16x16xi1>, vector<16x16xf32>
    %cst_133 = arith.constant dense<0xFF800000> : vector<16xf32>
    %342 = vector.multi_reduction <maximumf>, %341, %cst_133 [1] : vector<16x16xf32> to vector<16xf32>
    %343 = vector.shape_cast %342 : vector<16xf32> to vector<16x1xf32>
    %344 = vector.broadcast %343 : vector<16x1xf32> to vector<16x16xf32>
    %345 = arith.subf %341, %344 : vector<16x16xf32>
    %346 = math.exp %345 : vector<16x16xf32>
    %cst_134 = arith.constant dense<0.000000e+00> : vector<16xf32>
    %347 = vector.multi_reduction <add>, %346, %cst_134 [1] : vector<16x16xf32> to vector<16xf32>
    %348 = vector.shape_cast %347 : vector<16xf32> to vector<16x1xf32>
    %349 = tpu.reciprocal %348 {approx = true} : vector<16x1xf32> -> vector<16x1xf32>
    %350 = vector.broadcast %349 : vector<16x1xf32> to vector<16x16xf32>
    %351 = arith.mulf %346, %350 : vector<16x16xf32>
    %cst_135 = arith.constant dense<0.000000e+00> : vector<16x8xf32>
    %352 = tpu.matmul %351, %338, %cst_135 {dimension_numbers = #tpu.dot_dimension_numbers<[1], [0], [0], [1], [0, 0, 1, 1], [], []>} : vector<16x16xf32>, vector<16x8xf32>, vector<16x8xf32> -> vector<16x8xf32>
    %353 = tpu.concatenate %295, %314, %333, %352 in 1 : vector<16x8xf32>, vector<16x8xf32>, vector<16x8xf32>, vector<16x8xf32> -> vector<16x32xf32>
    %354 = arith.truncf %353 : vector<16x32xf32> to vector<16x32xbf16>
    %cst_136 = arith.constant dense<0.000000e+00> : vector<16x32xf32>
    %355 = tpu.matmul %354, %228, %cst_136 {dimension_numbers = #tpu.dot_dimension_numbers<[1], [0], [0], [1], [0, 0, 1, 1], [], []>} : vector<16x32xbf16>, vector<32x32xbf16>, vector<16x32xf32> -> vector<16x32xf32>
    %356 = arith.addf %223, %355 : vector<16x32xf32>
    %cst_137 = arith.constant dense<0.000000e+00> : vector<16xf32>
    %357 = vector.multi_reduction <add>, %356, %cst_137 [1] : vector<16x32xf32> to vector<16xf32>
    %358 = vector.shape_cast %357 : vector<16xf32> to vector<16x1xf32>
    %cst_138 = arith.constant 3.200000e+01 : f32
    %359 = vector.broadcast %cst_138 : f32 to vector<16x1xf32>
    %360 = arith.divf %358, %359 : vector<16x1xf32>
    %361 = vector.broadcast %360 : vector<16x1xf32> to vector<16x32xf32>
    %362 = arith.subf %356, %361 : vector<16x32xf32>
    %363 = arith.mulf %362, %362 : vector<16x32xf32>
    %cst_139 = arith.constant dense<0.000000e+00> : vector<16xf32>
    %364 = vector.multi_reduction <add>, %363, %cst_139 [1] : vector<16x32xf32> to vector<16xf32>
    %365 = vector.shape_cast %364 : vector<16xf32> to vector<16x1xf32>
    %cst_140 = arith.constant 3.200000e+01 : f32
    %366 = vector.broadcast %cst_140 : f32 to vector<16x1xf32>
    %367 = arith.divf %365, %366 : vector<16x1xf32>
    %368 = vector.broadcast %360 : vector<16x1xf32> to vector<16x32xf32>
    %369 = arith.subf %356, %368 : vector<16x32xf32>
    %cst_141 = arith.constant 9.99999974E-6 : f32
    %370 = vector.broadcast %cst_141 : f32 to vector<16x1xf32>
    %371 = arith.addf %367, %370 : vector<16x1xf32>
    %372 = math.rsqrt %371 : vector<16x1xf32>
    %373 = vector.broadcast %372 : vector<16x1xf32> to vector<16x32xf32>
    %374 = arith.mulf %369, %373 : vector<16x32xf32>
    %375 = vector.broadcast %229 : vector<1x32xf32> to vector<16x32xf32>
    %376 = arith.mulf %374, %375 : vector<16x32xf32>
    %377 = vector.broadcast %230 : vector<1x32xf32> to vector<16x32xf32>
    %378 = arith.addf %376, %377 : vector<16x32xf32>
    %379 = arith.truncf %378 : vector<16x32xf32> to vector<16x32xbf16>
    %cst_142 = arith.constant dense<0.000000e+00> : vector<16x128xf32>
    %380 = tpu.matmul %379, %231, %cst_142 {dimension_numbers = #tpu.dot_dimension_numbers<[1], [0], [0], [1], [0, 0, 1, 1], [], []>} : vector<16x32xbf16>, vector<32x128xbf16>, vector<16x128xf32> -> vector<16x128xf32>
    %cst_143 = arith.constant 5.000000e-01 : f32
    %381 = vector.broadcast %cst_143 : f32 to vector<16x128xf32>
    %382 = arith.mulf %381, %380 : vector<16x128xf32>
    %cst_144 = arith.constant 0.707106769 : f32
    %383 = vector.broadcast %cst_144 : f32 to vector<16x128xf32>
    %384 = arith.mulf %380, %383 : vector<16x128xf32>
    %cst_145 = arith.constant 0.000000e+00 : f32
    %385 = vector.broadcast %cst_145 : f32 to vector<16x128xf32>
    %386 = arith.cmpf olt, %384, %385 : vector<16x128xf32>
    %cst_146 = arith.constant -1.000000e+00 : f32
    %cst_147 = arith.constant 1.000000e+00 : f32
    %387 = vector.broadcast %cst_146 : f32 to vector<16x128xf32>
    %388 = vector.broadcast %cst_147 : f32 to vector<16x128xf32>
    %389 = arith.select %386, %387, %388 : vector<16x128xi1>, vector<16x128xf32>
    %390 = math.absf %384 : vector<16x128xf32>
    %cst_148 = arith.constant 0.327591091 : f32
    %391 = vector.broadcast %cst_148 : f32 to vector<16x128xf32>
    %392 = arith.mulf %391, %390 : vector<16x128xf32>
    %cst_149 = arith.constant 1.000000e+00 : f32
    %393 = vector.broadcast %cst_149 : f32 to vector<16x128xf32>
    %394 = arith.addf %393, %392 : vector<16x128xf32>
    %cst_150 = arith.constant 1.000000e+00 : f32
    %395 = vector.broadcast %cst_150 : f32 to vector<16x128xf32>
    %396 = arith.divf %395, %394 : vector<16x128xf32>
    %cst_151 = arith.constant 1.06140542 : f32
    %397 = vector.broadcast %cst_151 : f32 to vector<16x128xf32>
    %398 = arith.mulf %397, %396 : vector<16x128xf32>
    %cst_152 = arith.constant -1.45315206 : f32
    %399 = vector.broadcast %cst_152 : f32 to vector<16x128xf32>
    %400 = arith.addf %398, %399 : vector<16x128xf32>
    %401 = arith.mulf %400, %396 : vector<16x128xf32>
    %cst_153 = arith.constant 1.42141378 : f32
    %402 = vector.broadcast %cst_153 : f32 to vector<16x128xf32>
    %403 = arith.addf %401, %402 : vector<16x128xf32>
    %404 = arith.mulf %403, %396 : vector<16x128xf32>
    %cst_154 = arith.constant -0.284496725 : f32
    %405 = vector.broadcast %cst_154 : f32 to vector<16x128xf32>
    %406 = arith.addf %404, %405 : vector<16x128xf32>
    %407 = arith.mulf %406, %396 : vector<16x128xf32>
    %cst_155 = arith.constant 0.254829586 : f32
    %408 = vector.broadcast %cst_155 : f32 to vector<16x128xf32>
    %409 = arith.addf %407, %408 : vector<16x128xf32>
    %410 = arith.mulf %409, %396 : vector<16x128xf32>
    %cst_156 = arith.constant 0.000000e+00 : f32
    %411 = vector.broadcast %cst_156 : f32 to vector<16x128xf32>
    %412 = arith.subf %411, %390 : vector<16x128xf32>
    %413 = arith.mulf %412, %390 : vector<16x128xf32>
    %414 = math.exp %413 : vector<16x128xf32>
    %415 = arith.mulf %410, %414 : vector<16x128xf32>
    %cst_157 = arith.constant 1.000000e+00 : f32
    %416 = vector.broadcast %cst_157 : f32 to vector<16x128xf32>
    %417 = arith.subf %416, %415 : vector<16x128xf32>
    %418 = arith.mulf %389, %417 : vector<16x128xf32>
    %cst_158 = arith.constant 1.000000e+00 : f32
    %419 = vector.broadcast %cst_158 : f32 to vector<16x128xf32>
    %420 = arith.addf %419, %418 : vector<16x128xf32>
    %421 = arith.mulf %382, %420 : vector<16x128xf32>
    %422 = arith.truncf %421 : vector<16x128xf32> to vector<16x128xbf16>
    %cst_159 = arith.constant dense<0.000000e+00> : vector<16x32xf32>
    %423 = tpu.matmul %422, %232, %cst_159 {dimension_numbers = #tpu.dot_dimension_numbers<[1], [0], [0], [1], [0, 0, 1, 1], [], []>} : vector<16x128xbf16>, vector<128x32xbf16>, vector<16x32xf32> -> vector<16x32xf32>
    %424 = arith.addf %356, %423 : vector<16x32xf32>
    %c0_160 = arith.constant 0 : index
    %c0_161 = arith.constant 0 : index
    %425 = vector.load %arg23[%c0_160, %c0_161] : memref<16x32xf32, #tpu.memory_space<vmem>>, vector<16x32xf32>
    tpu.vector_store %arg23[%c0_160, %c0_161], %424 {strides = array<i32>} : memref<16x32xf32, #tpu.memory_space<vmem>>, vector<16x32xf32>,
    return
  }
}

</mosaic_0001>

<bundles_post_ra>
// kernel: flamingo_forward.9
= control target key start
LH: loop header
LB: loop body
LE: loop exit
PB: predicated region body
PF: predicated region fallthrough
CT: control target
= control target key end

     0   :  { %vm23_vm0 = vcmask 261120   ;;  %s252_s0 = inlined_call_operand.vmem [shape: f32[16,32], index: 0, kind: input, shape index: {}]   ;;  %s253_s1 = inlined_call_operand.vmem [shape: f32[1,32], index: 1, kind: input, shape index: {}]   ;;  %s254_s2 = inlined_call_operand.vmem [shape: f32[1,32], index: 2, kind: input, shape index: {}]   ;;  %s255_s3 = inlined_call_operand.vmem [shape: bf16[32,64], index: 3, kind: input, shape index: {}]   ;;  %s256_s4 = inlined_call_operand.hbm [shape: f32[16,64], index: 4, kind: output, shape index: {}]  }
   0x1   :  { %v19_v0 = vld [vmem:[%s252_s0] sm:$0xff]  ;;  %v20_v1 = vld [vmem:[%s252_s0 + $0x8] sm:$0xff] }
   0x2   :  { %v24_v2 = vsel %vm23_vm0, %v19_v0, 0.0 }
   0x3   :  { %25 = vadd.xlane.f32.xlu0 %v24_v2 }
   0x4   :  { %9 = vsyncpa [#allocation3], 0  ;;  %v27_v3 = vsel %vm23_vm0, %v20_v1, 0.0  ;;  %v168_v14 = vld [vmem:[%s255_s3 + $0x8] sm:$0xff]   ;;  %v196_v15 = vmov 0.0   ;;  %vm197_vm1 = vmmov 0  }
   0x5   :  { %155 = vmatprep.subr.bf16.mxu0 %v196_v15  ;;  %159 = vmatprep.mubr.msk.bf16.mxu0 %vm197_vm1, %v196_v15  ;;  %v169_v16 = vld [vmem:[%s255_s3] sm:$0xff]   ;;  %vm128_vm2 = vcmask 523264   ;;  %s198_s25 = smov [#allocation2]  }
   0x6   :  { %156 = vmatpush3.bf16.msra.mxu0 %v168_v14  ;;  %v147_v25 = vld [vmem:[%s253_s1] ss:$0 sm:$0xff]  ;;  %s136_s26 = sshll.u32 %s198_s25, 4  ;;  %s137_s26 = int_to_ptr.vmem [resolvable:$true] %s136_s26 }
   0x7   :  { %28 = vadd.xlane.f32.xlu0 %v27_v3  ;;  %157 = vmatprep.subr.bf16.mxu0 %v196_v15  ;;  %v148_v29 = vld [vmem:[%s254_s2] ss:$0 sm:$0xff]  ;;  %s174_s1 = scalar_lea.vmem %s137_s26, 256  ;;  %p179_p1 = scmp.lt.s32.totalorder %s137_s26, %s137_s26 }
   0x8   :  { %p175_p0 = scmp.ne.s32.totalorder %s137_s26, %s174_s1  ;;  %p180_p2 = scmp.lt.s32.totalorder %s174_s1, %s174_s1 }
   0xa   :  { %158 = vmatpush3.bf16.msra.mxu0 %v169_v16  ;;  %p181_p3 = por %p180_p2, %p179_p1 }
   0xc   :  { %p182_p4 = pnand %p181_p3, %p175_p0 }
  0x8c   :  { %v26_v4 = vpop.xlane.xlu0 %25 }
  0x8d   :  { %v31_v5 = vmul.f32 0.03125, %v26_v4 }
  0x8f   :  { %v33_v6 = vsub.f32 %v19_v0, %v31_v5 }
  0x90   :  { %v29_v7 = vpop.xlane.xlu0 %28 }
  0x91   :  { %v32_v8 = vmul.f32 0.03125, %v29_v7  ;;  %v35_v9 = vmul.f32 %v33_v6, %v33_v6 }
  0x93   :  { %v34_v10 = vsub.f32 %v20_v1, %v32_v8  ;;  %v37_v11 = vsel %vm23_vm0, %v35_v9, 0.0 }
  0x94   :  { %38 = vadd.xlane.f32.xlu1 %v37_v11 }
  0x95   :  { %v36_v12 = vmul.f32 %v34_v10, %v34_v10 }
  0x97   :  { %v40_v13 = vsel %vm23_vm0, %v36_v12, 0.0 }
  0x98   :  { %41 = vadd.xlane.f32.xlu1 %v40_v13 }
 0x11d   :  { %v39_v17 = vpop.xlane.xlu1 %38 }
 0x11e   :  { %v43_v18 = vmul.f32 0.03125, %v39_v17 }
 0x120   :  { %v45_v19 = vadd.f32 1e-05, %v43_v18 }
 0x121   :  { %v42_v20 = vpop.xlane.xlu1 %41 }
 0x122   :  { %170 = vrsqrt.f32 %v45_v19  ;;  %v44_v21 = vmul.f32 0.03125, %v42_v20 }
 0x124   :  { %v46_v22 = vadd.f32 1e-05, %v44_v21 }
 0x126   :  { %172 = vrsqrt.f32 %v46_v22 }
 0x12f   :  { %v171_v23 = vpop.eup %170 }
 0x130   :  { %v49_v24 = vmul.f32 %v171_v23, %v33_v6 }
 0x132   :  { %v57_v28 = vmul.f32 %v147_v25, %v49_v24 }
 0x133   :  { %v173_v26 = vpop.eup %172 }
 0x134   :  { %v50_v27 = vmul.f32 %v173_v26, %v34_v10  ;;  %v65_v31 = vadd.f32 %v148_v29, %v57_v28 }
 0x136   :  { %v58_v30 = vmul.f32 %v147_v25, %v50_v27 }
 0x138   :  { %v66_v32 = vadd.f32 %v148_v29, %v58_v30 }
 0x13a   :  { %v71_v33 = vpack.c.bf16 %v66_v32, %v65_v31 }
 0x13c   :  { %160 = vmatmul.mubr.msk.bf16.vlgmr.msra.gmra.mxu0 %vm23_vm0, %v71_v33 }
 0x1fc   :  { %v121_v34 = vpop.f32.mrf.mxu0 }
 0x1fd   :  { %129 = vst.msk [vmem:[#allocation2] sm:$0xff] %vm128_vm2, %v121_v34 }
 0x1fe   :  { %v161_v35 = vpop.f32.mrf.mxu0 }
 0x200   :  { %v124_v36 = vpop.f32.mrf.mxu0 }
 0x201   :  { %130 = vst.msk [vmem:[#allocation2 + $0x8] sm:$0xff] %vm128_vm2, %v124_v36 }
 0x202   :  { %v162_v37 = vpop.f32.mrf.mxu0 }
 0x203   :  { %185 = shalt.err (!%p182_p4)
}
 0x204   :  { %s199_s2 = smov 128   ;;  %s200_s27 = smov 8  }
 0x205   :  { %142 = dma.vmem_to_hbm [thread:$0]  %s137_s26, 256, %s256_s4, [#allocation3], %s199_s2, %s199_s2, %s200_s27  }
 0x206   :  { %194 = dma.done.wait [#allocation3], 256  }
 0x207   :  { %195 = vsyncadd [#allocation3], 4294967040 }
 0x208   :  { %146 = vsyncpa [#allocation3], 1 }

// kernel: flamingo_forward.5
= control target key start
LH: loop header
LB: loop body
LE: loop exit
PB: predicated region body
PF: predicated region fallthrough
CT: control target
= control target key end

     0   :  { %v1524_v0 = vmov 0   ;;  %vm146_vm0 = vcmask 523264   ;;  %vm192_vm1 = vcmask 261120   ;;  %v1525_v30 = vmov 0.0   ;;  %s1527_s25 = smov 64   ;;  %s1528_s26 = smov 96   ;;  %s1839_s1 = inlined_call_operand.vmem [shape: bf16[192,32], index: 1, kind: input, shape index: {}]   ;;  %s1840_s0 = inlined_call_operand.vmem [shape: f32[8,192], index: 0, kind: input, shape index: {}]   ;;  %s1841_s2 = inlined_call_operand.vmem [shape: f32[8,32], index: 2, kind: input, shape index: {}]   ;;  %s1842_s5 = inlined_call_operand.vmem [shape: bf16[32,96], index: 5, kind: input, shape index: {}]   ;;  %s1843_s3 = inlined_call_operand.vmem [shape: f32[1,32], index: 3, kind: input, shape index: {}]   ;;  %s1844_s4 = inlined_call_operand.vmem [shape: f32[1,32], index: 4, kind: input, shape index: {}]   ;;  %s1845_s6 = inlined_call_operand.vmem [shape: bf16[32,32], index: 6, kind: input, shape index: {}]   ;;  %s1846_s9 = inlined_call_operand.vmem [shape: bf16[32,128], index: 9, kind: input, shape index: {}]   ;;  %s1847_s7 = inlined_call_operand.vmem [shape: f32[1,32], index: 7, kind: input, shape index: {}]   ;;  %s1848_s8 = inlined_call_operand.vmem [shape: f32[1,32], index: 8, kind: input, shape index: {}]   ;;  %s1849_s10 = inlined_call_operand.vmem [shape: bf16[128,32], index: 10, kind: input, shape index: {}]   ;;  %s1850_s11 = inlined_call_operand.vmem [shape: f32[1,32], index: 11, kind: input, shape index: {}]   ;;  %s1851_s12 = inlined_call_operand.vmem [shape: f32[1,32], index: 12, kind: input, shape index: {}]   ;;  %s1852_s13 = inlined_call_operand.vmem [shape: f32[8,32], index: 13, kind: output, shape index: {}]  }
   0x1   :  { %150 = vmatprep.subr.bf16.mxu0 %v1524_v0  ;;  %v1472_v1 = vld [vmem:[%s1839_s1 + $0x38] sm:$0xff]   ;;  %v1473_v2 = vld [vmem:[%s1839_s1 + $0x30] sm:$0xff]   ;;  %v1474_v3 = vld [vmem:[%s1839_s1 + $0x28] sm:$0xff]   ;;  %1378 = vmatprep.subr.mxu1 %v1525_v30  ;;  %vm1526_vm2 = vmmov 0   ;;  %vm292_vm3 = vcmask 64512   ;;  %v281_v49 = vlaneseq  ;;  %s1531_s27 = smov 56  }
   0x2   :  { %151 = vmatpush1.bf16.msra.mxu0 %v1472_v1  ;;  %v1475_v4 = vld [vmem:[%s1839_s1 + $0x20] sm:$0xff]   ;;  %v46_v5 = vld [vmem:[%s1840_s0 + $0x8] sm:$0xff]  ;;  %v1476_v7 = vld [vmem:[%s1839_s1 + $0x18] sm:$0xff]   ;;  %1380 = vmatprep.mubr.msk.f32.mxu1 %vm1526_vm2, %v1525_v30  ;;  %s1532_s28 = smov 80   ;;  %s1533_s29 = smov 112   ;;  %vm967_vm5 = vcmask 130048  }
   0x3   :  { %152 = vmatprep.subr.bf16.mxu0 %v1524_v0  ;;  %v72_v6 = vpack.c.bf16 %v46_v5, %v46_v5  ;;  %v1477_v8 = vld [vmem:[%s1839_s1 + $0x10] sm:$0xff]   ;;  %v1478_v9 = vld [vmem:[%s1839_s1 + $0x8] sm:$0xff]   ;;  %v1479_v10 = vld [vmem:[%s1839_s1] sm:$0xff]   ;;  %v282_v50 = vshrl.u32 %v281_v49, 7  ;;  %v284_v51 = vand.u32 127, %v281_v49  ;;  %s1534_s30 = smov 48  }
   0x4   :  { %v1480_v11 = vld [vmem:[%s1839_s1 + $0x58] sm:$0xff]   ;;  %v1481_v12 = vld [vmem:[%s1839_s1 + $0x50] sm:$0xff]   ;;  %v1482_v13 = vld [vmem:[%s1839_s1 + $0x48] sm:$0xff]   ;;  %s1535_s14 = smov 72   ;;  %s1536_s15 = smov 104   ;;  %vm969_vm6 = vcmask 195584  }
   0x5   :  { %1300 = vmatprep.mubr.msk.bf16.mxu0 %vm146_vm0, %v72_v6  ;;  %v1483_v14 = vld [vmem:[%s1839_s1 + $0x40] sm:$0xff]   ;;  %v1484_v29 = vld [vmem:[%s1842_s5 + $0x8] sm:$0xff]   ;;  %v285_v52 = vshra.s32 %v282_v50, 2  ;;  %v286_v53 = vshra.s32 %v284_v51, 2  ;;  %s1537_s16 = smov 40   ;;  %s1538_s17 = smov 8  }
   0x6   :  { %153 = vmatpush1.bf16.msra.mxu0 %v1473_v2  ;;  %v45_v15 = vld [vmem:[%s1840_s0] sm:$0xff]  ;;  %s1539_s18 = smov 16  }
   0x7   :  { %154 = vmatprep.subr.bf16.mxu0 %v1524_v0  ;;  %v71_v16 = vpack.c.bf16 %v45_v15, %v45_v15  ;;  %v73_v17 = vld [vmem:[%s1841_s2] sm:$0xff]  ;;  %vm1700_vm4 = vcmp.eq.s32.totalorder %v285_v52, %v286_v53  ;;  %s1540_s2 = smov 24  }
   0x8   :  { %v1485_v31 = vld [vmem:[%s1842_s5] sm:$0xff]  }
   0x9   :  { %v1301_v36 = vld [vmem:[%s1843_s3] ss:$0 sm:$0xff]  ;;  %s1529_s3 = smov 88  }
   0xa   :  { %155 = vmatpush1.bf16.msra.mxu0 %v1474_v3  ;;  %v1302_v38 = vld [vmem:[%s1844_s4] ss:$0 sm:$0xff]  ;;  %s1530_s4 = smov 120  }
   0xb   :  { %156 = vmatprep.subr.bf16.mxu0 %v1524_v0 }
   0xe   :  { %157 = vmatpush1.bf16.msra.mxu0 %v1475_v4 }
   0xf   :  { %158 = vmatprep.subr.bf16.mxu0 %v1524_v0 }
  0x12   :  { %159 = vmatpush1.bf16.msra.mxu0 %v1476_v7 }
  0x13   :  { %160 = vmatprep.subr.bf16.mxu0 %v1524_v0 }
  0x16   :  { %161 = vmatpush1.bf16.msra.mxu0 %v1477_v8 }
  0x17   :  { %162 = vmatprep.subr.bf16.mxu0 %v1524_v0 }
  0x1a   :  { %163 = vmatpush1.bf16.msra.mxu0 %v1478_v9 }
  0x1b   :  { %164 = vmatprep.subr.bf16.mxu0 %v1524_v0 }
  0x1e   :  { %165 = vmatpush1.bf16.msra.mxu0 %v1479_v10 }
  0x1f   :  { %174 = vmatprep.subr.bf16.mxu0 %v1524_v0 }
  0x22   :  { %175 = vmatpush2.bf16.msra.mxu0 %v1480_v11 }
  0x23   :  { %176 = vmatprep.subr.bf16.mxu0 %v1524_v0 }
  0x26   :  { %177 = vmatpush2.bf16.msra.mxu0 %v1481_v12 }
  0x27   :  { %178 = vmatprep.subr.bf16.mxu0 %v1524_v0 }
  0x2a   :  { %179 = vmatpush2.bf16.msra.mxu0 %v1482_v13 }
  0x2b   :  { %180 = vmatprep.subr.bf16.mxu0 %v1524_v0 }
  0x2e   :  { %181 = vmatpush2.bf16.msra.mxu0 %v1483_v14 }
  0x2f   :  { %1370 = vmatprep.subr.bf16.mxu0 %v1525_v30 }
  0x31   :  { %183 = vmatmul.mubr.bf16.vlgmr.msra.gmra.mxu0 %v71_v16 }
  0x32   :  { %1371 = vmatpush3.bf16.msra.mxu0 %v1484_v29  ;;  %1374 = vmatprep.mubr.msk.bf16.mxu0 %vm1526_vm2, %v1525_v30 }
  0x33   :  { %1372 = vmatprep.subr.bf16.mxu0 %v1525_v30 }
  0x36   :  { %1373 = vmatpush3.bf16.msra.mxu0 %v1485_v31 }
  0x37   :  { %1426 = vmatprep.subr.bf16.mxu0 %v1525_v30 }
  0xf1   :  { %v184_v18 = vpop.f32.mrf.mxu0 }
  0xf2   :  { %v1657_v19 = vadd.f32 %v184_v18, %v73_v17 }
  0xf3   :  { %v186_v20 = vpop.f32.mrf.mxu0 }
  0xf4   :  { %v193_v21 = vsel %vm192_vm1, %v1657_v19, 0.0 }
  0xf5   :  { %v187_v22 = vpop.f32.mrf.mxu0  ;;  %194 = vadd.xlane.f32.xlu0 %v193_v21 }
  0xf7   :  { %v188_v23 = vpop.f32.mrf.mxu0 }
 0x17e   :  { %v195_v24 = vpop.xlane.xlu0 %194 }
 0x17f   :  { %v197_v25 = vmul.f32 0.03125, %v195_v24 }
 0x181   :  { %v198_v26 = vsub.f32 %v1657_v19, %v197_v25 }
 0x183   :  { %v199_v27 = vmul.f32 %v198_v26, %v198_v26 }
 0x185   :  { %v200_v28 = vsel %vm192_vm1, %v199_v27, 0.0 }
 0x186   :  { %201 = vadd.xlane.f32.xlu0 %v200_v28 }
 0x20f   :  { %v202_v32 = vpop.xlane.xlu0 %201 }
 0x210   :  { %v203_v33 = vmul.f32 0.03125, %v202_v32 }
 0x212   :  { %v204_v34 = vadd.f32 1e-05, %v203_v33 }
 0x214   :  { %1498 = vrsqrt.f32 %v204_v34 }
 0x221   :  { %v1499_v35 = vpop.eup %1498 }
 0x222   :  { %v206_v37 = vmul.f32 %v1499_v35, %v198_v26 }
 0x224   :  { %v213_v39 = vmul.f32 %v1301_v36, %v206_v37 }
 0x226   :  { %v220_v40 = vadd.f32 %v1302_v38, %v213_v39 }
 0x228   :  { %v225_v41 = vpack.c.bf16 %v220_v40, %v220_v40 }
 0x22a   :  { %1375 = vmatmul.mubr.msk.bf16.vlgmr.msra.gmra.mxu0 %vm192_vm1, %v225_v41 }
 0x22b   :  { %1430 = vmatprep.mubr.msk.bf16.mxu0 %vm1526_vm2, %v1525_v30 }
 0x2ea   :  { %v1686_v42 = vpop.f32.mrf.mxu0 }
 0x2eb   :  { %380 = vrot.lane.b32.xlu0 %v1686_v42, %s1527_s25  ;;  %290 = vrot.lane.b32.xlu1 %v1686_v42, %s1528_s26  ;;  %v1692_v47 = vmul.f32 0.35355338, %v1686_v42 }
 0x2ec   :  { %v1376_v43 = vpop.f32.mrf.mxu0 }
 0x2ee   :  { %v278_v44 = vpop.f32.mrf.mxu0 }
 0x2f0   :  { %v1377_v45 = vpop.f32.mrf.mxu0 }
 0x35d   :  { %v291_v46 = vpop.permute.xlu1 %290  ;;  %v381_v48 = vpop.permute.xlu0 %380 }
 0x35e   :  { %1379 = vmatpush3.xpose.msk.msra.mxu1 %vm292_vm3, %v291_v46 }
 0x35f   :  { %1383 = vmatprep.subr.mxu1 %v1525_v30 }
 0x361   :  { %1381 = vmatmul.mubr.msk.f32.vlgmr.msra.gmra.mxu1 %vm292_vm3, %v1692_v47 }
 0x362   :  { %1384 = vmatpush3.msra.mxu1 %v381_v48  ;;  %1385 = vmatprep.mubr.msk.f32.mxu1 %vm1526_vm2, %v1525_v30 }
 0x363   :  { %1388 = vmatprep.subr.mxu1 %v1525_v30 }
 0x421   :  { %v364_v55 = vpop.f32.mrf.mxu1 }
 0x422   :  { %v368_v56 = vsel %vm1700_vm4, %v364_v55, -3.4028235e+38 }
 0x423   :  { %v1382_v57 = vpop.f32.mrf.mxu1  ;;  %v369_v58 = vsel %vm292_vm3, %v368_v56, -inf }
 0x424   :  { %370 = vmax.xlane.f32.xlu1 %v369_v58  ;;  %v1487_v57 = vld [vmem:[%s1845_s6] sm:$0xff]  }
 0x4ad   :  { %v371_v59 = vpop.xlane.xlu1 %370 }
 0x4ae   :  { %v372_v60 = vsub.f32 %v368_v56, %v371_v59  ;;  %v1486_v56 = vld [vmem:[%s1845_s6 + $0x8] sm:$0xff]  }
 0x4b0   :  { %v373_v61 = vmul.f32 1.442695, %v372_v60 }
 0x4b2   :  { %1500 = vpow2.f32 %v373_v61 }
 0x4bf   :  { %v1501_v62 = vpop.eup %1500 }
 0x4c0   :  { %v375_v63 = vsel %vm292_vm3, %v1501_v62, 0.0 }
 0x4c1   :  { %376 = vadd.xlane.f32.xlu0 %v375_v63 }
 0x4d7   :  { %458 = vrot.lane.b32.xlu0 %v1686_v42, %s1529_s3 }
 0x4db   :  { %456 = vrot.lane.b32.xlu0 %v1692_v47, %s1530_s4 }
 0x54a   :  { %v377_v0 = vpop.xlane.xlu0 %376 }
 0x54b   :  { %1502 = vrcp.f32 %v377_v0 }
 0x54e   :  { %v459_v2 = vpop.permute.xlu0 %458 }
 0x552   :  { %v457_v4 = vpop.permute.xlu0 %456 }
 0x558   :  { %v1503_v1 = vpop.eup %1502 }
 0x559   :  { %v379_v3 = vmul.f32 %v1503_v1, %v1501_v62 }
 0x55b   :  { %1386 = vmatmul.mubr.msk.f32.vlgmr.msra.gmra.mxu1 %vm292_vm3, %v379_v3 }
 0x55c   :  { %1389 = vmatpush3.xpose.msk.msra.mxu1 %vm292_vm3, %v459_v2  ;;  %1390 = vmatprep.mubr.msk.f32.mxu1 %vm1526_vm2, %v1525_v30 }
 0x55d   :  { %1393 = vmatprep.subr.mxu1 %v1525_v30 }
 0x55f   :  { %1391 = vmatmul.mubr.msk.f32.vlgmr.msra.gmra.mxu1 %vm292_vm3, %v457_v4 }
 0x560   :  { %1395 = vmatprep.mubr.msk.f32.mxu1 %vm1526_vm2, %v1525_v30 }
 0x61b   :  { %v1718_v5 = vpop.f32.mrf.mxu1 }
 0x61d   :  { %v1387_v6 = vpop.f32.mrf.mxu1 }
 0x61f   :  { %v530_v7 = vpop.f32.mrf.mxu1 }
 0x620   :  { %v534_v8 = vsel %vm1700_vm4, %v530_v7, -3.4028235e+38 }
 0x621   :  { %v1392_v9 = vpop.f32.mrf.mxu1  ;;  %v535_v10 = vsel %vm292_vm3, %v534_v8, -inf }
 0x622   :  { %536 = vmax.xlane.f32.xlu1 %v535_v10 }
 0x633   :  { %546 = vrot.lane.b32.xlu1 %v1686_v42, %s1531_s27 }
 0x637   :  { %624 = vrot.lane.b32.xlu1 %v1686_v42, %s1532_s28 }
 0x63b   :  { %622 = vrot.lane.b32.xlu1 %v1692_v47, %s1533_s29 }
 0x6ab   :  { %v537_v11 = vpop.xlane.xlu1 %536 }
 0x6ac   :  { %v538_v12 = vsub.f32 %v534_v8, %v537_v11 }
 0x6ae   :  { %v539_v13 = vmul.f32 1.442695, %v538_v12 }
 0x6af   :  { %v547_v14 = vpop.permute.xlu1 %546 }
 0x6b0   :  { %1504 = vpow2.f32 %v539_v13  ;;  %1394 = vmatpush3.msra.mxu1 %v547_v14  ;;  %v1489_v14 = vld [vmem:[%s1846_s9] sm:$0xff]  }
 0x6b1   :  { %1398 = vmatprep.subr.mxu1 %v1525_v30 }
 0x6b3   :  { %v625_v20 = vpop.permute.xlu1 %624 }
 0x6b7   :  { %v623_v22 = vpop.permute.xlu1 %622 }
 0x6bd   :  { %v1505_v15 = vpop.eup %1504 }
 0x6be   :  { %v541_v16 = vsel %vm292_vm3, %v1505_v15, 0.0 }
 0x6bf   :  { %542 = vadd.xlane.f32.xlu0 %v541_v16 }
 0x6d5   :  { %712 = vrot.lane.b32.xlu0 %v1686_v42, %s1534_s30 }
 0x748   :  { %v543_v17 = vpop.xlane.xlu0 %542 }
 0x749   :  { %1506 = vrcp.f32 %v543_v17 }
 0x74c   :  { %v713_v23 = vpop.permute.xlu0 %712 }
 0x756   :  { %v1507_v18 = vpop.eup %1506 }
 0x757   :  { %v545_v21 = vmul.f32 %v1507_v18, %v1505_v15 }
 0x759   :  { %1396 = vmatmul.mubr.msk.f32.vlgmr.msra.gmra.mxu1 %vm292_vm3, %v545_v21 }
 0x75a   :  { %1399 = vmatpush3.xpose.msk.msra.mxu1 %vm292_vm3, %v625_v20  ;;  %1400 = vmatprep.mubr.msk.f32.mxu1 %vm1526_vm2, %v1525_v30  ;;  %v1321_v20 = vld [vmem:[%s1847_s7] ss:$0 sm:$0xff] }
 0x75b   :  { %1403 = vmatprep.subr.mxu1 %v1525_v30 }
 0x75d   :  { %1401 = vmatmul.mubr.msk.f32.vlgmr.msra.gmra.mxu1 %vm292_vm3, %v623_v22  ;;  %v1322_v22 = vld [vmem:[%s1848_s8] ss:$0 sm:$0xff] }
 0x75e   :  { %1404 = vmatpush3.msra.mxu1 %v713_v23  ;;  %1405 = vmatprep.mubr.msk.f32.mxu1 %vm1526_vm2, %v1525_v30 }
 0x75f   :  { %1408 = vmatprep.subr.mxu1 %v1525_v30 }
 0x819   :  { %v618_v24 = vpop.f32.mrf.mxu1 }
 0x81b   :  { %v1397_v25 = vpop.f32.mrf.mxu1 }
 0x81d   :  { %v696_v26 = vpop.f32.mrf.mxu1 }
 0x81e   :  { %v700_v27 = vsel %vm1700_vm4, %v696_v26, -3.4028235e+38  ;;  %v1490_v26 = vld [vmem:[%s1849_s10 + $0x38] sm:$0xff]  }
 0x81f   :  { %v1402_v28 = vpop.f32.mrf.mxu1  ;;  %v701_v29 = vsel %vm292_vm3, %v700_v27, -inf }
 0x820   :  { %702 = vmax.xlane.f32.xlu1 %v701_v29  ;;  %v1492_v28 = vld [vmem:[%s1849_s10 + $0x28] sm:$0xff]   ;;  %v1493_v29 = vld [vmem:[%s1849_s10 + $0x20] sm:$0xff]  }
 0x8a9   :  { %v703_v31 = vpop.xlane.xlu1 %702 }
 0x8aa   :  { %v704_v32 = vsub.f32 %v700_v27, %v703_v31  ;;  %v1491_v27 = vld [vmem:[%s1849_s10 + $0x30] sm:$0xff]   ;;  %v1494_v31 = vld [vmem:[%s1849_s10 + $0x18] sm:$0xff]  }
 0x8ac   :  { %v705_v33 = vmul.f32 1.442695, %v704_v32  ;;  %v1495_v32 = vld [vmem:[%s1849_s10 + $0x10] sm:$0xff]  }
 0x8ae   :  { %1508 = vpow2.f32 %v705_v33  ;;  %v1496_v33 = vld [vmem:[%s1849_s10 + $0x8] sm:$0xff]  }
 0x8bb   :  { %v1509_v34 = vpop.eup %1508 }
 0x8bc   :  { %v707_v35 = vsel %vm292_vm3, %v1509_v34, 0.0 }
 0x8bd   :  { %708 = vadd.xlane.f32.xlu0 %v707_v35 }
 0x8d3   :  { %790 = vrot.lane.b32.xlu0 %v1686_v42, %s1535_s14 }
 0x8d7   :  { %788 = vrot.lane.b32.xlu0 %v1692_v47, %s1536_s15 }
 0x946   :  { %v709_v36 = vpop.xlane.xlu0 %708 }
 0x947   :  { %1510 = vrcp.f32 %v709_v36 }
 0x94a   :  { %v791_v38 = vpop.permute.xlu0 %790 }
 0x94e   :  { %v789_v40 = vpop.permute.xlu0 %788 }
 0x954   :  { %v1511_v37 = vpop.eup %1510 }
 0x955   :  { %v711_v39 = vmul.f32 %v1511_v37, %v1509_v34  ;;  %v1497_v34 = vld [vmem:[%s1849_s10] sm:$0xff]  }
 0x957   :  { %1406 = vmatmul.mubr.msk.f32.vlgmr.msra.gmra.mxu1 %vm292_vm3, %v711_v39 }
 0x958   :  { %1409 = vmatpush3.xpose.msk.msra.mxu1 %vm292_vm3, %v791_v38  ;;  %1410 = vmatprep.mubr.msk.f32.mxu1 %vm1526_vm2, %v1525_v30 }
 0x959   :  { %1413 = vmatprep.subr.mxu1 %v1525_v30 }
 0x95b   :  { %1411 = vmatmul.mubr.msk.f32.vlgmr.msra.gmra.mxu1 %vm292_vm3, %v789_v40 }
 0x95c   :  { %1415 = vmatprep.mubr.msk.f32.mxu1 %vm1526_vm2, %v1525_v30 }
 0xa17   :  { %v784_v41 = vpop.f32.mrf.mxu1 }
 0xa19   :  { %v1407_v43 = vpop.f32.mrf.mxu1 }
 0xa1b   :  { %v862_v44 = vpop.f32.mrf.mxu1 }
 0xa1c   :  { %v866_v45 = vsel %vm1700_vm4, %v862_v44, -3.4028235e+38 }
 0xa1d   :  { %v1412_v46 = vpop.f32.mrf.mxu1  ;;  %v867_v47 = vsel %vm292_vm3, %v866_v45, -inf }
 0xa1e   :  { %868 = vmax.xlane.f32.xlu1 %v867_v47 }
 0xa2f   :  { %878 = vrot.lane.b32.xlu1 %v1686_v42, %s1537_s16 }
 0xa33   :  { %955 = vrot.lane.b32.xlu1 %v618_v24, %s1538_s17 }
 0xa37   :  { %959 = vrot.lane.b32.xlu1 %v784_v41, %s1539_s18 }
 0xaa7   :  { %v869_v48 = vpop.xlane.xlu1 %868 }
 0xaa8   :  { %v870_v49 = vsub.f32 %v866_v45, %v869_v48 }
 0xaaa   :  { %v871_v50 = vmul.f32 1.442695, %v870_v49 }
 0xaab   :  { %v879_v51 = vpop.permute.xlu1 %878 }
 0xaac   :  { %1512 = vpow2.f32 %v871_v50  ;;  %1414 = vmatpush3.msra.mxu1 %v879_v51 }
 0xaad   :  { %1418 = vmatprep.subr.bf16.mxu1 %v1525_v30 }
 0xaaf   :  { %v956_v60 = vpop.permute.xlu1 %955 }
 0xab0   :  { %v966_v62 = vsel %vm292_vm3, %v1718_v5, %v956_v60 }
 0xab3   :  { %v960_v61 = vpop.permute.xlu1 %959 }
 0xab4   :  { %v968_v63 = vsel %vm967_vm5, %v966_v62, %v960_v61 }
 0xab9   :  { %v1513_v52 = vpop.eup %1512 }
 0xaba   :  { %v873_v53 = vsel %vm292_vm3, %v1513_v52, 0.0 }
 0xabb   :  { %874 = vadd.xlane.f32.xlu0 %v873_v53 }
 0xb44   :  { %v875_v54 = vpop.xlane.xlu0 %874 }
 0xb45   :  { %1514 = vrcp.f32 %v875_v54 }
 0xb52   :  { %v1515_v55 = vpop.eup %1514 }
 0xb53   :  { %v877_v42 = vmul.f32 %v1515_v55, %v1513_v52 }
 0xb55   :  { %1416 = vmatmul.mubr.msk.f32.vlgmr.msra.gmra.mxu1 %vm292_vm3, %v877_v42 }
 0xb56   :  { %1422 = vmatprep.mubr.msk.bf16.mxu1 %vm1526_vm2, %v1525_v30  ;;  %1419 = vmatpush3.bf16.msra.mxu1 %v1486_v56 }
 0xb57   :  { %1420 = vmatprep.subr.bf16.mxu1 %v1525_v30 }
 0xb5a   :  { %1421 = vmatpush3.bf16.msra.mxu1 %v1487_v57 }
 0xb5b   :  { %1434 = vmatprep.subr.bf16.mxu1 %v1525_v30 }
 0xc15   :  { %v950_v58 = vpop.f32.mrf.mxu1 }
 0xc16   :  { %963 = vrot.lane.b32.xlu1 %v950_v58, %s1540_s2  ;;  %v1541_v58 = vmov 1.0  }
 0xc17   :  { %v1417_v59 = vpop.f32.mrf.mxu1 }
 0xc88   :  { %v964_v0 = vpop.permute.xlu1 %963 }
 0xc89   :  { %v970_v1 = vsel %vm969_vm6, %v968_v63, %v964_v0 }
 0xc8a   :  { %v975_v2 = vpack.c.bf16 %v970_v1, %v970_v1 }
 0xc8c   :  { %1423 = vmatmul.mubr.msk.bf16.vlgmr.msra.gmra.mxu1 %vm192_vm1, %v975_v2 }
 0xc8d   :  { %1450 = vmatprep.mubr.msk.bf16.mxu1 %vm1526_vm2, %v1525_v30  ;;  %1435 = vmatpush3.bf16.msra.mxu1 %v1490_v26 }
 0xc8e   :  { %1436 = vmatprep.subr.bf16.mxu1 %v1525_v30 }
 0xc91   :  { %1437 = vmatpush3.bf16.msra.mxu1 %v1491_v27 }
 0xc92   :  { %1438 = vmatprep.subr.bf16.mxu1 %v1525_v30 }
 0xc95   :  { %1439 = vmatpush3.bf16.msra.mxu1 %v1492_v28 }
 0xc96   :  { %1440 = vmatprep.subr.bf16.mxu1 %v1525_v30 }
 0xc99   :  { %1441 = vmatpush3.bf16.msra.mxu1 %v1493_v29 }
 0xc9a   :  { %1442 = vmatprep.subr.bf16.mxu1 %v1525_v30 }
 0xc9d   :  { %1443 = vmatpush3.bf16.msra.mxu1 %v1494_v31 }
 0xc9e   :  { %1444 = vmatprep.subr.bf16.mxu1 %v1525_v30 }
 0xca1   :  { %1445 = vmatpush3.bf16.msra.mxu1 %v1495_v32 }
 0xca2   :  { %1446 = vmatprep.subr.bf16.mxu1 %v1525_v30 }
 0xca5   :  { %1447 = vmatpush3.bf16.msra.mxu1 %v1496_v33 }
 0xca6   :  { %1448 = vmatprep.subr.bf16.mxu1 %v1525_v30 }
 0xca9   :  { %1449 = vmatpush3.bf16.msra.mxu1 %v1497_v34 }
 0xd4c   :  { %v1025_v3 = vpop.f32.mrf.mxu1 }
 0xd4d   :  { %v1775_v4 = vadd.f32 %v1025_v3, %v1657_v19  ;;  %v1488_v19 = vld [vmem:[%s1846_s9 + $0x8] sm:$0xff]  }
 0xd4e   :  { %v1424_v6 = vpop.f32.mrf.mxu1  ;;  %1427 = vmatpush3.bf16.msra.mxu0 %v1488_v19 }
 0xd4f   :  { %v1034_v7 = vsel %vm192_vm1, %v1775_v4, 0.0  ;;  %1428 = vmatprep.subr.bf16.mxu0 %v1525_v30 }
 0xd50   :  { %1035 = vadd.xlane.f32.xlu0 %v1034_v7  ;;  %v1028_v8 = vpop.f32.mrf.mxu1 }
 0xd52   :  { %v1425_v5 = vpop.f32.mrf.mxu1  ;;  %1429 = vmatpush3.bf16.msra.mxu0 %v1489_v14 }
 0xdd9   :  { %v1036_v9 = vpop.xlane.xlu0 %1035 }
 0xdda   :  { %v1037_v10 = vmul.f32 0.03125, %v1036_v9 }
 0xddc   :  { %v1038_v11 = vsub.f32 %v1775_v4, %v1037_v10 }
 0xdde   :  { %v1039_v12 = vmul.f32 %v1038_v11, %v1038_v11 }
 0xde0   :  { %v1040_v13 = vsel %vm192_vm1, %v1039_v12, 0.0 }
 0xde1   :  { %1041 = vadd.xlane.f32.xlu1 %v1040_v13 }
 0xe6a   :  { %v1042_v15 = vpop.xlane.xlu1 %1041 }
 0xe6b   :  { %v1043_v16 = vmul.f32 0.03125, %v1042_v15 }
 0xe6d   :  { %v1044_v17 = vadd.f32 1e-05, %v1043_v16 }
 0xe6f   :  { %1516 = vrsqrt.f32 %v1044_v17  ;;  %v1335_v17 = vld [vmem:[%s1851_s12] ss:$0 sm:$0xff] }
 0xe7c   :  { %v1517_v18 = vpop.eup %1516 }
 0xe7d   :  { %v1046_v21 = vmul.f32 %v1517_v18, %v1038_v11 }
 0xe7f   :  { %v1053_v23 = vmul.f32 %v1321_v20, %v1046_v21 }
 0xe81   :  { %v1060_v24 = vadd.f32 %v1322_v22, %v1053_v23 }
 0xe83   :  { %v1065_v25 = vpack.c.bf16 %v1060_v24, %v1060_v24 }
 0xe85   :  { %1431 = vmatmul.mubr.msk.bf16.vlgmr.msra.gmra.mxu0 %vm192_vm1, %v1065_v25 }
 0xf45   :  { %v1115_v35 = vpop.f32.mrf.mxu0 }
 0xf46   :  { %v1122_v36 = vmul.f32 0.70710677, %v1115_v35  ;;  %v1121_v61 = vmul.f32 0.5, %v1115_v35 }
 0xf47   :  { %v1432_v37 = vpop.f32.mrf.mxu0 }
 0xf48   :  { %v1125_v38 = vand.u32 2147483647, %v1122_v36  ;;  %vm1123_vm7 = vcmp.lt.f32.partialorder %v1122_v36, 0.0 }
 0xf49   :  { %v1118_v39 = vpop.f32.mrf.mxu0  ;;  %v1124_v59 = vsel %vm1123_vm7, -1.0, %v1541_v58 }
 0xf4a   :  { %v1126_v40 = vmul.f32 0.3275911, %v1125_v38  ;;  %v1139_v44 = vsub.f32 0.0, %v1125_v38 }
 0xf4b   :  { %v1433_v41 = vpop.f32.mrf.mxu0 }
 0xf4c   :  { %v1127_v43 = vadd.f32 1.0, %v1126_v40  ;;  %v1140_v45 = vmul.f32 %v1139_v44, %v1125_v38 }
 0xf4e   :  { %1518 = vrcp.f32 %v1127_v43  ;;  %v1141_v48 = vmul.f32 1.442695, %v1140_v45 }
 0xf50   :  { %1520 = vpow2.f32 %v1141_v48 }
 0xf5b   :  { %v1519_v46 = vpop.eup %1518 }
 0xf5c   :  { %v1130_v47 = vmul.f32 1.0614054, %v1519_v46 }
 0xf5d   :  { %v1521_v42 = vpop.eup %1520 }
 0xf5e   :  { %v1131_v30 = vadd.f32 -1.4531521, %v1130_v47 }
 0xf60   :  { %v1132_v49 = vmul.f32 %v1519_v46, %v1131_v30 }
 0xf62   :  { %v1133_v50 = vadd.f32 1.4214138, %v1132_v49 }
 0xf64   :  { %v1134_v51 = vmul.f32 %v1519_v46, %v1133_v50 }
 0xf66   :  { %v1135_v52 = vadd.f32 -0.28449672, %v1134_v51 }
 0xf68   :  { %v1136_v53 = vmul.f32 %v1519_v46, %v1135_v52 }
 0xf6a   :  { %v1137_v54 = vadd.f32 0.2548296, %v1136_v53 }
 0xf6c   :  { %v1138_v55 = vmul.f32 %v1519_v46, %v1137_v54 }
 0xf6e   :  { %v1143_v56 = vmul.f32 %v1521_v42, %v1138_v55 }
 0xf70   :  { %v1144_v57 = vsub.f32 1.0, %v1143_v56 }
 0xf72   :  { %v1145_v60 = vmul.f32 %v1144_v57, %v1124_v59 }
 0xf74   :  { %v1146_v62 = vadd.f32 1.0, %v1145_v60 }
 0xf76   :  { %v1147_v63 = vmul.f32 %v1146_v62, %v1121_v61 }
 0xf78   :  { %v1164_v0 = vpack.c.bf16 %v1147_v63, %v1147_v63 }
 0xf7a   :  { %1451 = vmatmul.mubr.bf16.vlgmr.msra.gmra.mxu1 %v1164_v0 }
0x103a   :  { %v1247_v1 = vpop.f32.mrf.mxu1 }
0x103b   :  { %v1253_v2 = vadd.f32 %v1247_v1, %v1775_v4  ;;  %v1334_v4 = vld [vmem:[%s1850_s11] ss:$0 sm:$0xff] }
0x103c   :  { %v1452_v3 = vpop.f32.mrf.mxu1 }
0x103d   :  { %v1256_v6 = vsel %vm192_vm1, %v1253_v2, 0.0 }
0x103e   :  { %1257 = vadd.xlane.f32.xlu0 %v1256_v6  ;;  %v1250_v7 = vpop.f32.mrf.mxu1 }
0x1040   :  { %v1453_v8 = vpop.f32.mrf.mxu1 }
0x10c7   :  { %v1258_v5 = vpop.xlane.xlu0 %1257 }
0x10c8   :  { %v1259_v9 = vmul.f32 0.03125, %v1258_v5 }
0x10ca   :  { %v1260_v10 = vsub.f32 %v1253_v2, %v1259_v9 }
0x10cc   :  { %v1261_v11 = vmul.f32 %v1260_v10, %v1260_v10 }
0x10ce   :  { %v1262_v12 = vsel %vm192_vm1, %v1261_v11, 0.0 }
0x10cf   :  { %1263 = vadd.xlane.f32.xlu0 %v1262_v12 }
0x1158   :  { %v1264_v13 = vpop.xlane.xlu0 %1263 }
0x1159   :  { %v1265_v19 = vmul.f32 0.03125, %v1264_v13 }
0x115b   :  { %v1266_v14 = vadd.f32 1e-05, %v1265_v19 }
0x115d   :  { %1522 = vrsqrt.f32 %v1266_v14 }
0x116a   :  { %v1523_v15 = vpop.eup %1522 }
0x116b   :  { %v1268_v16 = vmul.f32 %v1523_v15, %v1260_v10 }
0x116d   :  { %v1275_v18 = vmul.f32 %v1334_v4, %v1268_v16 }
0x116f   :  { %v1282_v20 = vadd.f32 %v1335_v17, %v1275_v18 }
0x1171   :  { %1283 = vst.msk [vmem:[%s1852_s13] sm:$0xff] %vm192_vm1, %v1282_v20 }

// kernel: flamingo_forward.6
= control target key start
LH: loop header
LB: loop body
LE: loop exit
PB: predicated region body
PF: predicated region fallthrough
CT: control target
= control target key end

     0   :  { %vm103_vm0 = vcmask 261120   ;;  %v3731_v21 = vmov 0.0   ;;  %vm3732_vm1 = vmmov 0   ;;  %vm340_vm2 = vcmask 130048   ;;  %s3734_s27 = smov 64   ;;  %s3736_s28 = smov 96   ;;  %s4531_s1 = inlined_call_operand.vmem [shape: f32[16,32], index: 1, kind: input, shape index: {}]   ;;  %s4532_s0 = inlined_call_operand.vmem [shape: f32[8,32], index: 0, kind: input, shape index: {}]   ;;  %s4533_s6 = inlined_call_operand.vmem [shape: bf16[32,64], index: 6, kind: input, shape index: {}]   ;;  %s4534_s7 = inlined_call_operand.vmem [shape: bf16[32,128], index: 7, kind: input, shape index: {}]   ;;  %s4535_s4 = inlined_call_operand.vmem [shape: f32[1,32], index: 4, kind: input, shape index: {}]   ;;  %s4536_s2 = inlined_call_operand.vmem [shape: f32[1,32], index: 2, kind: input, shape index: {}]   ;;  %s4537_s5 = inlined_call_operand.vmem [shape: f32[1,32], index: 5, kind: input, shape index: {}]   ;;  %s4538_s3 = inlined_call_operand.vmem [shape: f32[1,32], index: 3, kind: input, shape index: {}]   ;;  %s4539_s8 = inlined_call_operand.vmem [shape: bf16[64,32], index: 8, kind: input, shape index: {}]   ;;  %s4540_s11 = inlined_call_operand.vmem [shape: bf16[32,128], index: 11, kind: input, shape index: {}]   ;;  %s4541_s9 = inlined_call_operand.vmem [shape: f32[1,32], index: 9, kind: input, shape index: {}]   ;;  %s4542_s10 = inlined_call_operand.vmem [shape: f32[1,32], index: 10, kind: input, shape index: {}]   ;;  %s4543_s12 = inlined_call_operand.vmem [shape: bf16[128,32], index: 12, kind: input, shape index: {}]   ;;  %s4544_s17 = inlined_call_operand.vmem [shape: bf16[32,64], index: 17, kind: input, shape index: {}]   ;;  %s4545_s18 = inlined_call_operand.vmem [shape: bf16[32,128], index: 18, kind: input, shape index: {}]   ;;  %s4546_s15 = inlined_call_operand.vmem [shape: f32[1,32], index: 15, kind: input, shape index: {}]   ;;  %s4547_s16 = inlined_call_operand.vmem [shape: f32[1,32], index: 16, kind: input, shape index: {}]   ;;  %s4548_s13 = inlined_call_operand.vmem [shape: f32[1,32], index: 13, kind: input, shape index: {}]   ;;  %s4549_s14 = inlined_call_operand.vmem [shape: f32[1,32], index: 14, kind: input, shape index: {}]   ;;  %s4550_s19 = inlined_call_operand.vmem [shape: bf16[64,32], index: 19, kind: input, shape index: {}]   ;;  %s4551_s22 = inlined_call_operand.vmem [shape: bf16[32,128], index: 22, kind: input, shape index: {}]   ;;  %s4552_s20 = inlined_call_operand.vmem [shape: f32[1,32], index: 20, kind: input, shape index: {}]   ;;  %s4553_s21 = inlined_call_operand.vmem [shape: f32[1,32], index: 21, kind: input, shape index: {}]   ;;  %s4554_s23 = inlined_call_operand.vmem [shape: bf16[128,32], index: 23, kind: input, shape index: {}]   ;;  %s4555_s24 = inlined_call_operand.vmem [shape: f32[1,32], index: 24, kind: input, shape index: {}]   ;;  %s4556_s25 = inlined_call_operand.vmem [shape: f32[1,32], index: 25, kind: input, shape index: {}]   ;;  %s4557_s26 = inlined_call_operand.vmem [shape: f32[16,32], index: 26, kind: output, shape index: {}]  }
   0x1   :  { %4563 = sst [smem:[#allocation2_spill]] %s4531_s1  ;;  %3281 = vmatprep.subr.bf16.mxu0 %v3731_v21  ;;  %3289 = vmatprep.subr.bf16.mxu1 %v3731_v21  ;;  %vm433_vm5 = vcmask 195584   ;;  %s3739_s29 = smov 16   ;;  %vm1201_vm7 = vcmask 392192   ;;  %vm1237_vm8 = vcmask 523264  }
   0x2   :  { %4564 = sst [smem:[#allocation3_spill]] %s4532_s0  ;;  %3285 = vmatprep.mubr.msk.bf16.mxu0 %vm3732_vm1, %v3731_v21  ;;  %3293 = vmatprep.mubr.msk.bf16.mxu1 %vm3732_vm1, %v3731_v21 }
   0x3   :  { %4565 = sst [smem:[#allocation4_spill]] %s4533_s6 }
   0x4   :  { %4566 = sst [smem:[#allocation5_spill]] %s4534_s7 }
   0x5   :  { %4567 = sst [smem:[#allocation6_spill]] %s4535_s4 }
   0x6   :  { %4568 = sst [smem:[#allocation7_spill]] %s4536_s2 }
   0x7   :  { %4569 = sst [smem:[#allocation8_spill]] %s4537_s5 }
   0x8   :  { %4570 = sst [smem:[#allocation9_spill]] %s4538_s3  ;;  %s3733_s3 = smov 112  }
   0x9   :  { %4571 = sst [smem:[#allocation10_spill]] %s4539_s8  ;;  %s3737_s8 = smov 32  }
   0xa   :  { %4572 = sst [smem:[#allocation11_spill]] %s4540_s11 }
   0xb   :  { %4573 = sst [smem:[#allocation12_spill]] %s4541_s9 }
   0xc   :  { %s4574_s7 = sld [smem:[#allocation2_spill]] }
   0xd   :  { %s4575_s1 = sld [smem:[#allocation3_spill]] }
   0xe   :  { %s4576_s2 = sld [smem:[#allocation4_spill]] }
   0xf   :  { %s4577_s5 = sld [smem:[#allocation5_spill]] }
  0x10   :  { %s4578_s4 = sld [smem:[#allocation6_spill]] }
  0x11   :  { %s4579_s11 = sld [smem:[#allocation7_spill]] }
  0x12   :  { %v3879_v0 = vld [vmem:[%s4574_s7] sm:$0xff]  ;;  %v3884_v1 = vld [vmem:[%s4574_s7 + $0x8] sm:$0xff]  ;;  %s4580_s6 = sld [smem:[#allocation8_spill]]  ;;  %s3735_s7 = smov 48  }
  0x13   :  { %v84_v2 = vld [vmem:[%s4575_s1] sm:$0xff]  ;;  %v134_v3 = vsel %vm103_vm0, %v3879_v0, 0.0  ;;  %v137_v5 = vsel %vm103_vm0, %v3884_v1, 0.0  ;;  %s4581_s0 = sld [smem:[#allocation9_spill]] }
  0x14   :  { %v104_v4 = vsel %vm103_vm0, %v84_v2, 0.0  ;;  %135 = vadd.xlane.f32.xlu0 %v134_v3  ;;  %v3593_v22 = vld [vmem:[%s4576_s2 + $0x8] sm:$0xff]   ;;  %v3595_v24 = vld [vmem:[%s4576_s2] sm:$0xff]   ;;  %s4586_s30 = sld [smem:[#allocation10_spill]] }
  0x15   :  { %105 = vadd.xlane.f32.xlu1 %v104_v4  ;;  %v3594_v23 = vld [vmem:[%s4577_s5 + $0x8] sm:$0xff]   ;;  %3282 = vmatpush3.bf16.msra.mxu0 %v3593_v22  ;;  %v3596_v25 = vld [vmem:[%s4577_s5] sm:$0xff]   ;;  %s4587_s2 = sld [smem:[#allocation11_spill]] }
  0x16   :  { %3290 = vmatpush3.bf16.msra.mxu1 %v3594_v23  ;;  %3283 = vmatprep.subr.bf16.mxu0 %v3731_v21  ;;  %v3035_v37 = vld [vmem:[%s4578_s4] ss:$0 sm:$0xff]  ;;  %s3738_s4 = smov 80   ;;  %s4588_s1 = sld [smem:[#allocation12_spill]] }
  0x17   :  { %3291 = vmatprep.subr.bf16.mxu1 %v3731_v21  ;;  %v3033_v42 = vld [vmem:[%s4579_s11] ss:$0 sm:$0xff] }
  0x18   :  { %138 = vadd.xlane.f32.xlu0 %v137_v5  ;;  %v3036_v43 = vld [vmem:[%s4580_s6] ss:$0 sm:$0xff] }
  0x19   :  { %3284 = vmatpush3.bf16.msra.mxu0 %v3595_v24  ;;  %v3034_v46 = vld [vmem:[%s4581_s0] ss:$0 sm:$0xff] }
  0x1a   :  { %3292 = vmatpush3.bf16.msra.mxu1 %v3596_v25  ;;  %3297 = vmatprep.subr.bf16.mxu0 %v3731_v21 }
  0x9d   :  { %v136_v6 = vpop.xlane.xlu0 %135 }
  0x9e   :  { %v106_v7 = vpop.xlane.xlu1 %105  ;;  %v140_v8 = vmul.f32 0.03125, %v136_v6 }
  0x9f   :  { %v108_v9 = vmul.f32 0.03125, %v106_v7 }
  0xa0   :  { %v142_v10 = vsub.f32 %v3879_v0, %v140_v8 }
  0xa1   :  { %v109_v11 = vsub.f32 %v84_v2, %v108_v9  ;;  %v139_v12 = vpop.xlane.xlu0 %138 }
  0xa2   :  { %v141_v13 = vmul.f32 0.03125, %v139_v12  ;;  %v144_v14 = vmul.f32 %v142_v10, %v142_v10 }
  0xa3   :  { %v110_v15 = vmul.f32 %v109_v11, %v109_v11 }
  0xa4   :  { %v143_v16 = vsub.f32 %v3884_v1, %v141_v13  ;;  %v146_v17 = vsel %vm103_vm0, %v144_v14, 0.0 }
  0xa5   :  { %147 = vadd.xlane.f32.xlu1 %v146_v17  ;;  %v111_v19 = vsel %vm103_vm0, %v110_v15, 0.0 }
  0xa6   :  { %v145_v18 = vmul.f32 %v143_v16, %v143_v16 }
  0xa8   :  { %v149_v20 = vsel %vm103_vm0, %v145_v18, 0.0 }
  0xa9   :  { %150 = vadd.xlane.f32.xlu0 %v149_v20  ;;  %112 = vadd.xlane.f32.xlu1 %v111_v19 }
 0x12e   :  { %v148_v26 = vpop.xlane.xlu1 %147 }
 0x12f   :  { %v152_v27 = vmul.f32 0.03125, %v148_v26 }
 0x131   :  { %v154_v28 = vadd.f32 1e-05, %v152_v27 }
 0x132   :  { %v151_v29 = vpop.xlane.xlu0 %150  ;;  %v113_v30 = vpop.xlane.xlu1 %112 }
 0x133   :  { %3629 = vrsqrt.f32 %v154_v28  ;;  %v153_v31 = vmul.f32 0.03125, %v151_v29  ;;  %v114_v32 = vmul.f32 0.03125, %v113_v30 }
 0x135   :  { %v155_v33 = vadd.f32 1e-05, %v153_v31  ;;  %v115_v34 = vadd.f32 1e-05, %v114_v32 }
 0x137   :  { %3631 = vrsqrt.f32 %v155_v33 }
 0x138   :  { %3633 = vrsqrt.f32 %v115_v34 }
 0x140   :  { %v3630_v35 = vpop.eup %3629 }
 0x141   :  { %v158_v36 = vmul.f32 %v3630_v35, %v142_v10 }
 0x143   :  { %v166_v41 = vmul.f32 %v3035_v37, %v158_v36 }
 0x144   :  { %v3632_v38 = vpop.eup %3631 }
 0x145   :  { %v3634_v39 = vpop.eup %3633  ;;  %v159_v40 = vmul.f32 %v3632_v38, %v143_v16  ;;  %v174_v48 = vadd.f32 %v3036_v43, %v166_v41 }
 0x146   :  { %v3929_v44 = vmul.f32 %v3634_v39, %v109_v11  ;;  %v87_v11 = vlaneseq }
 0x147   :  { %v167_v45 = vmul.f32 %v3035_v37, %v159_v40 }
 0x148   :  { %v124_v47 = vmul.f32 %v3033_v42, %v3929_v44  ;;  %v91_v12 = vand.u32 127, %v87_v11  ;;  %v88_v13 = vshrl.u32 %v87_v11, 7 }
 0x149   :  { %v175_v49 = vadd.f32 %v3036_v43, %v167_v45 }
 0x14a   :  { %v131_v50 = vadd.f32 %v3034_v46, %v124_v47  ;;  %v3032_v14 = vadd.s32 4294967288, %v91_v12  ;;  %v89_v15 = vadd.s32 8, %v88_v13  ;;  %v93_v16 = vshra.s32 %v91_v12, 2 }
 0x14b   :  { %v180_v51 = vpack.c.bf16 %v175_v49, %v174_v48  ;;  %vm92_vm3 = vcmp.lt.s32.totalorder %v91_v12, 8  ;;  %v97_v20 = vshra.s32 %v88_v13, 3 }
 0x14c   :  { %v241_v52 = vpack.c.bf16 %v131_v50, %v131_v50  ;;  %v95_v17 = vshra.s32 %v3032_v14, 3  ;;  %v98_v18 = vshra.s32 %v89_v15, 3 }
 0x14d   :  { %3286 = vmatmul.mubr.msk.bf16.vlgmr.msra.gmra.mxu0 %vm103_vm0, %v180_v51 }
 0x14e   :  { %3294 = vmatmul.mubr.msk.bf16.vlgmr.msra.gmra.mxu1 %vm103_vm0, %v241_v52  ;;  %3298 = vmatpush3.bf16.msra.mxu0 %v3594_v23  ;;  %v96_v19 = vsel %vm92_vm3, %v93_v16, %v95_v17 }
 0x14f   :  { %3299 = vmatprep.subr.bf16.mxu0 %v3731_v21  ;;  %3301 = vmatprep.mubr.msk.bf16.mxu0 %vm3732_vm1, %v3731_v21  ;;  %vm3987_vm4 = vcmp.eq.s32.totalorder %v98_v18, %v96_v19  ;;  %vm3991_vm6 = vcmp.eq.s32.totalorder %v97_v20, %v96_v19 }
 0x152   :  { %3300 = vmatpush3.bf16.msra.mxu0 %v3596_v25 }
 0x155   :  { %3302 = vmatmul.mubr.msk.bf16.vlgmr.msra.gmra.mxu0 %vm103_vm0, %v180_v51 }
 0x20d   :  { %v230_v53 = vpop.f32.mrf.mxu0 }
 0x20e   :  { %v3941_v54 = vmul.f32 0.25, %v230_v53  ;;  %v3943_v55 = vpop.f32.mrf.mxu1 }
 0x20f   :  { %v3287_v56 = vpop.f32.mrf.mxu0 }
 0x210   :  { %v3295_v57 = vpop.f32.mrf.mxu1  ;;  %3311 = vmatprep.mubr.msk.f32.mxu0 %vm340_vm2, %v3941_v54 }
 0x211   :  { %v233_v58 = vpop.f32.mrf.mxu0 }
 0x212   :  { %v294_v59 = vpop.f32.mrf.mxu1  ;;  %v3961_v4 = vmul.f32 0.25, %v233_v58 }
 0x213   :  { %v3288_v60 = vpop.f32.mrf.mxu0 }
 0x214   :  { %v3296_v61 = vpop.f32.mrf.mxu1 }
 0x215   :  { %v3947_v62 = vpop.f32.mrf.mxu0 }
 0x216   :  { %552 = vrot.lane.b32.xlu1 %v3947_v62, %s3733_s3 }
 0x217   :  { %v3303_v63 = vpop.f32.mrf.mxu0 }
 0x219   :  { %v3951_v2 = vpop.f32.mrf.mxu0 }
 0x21a   :  { %554 = vrot.lane.b32.xlu0 %v3951_v2, %s3733_s3  ;;  %3305 = vmatprep.subr.msk.mxu0 %vm340_vm2, %v3951_v2 }
 0x21b   :  { %550 = vrot.lane.b32.xlu1 %v3943_v55, %s3733_s3  ;;  %v3304_v3 = vpop.f32.mrf.mxu0  ;;  %3306 = vmatpush3.xpose.msk.msra.mxu0 %vm340_vm2, %v3951_v2 }
 0x21c   :  { %3307 = vmatprep.subr.msk.mxu0 %vm340_vm2, %v3947_v62 }
 0x21e   :  { %548 = vrot.lane.b32.xlu0 %v3961_v4, %s3733_s3 }
 0x21f   :  { %546 = vrot.lane.b32.xlu1 %v3941_v54, %s3733_s3  ;;  %3308 = vmatpush3.xpose.msk.msra.mxu0 %vm340_vm2, %v3947_v62 }
 0x220   :  { %3309 = vmatprep.subr.msk.mxu0 %vm340_vm2, %v3943_v55 }
 0x223   :  { %460 = vrot.lane.b32.xlu1 %v3951_v2, %s3734_s27  ;;  %3310 = vmatpush3.xpose.msk.msra.mxu0 %vm340_vm2, %v3943_v55 }
 0x226   :  { %3312 = vmatmul.mubr.msk.f32.vlgmr.msra.gmra.mxu0 %vm340_vm2, %v3961_v4 }
 0x288   :  { %v553_v5 = vpop.permute.xlu1 %552 }
 0x28c   :  { %v555_v6 = vpop.permute.xlu0 %554 }
 0x28d   :  { %v551_v7 = vpop.permute.xlu1 %550  ;;  %3323 = vmatprep.subr.msk.mxu1 %vm340_vm2, %v555_v6 }
 0x28e   :  { %3324 = vmatpush3.xpose.msk.msra.mxu1 %vm340_vm2, %v555_v6 }
 0x28f   :  { %3325 = vmatprep.subr.msk.mxu1 %vm340_vm2, %v553_v5 }
 0x290   :  { %v549_v10 = vpop.permute.xlu0 %548 }
 0x291   :  { %v547_v8 = vpop.permute.xlu1 %546 }
 0x292   :  { %3329 = vmatprep.mubr.msk.f32.mxu1 %vm340_vm2, %v547_v8  ;;  %3326 = vmatpush3.xpose.msk.msra.mxu1 %vm340_vm2, %v553_v5 }
 0x293   :  { %3327 = vmatprep.subr.msk.mxu1 %vm340_vm2, %v551_v7 }
 0x295   :  { %v461_v9 = vpop.permute.xlu1 %460 }
 0x296   :  { %3314 = vmatprep.subr.mxu0 %v461_v9  ;;  %3328 = vmatpush3.xpose.msk.msra.mxu1 %vm340_vm2, %v551_v7 }
 0x297   :  { %3315 = vmatpush3.msra.mxu0 %v461_v9 }
 0x299   :  { %3330 = vmatmul.mubr.msk.f32.vlgmr.msra.gmra.mxu1 %vm340_vm2, %v549_v10 }
 0x2e6   :  { %v3313_v23 = vpop.f32.mrf.mxu0 }
 0x2e7   :  { %v432_v25 = vsel %vm3987_vm4, %v3313_v23, -3.4028235e+38 }
 0x2e8   :  { %v422_v26 = vpop.f32.mrf.mxu0  ;;  %v437_v27 = vsel %vm433_vm5, %v432_v25, -inf }
 0x2e9   :  { %v431_v28 = vsel %vm3991_vm6, %v422_v26, -3.4028235e+38  ;;  %438 = vmax.xlane.f32.xlu0 %v437_v27 }
 0x2ea   :  { %v434_v29 = vsel %vm433_vm5, %v431_v28, -inf }
 0x2eb   :  { %435 = vmax.xlane.f32.xlu1 %v434_v29 }
 0x2fc   :  { %456 = vrot.lane.b32.xlu1 %v3943_v55, %s3734_s27 }
 0x300   :  { %669 = vrot.lane.b32.xlu1 %v3951_v2, %s3735_s7 }
 0x304   :  { %667 = vrot.lane.b32.xlu1 %v3947_v62, %s3735_s7 }
 0x359   :  { %v3331_v30 = vpop.f32.mrf.mxu1 }
 0x35a   :  { %v642_v31 = vsel %vm3987_vm4, %v3331_v30, -3.4028235e+38 }
 0x35b   :  { %v632_v32 = vpop.f32.mrf.mxu1  ;;  %v646_v33 = vsel %vm433_vm5, %v642_v31, -inf }
 0x35c   :  { %v641_v34 = vsel %vm3991_vm6, %v632_v32, -3.4028235e+38  ;;  %647 = vmax.xlane.f32.xlu0 %v646_v33 }
 0x35d   :  { %v643_v35 = vsel %vm433_vm5, %v641_v34, -inf }
 0x360   :  { %644 = vmax.xlane.f32.xlu0 %v643_v35 }
 0x372   :  { %v439_v39 = vpop.xlane.xlu0 %438 }
 0x373   :  { %v441_v40 = vsub.f32 %v432_v25, %v439_v39 }
 0x374   :  { %v436_v36 = vpop.xlane.xlu1 %435 }
 0x375   :  { %v440_v37 = vsub.f32 %v431_v28, %v436_v36  ;;  %v444_v41 = vmul.f32 1.442695, %v441_v40 }
 0x376   :  { %458 = vrot.lane.b32.xlu0 %v3947_v62, %s3734_s27 }
 0x377   :  { %v442_v38 = vmul.f32 1.442695, %v440_v37 }
 0x378   :  { %v457_v52 = vpop.permute.xlu1 %456 }
 0x379   :  { %3635 = vpow2.f32 %v442_v38 }
 0x37a   :  { %3637 = vpow2.f32 %v444_v41 }
 0x37c   :  { %v670_v57 = vpop.permute.xlu1 %669 }
 0x380   :  { %v668_v63 = vpop.permute.xlu1 %667 }
 0x386   :  { %v3636_v42 = vpop.eup %3635 }
 0x387   :  { %v446_v43 = vsel %vm433_vm5, %v3636_v42, 0.0  ;;  %v3638_v45 = vpop.eup %3637 }
 0x388   :  { %447 = vadd.xlane.f32.xlu1 %v446_v43  ;;  %v449_v46 = vsel %vm433_vm5, %v3638_v45, 0.0 }
 0x395   :  { %450 = vadd.xlane.f32.xlu0 %v449_v46 }
 0x399   :  { %763 = vrot.lane.b32.xlu1 %v3951_v2, %s3736_s28 }
 0x3ab   :  { %665 = vrot.lane.b32.xlu0 %v3943_v55, %s3735_s7 }
 0x3e5   :  { %v648_v47 = vpop.xlane.xlu0 %647 }
 0x3e6   :  { %v650_v48 = vsub.f32 %v642_v31, %v648_v47 }
 0x3e8   :  { %v653_v49 = vmul.f32 1.442695, %v650_v48 }
 0x3e9   :  { %v645_v50 = vpop.xlane.xlu0 %644 }
 0x3ea   :  { %3639 = vpow2.f32 %v653_v49  ;;  %v649_v51 = vsub.f32 %v641_v34, %v645_v50 }
 0x3ec   :  { %v651_v53 = vmul.f32 1.442695, %v649_v51 }
 0x3ed   :  { %v459_v56 = vpop.permute.xlu0 %458 }
 0x3ee   :  { %3641 = vpow2.f32 %v651_v53  ;;  %3316 = vmatprep.subr.mxu0 %v459_v56 }
 0x3ef   :  { %3317 = vmatpush3.msra.mxu0 %v459_v56 }
 0x3f0   :  { %3318 = vmatprep.subr.mxu0 %v457_v52 }
 0x3f1   :  { %3319 = vmatpush3.msra.mxu0 %v457_v52 }
 0x3f2   :  { %3332 = vmatprep.subr.mxu0 %v670_v57 }
 0x3f7   :  { %v3640_v58 = vpop.eup %3639 }
 0x3f8   :  { %v658_v59 = vsel %vm433_vm5, %v3640_v58, 0.0 }
 0x3f9   :  { %659 = vadd.xlane.f32.xlu0 %v658_v59 }
 0x3fb   :  { %v3642_v60 = vpop.eup %3641 }
 0x3fc   :  { %v655_v61 = vsel %vm433_vm5, %v3642_v60, 0.0 }
 0x3fd   :  { %656 = vadd.xlane.f32.xlu1 %v655_v61 }
 0x40e   :  { %759 = vrot.lane.b32.xlu1 %v3943_v55, %s3736_s28 }
 0x40f   :  { %761 = vrot.lane.b32.xlu0 %v3947_v62, %s3736_s28 }
 0x411   :  { %v448_v3 = vpop.xlane.xlu1 %447 }
 0x412   :  { %3643 = vrcp.f32 %v448_v3  ;;  %757 = vrot.lane.b32.xlu1 %v3961_v4, %s3736_s28 }
 0x413   :  { %755 = vrot.lane.b32.xlu0 %v3941_v54, %s3736_s28 }
 0x415   :  { %v764_v11 = vpop.permute.xlu1 %763 }
 0x41e   :  { %v451_v5 = vpop.xlane.xlu0 %450 }
 0x41f   :  { %v3644_v6 = vpop.eup %3643  ;;  %3645 = vrcp.f32 %v451_v5 }
 0x420   :  { %v454_v7 = vmul.f32 %v3644_v6, %v3636_v42 }
 0x422   :  { %3320 = vmatprep.mubr.msk.f32.mxu0 %vm433_vm5, %v454_v7  ;;  %v666_v10 = vpop.permute.xlu0 %665 }
 0x42c   :  { %v3646_v8 = vpop.eup %3645 }
 0x42d   :  { %v455_v9 = vmul.f32 %v3646_v8, %v3638_v45 }
 0x42f   :  { %3321 = vmatmul.mubr.msk.f32.vlgmr.msra.gmra.mxu0 %vm433_vm5, %v455_v9 }
 0x430   :  { %3333 = vmatpush3.msra.mxu0 %v670_v57 }
 0x431   :  { %3334 = vmatprep.subr.mxu0 %v668_v63 }
 0x432   :  { %3335 = vmatpush3.msra.mxu0 %v668_v63 }
 0x433   :  { %3336 = vmatprep.subr.mxu0 %v666_v10 }
 0x434   :  { %3337 = vmatpush3.msra.mxu0 %v666_v10 }
 0x435   :  { %3341 = vmatprep.subr.msk.mxu0 %vm340_vm2, %v764_v11 }
 0x482   :  { %v660_v12 = vpop.xlane.xlu0 %659 }
 0x483   :  { %3647 = vrcp.f32 %v660_v12 }
 0x486   :  { %v657_v13 = vpop.xlane.xlu1 %656  ;;  %v762_v14 = vpop.permute.xlu0 %761 }
 0x487   :  { %3649 = vrcp.f32 %v657_v13 }
 0x48a   :  { %v756_v19 = vpop.permute.xlu0 %755  ;;  %v760_v20 = vpop.permute.xlu1 %759 }
 0x48e   :  { %v758_v23 = vpop.permute.xlu1 %757 }
 0x490   :  { %v3648_v15 = vpop.eup %3647 }
 0x491   :  { %v664_v18 = vmul.f32 %v3648_v15, %v3640_v58 }
 0x494   :  { %v3650_v16 = vpop.eup %3649 }
 0x495   :  { %v663_v17 = vmul.f32 %v3650_v16, %v3642_v60 }
 0x497   :  { %3338 = vmatprep.mubr.msk.f32.mxu0 %vm433_vm5, %v663_v17 }
 0x498   :  { %3339 = vmatmul.mubr.msk.f32.vlgmr.msra.gmra.mxu0 %vm433_vm5, %v664_v18 }
 0x499   :  { %3342 = vmatpush3.xpose.msk.msra.mxu0 %vm340_vm2, %v764_v11  ;;  %3347 = vmatprep.mubr.msk.f32.mxu0 %vm340_vm2, %v756_v19 }
 0x49a   :  { %3343 = vmatprep.subr.msk.mxu0 %vm340_vm2, %v762_v14 }
 0x49d   :  { %3344 = vmatpush3.xpose.msk.msra.mxu0 %vm340_vm2, %v762_v14 }
 0x49e   :  { %3345 = vmatprep.subr.msk.mxu0 %vm340_vm2, %v760_v20 }
 0x4a1   :  { %3346 = vmatpush3.xpose.msk.msra.mxu0 %vm340_vm2, %v760_v20 }
 0x4a4   :  { %3348 = vmatmul.mubr.msk.f32.vlgmr.msra.gmra.mxu0 %vm340_vm2, %v758_v23 }
 0x4ef   :  { %v4043_v25 = vpop.f32.mrf.mxu0 }
 0x4f1   :  { %v4045_v26 = vpop.f32.mrf.mxu0 }
 0x558   :  { %v4047_v27 = vpop.f32.mrf.mxu0 }
 0x55a   :  { %v4049_v28 = vpop.f32.mrf.mxu0 }
 0x55b   :  { %v3563_v29 = vpack.i.bf16 %v4047_v27, %v4049_v28 }
 0x564   :  { %v3349_v30 = vpop.f32.mrf.mxu0 }
 0x565   :  { %v851_v31 = vsel %vm3987_vm4, %v3349_v30, -3.4028235e+38 }
 0x566   :  { %v841_v32 = vpop.f32.mrf.mxu0  ;;  %v855_v33 = vsel %vm433_vm5, %v851_v31, -inf }
 0x567   :  { %v850_v34 = vsel %vm3991_vm6, %v841_v32, -3.4028235e+38  ;;  %856 = vmax.xlane.f32.xlu1 %v855_v33  ;;  %v3597_v32 = vld [vmem:[%s4586_s30 + $0x18] sm:$0xff]   ;;  %v3598_v33 = vld [vmem:[%s4586_s30 + $0x10] sm:$0xff]  }
 0x568   :  { %v852_v35 = vsel %vm433_vm5, %v850_v34, -inf }
 0x569   :  { %853 = vmax.xlane.f32.xlu0 %v852_v35  ;;  %v3600_v35 = vld [vmem:[%s4586_s30] sm:$0xff]  }
 0x578   :  { %876 = vrot.lane.b32.xlu1 %v3947_v62, %s3737_s8 }
 0x57c   :  { %874 = vrot.lane.b32.xlu1 %v3943_v55, %s3737_s8 }
 0x580   :  { %972 = vrot.lane.b32.xlu1 %v3951_v2, %s3738_s4 }
 0x584   :  { %968 = vrot.lane.b32.xlu1 %v3943_v55, %s3738_s4 }
 0x588   :  { %966 = vrot.lane.b32.xlu1 %v3961_v4, %s3738_s4 }
 0x5f0   :  { %v857_v36 = vpop.xlane.xlu1 %856 }
 0x5f1   :  { %v859_v37 = vsub.f32 %v851_v31, %v857_v36 }
 0x5f2   :  { %v854_v38 = vpop.xlane.xlu0 %853 }
 0x5f3   :  { %v862_v39 = vmul.f32 1.442695, %v859_v37  ;;  %v858_v40 = vsub.f32 %v850_v34, %v854_v38  ;;  %v3599_v34 = vld [vmem:[%s4586_s30 + $0x8] sm:$0xff]  }
 0x5f4   :  { %v877_v47 = vpop.permute.xlu1 %876 }
 0x5f5   :  { %3651 = vpow2.f32 %v862_v39  ;;  %v860_v41 = vmul.f32 1.442695, %v858_v40 }
 0x5f7   :  { %3653 = vpow2.f32 %v860_v41 }
 0x5f8   :  { %v875_v49 = vpop.permute.xlu1 %874 }
 0x5fc   :  { %v973_v51 = vpop.permute.xlu1 %972 }
 0x600   :  { %v969_v59 = vpop.permute.xlu1 %968 }
 0x602   :  { %v3652_v42 = vpop.eup %3651 }
 0x603   :  { %v867_v43 = vsel %vm433_vm5, %v3652_v42, 0.0 }
 0x604   :  { %v3654_v45 = vpop.eup %3653  ;;  %868 = vadd.xlane.f32.xlu0 %v867_v43  ;;  %v967_v60 = vpop.permute.xlu1 %966 }
 0x605   :  { %v864_v46 = vsel %vm433_vm5, %v3654_v45, 0.0 }
 0x608   :  { %865 = vadd.xlane.f32.xlu0 %v864_v46 }
 0x61e   :  { %878 = vrot.lane.b32.xlu0 %v3951_v2, %s3737_s8 }
 0x622   :  { %970 = vrot.lane.b32.xlu0 %v3947_v62, %s3738_s4 }
 0x626   :  { %964 = vrot.lane.b32.xlu0 %v3941_v54, %s3738_s4 }
 0x68d   :  { %v869_v4 = vpop.xlane.xlu0 %868 }
 0x68e   :  { %3655 = vrcp.f32 %v869_v4 }
 0x691   :  { %v866_v48 = vpop.xlane.xlu0 %865 }
 0x692   :  { %3657 = vrcp.f32 %v866_v48 }
 0x695   :  { %v879_v50 = vpop.permute.xlu0 %878 }
 0x696   :  { %3350 = vmatprep.subr.mxu1 %v879_v50 }
 0x697   :  { %3351 = vmatpush3.msra.mxu1 %v879_v50 }
 0x698   :  { %3352 = vmatprep.subr.mxu1 %v877_v47 }
 0x699   :  { %3353 = vmatpush3.msra.mxu1 %v877_v47  ;;  %v971_v52 = vpop.permute.xlu0 %970 }
 0x69a   :  { %3354 = vmatprep.subr.mxu1 %v875_v49 }
 0x69b   :  { %3355 = vmatpush3.msra.mxu1 %v875_v49  ;;  %v3656_v53 = vpop.eup %3655 }
 0x69c   :  { %3359 = vmatprep.subr.msk.mxu1 %vm340_vm2, %v973_v51  ;;  %v873_v57 = vmul.f32 %v3656_v53, %v3652_v42 }
 0x69d   :  { %v965_v58 = vpop.permute.xlu0 %964 }
 0x69f   :  { %v3658_v56 = vpop.eup %3657 }
 0x6a0   :  { %v872_v54 = vmul.f32 %v3658_v56, %v3654_v45 }
 0x6a2   :  { %3356 = vmatprep.mubr.msk.f32.mxu1 %vm433_vm5, %v872_v54 }
 0x6a3   :  { %3357 = vmatmul.mubr.msk.f32.vlgmr.msra.gmra.mxu1 %vm433_vm5, %v873_v57 }
 0x6a4   :  { %3360 = vmatpush3.xpose.msk.msra.mxu1 %vm340_vm2, %v973_v51  ;;  %3365 = vmatprep.mubr.msk.f32.mxu1 %vm340_vm2, %v965_v58 }
 0x6a5   :  { %3361 = vmatprep.subr.msk.mxu1 %vm340_vm2, %v971_v52 }
 0x6a8   :  { %3362 = vmatpush3.xpose.msk.msra.mxu1 %vm340_vm2, %v971_v52 }
 0x6a9   :  { %3363 = vmatprep.subr.msk.mxu1 %vm340_vm2, %v969_v59 }
 0x6ac   :  { %3364 = vmatpush3.xpose.msk.msra.mxu1 %vm340_vm2, %v969_v59 }
 0x6ad   :  { %3389 = vmatprep.subr.bf16.mxu1 %v3731_v21 }
 0x6af   :  { %3366 = vmatmul.mubr.msk.f32.vlgmr.msra.gmra.mxu1 %vm340_vm2, %v967_v60 }
 0x6b0   :  { %3393 = vmatprep.mubr.msk.bf16.mxu1 %vm3732_vm1, %v3731_v21 }
 0x763   :  { %v3358_v61 = vpop.f32.mrf.mxu1 }
 0x765   :  { %v955_v63 = vpop.f32.mrf.mxu1 }
 0x766   :  { %v3568_v3 = vpack.i.bf16 %v3358_v61, %v955_v63 }
 0x76f   :  { %v3367_v5 = vpop.f32.mrf.mxu1 }
 0x770   :  { %v1060_v6 = vsel %vm3987_vm4, %v3367_v5, -3.4028235e+38 }
 0x771   :  { %v1050_v7 = vpop.f32.mrf.mxu1  ;;  %v1064_v8 = vsel %vm433_vm5, %v1060_v6, -inf }
 0x772   :  { %v1059_v9 = vsel %vm3991_vm6, %v1050_v7, -3.4028235e+38  ;;  %1065 = vmax.xlane.f32.xlu1 %v1064_v8 }
 0x773   :  { %v1061_v10 = vsel %vm433_vm5, %v1059_v9, -inf }
 0x774   :  { %1062 = vmax.xlane.f32.xlu0 %v1061_v10 }
 0x783   :  { %1085 = vrot.lane.b32.xlu1 %v3947_v62, %s3739_s29 }
 0x787   :  { %1083 = vrot.lane.b32.xlu1 %v3943_v55, %s3739_s29 }
 0x78b   :  { %3564 = vrot.lane.b32.xlu1 %v3563_v29, %s3739_s29 }
 0x7fb   :  { %v1066_v11 = vpop.xlane.xlu1 %1065 }
 0x7fc   :  { %v1068_v12 = vsub.f32 %v1060_v6, %v1066_v11  ;;  %v3601_v11 = vld [vmem:[%s4587_s2 + $0x8] sm:$0xff]  }
 0x7fd   :  { %v1063_v13 = vpop.xlane.xlu0 %1062  ;;  %3390 = vmatpush3.bf16.msra.mxu1 %v3601_v11 }
 0x7fe   :  { %v1071_v14 = vmul.f32 1.442695, %v1068_v12  ;;  %v1067_v15 = vsub.f32 %v1059_v9, %v1063_v13  ;;  %v3602_v12 = vld [vmem:[%s4587_s2] sm:$0xff]   ;;  %3391 = vmatprep.subr.bf16.mxu1 %v3731_v21 }
 0x7ff   :  { %v1086_v23 = vpop.permute.xlu1 %1085 }
 0x800   :  { %3659 = vpow2.f32 %v1071_v14  ;;  %v1069_v16 = vmul.f32 1.442695, %v1067_v15 }
 0x801   :  { %3392 = vmatpush3.bf16.msra.mxu1 %v3602_v12 }
 0x802   :  { %3661 = vpow2.f32 %v1069_v16  ;;  %3397 = vmatprep.subr.bf16.mxu1 %v3731_v21 }
 0x803   :  { %v1084_v28 = vpop.permute.xlu1 %1083 }
 0x807   :  { %v3565_v39 = vpop.permute.xlu1 %3564 }
 0x808   :  { %v3567_v41 = vunpack.i.h.bf16 %v3565_v39  ;;  %v3566_v42 = vunpack.i.l.bf16 %v3565_v39  ;;  %v3610_v39 = vld [vmem:[%s4543_s12] sm:$0xff]  }
 0x80a   :  { %v1198_v4 = vsel %vm340_vm2, %v4043_v25, %v3567_v41  ;;  %v1197_v47 = vsel %vm340_vm2, %v4045_v26, %v3566_v42 }
 0x80d   :  { %v3660_v17 = vpop.eup %3659 }
 0x80e   :  { %v1076_v18 = vsel %vm433_vm5, %v3660_v17, 0.0 }
 0x80f   :  { %v3662_v62 = vpop.eup %3661  ;;  %1077 = vadd.xlane.f32.xlu0 %v1076_v18 }
 0x810   :  { %v1073_v55 = vsel %vm433_vm5, %v3662_v62, 0.0 }
 0x813   :  { %1074 = vadd.xlane.f32.xlu0 %v1073_v55 }
 0x829   :  { %1087 = vrot.lane.b32.xlu0 %v3951_v2, %s3739_s29 }
 0x82d   :  { %3569 = vrot.lane.b32.xlu0 %v3568_v3, %s3737_s8 }
 0x898   :  { %v1078_v19 = vpop.xlane.xlu0 %1077 }
 0x899   :  { %3663 = vrcp.f32 %v1078_v19  ;;  %v3077_v19 = vld [vmem:[%s4588_s1] ss:$0 sm:$0xff] }
 0x89c   :  { %v1075_v20 = vpop.xlane.xlu0 %1074 }
 0x89d   :  { %3665 = vrcp.f32 %v1075_v20 }
 0x8a0   :  { %v1088_v27 = vpop.permute.xlu0 %1087 }
 0x8a1   :  { %3368 = vmatprep.subr.mxu0 %v1088_v27 }
 0x8a2   :  { %3369 = vmatpush3.msra.mxu0 %v1088_v27 }
 0x8a3   :  { %3370 = vmatprep.subr.mxu0 %v1086_v23 }
 0x8a4   :  { %3371 = vmatpush3.msra.mxu0 %v1086_v23  ;;  %v3570_v40 = vpop.permute.xlu0 %3569 }
 0x8a5   :  { %3372 = vmatprep.subr.mxu0 %v1084_v28  ;;  %v3572_v43 = vunpack.i.h.bf16 %v3570_v40  ;;  %v3571_v45 = vunpack.i.l.bf16 %v3570_v40 }
 0x8a6   :  { %3373 = vmatpush3.msra.mxu0 %v1084_v28  ;;  %v3664_v29 = vpop.eup %3663  ;;  %v3078_v28 = vld [vmem:[%s4542_s10] ss:$0 sm:$0xff] }
 0x8a7   :  { %3377 = vmatprep.subr.bf16.mxu0 %v3731_v21  ;;  %v1082_v31 = vmul.f32 %v3664_v29, %v3660_v17  ;;  %v1200_v50 = vsel %vm103_vm0, %v1198_v4, %v3572_v43  ;;  %v1199_v51 = vsel %vm103_vm0, %v1197_v47, %v3571_v45 }
 0x8aa   :  { %v3666_v30 = vpop.eup %3665 }
 0x8ab   :  { %v1081_v2 = vmul.f32 %v3666_v30, %v3662_v62 }
 0x8ad   :  { %3374 = vmatprep.mubr.msk.f32.mxu0 %vm433_vm5, %v1081_v2 }
 0x8ae   :  { %3375 = vmatmul.mubr.msk.f32.vlgmr.msra.gmra.mxu0 %vm433_vm5, %v1082_v31 }
 0x8af   :  { %3385 = vmatprep.mubr.msk.bf16.mxu0 %vm3732_vm1, %v3731_v21  ;;  %3378 = vmatpush3.bf16.msra.mxu0 %v3597_v32  ;;  %v3603_v32 = vld [vmem:[%s4543_s12 + $0x38] sm:$0xff]  }
 0x8b0   :  { %3379 = vmatprep.subr.bf16.mxu0 %v3731_v21 }
 0x8b3   :  { %3380 = vmatpush3.bf16.msra.mxu0 %v3598_v33  ;;  %v3604_v33 = vld [vmem:[%s4543_s12 + $0x30] sm:$0xff]  }
 0x8b4   :  { %3381 = vmatprep.subr.bf16.mxu0 %v3731_v21 }
 0x8b7   :  { %3382 = vmatpush3.bf16.msra.mxu0 %v3599_v34  ;;  %v3605_v34 = vld [vmem:[%s4543_s12 + $0x28] sm:$0xff]  }
 0x8b8   :  { %3383 = vmatprep.subr.bf16.mxu0 %v3731_v21 }
 0x8bb   :  { %3384 = vmatpush3.bf16.msra.mxu0 %v3600_v35  ;;  %v3606_v35 = vld [vmem:[%s4543_s12 + $0x20] sm:$0xff]  }
 0x8bc   :  { %3417 = vmatprep.subr.bf16.mxu0 %v3731_v21 }
 0x96e   :  { %v3376_v36 = vpop.f32.mrf.mxu0 }
 0x970   :  { %v1164_v37 = vpop.f32.mrf.mxu0 }
 0x971   :  { %v3573_v38 = vpack.i.bf16 %v3376_v36, %v1164_v37  ;;  %v3607_v36 = vld [vmem:[%s4543_s12 + $0x18] sm:$0xff]   ;;  %v3608_v37 = vld [vmem:[%s4543_s12 + $0x10] sm:$0xff]  }
 0x973   :  { %3574 = vrot.lane.b32.xlu1 %v3573_v38, %s3735_s7  ;;  %v3609_v38 = vld [vmem:[%s4543_s12 + $0x8] sm:$0xff]  }
 0x9e5   :  { %v3575_v46 = vpop.permute.xlu1 %3574 }
 0x9e6   :  { %v3577_v48 = vunpack.i.h.bf16 %v3575_v46  ;;  %v3576_v49 = vunpack.i.l.bf16 %v3575_v46 }
 0x9e8   :  { %v1202_v52 = vsel %vm1201_vm7, %v1199_v51, %v3576_v49  ;;  %v1203_v53 = vsel %vm1201_vm7, %v1200_v50, %v3577_v48 }
 0x9e9   :  { %v1212_v56 = vpack.c.bf16 %v1203_v53, %v1202_v52 }
 0x9eb   :  { %3386 = vmatmul.mubr.msk.bf16.vlgmr.msra.gmra.mxu0 %vm1237_vm8, %v1212_v56 }
 0x9ec   :  { %3421 = vmatprep.mubr.msk.bf16.mxu0 %vm3732_vm1, %v3731_v21 }
 0xaab   :  { %v1275_v25 = vpop.f32.mrf.mxu0 }
 0xaac   :  { %v4143_v26 = vadd.f32 %v1275_v25, %v3879_v0 }
 0xaad   :  { %v3387_v54 = vpop.f32.mrf.mxu0 }
 0xaae   :  { %v1286_v57 = vsel %vm103_vm0, %v4143_v26, 0.0 }
 0xaaf   :  { %1287 = vadd.xlane.f32.xlu0 %v1286_v57  ;;  %v1278_v58 = vpop.f32.mrf.mxu0 }
 0xab0   :  { %v4148_v59 = vadd.f32 %v1278_v58, %v3884_v1 }
 0xab1   :  { %v3388_v60 = vpop.f32.mrf.mxu0 }
 0xab2   :  { %v1289_v61 = vsel %vm103_vm0, %v4148_v59, 0.0 }
 0xab3   :  { %1290 = vadd.xlane.f32.xlu1 %v1289_v61 }
 0xb38   :  { %v1288_v63 = vpop.xlane.xlu0 %1287 }
 0xb39   :  { %v1292_v3 = vmul.f32 0.03125, %v1288_v63 }
 0xb3b   :  { %v1294_v5 = vsub.f32 %v4143_v26, %v1292_v3 }
 0xb3c   :  { %v1291_v0 = vpop.xlane.xlu1 %1290 }
 0xb3d   :  { %v1293_v6 = vmul.f32 0.03125, %v1291_v0  ;;  %v1296_v7 = vmul.f32 %v1294_v5, %v1294_v5 }
 0xb3f   :  { %v1295_v8 = vsub.f32 %v4148_v59, %v1293_v6  ;;  %v1298_v9 = vsel %vm103_vm0, %v1296_v7, 0.0 }
 0xb40   :  { %1299 = vadd.xlane.f32.xlu0 %v1298_v9 }
 0xb41   :  { %v1297_v10 = vmul.f32 %v1295_v8, %v1295_v8 }
 0xb43   :  { %v1301_v1 = vsel %vm103_vm0, %v1297_v10, 0.0 }
 0xb44   :  { %1302 = vadd.xlane.f32.xlu0 %v1301_v1 }
 0xbc9   :  { %v1300_v13 = vpop.xlane.xlu0 %1299 }
 0xbca   :  { %v1304_v14 = vmul.f32 0.03125, %v1300_v13 }
 0xbcc   :  { %v1306_v15 = vadd.f32 1e-05, %v1304_v14 }
 0xbcd   :  { %v1303_v16 = vpop.xlane.xlu0 %1302 }
 0xbce   :  { %3667 = vrsqrt.f32 %v1306_v15  ;;  %v1305_v17 = vmul.f32 0.03125, %v1303_v16 }
 0xbd0   :  { %v1307_v18 = vadd.f32 1e-05, %v1305_v17 }
 0xbd2   :  { %3669 = vrsqrt.f32 %v1307_v18 }
 0xbdb   :  { %v3668_v62 = vpop.eup %3667 }
 0xbdc   :  { %v1310_v55 = vmul.f32 %v3668_v62, %v1294_v5 }
 0xbde   :  { %v1318_v27 = vmul.f32 %v3077_v19, %v1310_v55 }
 0xbdf   :  { %v3670_v20 = vpop.eup %3669 }
 0xbe0   :  { %v1311_v23 = vmul.f32 %v3670_v20, %v1295_v8  ;;  %v1326_v30 = vadd.f32 %v3078_v28, %v1318_v27  ;;  %v3740_v20 = vmov 1.0  }
 0xbe2   :  { %v1319_v29 = vmul.f32 %v3077_v19, %v1311_v23 }
 0xbe4   :  { %v1327_v2 = vadd.f32 %v3078_v28, %v1319_v29 }
 0xbe6   :  { %v1332_v31 = vpack.c.bf16 %v1327_v2, %v1326_v30 }
 0xbe8   :  { %3394 = vmatmul.mubr.msk.bf16.vlgmr.msra.gmra.mxu1 %vm103_vm0, %v1332_v31 }
 0xbe9   :  { %3413 = vmatprep.mubr.msk.bf16.mxu1 %vm3732_vm1, %v3731_v21  ;;  %3398 = vmatpush3.bf16.msra.mxu1 %v3603_v32 }
 0xbea   :  { %3399 = vmatprep.subr.bf16.mxu1 %v3731_v21 }
 0xbed   :  { %3400 = vmatpush3.bf16.msra.mxu1 %v3604_v33 }
 0xbee   :  { %3401 = vmatprep.subr.bf16.mxu1 %v3731_v21 }
 0xbf1   :  { %3402 = vmatpush3.bf16.msra.mxu1 %v3605_v34 }
 0xbf2   :  { %3403 = vmatprep.subr.bf16.mxu1 %v3731_v21 }
 0xbf5   :  { %3404 = vmatpush3.bf16.msra.mxu1 %v3606_v35 }
 0xbf6   :  { %3405 = vmatprep.subr.bf16.mxu1 %v3731_v21 }
 0xbf9   :  { %3406 = vmatpush3.bf16.msra.mxu1 %v3607_v36 }
 0xbfa   :  { %3407 = vmatprep.subr.bf16.mxu1 %v3731_v21 }
 0xbfd   :  { %3408 = vmatpush3.bf16.msra.mxu1 %v3608_v37 }
 0xbfe   :  { %3409 = vmatprep.subr.bf16.mxu1 %v3731_v21 }
 0xc01   :  { %3410 = vmatpush3.bf16.msra.mxu1 %v3609_v38 }
 0xc02   :  { %3411 = vmatprep.subr.bf16.mxu1 %v3731_v21 }
 0xc05   :  { %3412 = vmatpush3.bf16.msra.mxu1 %v3610_v39 }
 0xca8   :  { %v1382_v40 = vpop.f32.mrf.mxu1 }
 0xca9   :  { %v1391_v41 = vmul.f32 0.70710677, %v1382_v40  ;;  %v1389_v32 = vmul.f32 0.5, %v1382_v40 }
 0xcaa   :  { %v3395_v42 = vpop.f32.mrf.mxu1 }
 0xcab   :  { %v1397_v43 = vand.u32 2147483647, %v1391_v41  ;;  %vm1393_vm9 = vcmp.lt.f32.partialorder %v1391_v41, 0.0 }
 0xcac   :  { %v1385_v45 = vpop.f32.mrf.mxu1  ;;  %v1395_v23 = vsel %vm1393_vm9, -1.0, %v3740_v20 }
 0xcad   :  { %v1399_v46 = vmul.f32 0.3275911, %v1397_v43  ;;  %v1392_v4 = vmul.f32 0.70710677, %v1385_v45  ;;  %v1425_v52 = vsub.f32 0.0, %v1397_v43  ;;  %v1390_v33 = vmul.f32 0.5, %v1385_v45 }
 0xcae   :  { %v3396_v47 = vpop.f32.mrf.mxu1 }
 0xcaf   :  { %v1401_v48 = vadd.f32 1.0, %v1399_v46  ;;  %v1398_v49 = vand.u32 2147483647, %v1392_v4  ;;  %v1427_v53 = vmul.f32 %v1425_v52, %v1397_v43  ;;  %vm1394_vm10 = vcmp.lt.f32.partialorder %v1392_v4, 0.0 }
 0xcb0   :  { %v1396_v30 = vsel %vm1394_vm10, -1.0, %v3740_v20 }
 0xcb1   :  { %3671 = vrcp.f32 %v1401_v48  ;;  %v1400_v50 = vmul.f32 0.3275911, %v1398_v49  ;;  %v1426_v56 = vsub.f32 0.0, %v1398_v49  ;;  %v1429_v57 = vmul.f32 1.442695, %v1427_v53 }
 0xcb3   :  { %v1402_v51 = vadd.f32 1.0, %v1400_v50  ;;  %v1428_v58 = vmul.f32 %v1426_v56, %v1398_v49  ;;  %v3611_v56 = vld [vmem:[%s4544_s17 + $0x8] sm:$0xff]  }
 0xcb4   :  { %3418 = vmatpush3.bf16.msra.mxu0 %v3611_v56 }
 0xcb5   :  { %3673 = vrcp.f32 %v1402_v51  ;;  %v1431_v5 = vmul.f32 1.442695, %v1428_v58  ;;  %3419 = vmatprep.subr.bf16.mxu0 %v3731_v21 }
 0xcb6   :  { %3675 = vpow2.f32 %v1429_v57 }
 0xcb7   :  { %3677 = vpow2.f32 %v1431_v5 }
 0xcbe   :  { %v3672_v25 = vpop.eup %3671 }
 0xcbf   :  { %v1407_v54 = vmul.f32 1.0614054, %v3672_v25 }
 0xcc1   :  { %v1409_v60 = vadd.f32 -1.4531521, %v1407_v54 }
 0xcc2   :  { %v3674_v61 = vpop.eup %3673 }
 0xcc3   :  { %v1411_v63 = vmul.f32 %v3672_v25, %v1409_v60  ;;  %v1408_v3 = vmul.f32 1.0614054, %v3674_v61  ;;  %v3676_v16 = vpop.eup %3675 }
 0xcc4   :  { %v3678_v19 = vpop.eup %3677 }
 0xcc5   :  { %v1413_v0 = vadd.f32 1.4214138, %v1411_v63  ;;  %v1410_v6 = vadd.f32 -1.4531521, %v1408_v3 }
 0xcc7   :  { %v1415_v7 = vmul.f32 %v3672_v25, %v1413_v0  ;;  %v1412_v8 = vmul.f32 %v3674_v61, %v1410_v6  ;;  %v3092_v0 = vld [vmem:[%s4546_s15] ss:$0 sm:$0xff] }
 0xcc9   :  { %v1417_v9 = vadd.f32 -0.28449672, %v1415_v7  ;;  %v1414_v10 = vadd.f32 1.4214138, %v1412_v8 }
 0xccb   :  { %v1419_v1 = vmul.f32 %v3672_v25, %v1417_v9  ;;  %v1416_v11 = vmul.f32 %v3674_v61, %v1414_v10  ;;  %v3093_v9 = vld [vmem:[%s4547_s16] ss:$0 sm:$0xff] }
 0xccd   :  { %v1421_v12 = vadd.f32 0.2548296, %v1419_v1  ;;  %v1418_v13 = vadd.f32 -0.28449672, %v1416_v11  ;;  %v3090_v1 = vld [vmem:[%s4548_s13] ss:$0 sm:$0xff] }
 0xccf   :  { %v1423_v14 = vmul.f32 %v3672_v25, %v1421_v12  ;;  %v1420_v15 = vmul.f32 %v3674_v61, %v1418_v13  ;;  %v3612_v25 = vld [vmem:[%s4544_s17] sm:$0xff]   ;;  %v3613_v13 = vld [vmem:[%s4545_s18 + $0x8] sm:$0xff]  }
 0xcd0   :  { %3420 = vmatpush3.bf16.msra.mxu0 %v3612_v25 }
 0xcd1   :  { %v1433_v17 = vmul.f32 %v3676_v16, %v1423_v14  ;;  %v1422_v18 = vadd.f32 0.2548296, %v1420_v15  ;;  %3425 = vmatprep.subr.bf16.mxu0 %v3731_v21  ;;  %v1559_v14 = vmul.f32 %v3090_v1, %v3929_v44  ;;  %v3091_v16 = vld [vmem:[%s4549_s14] ss:$0 sm:$0xff] }
 0xcd3   :  { %v1435_v62 = vsub.f32 1.0, %v1433_v17  ;;  %v1424_v55 = vmul.f32 %v3674_v61, %v1422_v18  ;;  %v3614_v17 = vld [vmem:[%s4545_s18] sm:$0xff]   ;;  %v1566_v18 = vadd.f32 %v3091_v16, %v1559_v14 }
 0xcd5   :  { %v1437_v27 = vmul.f32 %v1435_v62, %v1395_v23  ;;  %v1434_v28 = vmul.f32 %v3678_v19, %v1424_v55  ;;  %v1676_v44 = vpack.c.bf16 %v1566_v18, %v1566_v18 }
 0xcd7   :  { %v1436_v29 = vsub.f32 1.0, %v1434_v28  ;;  %v1439_v2 = vadd.f32 1.0, %v1437_v27 }
 0xcd9   :  { %v1438_v31 = vmul.f32 %v1436_v29, %v1396_v30  ;;  %v1441_v35 = vmul.f32 %v1439_v2, %v1389_v32 }
 0xcdb   :  { %v1440_v34 = vadd.f32 1.0, %v1438_v31 }
 0xcdd   :  { %v1442_v36 = vmul.f32 %v1440_v34, %v1390_v33 }
 0xcdf   :  { %v1459_v37 = vpack.c.bf16 %v1442_v36, %v1441_v35 }
 0xce1   :  { %3414 = vmatmul.mubr.bf16.vlgmr.msra.gmra.mxu1 %v1459_v37 }
 0xda1   :  { %v1542_v38 = vpop.f32.mrf.mxu1 }
 0xda2   :  { %v4207_v39 = vadd.f32 %v1542_v38, %v4143_v26 }
 0xda3   :  { %v3415_v41 = vpop.f32.mrf.mxu1 }
 0xda4   :  { %v1569_v42 = vsel %vm103_vm0, %v4207_v39, 0.0 }
 0xda5   :  { %1570 = vadd.xlane.f32.xlu0 %v1569_v42  ;;  %v1545_v43 = vpop.f32.mrf.mxu1 }
 0xda6   :  { %v4212_v46 = vadd.f32 %v1545_v43, %v4148_v59 }
 0xda7   :  { %v3416_v40 = vpop.f32.mrf.mxu1 }
 0xda8   :  { %v1572_v45 = vsel %vm103_vm0, %v4212_v46, 0.0 }
 0xda9   :  { %1573 = vadd.xlane.f32.xlu1 %v1572_v45 }
 0xe2e   :  { %v1571_v4 = vpop.xlane.xlu0 %1570 }
 0xe2f   :  { %v1575_v47 = vmul.f32 0.03125, %v1571_v4 }
 0xe31   :  { %v1577_v48 = vsub.f32 %v4207_v39, %v1575_v47 }
 0xe32   :  { %v1574_v26 = vpop.xlane.xlu1 %1573 }
 0xe33   :  { %v1576_v49 = vmul.f32 0.03125, %v1574_v26  ;;  %v1579_v50 = vmul.f32 %v1577_v48, %v1577_v48 }
 0xe35   :  { %v1578_v51 = vsub.f32 %v4212_v46, %v1576_v49  ;;  %v1581_v52 = vsel %vm103_vm0, %v1579_v50, 0.0 }
 0xe36   :  { %1582 = vadd.xlane.f32.xlu0 %v1581_v52 }
 0xe37   :  { %v1580_v53 = vmul.f32 %v1578_v51, %v1578_v51 }
 0xe39   :  { %v1584_v59 = vsel %vm103_vm0, %v1580_v53, 0.0 }
 0xe3a   :  { %1585 = vadd.xlane.f32.xlu1 %v1584_v59 }
 0xebf   :  { %v1583_v54 = vpop.xlane.xlu0 %1582 }
 0xec0   :  { %v1587_v57 = vmul.f32 0.03125, %v1583_v54 }
 0xec2   :  { %v1589_v58 = vadd.f32 1e-05, %v1587_v57 }
 0xec3   :  { %v1586_v60 = vpop.xlane.xlu1 %1585 }
 0xec4   :  { %3679 = vrsqrt.f32 %v1589_v58  ;;  %v1588_v61 = vmul.f32 0.03125, %v1586_v60 }
 0xec6   :  { %v1590_v63 = vadd.f32 1e-05, %v1588_v61 }
 0xec8   :  { %3681 = vrsqrt.f32 %v1590_v63 }
 0xed1   :  { %v3680_v3 = vpop.eup %3679 }
 0xed2   :  { %v1593_v5 = vmul.f32 %v3680_v3, %v1577_v48 }
 0xed4   :  { %v1601_v8 = vmul.f32 %v3092_v0, %v1593_v5 }
 0xed5   :  { %v3682_v6 = vpop.eup %3681 }
 0xed6   :  { %v1594_v7 = vmul.f32 %v3682_v6, %v1578_v51  ;;  %v1609_v11 = vadd.f32 %v3093_v9, %v1601_v8 }
 0xed8   :  { %v1602_v10 = vmul.f32 %v3092_v0, %v1594_v7 }
 0xeda   :  { %v1610_v12 = vadd.f32 %v3093_v9, %v1602_v10 }
 0xedc   :  { %v1615_v15 = vpack.c.bf16 %v1610_v12, %v1609_v11 }
 0xede   :  { %3422 = vmatmul.mubr.msk.bf16.vlgmr.msra.gmra.mxu0 %vm103_vm0, %v1615_v15 }
 0xedf   :  { %3426 = vmatpush3.bf16.msra.mxu0 %v3613_v13  ;;  %3429 = vmatprep.mubr.msk.bf16.mxu0 %vm3732_vm1, %v3731_v21 }
 0xee0   :  { %3427 = vmatprep.subr.bf16.mxu0 %v3731_v21 }
 0xee3   :  { %3428 = vmatpush3.bf16.msra.mxu0 %v3614_v17 }
 0xee4   :  { %3433 = vmatprep.subr.bf16.mxu0 %v3731_v21 }
 0xee6   :  { %3430 = vmatmul.mubr.msk.bf16.vlgmr.msra.gmra.mxu0 %vm103_vm0, %v1676_v44 }
 0xee7   :  { %3434 = vmatpush3.bf16.msra.mxu0 %v3613_v13  ;;  %3437 = vmatprep.mubr.msk.bf16.mxu0 %vm3732_vm1, %v3731_v21 }
 0xee8   :  { %3435 = vmatprep.subr.bf16.mxu0 %v3731_v21 }
 0xeeb   :  { %3436 = vmatpush3.bf16.msra.mxu0 %v3614_v17 }
 0xeee   :  { %3438 = vmatmul.mubr.msk.bf16.vlgmr.msra.gmra.mxu0 %vm103_vm0, %v1615_v15 }
 0xf9e   :  { %v1665_v62 = vpop.f32.mrf.mxu0 }
 0xf9f   :  { %v4257_v55 = vmul.f32 0.25, %v1665_v62 }
 0xfa0   :  { %v3423_v19 = vpop.f32.mrf.mxu0 }
 0xfa1   :  { %3447 = vmatprep.mubr.msk.f32.mxu0 %vm340_vm2, %v4257_v55 }
 0xfa2   :  { %v1668_v23 = vpop.f32.mrf.mxu0 }
 0xfa3   :  { %v4279_v35 = vmul.f32 0.25, %v1668_v23 }
 0xfa4   :  { %v3424_v27 = vpop.f32.mrf.mxu0 }
 0xfa6   :  { %v4261_v28 = vpop.f32.mrf.mxu0 }
 0xfa8   :  { %v3431_v29 = vpop.f32.mrf.mxu0 }
 0xfaa   :  { %v1729_v30 = vpop.f32.mrf.mxu0 }
 0xfac   :  { %v3432_v2 = vpop.f32.mrf.mxu0 }
 0xfae   :  { %v4263_v31 = vpop.f32.mrf.mxu0 }
 0xfb0   :  { %v3439_v32 = vpop.f32.mrf.mxu0 }
 0xfb2   :  { %v4265_v33 = vpop.f32.mrf.mxu0 }
 0xfb3   :  { %3441 = vmatprep.subr.msk.mxu0 %vm340_vm2, %v4265_v33 }
 0xfb4   :  { %v3440_v34 = vpop.f32.mrf.mxu0  ;;  %3442 = vmatpush3.xpose.msk.msra.mxu0 %vm340_vm2, %v4265_v33 }
 0xfb5   :  { %3443 = vmatprep.subr.msk.mxu0 %vm340_vm2, %v4263_v31 }
 0xfb8   :  { %3444 = vmatpush3.xpose.msk.msra.mxu0 %vm340_vm2, %v4263_v31 }
 0xfb9   :  { %3445 = vmatprep.subr.msk.mxu0 %vm340_vm2, %v4261_v28 }
 0xfbc   :  { %3446 = vmatpush3.xpose.msk.msra.mxu0 %vm340_vm2, %v4261_v28 }
 0xfbf   :  { %3448 = vmatmul.mubr.msk.f32.vlgmr.msra.gmra.mxu0 %vm340_vm2, %v4279_v35 }
0x107f   :  { %v3449_v36 = vpop.f32.mrf.mxu0 }
0x1080   :  { %v1866_v37 = vsel %vm3987_vm4, %v3449_v36, -3.4028235e+38 }
0x1081   :  { %v1856_v38 = vpop.f32.mrf.mxu0  ;;  %v1870_v41 = vsel %vm433_vm5, %v1866_v37, -inf }
0x1082   :  { %v1865_v42 = vsel %vm3991_vm6, %v1856_v38, -3.4028235e+38  ;;  %1871 = vmax.xlane.f32.xlu1 %v1870_v41 }
0x1083   :  { %v1867_v43 = vsel %vm433_vm5, %v1865_v42, -inf }
0x1084   :  { %1868 = vmax.xlane.f32.xlu0 %v1867_v43 }
0x110b   :  { %v1872_v40 = vpop.xlane.xlu1 %1871 }
0x110c   :  { %v1874_v45 = vsub.f32 %v1866_v37, %v1872_v40 }
0x110d   :  { %v1869_v4 = vpop.xlane.xlu0 %1868 }
0x110e   :  { %v1877_v47 = vmul.f32 1.442695, %v1874_v45  ;;  %v1873_v48 = vsub.f32 %v1865_v42, %v1869_v4 }
0x1110   :  { %3683 = vpow2.f32 %v1877_v47  ;;  %v1875_v26 = vmul.f32 1.442695, %v1873_v48 }
0x1112   :  { %3685 = vpow2.f32 %v1875_v26 }
0x111d   :  { %v3684_v49 = vpop.eup %3683 }
0x111e   :  { %v1882_v50 = vsel %vm433_vm5, %v3684_v49, 0.0 }
0x111f   :  { %v3686_v51 = vpop.eup %3685  ;;  %1883 = vadd.xlane.f32.xlu1 %v1882_v50 }
0x1120   :  { %v1879_v52 = vsel %vm433_vm5, %v3686_v51, 0.0 }
0x1121   :  { %1880 = vadd.xlane.f32.xlu0 %v1879_v52 }
0x1130   :  { %1891 = vrot.lane.b32.xlu1 %v4263_v31, %s3734_s27 }
0x1134   :  { %1889 = vrot.lane.b32.xlu1 %v4261_v28, %s3734_s27 }
0x1137   :  { %1893 = vrot.lane.b32.xlu0 %v4265_v33, %s3734_s27 }
0x1138   :  { %1987 = vrot.lane.b32.xlu1 %v4265_v33, %s3733_s3 }
0x113b   :  { %1985 = vrot.lane.b32.xlu0 %v4263_v31, %s3733_s3 }
0x113c   :  { %1983 = vrot.lane.b32.xlu1 %v4261_v28, %s3733_s3 }
0x113f   :  { %1979 = vrot.lane.b32.xlu0 %v4257_v55, %s3733_s3 }
0x1140   :  { %1981 = vrot.lane.b32.xlu1 %v4279_v35, %s3733_s3 }
0x11a8   :  { %v1884_v53 = vpop.xlane.xlu1 %1883 }
0x11a9   :  { %3687 = vrcp.f32 %v1884_v53 }
0x11aa   :  { %v1881_v59 = vpop.xlane.xlu0 %1880 }
0x11ab   :  { %3689 = vrcp.f32 %v1881_v59 }
0x11ac   :  { %v1892_v56 = vpop.permute.xlu1 %1891 }
0x11ae   :  { %v1894_v25 = vpop.permute.xlu0 %1893 }
0x11af   :  { %3450 = vmatprep.subr.mxu1 %v1894_v25 }
0x11b0   :  { %v1890_v54 = vpop.permute.xlu1 %1889  ;;  %3451 = vmatpush3.msra.mxu1 %v1894_v25 }
0x11b1   :  { %3452 = vmatprep.subr.mxu1 %v1892_v56 }
0x11b2   :  { %3453 = vmatpush3.msra.mxu1 %v1892_v56  ;;  %v1986_v58 = vpop.permute.xlu0 %1985 }
0x11b3   :  { %3454 = vmatprep.subr.mxu1 %v1890_v54 }
0x11b4   :  { %v1988_v57 = vpop.permute.xlu1 %1987  ;;  %3455 = vmatpush3.msra.mxu1 %v1890_v54 }
0x11b5   :  { %3459 = vmatprep.subr.msk.mxu1 %vm340_vm2, %v1988_v57 }
0x11b6   :  { %v3688_v60 = vpop.eup %3687  ;;  %v1980_v5 = vpop.permute.xlu0 %1979 }
0x11b7   :  { %v1888_v3 = vmul.f32 %v3688_v60, %v3684_v49 }
0x11b8   :  { %v3690_v61 = vpop.eup %3689  ;;  %v1984_v0 = vpop.permute.xlu1 %1983 }
0x11b9   :  { %v1887_v63 = vmul.f32 %v3690_v61, %v3686_v51 }
0x11bb   :  { %3456 = vmatprep.mubr.msk.f32.mxu1 %vm433_vm5, %v1887_v63 }
0x11bc   :  { %3457 = vmatmul.mubr.msk.f32.vlgmr.msra.gmra.mxu1 %vm433_vm5, %v1888_v3  ;;  %v1982_v6 = vpop.permute.xlu1 %1981 }
0x11bd   :  { %3460 = vmatpush3.xpose.msk.msra.mxu1 %vm340_vm2, %v1988_v57  ;;  %3465 = vmatprep.mubr.msk.f32.mxu1 %vm340_vm2, %v1980_v5 }
0x11be   :  { %3461 = vmatprep.subr.msk.mxu1 %vm340_vm2, %v1986_v58 }
0x11c1   :  { %3462 = vmatpush3.xpose.msk.msra.mxu1 %vm340_vm2, %v1986_v58 }
0x11c2   :  { %3463 = vmatprep.subr.msk.mxu1 %vm340_vm2, %v1984_v0 }
0x11c5   :  { %3464 = vmatpush3.xpose.msk.msra.mxu1 %vm340_vm2, %v1984_v0 }
0x11c8   :  { %3466 = vmatmul.mubr.msk.f32.vlgmr.msra.gmra.mxu1 %vm340_vm2, %v1982_v6 }
0x127c   :  { %v4317_v7 = vpop.f32.mrf.mxu1 }
0x127e   :  { %v4319_v8 = vpop.f32.mrf.mxu1 }
0x1288   :  { %v3467_v9 = vpop.f32.mrf.mxu1 }
0x1289   :  { %v2075_v10 = vsel %vm3987_vm4, %v3467_v9, -3.4028235e+38 }
0x128a   :  { %v2065_v1 = vpop.f32.mrf.mxu1  ;;  %v2079_v11 = vsel %vm433_vm5, %v2075_v10, -inf }
0x128b   :  { %v2074_v12 = vsel %vm3991_vm6, %v2065_v1, -3.4028235e+38  ;;  %2080 = vmax.xlane.f32.xlu1 %v2079_v11 }
0x128c   :  { %v2076_v13 = vsel %vm433_vm5, %v2074_v12, -inf }
0x128d   :  { %2077 = vmax.xlane.f32.xlu0 %v2076_v13 }
0x129c   :  { %2100 = vrot.lane.b32.xlu1 %v4263_v31, %s3735_s7 }
0x12a0   :  { %2098 = vrot.lane.b32.xlu1 %v4261_v28, %s3735_s7 }
0x12a4   :  { %2196 = vrot.lane.b32.xlu1 %v4265_v33, %s3736_s28 }
0x12a8   :  { %2192 = vrot.lane.b32.xlu1 %v4261_v28, %s3736_s28 }
0x12ac   :  { %2190 = vrot.lane.b32.xlu1 %v4279_v35, %s3736_s28 }
0x1314   :  { %v2081_v14 = vpop.xlane.xlu1 %2080 }
0x1315   :  { %v2083_v15 = vsub.f32 %v2075_v10, %v2081_v14 }
0x1316   :  { %v2078_v16 = vpop.xlane.xlu0 %2077 }
0x1317   :  { %v2086_v17 = vmul.f32 1.442695, %v2083_v15  ;;  %v2082_v18 = vsub.f32 %v2074_v12, %v2078_v16 }
0x1318   :  { %v2101_v30 = vpop.permute.xlu1 %2100 }
0x1319   :  { %3691 = vpow2.f32 %v2086_v17  ;;  %v2084_v44 = vmul.f32 1.442695, %v2082_v18 }
0x131b   :  { %3693 = vpow2.f32 %v2084_v44 }
0x131c   :  { %v2099_v32 = vpop.permute.xlu1 %2098 }
0x1320   :  { %v2197_v36 = vpop.permute.xlu1 %2196 }
0x1324   :  { %v2193_v45 = vpop.permute.xlu1 %2192 }
0x1326   :  { %v3692_v62 = vpop.eup %3691 }
0x1327   :  { %v2091_v19 = vsel %vm433_vm5, %v3692_v62, 0.0 }
0x1328   :  { %v3694_v23 = vpop.eup %3693  ;;  %2092 = vadd.xlane.f32.xlu0 %v2091_v19  ;;  %v2191_v4 = vpop.permute.xlu1 %2190 }
0x1329   :  { %v2088_v27 = vsel %vm433_vm5, %v3694_v23, 0.0 }
0x132c   :  { %2089 = vadd.xlane.f32.xlu0 %v2088_v27 }
0x1342   :  { %2102 = vrot.lane.b32.xlu0 %v4265_v33, %s3735_s7 }
0x1346   :  { %2194 = vrot.lane.b32.xlu0 %v4263_v31, %s3736_s28 }
0x134a   :  { %2188 = vrot.lane.b32.xlu0 %v4257_v55, %s3736_s28 }
0x13b1   :  { %v2093_v29 = vpop.xlane.xlu0 %2092 }
0x13b2   :  { %3695 = vrcp.f32 %v2093_v29 }
0x13b5   :  { %v2090_v2 = vpop.xlane.xlu0 %2089 }
0x13b6   :  { %3697 = vrcp.f32 %v2090_v2 }
0x13b9   :  { %v2103_v34 = vpop.permute.xlu0 %2102 }
0x13ba   :  { %3468 = vmatprep.subr.mxu0 %v2103_v34 }
0x13bb   :  { %3469 = vmatpush3.msra.mxu0 %v2103_v34 }
0x13bc   :  { %3470 = vmatprep.subr.mxu0 %v2101_v30 }
0x13bd   :  { %3471 = vmatpush3.msra.mxu0 %v2101_v30  ;;  %v2195_v37 = vpop.permute.xlu0 %2194 }
0x13be   :  { %3472 = vmatprep.subr.mxu0 %v2099_v32 }
0x13bf   :  { %3473 = vmatpush3.msra.mxu0 %v2099_v32  ;;  %v3696_v38 = vpop.eup %3695 }
0x13c0   :  { %3477 = vmatprep.subr.msk.mxu0 %vm340_vm2, %v2197_v36  ;;  %v2097_v43 = vmul.f32 %v3696_v38, %v3692_v62 }
0x13c1   :  { %v2189_v40 = vpop.permute.xlu0 %2188 }
0x13c3   :  { %v3698_v41 = vpop.eup %3697 }
0x13c4   :  { %v2096_v42 = vmul.f32 %v3698_v41, %v3694_v23 }
0x13c6   :  { %3474 = vmatprep.mubr.msk.f32.mxu0 %vm433_vm5, %v2096_v42 }
0x13c7   :  { %3475 = vmatmul.mubr.msk.f32.vlgmr.msra.gmra.mxu0 %vm433_vm5, %v2097_v43 }
0x13c8   :  { %3478 = vmatpush3.xpose.msk.msra.mxu0 %vm340_vm2, %v2197_v36  ;;  %3483 = vmatprep.mubr.msk.f32.mxu0 %vm340_vm2, %v2189_v40 }
0x13c9   :  { %3479 = vmatprep.subr.msk.mxu0 %vm340_vm2, %v2195_v37 }
0x13cc   :  { %3480 = vmatpush3.xpose.msk.msra.mxu0 %vm340_vm2, %v2195_v37 }
0x13cd   :  { %3481 = vmatprep.subr.msk.mxu0 %vm340_vm2, %v2193_v45 }
0x13d0   :  { %3482 = vmatpush3.xpose.msk.msra.mxu0 %vm340_vm2, %v2193_v45 }
0x13d3   :  { %3484 = vmatmul.mubr.msk.f32.vlgmr.msra.gmra.mxu0 %vm340_vm2, %v2191_v4 }
0x1487   :  { %v4355_v47 = vpop.f32.mrf.mxu0 }
0x1489   :  { %v4357_v48 = vpop.f32.mrf.mxu0 }
0x148a   :  { %v3578_v26 = vpack.i.bf16 %v4355_v47, %v4357_v48 }
0x1493   :  { %v3485_v49 = vpop.f32.mrf.mxu0 }
0x1494   :  { %v2284_v50 = vsel %vm3987_vm4, %v3485_v49, -3.4028235e+38  ;;  %v3615_v49 = vld [vmem:[%s4550_s19 + $0x18] sm:$0xff]  }
0x1495   :  { %v2274_v51 = vpop.f32.mrf.mxu0  ;;  %v2288_v52 = vsel %vm433_vm5, %v2284_v50, -inf }
0x1496   :  { %v2283_v53 = vsel %vm3991_vm6, %v2274_v51, -3.4028235e+38  ;;  %2289 = vmax.xlane.f32.xlu1 %v2288_v52  ;;  %v3617_v51 = vld [vmem:[%s4550_s19 + $0x8] sm:$0xff]   ;;  %v3618_v52 = vld [vmem:[%s4550_s19] sm:$0xff]  }
0x1497   :  { %v2285_v59 = vsel %vm433_vm5, %v2283_v53, -inf }
0x1498   :  { %2286 = vmax.xlane.f32.xlu0 %v2285_v59 }
0x14a7   :  { %2309 = vrot.lane.b32.xlu1 %v4263_v31, %s3737_s8 }
0x14ab   :  { %2307 = vrot.lane.b32.xlu1 %v4261_v28, %s3737_s8 }
0x14af   :  { %2405 = vrot.lane.b32.xlu1 %v4265_v33, %s3738_s4 }
0x14b3   :  { %2401 = vrot.lane.b32.xlu1 %v4261_v28, %s3738_s4 }
0x14b7   :  { %2399 = vrot.lane.b32.xlu1 %v4279_v35, %s3738_s4 }
0x151f   :  { %v2290_v56 = vpop.xlane.xlu1 %2289 }
0x1520   :  { %v2292_v25 = vsub.f32 %v2284_v50, %v2290_v56  ;;  %v3616_v50 = vld [vmem:[%s4550_s19 + $0x10] sm:$0xff]  }
0x1521   :  { %v2287_v54 = vpop.xlane.xlu0 %2286 }
0x1522   :  { %v2295_v57 = vmul.f32 1.442695, %v2292_v25  ;;  %v2291_v58 = vsub.f32 %v2283_v53, %v2287_v54 }
0x1523   :  { %v2310_v0 = vpop.permute.xlu1 %2309 }
0x1524   :  { %3699 = vpow2.f32 %v2295_v57  ;;  %v2293_v60 = vmul.f32 1.442695, %v2291_v58 }
0x1526   :  { %3701 = vpow2.f32 %v2293_v60 }
0x1527   :  { %v2308_v9 = vpop.permute.xlu1 %2307 }
0x152b   :  { %v2406_v1 = vpop.permute.xlu1 %2405 }
0x152f   :  { %v2402_v16 = vpop.permute.xlu1 %2401 }
0x1531   :  { %v3700_v61 = vpop.eup %3699 }
0x1532   :  { %v2300_v63 = vsel %vm433_vm5, %v3700_v61, 0.0 }
0x1533   :  { %v3702_v3 = vpop.eup %3701  ;;  %2301 = vadd.xlane.f32.xlu0 %v2300_v63  ;;  %v2400_v17 = vpop.permute.xlu1 %2399 }
0x1534   :  { %v2297_v5 = vsel %vm433_vm5, %v3702_v3, 0.0 }
0x1537   :  { %2298 = vadd.xlane.f32.xlu0 %v2297_v5 }
0x154d   :  { %2311 = vrot.lane.b32.xlu0 %v4265_v33, %s3737_s8 }
0x1551   :  { %2403 = vrot.lane.b32.xlu0 %v4263_v31, %s3738_s4 }
0x1555   :  { %2397 = vrot.lane.b32.xlu0 %v4257_v55, %s3738_s4 }
0x15bc   :  { %v2302_v35 = vpop.xlane.xlu0 %2301 }
0x15bd   :  { %3703 = vrcp.f32 %v2302_v35 }
0x15c0   :  { %v2299_v6 = vpop.xlane.xlu0 %2298 }
0x15c1   :  { %3705 = vrcp.f32 %v2299_v6 }
0x15c4   :  { %v2312_v10 = vpop.permute.xlu0 %2311 }
0x15c5   :  { %3486 = vmatprep.subr.mxu1 %v2312_v10 }
0x15c6   :  { %3487 = vmatpush3.msra.mxu1 %v2312_v10 }
0x15c7   :  { %3488 = vmatprep.subr.mxu1 %v2310_v0 }
0x15c8   :  { %3489 = vmatpush3.msra.mxu1 %v2310_v0  ;;  %v2404_v11 = vpop.permute.xlu0 %2403 }
0x15c9   :  { %3490 = vmatprep.subr.mxu1 %v2308_v9 }
0x15ca   :  { %3491 = vmatpush3.msra.mxu1 %v2308_v9  ;;  %v3704_v12 = vpop.eup %3703 }
0x15cb   :  { %3495 = vmatprep.subr.msk.mxu1 %vm340_vm2, %v2406_v1  ;;  %v2306_v14 = vmul.f32 %v3704_v12, %v3700_v61 }
0x15cc   :  { %v2398_v15 = vpop.permute.xlu0 %2397 }
0x15ce   :  { %v3706_v13 = vpop.eup %3705 }
0x15cf   :  { %v2305_v55 = vmul.f32 %v3706_v13, %v3702_v3 }
0x15d1   :  { %3492 = vmatprep.mubr.msk.f32.mxu1 %vm433_vm5, %v2305_v55 }
0x15d2   :  { %3493 = vmatmul.mubr.msk.f32.vlgmr.msra.gmra.mxu1 %vm433_vm5, %v2306_v14 }
0x15d3   :  { %3496 = vmatpush3.xpose.msk.msra.mxu1 %vm340_vm2, %v2406_v1  ;;  %3501 = vmatprep.mubr.msk.f32.mxu1 %vm340_vm2, %v2398_v15 }
0x15d4   :  { %3497 = vmatprep.subr.msk.mxu1 %vm340_vm2, %v2404_v11 }
0x15d7   :  { %3498 = vmatpush3.xpose.msk.msra.mxu1 %vm340_vm2, %v2404_v11 }
0x15d8   :  { %3499 = vmatprep.subr.msk.mxu1 %vm340_vm2, %v2402_v16 }
0x15db   :  { %3500 = vmatpush3.xpose.msk.msra.mxu1 %vm340_vm2, %v2402_v16 }
0x15dc   :  { %3525 = vmatprep.subr.bf16.mxu1 %v3731_v21 }
0x15de   :  { %3502 = vmatmul.mubr.msk.f32.vlgmr.msra.gmra.mxu1 %vm340_vm2, %v2400_v17 }
0x15df   :  { %3529 = vmatprep.mubr.msk.bf16.mxu1 %vm3732_vm1, %v3731_v21 }
0x1692   :  { %v3494_v18 = vpop.f32.mrf.mxu1 }
0x1694   :  { %v2388_v44 = vpop.f32.mrf.mxu1 }
0x1695   :  { %v3583_v62 = vpack.i.bf16 %v3494_v18, %v2388_v44 }
0x169e   :  { %v3503_v19 = vpop.f32.mrf.mxu1 }
0x169f   :  { %v2493_v23 = vsel %vm3987_vm4, %v3503_v19, -3.4028235e+38 }
0x16a0   :  { %v2497_v27 = vsel %vm433_vm5, %v2493_v23, -inf  ;;  %v2483_v29 = vpop.f32.mrf.mxu1 }
0x16a1   :  { %v2492_v30 = vsel %vm3991_vm6, %v2483_v29, -3.4028235e+38  ;;  %2498 = vmax.xlane.f32.xlu1 %v2497_v27 }
0x16a2   :  { %v2494_v2 = vsel %vm433_vm5, %v2492_v30, -inf }
0x16a3   :  { %2495 = vmax.xlane.f32.xlu0 %v2494_v2  ;;  %v3620_v2 = vld [vmem:[%s4551_s22] sm:$0xff]  }
0x16b2   :  { %2518 = vrot.lane.b32.xlu1 %v4263_v31, %s3739_s29 }
0x16b6   :  { %2516 = vrot.lane.b32.xlu1 %v4261_v28, %s3739_s29 }
0x16ba   :  { %3579 = vrot.lane.b32.xlu1 %v3578_v26, %s3739_s29 }
0x172a   :  { %v2499_v22 = vpop.xlane.xlu1 %2498 }
0x172b   :  { %v2501_v32 = vsub.f32 %v2493_v23, %v2499_v22 }
0x172c   :  { %v2496_v34 = vpop.xlane.xlu0 %2495 }
0x172d   :  { %v2504_v24 = vmul.f32 1.442695, %v2501_v32  ;;  %v2500_v36 = vsub.f32 %v2492_v30, %v2496_v34  ;;  %v3619_v30 = vld [vmem:[%s4551_s22 + $0x8] sm:$0xff]  }
0x172e   :  { %v2519_v40 = vpop.permute.xlu1 %2518  ;;  %3526 = vmatpush3.bf16.msra.mxu1 %v3619_v30 }
0x172f   :  { %3707 = vpow2.f32 %v2504_v24  ;;  %v2502_v37 = vmul.f32 1.442695, %v2500_v36  ;;  %3527 = vmatprep.subr.bf16.mxu1 %v3731_v21 }
0x1731   :  { %3709 = vpow2.f32 %v2502_v37 }
0x1732   :  { %v2517_v4 = vpop.permute.xlu1 %2516  ;;  %3528 = vmatpush3.bf16.msra.mxu1 %v3620_v2 }
0x1733   :  { %3533 = vmatprep.subr.bf16.mxu1 %v3731_v21 }
0x1736   :  { %v3580_v25 = vpop.permute.xlu1 %3579 }
0x1737   :  { %v3582_v57 = vunpack.i.h.bf16 %v3580_v25  ;;  %v3581_v58 = vunpack.i.l.bf16 %v3580_v25 }
0x1739   :  { %v2631_v3 = vsel %vm340_vm2, %v4317_v7, %v3582_v57  ;;  %v2630_v5 = vsel %vm340_vm2, %v4319_v8, %v3581_v58 }
0x173c   :  { %v3708_v38 = vpop.eup %3707 }
0x173d   :  { %v2509_v41 = vsel %vm433_vm5, %v3708_v38, 0.0 }
0x173e   :  { %v3710_v31 = vpop.eup %3709  ;;  %2510 = vadd.xlane.f32.xlu0 %v2509_v41 }
0x173f   :  { %v2506_v28 = vsel %vm433_vm5, %v3710_v31, 0.0 }
0x1742   :  { %2507 = vadd.xlane.f32.xlu0 %v2506_v28 }
0x1758   :  { %2520 = vrot.lane.b32.xlu0 %v4265_v33, %s3739_s29 }
0x175c   :  { %3584 = vrot.lane.b32.xlu0 %v3583_v62, %s3737_s8 }
0x17c7   :  { %v2511_v42 = vpop.xlane.xlu0 %2510 }
0x17c8   :  { %3711 = vrcp.f32 %v2511_v42 }
0x17cb   :  { %v2508_v43 = vpop.xlane.xlu0 %2507 }
0x17cc   :  { %3713 = vrcp.f32 %v2508_v43 }
0x17cf   :  { %v2521_v45 = vpop.permute.xlu0 %2520 }
0x17d0   :  { %3504 = vmatprep.subr.mxu0 %v2521_v45 }
0x17d1   :  { %3505 = vmatpush3.msra.mxu0 %v2521_v45 }
0x17d2   :  { %3506 = vmatprep.subr.mxu0 %v2519_v40 }
0x17d3   :  { %3507 = vmatpush3.msra.mxu0 %v2519_v40  ;;  %v3585_v54 = vpop.permute.xlu0 %3584  ;;  %v3135_v40 = vld [vmem:[%s4553_s21] ss:$0 sm:$0xff] }
0x17d4   :  { %3508 = vmatprep.subr.mxu0 %v2517_v4  ;;  %v3587_v60 = vunpack.i.h.bf16 %v3585_v54  ;;  %v3586_v61 = vunpack.i.l.bf16 %v3585_v54 }
0x17d5   :  { %3509 = vmatpush3.msra.mxu0 %v2517_v4  ;;  %v3712_v47 = vpop.eup %3711 }
0x17d6   :  { %3513 = vmatprep.subr.bf16.mxu0 %v3731_v21  ;;  %v2515_v26 = vmul.f32 %v3712_v47, %v3708_v38  ;;  %v2633_v6 = vsel %vm103_vm0, %v2631_v3, %v3587_v60  ;;  %v2632_v9 = vsel %vm103_vm0, %v2630_v5, %v3586_v61 }
0x17d9   :  { %v3714_v48 = vpop.eup %3713 }
0x17da   :  { %v2514_v33 = vmul.f32 %v3714_v48, %v3710_v31  ;;  %v3134_v31 = vld [vmem:[%s4552_s20] ss:$0 sm:$0xff] }
0x17dc   :  { %3510 = vmatprep.mubr.msk.f32.mxu0 %vm433_vm5, %v2514_v33  ;;  %v3621_v33 = vld [vmem:[%s4554_s23 + $0x38] sm:$0xff]  }
0x17dd   :  { %3511 = vmatmul.mubr.msk.f32.vlgmr.msra.gmra.mxu0 %vm433_vm5, %v2515_v26  ;;  %v3622_v26 = vld [vmem:[%s4554_s23 + $0x30] sm:$0xff]  }
0x17de   :  { %3521 = vmatprep.mubr.msk.bf16.mxu0 %vm3732_vm1, %v3731_v21  ;;  %3514 = vmatpush3.bf16.msra.mxu0 %v3615_v49  ;;  %v3623_v49 = vld [vmem:[%s4554_s23 + $0x28] sm:$0xff]  }
0x17df   :  { %3515 = vmatprep.subr.bf16.mxu0 %v3731_v21 }
0x17e2   :  { %3516 = vmatpush3.bf16.msra.mxu0 %v3616_v50  ;;  %v3624_v50 = vld [vmem:[%s4554_s23 + $0x20] sm:$0xff]  }
0x17e3   :  { %3517 = vmatprep.subr.bf16.mxu0 %v3731_v21 }
0x17e6   :  { %3518 = vmatpush3.bf16.msra.mxu0 %v3617_v51  ;;  %v3625_v51 = vld [vmem:[%s4554_s23 + $0x18] sm:$0xff]  }
0x17e7   :  { %3519 = vmatprep.subr.bf16.mxu0 %v3731_v21 }
0x17ea   :  { %3520 = vmatpush3.bf16.msra.mxu0 %v3618_v52  ;;  %v3626_v52 = vld [vmem:[%s4554_s23 + $0x10] sm:$0xff]  }
0x189d   :  { %v3512_v53 = vpop.f32.mrf.mxu0 }
0x189f   :  { %v2597_v59 = vpop.f32.mrf.mxu0 }
0x18a0   :  { %v3588_v56 = vpack.i.bf16 %v3512_v53, %v2597_v59  ;;  %v3627_v53 = vld [vmem:[%s4554_s23 + $0x8] sm:$0xff]   ;;  %v3628_v59 = vld [vmem:[%s4554_s23] sm:$0xff]  }
0x18a2   :  { %3589 = vrot.lane.b32.xlu1 %v3588_v56, %s3735_s7 }
0x1914   :  { %v3590_v63 = vpop.permute.xlu1 %3589 }
0x1915   :  { %v3592_v35 = vunpack.i.h.bf16 %v3590_v63  ;;  %v3591_v0 = vunpack.i.l.bf16 %v3590_v63 }
0x1917   :  { %v2634_v10 = vsel %vm1201_vm7, %v2632_v9, %v3591_v0  ;;  %v2635_v1 = vsel %vm1201_vm7, %v2633_v6, %v3592_v35 }
0x1918   :  { %v2644_v11 = vpack.c.bf16 %v2635_v1, %v2634_v10 }
0x191a   :  { %3522 = vmatmul.mubr.msk.bf16.vlgmr.msra.gmra.mxu0 %vm1237_vm8, %v2644_v11 }
0x19da   :  { %v2706_v12 = vpop.f32.mrf.mxu0 }
0x19db   :  { %v4448_v13 = vadd.f32 %v2706_v12, %v4207_v39 }
0x19dc   :  { %v3523_v7 = vpop.f32.mrf.mxu0 }
0x19dd   :  { %v2717_v8 = vsel %vm103_vm0, %v4448_v13, 0.0 }
0x19de   :  { %2718 = vadd.xlane.f32.xlu0 %v2717_v8  ;;  %v2709_v55 = vpop.f32.mrf.mxu0 }
0x19df   :  { %v4453_v14 = vadd.f32 %v2709_v55, %v4212_v46 }
0x19e0   :  { %v3524_v15 = vpop.f32.mrf.mxu0 }
0x19e1   :  { %v2720_v16 = vsel %vm103_vm0, %v4453_v14, 0.0 }
0x19e2   :  { %2721 = vadd.xlane.f32.xlu1 %v2720_v16 }
0x1a67   :  { %v2719_v17 = vpop.xlane.xlu0 %2718 }
0x1a68   :  { %v2723_v18 = vmul.f32 0.03125, %v2719_v17 }
0x1a6a   :  { %v2725_v44 = vsub.f32 %v4448_v13, %v2723_v18 }
0x1a6b   :  { %v2722_v39 = vpop.xlane.xlu1 %2721 }
0x1a6c   :  { %v2724_v62 = vmul.f32 0.03125, %v2722_v39  ;;  %v2727_v19 = vmul.f32 %v2725_v44, %v2725_v44 }
0x1a6e   :  { %v2726_v23 = vsub.f32 %v4453_v14, %v2724_v62  ;;  %v2729_v27 = vsel %vm103_vm0, %v2727_v19, 0.0 }
0x1a6f   :  { %2730 = vadd.xlane.f32.xlu0 %v2729_v27 }
0x1a70   :  { %v2728_v29 = vmul.f32 %v2726_v23, %v2726_v23 }
0x1a72   :  { %v2732_v46 = vsel %vm103_vm0, %v2728_v29, 0.0 }
0x1a73   :  { %2733 = vadd.xlane.f32.xlu0 %v2732_v46 }
0x1af8   :  { %v2731_v22 = vpop.xlane.xlu0 %2730 }
0x1af9   :  { %v2735_v32 = vmul.f32 0.03125, %v2731_v22 }
0x1afb   :  { %v2737_v34 = vadd.f32 1e-05, %v2735_v32 }
0x1afc   :  { %v2734_v24 = vpop.xlane.xlu0 %2733 }
0x1afd   :  { %3715 = vrsqrt.f32 %v2737_v34  ;;  %v2736_v36 = vmul.f32 0.03125, %v2734_v24 }
0x1aff   :  { %v2738_v37 = vadd.f32 1e-05, %v2736_v36 }
0x1b01   :  { %3717 = vrsqrt.f32 %v2738_v37 }
0x1b0a   :  { %v3716_v38 = vpop.eup %3715 }
0x1b0b   :  { %v2741_v41 = vmul.f32 %v3716_v38, %v2725_v44 }
0x1b0d   :  { %v2749_v43 = vmul.f32 %v3134_v31, %v2741_v41 }
0x1b0e   :  { %v3718_v28 = vpop.eup %3717 }
0x1b0f   :  { %v2742_v42 = vmul.f32 %v3718_v28, %v2726_v23  ;;  %v2757_v4 = vadd.f32 %v3135_v40, %v2749_v43 }
0x1b11   :  { %v2750_v45 = vmul.f32 %v3134_v31, %v2742_v42 }
0x1b13   :  { %v2758_v47 = vadd.f32 %v3135_v40, %v2750_v45 }
0x1b15   :  { %v2763_v48 = vpack.c.bf16 %v2758_v47, %v2757_v4 }
0x1b17   :  { %3530 = vmatmul.mubr.msk.bf16.vlgmr.msra.gmra.mxu1 %vm103_vm0, %v2763_v48 }
0x1b18   :  { %3549 = vmatprep.mubr.msk.bf16.mxu1 %vm3732_vm1, %v3731_v21  ;;  %3534 = vmatpush3.bf16.msra.mxu1 %v3621_v33 }
0x1b19   :  { %3535 = vmatprep.subr.bf16.mxu1 %v3731_v21 }
0x1b1c   :  { %3536 = vmatpush3.bf16.msra.mxu1 %v3622_v26 }
0x1b1d   :  { %3537 = vmatprep.subr.bf16.mxu1 %v3731_v21 }
0x1b20   :  { %3538 = vmatpush3.bf16.msra.mxu1 %v3623_v49 }
0x1b21   :  { %3539 = vmatprep.subr.bf16.mxu1 %v3731_v21 }
0x1b24   :  { %3540 = vmatpush3.bf16.msra.mxu1 %v3624_v50 }
0x1b25   :  { %3541 = vmatprep.subr.bf16.mxu1 %v3731_v21 }
0x1b28   :  { %3542 = vmatpush3.bf16.msra.mxu1 %v3625_v51 }
0x1b29   :  { %3543 = vmatprep.subr.bf16.mxu1 %v3731_v21 }
0x1b2c   :  { %3544 = vmatpush3.bf16.msra.mxu1 %v3626_v52 }
0x1b2d   :  { %3545 = vmatprep.subr.bf16.mxu1 %v3731_v21 }
0x1b30   :  { %3546 = vmatpush3.bf16.msra.mxu1 %v3627_v53 }
0x1b31   :  { %3547 = vmatprep.subr.bf16.mxu1 %v3731_v21 }
0x1b34   :  { %3548 = vmatpush3.bf16.msra.mxu1 %v3628_v59 }
0x1bd7   :  { %v2813_v56 = vpop.f32.mrf.mxu1 }
0x1bd8   :  { %v2822_v25 = vmul.f32 0.70710677, %v2813_v56  ;;  %v2820_v45 = vmul.f32 0.5, %v2813_v56 }
0x1bd9   :  { %v3531_v54 = vpop.f32.mrf.mxu1 }
0x1bda   :  { %v2828_v57 = vand.u32 2147483647, %v2822_v25  ;;  %vm2824_vm11 = vcmp.lt.f32.partialorder %v2822_v25, 0.0 }
0x1bdb   :  { %v2816_v58 = vpop.f32.mrf.mxu1  ;;  %v2826_v38 = vsel %vm2824_vm11, -1.0, %v3740_v20 }
0x1bdc   :  { %v2830_v60 = vmul.f32 0.3275911, %v2828_v57  ;;  %v2823_v61 = vmul.f32 0.70710677, %v2816_v58  ;;  %v2856_v21 = vsub.f32 0.0, %v2828_v57  ;;  %v2821_v4 = vmul.f32 0.5, %v2816_v58 }
0x1bdd   :  { %v3532_v63 = vpop.f32.mrf.mxu1 }
0x1bde   :  { %v2832_v3 = vadd.f32 1.0, %v2830_v60  ;;  %v2829_v5 = vand.u32 2147483647, %v2823_v61  ;;  %v2858_v6 = vmul.f32 %v2856_v21, %v2828_v57  ;;  %vm2825_vm12 = vcmp.lt.f32.partialorder %v2823_v61, 0.0 }
0x1bdf   :  { %v2827_v42 = vsel %vm2825_vm12, -1.0, %v3740_v20 }
0x1be0   :  { %3719 = vrcp.f32 %v2832_v3  ;;  %v2831_v35 = vmul.f32 0.3275911, %v2829_v5  ;;  %v2857_v9 = vsub.f32 0.0, %v2829_v5  ;;  %v2860_v11 = vmul.f32 1.442695, %v2858_v6 }
0x1be2   :  { %v2833_v0 = vadd.f32 1.0, %v2831_v35  ;;  %v2859_v12 = vmul.f32 %v2857_v9, %v2829_v5 }
0x1be4   :  { %3721 = vrcp.f32 %v2833_v0  ;;  %v2862_v16 = vmul.f32 1.442695, %v2859_v12  ;;  %v3148_v12 = vld [vmem:[%s4556_s25] ss:$0 sm:$0xff] }
0x1be5   :  { %3723 = vpow2.f32 %v2860_v11 }
0x1be6   :  { %3725 = vpow2.f32 %v2862_v16 }
0x1bed   :  { %v3720_v10 = vpop.eup %3719 }
0x1bee   :  { %v2838_v1 = vmul.f32 1.0614054, %v3720_v10 }
0x1bf0   :  { %v2840_v7 = vadd.f32 -1.4531521, %v2838_v1  ;;  %v3147_v1 = vld [vmem:[%s4555_s24] ss:$0 sm:$0xff] }
0x1bf1   :  { %v3722_v8 = vpop.eup %3721 }
0x1bf2   :  { %v2842_v55 = vmul.f32 %v3720_v10, %v2840_v7  ;;  %v2839_v15 = vmul.f32 1.0614054, %v3722_v8  ;;  %v3724_v22 = vpop.eup %3723 }
0x1bf3   :  { %v3726_v37 = vpop.eup %3725 }
0x1bf4   :  { %v2844_v17 = vadd.f32 1.4214138, %v2842_v55  ;;  %v2841_v18 = vadd.f32 -1.4531521, %v2839_v15 }
0x1bf6   :  { %v2846_v44 = vmul.f32 %v3720_v10, %v2844_v17  ;;  %v2843_v39 = vmul.f32 %v3722_v8, %v2841_v18 }
0x1bf8   :  { %v2848_v62 = vadd.f32 -0.28449672, %v2846_v44  ;;  %v2845_v19 = vadd.f32 1.4214138, %v2843_v39 }
0x1bfa   :  { %v2850_v23 = vmul.f32 %v3720_v10, %v2848_v62  ;;  %v2847_v27 = vmul.f32 %v3722_v8, %v2845_v19 }
0x1bfc   :  { %v2852_v29 = vadd.f32 0.2548296, %v2850_v23  ;;  %v2849_v46 = vadd.f32 -0.28449672, %v2847_v27 }
0x1bfe   :  { %v2854_v30 = vmul.f32 %v3720_v10, %v2852_v29  ;;  %v2851_v2 = vmul.f32 %v3722_v8, %v2849_v46 }
0x1c00   :  { %v2864_v32 = vmul.f32 %v3724_v22, %v2854_v30  ;;  %v2853_v34 = vadd.f32 0.2548296, %v2851_v2 }
0x1c02   :  { %v2866_v24 = vsub.f32 1.0, %v2864_v32  ;;  %v2855_v36 = vmul.f32 %v3722_v8, %v2853_v34 }
0x1c04   :  { %v2868_v41 = vmul.f32 %v2866_v24, %v2826_v38  ;;  %v2865_v31 = vmul.f32 %v3726_v37, %v2855_v36 }
0x1c06   :  { %v2867_v28 = vsub.f32 1.0, %v2865_v31  ;;  %v2870_v43 = vadd.f32 1.0, %v2868_v41 }
0x1c08   :  { %v2869_v40 = vmul.f32 %v2867_v28, %v2827_v42  ;;  %v2872_v48 = vmul.f32 %v2870_v43, %v2820_v45 }
0x1c0a   :  { %v2871_v47 = vadd.f32 1.0, %v2869_v40 }
0x1c0c   :  { %v2873_v33 = vmul.f32 %v2871_v47, %v2821_v4 }
0x1c0e   :  { %v2890_v26 = vpack.c.bf16 %v2873_v33, %v2872_v48 }
0x1c10   :  { %3550 = vmatmul.mubr.bf16.vlgmr.msra.gmra.mxu1 %v2890_v26 }
0x1cd0   :  { %v2973_v49 = vpop.f32.mrf.mxu1 }
0x1cd1   :  { %v2980_v50 = vadd.f32 %v2973_v49, %v4448_v13 }
0x1cd2   :  { %v3551_v51 = vpop.f32.mrf.mxu1 }
0x1cd3   :  { %v2984_v52 = vsel %vm103_vm0, %v2980_v50, 0.0 }
0x1cd4   :  { %2985 = vadd.xlane.f32.xlu0 %v2984_v52  ;;  %v2976_v53 = vpop.f32.mrf.mxu1 }
0x1cd5   :  { %v2981_v59 = vadd.f32 %v2976_v53, %v4453_v14 }
0x1cd6   :  { %v3552_v20 = vpop.f32.mrf.mxu1 }
0x1cd7   :  { %v2987_v25 = vsel %vm103_vm0, %v2981_v59, 0.0 }
0x1cd8   :  { %2988 = vadd.xlane.f32.xlu1 %v2987_v25 }
0x1d5d   :  { %v2986_v56 = vpop.xlane.xlu0 %2985 }
0x1d5e   :  { %v2990_v54 = vmul.f32 0.03125, %v2986_v56 }
0x1d60   :  { %v2992_v57 = vsub.f32 %v2980_v50, %v2990_v54 }
0x1d61   :  { %v2989_v58 = vpop.xlane.xlu1 %2988 }
0x1d62   :  { %v2991_v60 = vmul.f32 0.03125, %v2989_v58  ;;  %v2994_v61 = vmul.f32 %v2992_v57, %v2992_v57 }
0x1d64   :  { %v2993_v63 = vsub.f32 %v2981_v59, %v2991_v60  ;;  %v2996_v13 = vsel %vm103_vm0, %v2994_v61, 0.0 }
0x1d65   :  { %2997 = vadd.xlane.f32.xlu0 %v2996_v13 }
0x1d66   :  { %v2995_v3 = vmul.f32 %v2993_v63, %v2993_v63 }
0x1d68   :  { %v2999_v5 = vsel %vm103_vm0, %v2995_v3, 0.0 }
0x1d69   :  { %3000 = vadd.xlane.f32.xlu1 %v2999_v5 }
0x1dee   :  { %v2998_v35 = vpop.xlane.xlu0 %2997 }
0x1def   :  { %v3002_v14 = vmul.f32 0.03125, %v2998_v35 }
0x1df1   :  { %v3004_v0 = vadd.f32 1e-05, %v3002_v14 }
0x1df2   :  { %v3001_v21 = vpop.xlane.xlu1 %3000 }
0x1df3   :  { %3727 = vrsqrt.f32 %v3004_v0  ;;  %v3003_v6 = vmul.f32 0.03125, %v3001_v21 }
0x1df5   :  { %v3005_v9 = vadd.f32 1e-05, %v3003_v6 }
0x1df7   :  { %3729 = vrsqrt.f32 %v3005_v9 }
0x1e00   :  { %v3728_v10 = vpop.eup %3727 }
0x1e01   :  { %v3008_v11 = vmul.f32 %v3728_v10, %v2992_v57 }
0x1e03   :  { %v3016_v7 = vmul.f32 %v3147_v1, %v3008_v11 }
0x1e04   :  { %v3730_v8 = vpop.eup %3729 }
0x1e05   :  { %v3024_v55 = vadd.f32 %v3148_v12, %v3016_v7  ;;  %v3009_v15 = vmul.f32 %v3730_v8, %v2993_v63 }
0x1e07   :  { %3026 = vst.msk [vmem:[%s4557_s26] sm:$0xff] %vm103_vm0, %v3024_v55  ;;  %v3017_v16 = vmul.f32 %v3147_v1, %v3009_v15 }
0x1e09   :  { %v3025_v17 = vadd.f32 %v3148_v12, %v3017_v16 }
0x1e0b   :  { %3027 = vst.msk [vmem:[%s4557_s26 + $0x8] sm:$0xff] %vm103_vm0, %v3025_v17 }

// kernel: flamingo_forward.7
= control target key start
LH: loop header
LB: loop body
LE: loop exit
PB: predicated region body
PF: predicated region fallthrough
CT: control target
= control target key end

     0   :  { %vm127_vm0 = vcmask 261120   ;;  %v3412_v14 = vmov 0.0   ;;  %vm3413_vm1 = vmmov 0   ;;  %v3414_v39 = vmov 0   ;;  %s3415_s30 = smov 64   ;;  %s4166_s0 = inlined_call_operand.vmem [shape: f32[16,32], index: 0, kind: input, shape index: {}]   ;;  %s4167_s6 = inlined_call_operand.vmem [shape: bf16[32,64], index: 6, kind: input, shape index: {}]   ;;  %s4168_s7 = inlined_call_operand.vmem [shape: bf16[32,128], index: 7, kind: input, shape index: {}]   ;;  %s4169_s4 = inlined_call_operand.vmem [shape: f32[1,32], index: 4, kind: input, shape index: {}]   ;;  %s4170_s5 = inlined_call_operand.vmem [shape: f32[1,32], index: 5, kind: input, shape index: {}]   ;;  %s4171_s1 = inlined_call_operand.vmem [shape: f32[16,32], index: 1, kind: input, shape index: {}]   ;;  %s4172_s2 = inlined_call_operand.vmem [shape: s32[16,1], index: 2, kind: input, shape index: {}]   ;;  %s4173_s9 = inlined_call_operand.<no memory space> [shape: f32[1,1], index: 9, kind: input, shape index: {}]   ;;  %s4174_s8 = inlined_call_operand.vmem [shape: bf16[64,32], index: 8, kind: input, shape index: {}]   ;;  %s4175_s14 = inlined_call_operand.<no memory space> [shape: f32[1,1], index: 14, kind: input, shape index: {}]   ;;  %s4176_s12 = inlined_call_operand.vmem [shape: bf16[32,128], index: 12, kind: input, shape index: {}]   ;;  %s4177_s10 = inlined_call_operand.vmem [shape: f32[1,32], index: 10, kind: input, shape index: {}]   ;;  %s4178_s11 = inlined_call_operand.vmem [shape: f32[1,32], index: 11, kind: input, shape index: {}]   ;;  %s4179_s13 = inlined_call_operand.vmem [shape: bf16[128,32], index: 13, kind: input, shape index: {}]   ;;  %s4180_s17 = inlined_call_operand.vmem [shape: bf16[32,96], index: 17, kind: input, shape index: {}]   ;;  %s4181_s15 = inlined_call_operand.vmem [shape: f32[1,32], index: 15, kind: input, shape index: {}]   ;;  %s4182_s16 = inlined_call_operand.vmem [shape: f32[1,32], index: 16, kind: input, shape index: {}]   ;;  %s4183_s3 = inlined_call_operand.vmem [shape: s32[1,16], index: 3, kind: input, shape index: {}]   ;;  %s4184_s18 = inlined_call_operand.vmem [shape: bf16[32,32], index: 18, kind: input, shape index: {}]   ;;  %s4185_s21 = inlined_call_operand.vmem [shape: bf16[32,128], index: 21, kind: input, shape index: {}]   ;;  %s4186_s19 = inlined_call_operand.vmem [shape: f32[1,32], index: 19, kind: input, shape index: {}]   ;;  %s4187_s20 = inlined_call_operand.vmem [shape: f32[1,32], index: 20, kind: input, shape index: {}]   ;;  %s4188_s22 = inlined_call_operand.vmem [shape: bf16[128,32], index: 22, kind: input, shape index: {}]   ;;  %s4189_s23 = inlined_call_operand.vmem [shape: f32[16,32], index: 23, kind: output, shape index: {}]  }
   0x1   :  { %4195 = sst [smem:[#allocation4_spill]] %s4166_s0  ;;  %3012 = vmatprep.subr.bf16.mxu0 %v3412_v14  ;;  %3016 = vmatprep.mubr.msk.bf16.mxu0 %vm3413_vm1, %v3412_v14  ;;  %vm316_vm2 = vcmask 130048   ;;  %v285_v55 = vlaneseq  ;;  %vm1167_vm11 = vcmask 392192   ;;  %vm1195_vm12 = vcmask 523264  }
   0x2   :  { %4196 = sst [smem:[#allocation5_spill]] %s4167_s6  ;;  %3244 = vset.pattern.permute.xlu1 %v3414_v39  ;;  %3243 = vset.pattern.permute.xlu0 %v3414_v39  ;;  %s3419_s6 = smov 32  }
   0x3   :  { %4197 = sst [smem:[#allocation6_spill]] %s4168_s7  ;;  %v289_v56 = vand.u32 127, %v285_v55  ;;  %v3633_v57 = vshrl.u32 %v285_v55, 7 }
   0x4   :  { %4198 = sst [smem:[#allocation7_spill]] %s4169_s4 }
   0x5   :  { %4199 = sst [smem:[#allocation8_spill]] %s4170_s5  ;;  %v3635_v58 = vand.u32 7, %v289_v56  ;;  %v3638_v59 = vadd.s32 8, %v3633_v57  ;;  %v292_v62 = vshra.s32 %v289_v56, 3 }
   0x6   :  { %4200 = sst [smem:[#allocation9_spill]] %s4171_s1  ;;  %s3418_s1 = smov 96  }
   0x7   :  { %4201 = sst [smem:[#allocation10_spill]] %s4172_s2  ;;  %v296_v60 = vshra.s32 %v3635_v58, 3  ;;  %v291_v61 = vshra.s32 %v3638_v59, 3  ;;  %s3420_s2 = smov 80  }
   0x8   :  { %4202 = sst [smem:[#allocation11_spill]] %s4173_s9  ;;  %s3421_s9 = smov 16  }
   0x9   :  { %s4203_s24 = sld [smem:[#allocation4_spill]]  ;;  %v297_v63 = vadd.s32 1, %v296_v60  ;;  %vm3643_vm5 = vcmp.eq.s32.totalorder %v291_v61, %v292_v62 }
   0xa   :  { %s4204_s26 = sld [smem:[#allocation5_spill]] }
   0xb   :  { %s4205_s29 = sld [smem:[#allocation7_spill]] }
   0xc   :  { %s4206_s5 = sld [smem:[#allocation8_spill]] }
   0xd   :  { %s4207_s25 = sld [smem:[#allocation6_spill]] }
   0xe   :  { %s4208_s7 = sld [smem:[#allocation9_spill]] }
   0xf   :  { %v3554_v0 = vld [vmem:[%s4203_s24] sm:$0xff]  ;;  %v3559_v1 = vld [vmem:[%s4203_s24 + $0x8] sm:$0xff]  ;;  %s4209_s4 = sld [smem:[#allocation10_spill]]  ;;  %s3416_s24 = smov 112  }
  0x10   :  { %v128_v2 = vsel %vm127_vm0, %v3554_v0, 0.0  ;;  %v131_v3 = vsel %vm127_vm0, %v3559_v1, 0.0  ;;  %v3280_v15 = vld [vmem:[%s4204_s26 + $0x8] sm:$0xff]   ;;  %v3281_v16 = vld [vmem:[%s4204_s26] sm:$0xff]   ;;  %s4218_s27 = sld [smem:[#allocation11_spill]] }
  0x11   :  { %129 = vadd.xlane.f32.xlu0 %v128_v2  ;;  %3013 = vmatpush3.bf16.msra.mxu0 %v3280_v15  ;;  %v2810_v25 = vld [vmem:[%s4205_s29] ss:$0 sm:$0xff] }
  0x12   :  { %3014 = vmatprep.subr.bf16.mxu0 %v3412_v14  ;;  %v2811_v29 = vld [vmem:[%s4206_s5] ss:$0 sm:$0xff] }
  0x13   :  { %v3282_v33 = vld [vmem:[%s4207_s25 + $0x8] sm:$0xff]   ;;  %v3283_v35 = vld [vmem:[%s4207_s25] sm:$0xff]   ;;  %s3417_s25 = smov 48  }
  0x14   :  { %v81_v36 = vld [vmem:[%s4208_s7] sm:$0xff]  ;;  %v82_v37 = vld [vmem:[%s4208_s7 + $0x8] sm:$0xff] }
  0x15   :  { %132 = vadd.xlane.f32.xlu0 %v131_v3  ;;  %3015 = vmatpush3.bf16.msra.mxu0 %v3281_v16  ;;  %v228_v38 = vpack.c.bf16 %v82_v37, %v81_v36  ;;  %v84_v40 = vld [vmem:[%s4209_s4 + $0x8] sm:$0xff]  ;;  %v83_v41 = vld [vmem:[%s4209_s4] sm:$0xff]  ;;  %v290_v3 = vshra.s32 %v3633_v57, 3 }
  0x16   :  { %3020 = vmatprep.subr.bf16.mxu0 %v3412_v14  ;;  %vm309_vm3 = vcmp.ne.s32.totalorder %v84_v40, 0  ;;  %vm308_vm4 = vcmp.ne.s32.totalorder %v83_v41, 0 }
  0x17   :  { %v2819_v52 = vsel %vm309_vm3, 1.0, %v3412_v14  ;;  %v2818_v53 = vsel %vm308_vm4, 1.0, %v3412_v14  ;;  %vm3647_vm7 = vcmp.eq.s32.totalorder %v290_v3, %v292_v62 }
  0x18   :  { %v3245_v54 = vpack.i.bf16 %v2819_v52, %v2818_v53 }
  0x2b   :  { %299 = vperm.xlu0 %3243, %v83_v41  }
  0x9a   :  { %v130_v4 = vpop.xlane.xlu0 %129 }
  0x9b   :  { %v135_v5 = vmul.f32 0.03125, %v130_v4 }
  0x9d   :  { %v137_v6 = vsub.f32 %v3554_v0, %v135_v5 }
  0x9e   :  { %v133_v7 = vpop.xlane.xlu0 %132 }
  0x9f   :  { %v136_v8 = vmul.f32 0.03125, %v133_v7  ;;  %v139_v9 = vmul.f32 %v137_v6, %v137_v6 }
  0xa1   :  { %v138_v10 = vsub.f32 %v3559_v1, %v136_v8  ;;  %v141_v11 = vsel %vm127_vm0, %v139_v9, 0.0 }
  0xa2   :  { %142 = vadd.xlane.f32.xlu1 %v141_v11 }
  0xa3   :  { %v140_v12 = vmul.f32 %v138_v10, %v138_v10 }
  0xa5   :  { %v144_v13 = vsel %vm127_vm0, %v140_v12, 0.0 }
  0xa6   :  { %145 = vadd.xlane.f32.xlu1 %v144_v13  ;;  %v300_v4 = vpop.permute.xlu0 %299 }
  0xa7   :  { %vm304_vm8 = vcmp.eq.s32.totalorder %v300_v4, %v297_v63 }
  0xa8   :  { %vm3659_vm10 = vmand %vm3647_vm7, %vm304_vm8 }
  0xb7   :  { %302 = vperm.xlu1 %3244, %v84_v40  }
 0x12b   :  { %v143_v17 = vpop.xlane.xlu1 %142 }
 0x12c   :  { %v147_v18 = vmul.f32 0.03125, %v143_v17 }
 0x12e   :  { %v149_v19 = vadd.f32 1e-05, %v147_v18 }
 0x12f   :  { %v146_v20 = vpop.xlane.xlu1 %145 }
 0x130   :  { %3312 = vrsqrt.f32 %v149_v19  ;;  %v148_v21 = vmul.f32 0.03125, %v146_v20 }
 0x132   :  { %v150_v22 = vadd.f32 1e-05, %v148_v21 }
 0x133   :  { %v303_v2 = vpop.permute.xlu1 %302 }
 0x134   :  { %3314 = vrsqrt.f32 %v150_v22  ;;  %vm305_vm6 = vcmp.eq.s32.totalorder %v303_v2, %v297_v63 }
 0x135   :  { %vm3653_vm9 = vmand %vm3643_vm5, %vm305_vm6  ;;  %vm1666_vm6 = vcmask 64512  }
 0x13d   :  { %v3313_v23 = vpop.eup %3312 }
 0x13e   :  { %v153_v24 = vmul.f32 %v3313_v23, %v137_v6 }
 0x140   :  { %v161_v28 = vmul.f32 %v2810_v25, %v153_v24 }
 0x141   :  { %v3315_v26 = vpop.eup %3314 }
 0x142   :  { %v154_v27 = vmul.f32 %v3315_v26, %v138_v10  ;;  %v169_v31 = vadd.f32 %v2811_v29, %v161_v28 }
 0x144   :  { %v162_v30 = vmul.f32 %v2810_v25, %v154_v27 }
 0x146   :  { %v170_v32 = vadd.f32 %v2811_v29, %v162_v30 }
 0x148   :  { %v171_v34 = vpack.c.bf16 %v170_v32, %v169_v31 }
 0x14a   :  { %3017 = vmatmul.mubr.msk.bf16.vlgmr.msra.gmra.mxu0 %vm127_vm0, %v171_v34 }
 0x14b   :  { %3021 = vmatpush3.bf16.msra.mxu0 %v3282_v33  ;;  %3024 = vmatprep.mubr.msk.bf16.mxu0 %vm3413_vm1, %v3412_v14 }
 0x14c   :  { %3022 = vmatprep.subr.bf16.mxu0 %v3412_v14 }
 0x14f   :  { %3023 = vmatpush3.bf16.msra.mxu0 %v3283_v35 }
 0x152   :  { %3025 = vmatmul.mubr.msk.bf16.vlgmr.msra.gmra.mxu0 %vm127_vm0, %v228_v38 }
 0x20a   :  { %v221_v42 = vpop.f32.mrf.mxu0 }
 0x20b   :  { %v3611_v43 = vmul.f32 0.25, %v221_v42 }
 0x20c   :  { %v3018_v44 = vpop.f32.mrf.mxu0 }
 0x20d   :  { %3032 = vmatprep.mubr.msk.f32.mxu0 %vm316_vm2, %v3611_v43 }
 0x20e   :  { %v224_v45 = vpop.f32.mrf.mxu0 }
 0x20f   :  { %v3627_v51 = vmul.f32 0.25, %v224_v45 }
 0x210   :  { %v3019_v46 = vpop.f32.mrf.mxu0 }
 0x212   :  { %v3615_v47 = vpop.f32.mrf.mxu0 }
 0x214   :  { %v3026_v48 = vpop.f32.mrf.mxu0 }
 0x216   :  { %v3617_v49 = vpop.f32.mrf.mxu0 }
 0x217   :  { %3028 = vmatprep.subr.msk.mxu0 %vm316_vm2, %v3617_v49 }
 0x218   :  { %v3027_v50 = vpop.f32.mrf.mxu0  ;;  %3029 = vmatpush3.xpose.msk.msra.mxu0 %vm316_vm2, %v3617_v49 }
 0x219   :  { %3030 = vmatprep.subr.msk.mxu0 %vm316_vm2, %v3615_v47 }
 0x21c   :  { %3031 = vmatpush3.xpose.msk.msra.mxu0 %vm316_vm2, %v3615_v47 }
 0x21f   :  { %3033 = vmatmul.mubr.msk.f32.vlgmr.msra.gmra.mxu0 %vm316_vm2, %v3627_v51 }
 0x2df   :  { %v3034_v8 = vpop.f32.mrf.mxu0 }
 0x2e0   :  { %v405_v10 = vsel %vm3653_vm9, %v3034_v8, -3.4028235e+38 }
 0x2e1   :  { %v395_v11 = vpop.f32.mrf.mxu0  ;;  %v409_v12 = vsel %vm316_vm2, %v405_v10, -inf }
 0x2e2   :  { %v404_v13 = vsel %vm3659_vm10, %v395_v11, -3.4028235e+38  ;;  %410 = vmax.xlane.f32.xlu0 %v409_v12 }
 0x2e3   :  { %v406_v15 = vsel %vm316_vm2, %v404_v13, -inf }
 0x2e4   :  { %407 = vmax.xlane.f32.xlu1 %v406_v15 }
 0x2f5   :  { %3246 = vperm.xlu1 %3244, %v3245_v54  }
 0x2f8   :  { %442 = vrot.lane.b32.xlu0 %v3617_v49, %s3415_s30 }
 0x2f9   :  { %440 = vrot.lane.b32.xlu1 %v3615_v47, %s3415_s30 }
 0x2fd   :  { %533 = vrot.lane.b32.xlu1 %v3617_v49, %s3416_s24 }
 0x301   :  { %531 = vrot.lane.b32.xlu1 %v3615_v47, %s3416_s24 }
 0x36b   :  { %v411_v16 = vpop.xlane.xlu0 %410 }
 0x36c   :  { %v413_v17 = vsub.f32 %v405_v10, %v411_v16 }
 0x36d   :  { %v408_v18 = vpop.xlane.xlu1 %407 }
 0x36e   :  { %v416_v19 = vmul.f32 1.442695, %v413_v17  ;;  %v412_v20 = vsub.f32 %v404_v13, %v408_v18 }
 0x36f   :  { %v443_v21 = vpop.permute.xlu0 %442 }
 0x370   :  { %3316 = vpow2.f32 %v416_v19  ;;  %v414_v22 = vmul.f32 1.442695, %v412_v20  ;;  %3035 = vmatprep.subr.mxu0 %v443_v21 }
 0x371   :  { %v3247_v23 = vpop.permute.xlu1 %3246  ;;  %3036 = vmatpush3.msra.mxu0 %v443_v21 }
 0x372   :  { %3318 = vpow2.f32 %v414_v22  ;;  %v3684_v36 = vunpack.i.l.bf16 %v3247_v23  ;;  %v3686_v38 = vunpack.i.h.bf16 %v3247_v23 }
 0x375   :  { %v441_v24 = vpop.permute.xlu1 %440 }
 0x376   :  { %3037 = vmatprep.subr.mxu0 %v441_v24 }
 0x377   :  { %3038 = vmatpush3.msra.mxu0 %v441_v24 }
 0x379   :  { %v534_v25 = vpop.permute.xlu1 %533 }
 0x37a   :  { %3042 = vmatprep.subr.msk.mxu0 %vm316_vm2, %v534_v25 }
 0x37d   :  { %v3317_v26 = vpop.eup %3316  ;;  %v532_v30 = vpop.permute.xlu1 %531 }
 0x37e   :  { %v421_v27 = vsel %vm316_vm2, %v3317_v26, 0.0 }
 0x37f   :  { %v3319_v28 = vpop.eup %3318  ;;  %422 = vadd.xlane.f32.xlu1 %v421_v27 }
 0x380   :  { %v418_v29 = vsel %vm316_vm2, %v3319_v28, 0.0 }
 0x383   :  { %419 = vadd.xlane.f32.xlu1 %v418_v29 }
 0x394   :  { %527 = vrot.lane.b32.xlu1 %v3611_v43, %s3416_s24 }
 0x398   :  { %529 = vrot.lane.b32.xlu1 %v3627_v51, %s3416_s24 }
 0x408   :  { %v423_v31 = vpop.xlane.xlu1 %422 }
 0x409   :  { %3320 = vrcp.f32 %v423_v31 }
 0x40c   :  { %v420_v32 = vpop.xlane.xlu1 %419 }
 0x40d   :  { %3322 = vrcp.f32 %v420_v32 }
 0x410   :  { %v528_v42 = vpop.permute.xlu1 %527 }
 0x414   :  { %v530_v44 = vpop.permute.xlu1 %529 }
 0x416   :  { %v3321_v33 = vpop.eup %3320 }
 0x417   :  { %v427_v35 = vmul.f32 %v3321_v33, %v3317_v26 }
 0x419   :  { %v439_v41 = vmul.f32 %v3686_v38, %v427_v35 }
 0x41a   :  { %v3323_v34 = vpop.eup %3322 }
 0x41b   :  { %v426_v37 = vmul.f32 %v3323_v34, %v3319_v28 }
 0x41d   :  { %v438_v40 = vmul.f32 %v3684_v36, %v426_v37 }
 0x41f   :  { %3039 = vmatprep.mubr.msk.f32.mxu0 %vm316_vm2, %v438_v40 }
 0x420   :  { %3040 = vmatmul.mubr.msk.f32.vlgmr.msra.gmra.mxu0 %vm316_vm2, %v439_v41 }
 0x421   :  { %3043 = vmatpush3.xpose.msk.msra.mxu0 %vm316_vm2, %v534_v25  ;;  %3046 = vmatprep.mubr.msk.f32.mxu0 %vm316_vm2, %v528_v42 }
 0x422   :  { %3044 = vmatprep.subr.msk.mxu0 %vm316_vm2, %v532_v30 }
 0x425   :  { %3045 = vmatpush3.xpose.msk.msra.mxu0 %vm316_vm2, %v532_v30 }
 0x428   :  { %3047 = vmatmul.mubr.msk.f32.vlgmr.msra.gmra.mxu0 %vm316_vm2, %v530_v44 }
 0x4e0   :  { %v3697_v45 = vpop.f32.mrf.mxu0 }
 0x4e2   :  { %v3699_v46 = vpop.f32.mrf.mxu0 }
 0x4e8   :  { %v3048_v48 = vpop.f32.mrf.mxu0 }
 0x4e9   :  { %v619_v50 = vsel %vm3653_vm9, %v3048_v48, -3.4028235e+38 }
 0x4ea   :  { %v609_v52 = vpop.f32.mrf.mxu0  ;;  %v623_v53 = vsel %vm316_vm2, %v619_v50, -inf }
 0x4eb   :  { %v618_v54 = vsel %vm3659_vm10, %v609_v52, -3.4028235e+38  ;;  %624 = vmax.xlane.f32.xlu1 %v623_v53 }
 0x4ec   :  { %v620_v55 = vsel %vm316_vm2, %v618_v54, -inf }
 0x4ed   :  { %621 = vmax.xlane.f32.xlu0 %v620_v55 }
 0x4fc   :  { %646 = vrot.lane.b32.xlu1 %v3617_v49, %s3417_s25 }
 0x500   :  { %737 = vrot.lane.b32.xlu1 %v3617_v49, %s3418_s1 }
 0x504   :  { %735 = vrot.lane.b32.xlu1 %v3615_v47, %s3418_s1 }
 0x508   :  { %733 = vrot.lane.b32.xlu1 %v3627_v51, %s3418_s1 }
 0x574   :  { %v625_v56 = vpop.xlane.xlu1 %624 }
 0x575   :  { %v627_v60 = vsub.f32 %v619_v50, %v625_v56 }
 0x576   :  { %v622_v61 = vpop.xlane.xlu0 %621 }
 0x577   :  { %v630_v62 = vmul.f32 1.442695, %v627_v60  ;;  %v626_v63 = vsub.f32 %v618_v54, %v622_v61 }
 0x578   :  { %v647_v2 = vpop.permute.xlu1 %646 }
 0x579   :  { %3324 = vpow2.f32 %v630_v62  ;;  %v628_v3 = vmul.f32 1.442695, %v626_v63  ;;  %3049 = vmatprep.subr.mxu1 %v647_v2 }
 0x57a   :  { %3050 = vmatpush3.msra.mxu1 %v647_v2 }
 0x57b   :  { %3326 = vpow2.f32 %v628_v3 }
 0x57c   :  { %v738_v16 = vpop.permute.xlu1 %737 }
 0x580   :  { %v736_v24 = vpop.permute.xlu1 %735 }
 0x584   :  { %v734_v25 = vpop.permute.xlu1 %733 }
 0x586   :  { %v3325_v4 = vpop.eup %3324 }
 0x587   :  { %v635_v8 = vsel %vm316_vm2, %v3325_v4, 0.0 }
 0x588   :  { %v3327_v10 = vpop.eup %3326  ;;  %636 = vadd.xlane.f32.xlu0 %v635_v8 }
 0x589   :  { %v632_v11 = vsel %vm316_vm2, %v3327_v10, 0.0 }
 0x58c   :  { %633 = vadd.xlane.f32.xlu0 %v632_v11  ;;  %v28_v11 = vstv %s4218_s27 }
 0x58d   :  { %29 = vst [vmem:[#allocation2] sm:$0x1] %v28_v11 }
 0x5a2   :  { %644 = vrot.lane.b32.xlu0 %v3615_v47, %s3417_s25 }
 0x5a6   :  { %731 = vrot.lane.b32.xlu0 %v3611_v43, %s3418_s1 }
 0x611   :  { %v637_v12 = vpop.xlane.xlu0 %636 }
 0x612   :  { %3328 = vrcp.f32 %v637_v12 }
 0x615   :  { %v634_v13 = vpop.xlane.xlu0 %633 }
 0x616   :  { %3330 = vrcp.f32 %v634_v13 }
 0x619   :  { %v645_v15 = vpop.permute.xlu0 %644 }
 0x61a   :  { %3051 = vmatprep.subr.mxu1 %v645_v15 }
 0x61b   :  { %3052 = vmatpush3.msra.mxu1 %v645_v15 }
 0x61c   :  { %3056 = vmatprep.subr.msk.mxu1 %vm316_vm2, %v738_v16 }
 0x61d   :  { %v732_v23 = vpop.permute.xlu0 %731 }
 0x61f   :  { %v3329_v17 = vpop.eup %3328 }
 0x620   :  { %v641_v19 = vmul.f32 %v3329_v17, %v3325_v4 }
 0x622   :  { %v643_v22 = vmul.f32 %v3686_v38, %v641_v19 }
 0x623   :  { %v3331_v18 = vpop.eup %3330 }
 0x624   :  { %v640_v20 = vmul.f32 %v3331_v18, %v3327_v10 }
 0x626   :  { %v642_v21 = vmul.f32 %v3684_v36, %v640_v20 }
 0x628   :  { %3053 = vmatprep.mubr.msk.f32.mxu1 %vm316_vm2, %v642_v21  ;;  %v103_v21 = vld [vmem:[#allocation2] sm:$0x1] }
 0x629   :  { %3054 = vmatmul.mubr.msk.f32.vlgmr.msra.gmra.mxu1 %vm316_vm2, %v643_v22  ;;  %v3782_v22 = vsub.s32 0, %v3633_v57 }
 0x62a   :  { %3057 = vmatpush3.xpose.msk.msra.mxu1 %vm316_vm2, %v738_v16  ;;  %3060 = vmatprep.mubr.msk.f32.mxu1 %vm316_vm2, %v732_v23 }
 0x62b   :  { %3058 = vmatprep.subr.msk.mxu1 %vm316_vm2, %v736_v24 }
 0x62e   :  { %3059 = vmatpush3.xpose.msk.msra.mxu1 %vm316_vm2, %v736_v24 }
 0x631   :  { %3061 = vmatmul.mubr.msk.f32.vlgmr.msra.gmra.mxu1 %vm316_vm2, %v734_v25 }
 0x6e9   :  { %v3731_v26 = vpop.f32.mrf.mxu1 }
 0x6eb   :  { %v3733_v27 = vpop.f32.mrf.mxu1 }
 0x6ec   :  { %v3250_v28 = vpack.i.bf16 %v3731_v26, %v3733_v27 }
 0x6f1   :  { %v3062_v29 = vpop.f32.mrf.mxu1 }
 0x6f2   :  { %v823_v30 = vsel %vm3653_vm9, %v3062_v29, -3.4028235e+38 }
 0x6f3   :  { %v813_v31 = vpop.f32.mrf.mxu1  ;;  %v827_v32 = vsel %vm316_vm2, %v823_v30, -inf }
 0x6f4   :  { %v822_v33 = vsel %vm3659_vm10, %v813_v31, -3.4028235e+38  ;;  %828 = vmax.xlane.f32.xlu1 %v827_v32 }
 0x6f5   :  { %v824_v34 = vsel %vm316_vm2, %v822_v33, -inf }
 0x6f6   :  { %825 = vmax.xlane.f32.xlu0 %v824_v34 }
 0x705   :  { %850 = vrot.lane.b32.xlu1 %v3617_v49, %s3419_s6 }
 0x709   :  { %941 = vrot.lane.b32.xlu1 %v3617_v49, %s3420_s2 }
 0x70d   :  { %939 = vrot.lane.b32.xlu1 %v3615_v47, %s3420_s2 }
 0x711   :  { %937 = vrot.lane.b32.xlu1 %v3627_v51, %s3420_s2 }
 0x77d   :  { %v829_v35 = vpop.xlane.xlu1 %828 }
 0x77e   :  { %v831_v37 = vsub.f32 %v823_v30, %v829_v35 }
 0x77f   :  { %v826_v40 = vpop.xlane.xlu0 %825 }
 0x780   :  { %v834_v41 = vmul.f32 1.442695, %v831_v37  ;;  %v830_v42 = vsub.f32 %v822_v33, %v826_v40 }
 0x781   :  { %v851_v44 = vpop.permute.xlu1 %850 }
 0x782   :  { %3332 = vpow2.f32 %v834_v41  ;;  %v832_v48 = vmul.f32 1.442695, %v830_v42  ;;  %3063 = vmatprep.subr.mxu0 %v851_v44 }
 0x783   :  { %3064 = vmatpush3.msra.mxu0 %v851_v44 }
 0x784   :  { %3334 = vpow2.f32 %v832_v48 }
 0x785   :  { %v942_v60 = vpop.permute.xlu1 %941 }
 0x789   :  { %v940_v8 = vpop.permute.xlu1 %939 }
 0x78d   :  { %v938_v10 = vpop.permute.xlu1 %937 }
 0x78f   :  { %v3333_v50 = vpop.eup %3332 }
 0x790   :  { %v839_v52 = vsel %vm316_vm2, %v3333_v50, 0.0 }
 0x791   :  { %v3335_v53 = vpop.eup %3334  ;;  %840 = vadd.xlane.f32.xlu0 %v839_v52  ;;  %v3285_v52 = vld [vmem:[%s4174_s8 + $0x10] sm:$0xff]  }
 0x792   :  { %v836_v54 = vsel %vm316_vm2, %v3335_v53, 0.0 }
 0x795   :  { %837 = vadd.xlane.f32.xlu0 %v836_v54 }
 0x7ab   :  { %848 = vrot.lane.b32.xlu0 %v3615_v47, %s3419_s6 }
 0x7af   :  { %935 = vrot.lane.b32.xlu0 %v3611_v43, %s3420_s2 }
 0x81a   :  { %v841_v51 = vpop.xlane.xlu0 %840 }
 0x81b   :  { %3336 = vrcp.f32 %v841_v51 }
 0x81e   :  { %v838_v55 = vpop.xlane.xlu0 %837 }
 0x81f   :  { %3338 = vrcp.f32 %v838_v55 }
 0x820   :  { %3340 = vtanh.f32 %v103_v21 }
 0x822   :  { %v849_v56 = vpop.permute.xlu0 %848 }
 0x823   :  { %3065 = vmatprep.subr.mxu0 %v849_v56 }
 0x824   :  { %3066 = vmatpush3.msra.mxu0 %v849_v56 }
 0x825   :  { %3070 = vmatprep.subr.msk.mxu0 %vm316_vm2, %v942_v60 }
 0x826   :  { %v936_v43 = vpop.permute.xlu0 %935 }
 0x828   :  { %v3337_v61 = vpop.eup %3336 }
 0x829   :  { %v845_v63 = vmul.f32 %v3337_v61, %v3333_v50 }
 0x82b   :  { %v847_v4 = vmul.f32 %v3686_v38, %v845_v63 }
 0x82c   :  { %v3339_v62 = vpop.eup %3338 }
 0x82d   :  { %v844_v2 = vmul.f32 %v3339_v62, %v3335_v53  ;;  %v3341_v7 = vpop.eup %3340 }
 0x82e   :  { %v1245_v23 = vrot.slane %v3341_v7, %v3782_v22 }
 0x82f   :  { %v846_v3 = vmul.f32 %v3684_v36, %v844_v2 }
 0x831   :  { %3067 = vmatprep.mubr.msk.f32.mxu0 %vm316_vm2, %v846_v3 }
 0x832   :  { %3068 = vmatmul.mubr.msk.f32.vlgmr.msra.gmra.mxu0 %vm316_vm2, %v847_v4 }
 0x833   :  { %3071 = vmatpush3.xpose.msk.msra.mxu0 %vm316_vm2, %v942_v60  ;;  %3074 = vmatprep.mubr.msk.f32.mxu0 %vm316_vm2, %v936_v43 }
 0x834   :  { %3072 = vmatprep.subr.msk.mxu0 %vm316_vm2, %v940_v8 }
 0x837   :  { %3073 = vmatpush3.xpose.msk.msra.mxu0 %vm316_vm2, %v940_v8 }
 0x838   :  { %3096 = vmatprep.subr.bf16.mxu0 %v3412_v14 }
 0x83a   :  { %3075 = vmatmul.mubr.msk.f32.vlgmr.msra.gmra.mxu0 %vm316_vm2, %v938_v10 }
 0x83b   :  { %3100 = vmatprep.mubr.msk.bf16.mxu0 %vm3413_vm1, %v3412_v14 }
 0x8f2   :  { %v3069_v12 = vpop.f32.mrf.mxu0 }
 0x8f4   :  { %v926_v13 = vpop.f32.mrf.mxu0 }
 0x8f5   :  { %v3255_v9 = vpack.i.bf16 %v3069_v12, %v926_v13 }
 0x8fa   :  { %v3076_v15 = vpop.f32.mrf.mxu0 }
 0x8fb   :  { %v1027_v16 = vsel %vm3653_vm9, %v3076_v15, -3.4028235e+38 }
 0x8fc   :  { %v1017_v17 = vpop.f32.mrf.mxu0  ;;  %v1031_v18 = vsel %vm316_vm2, %v1027_v16, -inf }
 0x8fd   :  { %v1026_v19 = vsel %vm3659_vm10, %v1017_v17, -3.4028235e+38  ;;  %1032 = vmax.xlane.f32.xlu1 %v1031_v18 }
 0x8fe   :  { %v1028_v20 = vsel %vm316_vm2, %v1026_v19, -inf }
 0x8ff   :  { %1029 = vmax.xlane.f32.xlu0 %v1028_v20 }
 0x90e   :  { %1054 = vrot.lane.b32.xlu1 %v3617_v49, %s3421_s9 }
 0x912   :  { %3251 = vrot.lane.b32.xlu1 %v3250_v28, %s3421_s9 }
 0x916   :  { %3256 = vrot.lane.b32.xlu1 %v3255_v9, %s3419_s6  ;;  %s3430_s6 = smov 24  }
 0x91a   :  { %1247 = vperm.xlu1 %3244, %v1245_v23  }
 0x986   :  { %v1033_v24 = vpop.xlane.xlu1 %1032 }
 0x987   :  { %v1035_v25 = vsub.f32 %v1027_v16, %v1033_v24 }
 0x988   :  { %v1030_v29 = vpop.xlane.xlu0 %1029 }
 0x989   :  { %v1038_v30 = vmul.f32 1.442695, %v1035_v25  ;;  %v1034_v49 = vsub.f32 %v1026_v19, %v1030_v29 }
 0x98a   :  { %v1055_v31 = vpop.permute.xlu1 %1054 }
 0x98b   :  { %3342 = vpow2.f32 %v1038_v30  ;;  %v1036_v32 = vmul.f32 1.442695, %v1034_v49  ;;  %3077 = vmatprep.subr.mxu1 %v1055_v31 }
 0x98c   :  { %3078 = vmatpush3.msra.mxu1 %v1055_v31 }
 0x98d   :  { %3344 = vpow2.f32 %v1036_v32 }
 0x98e   :  { %v3252_v55 = vpop.permute.xlu1 %3251 }
 0x98f   :  { %v3254_v60 = vunpack.i.h.bf16 %v3252_v55  ;;  %v3253_v61 = vunpack.i.l.bf16 %v3252_v55 }
 0x991   :  { %v1164_v3 = vsel %vm316_vm2, %v3697_v45, %v3254_v60  ;;  %v1163_v4 = vsel %vm316_vm2, %v3699_v46, %v3253_v61  ;;  %v30_v45 = vstv %s4175_s14 }
 0x992   :  { %v3257_v56 = vpop.permute.xlu1 %3256  ;;  %31 = vst [vmem:[#allocation3] sm:$0x1] %v30_v45 }
 0x993   :  { %v3259_v62 = vunpack.i.h.bf16 %v3257_v56  ;;  %v3258_v63 = vunpack.i.l.bf16 %v3257_v56 }
 0x995   :  { %v1165_v10 = vsel %vm127_vm0, %v1163_v4, %v3258_v63  ;;  %v1166_v11 = vsel %vm127_vm0, %v1164_v3, %v3259_v62  ;;  %v3290_v62 = vld [vmem:[%s4179_s13 + $0x38] sm:$0xff]   ;;  %v3291_v63 = vld [vmem:[%s4179_s13 + $0x30] sm:$0xff]   ;;  %v3293_v3 = vld [vmem:[%s4179_s13 + $0x20] sm:$0xff]  }
 0x996   :  { %v1248_v46 = vpop.permute.xlu1 %1247  ;;  %v3294_v4 = vld [vmem:[%s4179_s13 + $0x18] sm:$0xff]  }
 0x998   :  { %v3343_v26 = vpop.eup %3342 }
 0x999   :  { %v1043_v27 = vsel %vm316_vm2, %v3343_v26, 0.0  ;;  %v126_v21 = vld [vmem:[#allocation3] sm:$0x1] }
 0x99a   :  { %v3345_v28 = vpop.eup %3344  ;;  %1044 = vadd.xlane.f32.xlu0 %v1043_v27 }
 0x99b   :  { %v1040_v33 = vsel %vm316_vm2, %v3345_v28, 0.0 }
 0x99e   :  { %1041 = vadd.xlane.f32.xlu0 %v1040_v33 }
 0x9b4   :  { %1052 = vrot.lane.b32.xlu0 %v3615_v47, %s3421_s9  ;;  %v3284_v47 = vld [vmem:[%s4174_s8 + $0x18] sm:$0xff]  }
 0xa23   :  { %v1045_v34 = vpop.xlane.xlu0 %1044 }
 0xa24   :  { %3346 = vrcp.f32 %v1045_v34 }
 0xa27   :  { %v1042_v35 = vpop.xlane.xlu0 %1041 }
 0xa28   :  { %3348 = vrcp.f32 %v1042_v35  ;;  %v3288_v35 = vld [vmem:[%s4176_s12 + $0x8] sm:$0xff]  }
 0xa29   :  { %3350 = vtanh.f32 %v126_v21  ;;  %3097 = vmatpush3.bf16.msra.mxu0 %v3288_v35 }
 0xa2a   :  { %3098 = vmatprep.subr.bf16.mxu0 %v3412_v14 }
 0xa2b   :  { %v1053_v37 = vpop.permute.xlu0 %1052 }
 0xa2c   :  { %3079 = vmatprep.subr.mxu1 %v1053_v37 }
 0xa2d   :  { %3080 = vmatpush3.msra.mxu1 %v1053_v37  ;;  %v3289_v37 = vld [vmem:[%s4176_s12] sm:$0xff]   ;;  %s3429_s12 = smov 8  }
 0xa2e   :  { %3084 = vmatprep.subr.bf16.mxu1 %v3412_v14  ;;  %3099 = vmatpush3.bf16.msra.mxu0 %v3289_v37 }
 0xa2f   :  { %3104 = vmatprep.subr.bf16.mxu0 %v3412_v14 }
 0xa31   :  { %v3347_v40 = vpop.eup %3346 }
 0xa32   :  { %v1049_v42 = vmul.f32 %v3347_v40, %v3343_v26 }
 0xa34   :  { %v1051_v50 = vmul.f32 %v3686_v38, %v1049_v42  ;;  %v3287_v38 = vld [vmem:[%s4174_s8] sm:$0xff]  }
 0xa35   :  { %v3349_v41 = vpop.eup %3348 }
 0xa36   :  { %v1048_v44 = vmul.f32 %v3349_v41, %v3345_v28  ;;  %v3351_v29 = vpop.eup %3350 }
 0xa38   :  { %v1050_v48 = vmul.f32 %v3684_v36, %v1048_v44  ;;  %v3286_v36 = vld [vmem:[%s4174_s8 + $0x8] sm:$0xff]  }
 0xa3a   :  { %3081 = vmatprep.mubr.msk.f32.mxu1 %vm316_vm2, %v1050_v48 }
 0xa3b   :  { %3082 = vmatmul.mubr.msk.f32.vlgmr.msra.gmra.mxu1 %vm316_vm2, %v1051_v50 }
 0xa3c   :  { %3092 = vmatprep.mubr.msk.bf16.mxu1 %vm3413_vm1, %v3412_v14  ;;  %3085 = vmatpush3.bf16.msra.mxu1 %v3284_v47 }
 0xa3d   :  { %3086 = vmatprep.subr.bf16.mxu1 %v3412_v14 }
 0xa40   :  { %3087 = vmatpush3.bf16.msra.mxu1 %v3285_v52 }
 0xa41   :  { %3088 = vmatprep.subr.bf16.mxu1 %v3412_v14 }
 0xa44   :  { %3089 = vmatpush3.bf16.msra.mxu1 %v3286_v36  ;;  %v2849_v36 = vld [vmem:[%s4177_s10] ss:$0 sm:$0xff] }
 0xa45   :  { %3090 = vmatprep.subr.bf16.mxu1 %v3412_v14 }
 0xa48   :  { %3091 = vmatpush3.bf16.msra.mxu1 %v3287_v38 }
 0xa49   :  { %3124 = vmatprep.subr.bf16.mxu1 %v3412_v14 }
 0xafb   :  { %v3083_v53 = vpop.f32.mrf.mxu1 }
 0xafd   :  { %v1130_v54 = vpop.f32.mrf.mxu1 }
 0xafe   :  { %v3260_v51 = vpack.i.bf16 %v3083_v53, %v1130_v54 }
 0xb00   :  { %3261 = vrot.lane.b32.xlu0 %v3260_v51, %s3417_s25  ;;  %v2850_v51 = vld [vmem:[%s4178_s11] ss:$0 sm:$0xff] }
 0xb72   :  { %v3262_v2 = vpop.permute.xlu0 %3261 }
 0xb73   :  { %v3264_v43 = vunpack.i.h.bf16 %v3262_v2  ;;  %v3263_v8 = vunpack.i.l.bf16 %v3262_v2  ;;  %v3292_v2 = vld [vmem:[%s4179_s13 + $0x28] sm:$0xff]  }
 0xb75   :  { %v1169_v12 = vsel %vm1167_vm11, %v1166_v11, %v3264_v43  ;;  %v1168_v13 = vsel %vm1167_vm11, %v1165_v10, %v3263_v8  ;;  %v3295_v43 = vld [vmem:[%s4179_s13 + $0x10] sm:$0xff]   ;;  %v3296_v8 = vld [vmem:[%s4179_s13 + $0x8] sm:$0xff]   ;;  %v3297_v10 = vld [vmem:[%s4179_s13] sm:$0xff]  }
 0xb76   :  { %v1170_v15 = vpack.c.bf16 %v1169_v12, %v1168_v13 }
 0xb78   :  { %3093 = vmatmul.mubr.msk.bf16.vlgmr.msra.gmra.mxu1 %vm1195_vm12, %v1170_v15 }
 0xb79   :  { %3128 = vmatprep.mubr.msk.bf16.mxu1 %vm3413_vm1, %v3412_v14 }
 0xc38   :  { %v1233_v16 = vpop.f32.mrf.mxu1 }
 0xc39   :  { %v1250_v17 = vmul.f32 %v1248_v46, %v1233_v16 }
 0xc3a   :  { %v3094_v18 = vpop.f32.mrf.mxu1 }
 0xc3b   :  { %v3830_v19 = vadd.f32 %v1250_v17, %v3554_v0  ;;  %v1502_v0 = vrot.slane %v3351_v29, %v3782_v22 }
 0xc3c   :  { %v1236_v20 = vpop.f32.mrf.mxu1 }
 0xc3d   :  { %v1251_v7 = vmul.f32 %v1248_v46, %v1236_v20  ;;  %v1254_v9 = vsel %vm127_vm0, %v3830_v19, 0.0 }
 0xc3e   :  { %1255 = vadd.xlane.f32.xlu0 %v1254_v9  ;;  %v3095_v23 = vpop.f32.mrf.mxu1 }
 0xc3f   :  { %v3835_v24 = vadd.f32 %v1251_v7, %v3559_v1 }
 0xc41   :  { %v1257_v25 = vsel %vm127_vm0, %v3835_v24, 0.0 }
 0xc42   :  { %1258 = vadd.xlane.f32.xlu1 %v1257_v25 }
 0xc53   :  { %1504 = vperm.xlu1 %3244, %v1502_v0  }
 0xcc7   :  { %v1256_v30 = vpop.xlane.xlu0 %1255 }
 0xcc8   :  { %v1260_v49 = vmul.f32 0.03125, %v1256_v30 }
 0xcca   :  { %v1262_v31 = vsub.f32 %v3830_v19, %v1260_v49 }
 0xccb   :  { %v1259_v32 = vpop.xlane.xlu1 %1258 }
 0xccc   :  { %v1261_v26 = vmul.f32 0.03125, %v1259_v32  ;;  %v1264_v27 = vmul.f32 %v1262_v31, %v1262_v31 }
 0xcce   :  { %v1263_v28 = vsub.f32 %v3835_v24, %v1261_v26  ;;  %v1266_v1 = vsel %vm127_vm0, %v1264_v27, 0.0 }
 0xccf   :  { %1267 = vadd.xlane.f32.xlu0 %v1266_v1 }
 0xcd0   :  { %v1265_v33 = vmul.f32 %v1263_v28, %v1263_v28 }
 0xcd2   :  { %v1269_v34 = vsel %vm127_vm0, %v1265_v33, 0.0 }
 0xcd3   :  { %1270 = vadd.xlane.f32.xlu0 %v1269_v34 }
 0xd58   :  { %v1268_v40 = vpop.xlane.xlu0 %1267 }
 0xd59   :  { %v1272_v41 = vmul.f32 0.03125, %v1268_v40 }
 0xd5b   :  { %v1274_v42 = vadd.f32 1e-05, %v1272_v41 }
 0xd5c   :  { %v1271_v44 = vpop.xlane.xlu0 %1270 }
 0xd5d   :  { %3352 = vrsqrt.f32 %v1274_v42  ;;  %v1273_v48 = vmul.f32 0.03125, %v1271_v44 }
 0xd5f   :  { %v1275_v50 = vadd.f32 1e-05, %v1273_v48 }
 0xd61   :  { %3354 = vrsqrt.f32 %v1275_v50 }
 0xd6a   :  { %v3353_v47 = vpop.eup %3352 }
 0xd6b   :  { %v1278_v52 = vmul.f32 %v3353_v47, %v1262_v31 }
 0xd6d   :  { %v1286_v54 = vmul.f32 %v2849_v36, %v1278_v52 }
 0xd6e   :  { %v3355_v38 = vpop.eup %3354 }
 0xd6f   :  { %v1279_v53 = vmul.f32 %v3355_v38, %v1263_v28  ;;  %v1294_v56 = vadd.f32 %v2850_v51, %v1286_v54 }
 0xd71   :  { %v1287_v55 = vmul.f32 %v2849_v36, %v1279_v53 }
 0xd73   :  { %v1295_v60 = vadd.f32 %v2850_v51, %v1287_v55  ;;  %v3422_v55 = vmov 1.0  }
 0xd75   :  { %v1296_v61 = vpack.c.bf16 %v1295_v60, %v1294_v56 }
 0xd77   :  { %3101 = vmatmul.mubr.msk.bf16.vlgmr.msra.gmra.mxu0 %vm127_vm0, %v1296_v61 }
 0xd78   :  { %3120 = vmatprep.mubr.msk.bf16.mxu0 %vm3413_vm1, %v3412_v14  ;;  %3105 = vmatpush3.bf16.msra.mxu0 %v3290_v62 }
 0xd79   :  { %3106 = vmatprep.subr.bf16.mxu0 %v3412_v14 }
 0xd7c   :  { %3107 = vmatpush3.bf16.msra.mxu0 %v3291_v63 }
 0xd7d   :  { %3108 = vmatprep.subr.bf16.mxu0 %v3412_v14 }
 0xd80   :  { %3109 = vmatpush3.bf16.msra.mxu0 %v3292_v2 }
 0xd81   :  { %3110 = vmatprep.subr.bf16.mxu0 %v3412_v14 }
 0xd84   :  { %3111 = vmatpush3.bf16.msra.mxu0 %v3293_v3 }
 0xd85   :  { %3112 = vmatprep.subr.bf16.mxu0 %v3412_v14 }
 0xd88   :  { %3113 = vmatpush3.bf16.msra.mxu0 %v3294_v4 }
 0xd89   :  { %3114 = vmatprep.subr.bf16.mxu0 %v3412_v14 }
 0xd8c   :  { %3115 = vmatpush3.bf16.msra.mxu0 %v3295_v43 }
 0xd8d   :  { %3116 = vmatprep.subr.bf16.mxu0 %v3412_v14 }
 0xd90   :  { %3117 = vmatpush3.bf16.msra.mxu0 %v3296_v8 }
 0xd91   :  { %3118 = vmatprep.subr.bf16.mxu0 %v3412_v14 }
 0xd94   :  { %3119 = vmatpush3.bf16.msra.mxu0 %v3297_v10 }
 0xe37   :  { %v1346_v11 = vpop.f32.mrf.mxu0 }
 0xe38   :  { %v1355_v12 = vmul.f32 0.70710677, %v1346_v11  ;;  %v1353_v4 = vmul.f32 0.5, %v1346_v11 }
 0xe39   :  { %v3102_v13 = vpop.f32.mrf.mxu0 }
 0xe3a   :  { %v1361_v15 = vand.u32 2147483647, %v1355_v12  ;;  %vm1357_vm13 = vcmp.lt.f32.partialorder %v1355_v12, 0.0 }
 0xe3b   :  { %v1349_v45 = vpop.f32.mrf.mxu0  ;;  %v1359_v56 = vsel %vm1357_vm13, -1.0, %v3422_v55 }
 0xe3c   :  { %v1363_v46 = vmul.f32 0.3275911, %v1361_v15  ;;  %v1356_v16 = vmul.f32 0.70710677, %v1349_v45  ;;  %v1389_v9 = vsub.f32 0.0, %v1361_v15  ;;  %v1354_v43 = vmul.f32 0.5, %v1349_v45 }
 0xe3d   :  { %v3103_v17 = vpop.f32.mrf.mxu0 }
 0xe3e   :  { %v1365_v18 = vadd.f32 1.0, %v1363_v46  ;;  %v1362_v20 = vand.u32 2147483647, %v1356_v16  ;;  %v1391_v23 = vmul.f32 %v1389_v9, %v1361_v15  ;;  %vm1358_vm14 = vcmp.lt.f32.partialorder %v1356_v16, 0.0  ;;  %v1505_v15 = vpop.permute.xlu1 %1504 }
 0xe3f   :  { %v1360_v63 = vsel %vm1358_vm14, -1.0, %v3422_v55 }
 0xe40   :  { %3356 = vrcp.f32 %v1365_v18  ;;  %v1364_v21 = vmul.f32 0.3275911, %v1362_v20  ;;  %v1390_v25 = vsub.f32 0.0, %v1362_v20  ;;  %v1393_v30 = vmul.f32 1.442695, %v1391_v23 }
 0xe42   :  { %v1366_v7 = vadd.f32 1.0, %v1364_v21  ;;  %v1392_v49 = vmul.f32 %v1390_v25, %v1362_v20 }
 0xe44   :  { %3358 = vrcp.f32 %v1366_v7  ;;  %v1395_v28 = vmul.f32 1.442695, %v1392_v49 }
 0xe45   :  { %3360 = vpow2.f32 %v1393_v30 }
 0xe46   :  { %3362 = vpow2.f32 %v1395_v28 }
 0xe4d   :  { %v3357_v29 = vpop.eup %3356 }
 0xe4e   :  { %v1371_v0 = vmul.f32 1.0614054, %v3357_v29 }
 0xe50   :  { %v1373_v31 = vadd.f32 -1.4531521, %v1371_v0 }
 0xe51   :  { %v3359_v32 = vpop.eup %3358 }
 0xe52   :  { %v1375_v26 = vmul.f32 %v3357_v29, %v1373_v31  ;;  %v1372_v27 = vmul.f32 1.0614054, %v3359_v32  ;;  %v3361_v52 = vpop.eup %3360 }
 0xe53   :  { %v3363_v51 = vpop.eup %3362 }
 0xe54   :  { %v1377_v1 = vadd.f32 1.4214138, %v1375_v26  ;;  %v1374_v33 = vadd.f32 -1.4531521, %v1372_v27  ;;  %v3298_v26 = vld [vmem:[%s4180_s17 + $0x8] sm:$0xff]   ;;  %v3299_v27 = vld [vmem:[%s4180_s17] sm:$0xff]  }
 0xe55   :  { %3125 = vmatpush3.bf16.msra.mxu1 %v3298_v26 }
 0xe56   :  { %v1379_v34 = vmul.f32 %v3357_v29, %v1377_v1  ;;  %v1376_v35 = vmul.f32 %v3359_v32, %v1374_v33  ;;  %3126 = vmatprep.subr.bf16.mxu1 %v3412_v14 }
 0xe58   :  { %v1381_v37 = vadd.f32 -0.28449672, %v1379_v34  ;;  %v1378_v40 = vadd.f32 1.4214138, %v1376_v35 }
 0xe59   :  { %3127 = vmatpush3.bf16.msra.mxu1 %v3299_v27 }
 0xe5a   :  { %v1383_v41 = vmul.f32 %v3357_v29, %v1381_v37  ;;  %v1380_v42 = vmul.f32 %v3359_v32, %v1378_v40 }
 0xe5c   :  { %v1385_v44 = vadd.f32 0.2548296, %v1383_v41  ;;  %v1382_v48 = vadd.f32 -0.28449672, %v1380_v42  ;;  %v2862_v42 = vld [vmem:[%s4181_s15] ss:$0 sm:$0xff] }
 0xe5d   :  { %s3424_s15 = smov 120  }
 0xe5e   :  { %v1387_v50 = vmul.f32 %v3357_v29, %v1385_v44  ;;  %v1384_v47 = vmul.f32 %v3359_v32, %v1382_v48 }
 0xe60   :  { %v1397_v36 = vmul.f32 %v3361_v52, %v1387_v50  ;;  %v1386_v38 = vadd.f32 0.2548296, %v1384_v47  ;;  %v2863_v47 = vld [vmem:[%s4182_s16] ss:$0 sm:$0xff]  ;;  %s3425_s16 = smov 72  }
 0xe62   :  { %v1399_v53 = vsub.f32 1.0, %v1397_v36  ;;  %v1388_v54 = vmul.f32 %v3359_v32, %v1386_v38 }
 0xe64   :  { %v1401_v60 = vmul.f32 %v1399_v53, %v1359_v56  ;;  %v1398_v61 = vmul.f32 %v3363_v51, %v1388_v54  ;;  %v1511_v54 = vld [vmem:[%s4183_s3] sm:$0x1]  ;;  %v1644_v51 = vand.u32 7, %v3638_v59  ;;  %s3423_s3 = smov 88  }
 0xe65   :  { %vm1649_vm15 = vcmp.gt.s32.totalorder %v1511_v54, 0 }
 0xe66   :  { %v1400_v62 = vsub.f32 1.0, %v1398_v61  ;;  %v1403_v2 = vadd.f32 1.0, %v1401_v60  ;;  %v1650_v56 = vsel %vm1649_vm15, 1, %v3414_v39  ;;  %vm1646_vm3 = vcmp.ge.s32.totalorder %v1644_v51, %v3635_v58 }
 0xe67   :  { %v1654_v60 = vrot.slane %v1650_v56, %v3782_v22  ;;  %vm1648_vm4 = vmand %vm3643_vm5, %vm1646_vm3 }
 0xe68   :  { %v1402_v3 = vmul.f32 %v1400_v62, %v1360_v63  ;;  %v1405_v10 = vmul.f32 %v1403_v2, %v1353_v4 }
 0xe69   :  { %vm3933_vm8 = vcmp.eq.s32.totalorder %v1654_v60, 1 }
 0xe6a   :  { %v1404_v8 = vadd.f32 1.0, %v1402_v3  ;;  %vm3944_vm9 = vmand %vm1648_vm4, %vm3933_vm8 }
 0xe6c   :  { %v1406_v12 = vmul.f32 %v1404_v8, %v1354_v43  ;;  %v1643_v43 = vand.u32 7, %v3633_v57 }
 0xe6e   :  { %v1407_v13 = vpack.c.bf16 %v1406_v12, %v1405_v10  ;;  %vm1645_vm5 = vcmp.ge.s32.totalorder %v1643_v43, %v3635_v58 }
 0xe6f   :  { %vm1647_vm10 = vmand %vm3647_vm7, %vm1645_vm5  ;;  %vm2497_vm7 = vcmask 195584  }
 0xe70   :  { %3121 = vmatmul.mubr.bf16.vlgmr.msra.gmra.mxu0 %v1407_v13  ;;  %vm3966_vm11 = vmand %vm1647_vm10, %vm3933_vm8 }
 0xf30   :  { %v1490_v46 = vpop.f32.mrf.mxu0 }
 0xf31   :  { %v1507_v17 = vmul.f32 %v1505_v15, %v1490_v46 }
 0xf32   :  { %v3122_v18 = vpop.f32.mrf.mxu0 }
 0xf33   :  { %v3895_v20 = vadd.f32 %v1507_v17, %v3830_v19 }
 0xf34   :  { %v1493_v16 = vpop.f32.mrf.mxu0 }
 0xf35   :  { %v1508_v21 = vmul.f32 %v1505_v15, %v1493_v16  ;;  %v1544_v7 = vsel %vm127_vm0, %v3895_v20, 0.0 }
 0xf36   :  { %v3123_v9 = vpop.f32.mrf.mxu0  ;;  %1545 = vadd.xlane.f32.xlu0 %v1544_v7 }
 0xf37   :  { %v3900_v11 = vadd.f32 %v1508_v21, %v3835_v24 }
 0xf39   :  { %v1547_v45 = vsel %vm127_vm0, %v3900_v11, 0.0 }
 0xf3a   :  { %1548 = vadd.xlane.f32.xlu0 %v1547_v45 }
 0xfbf   :  { %v1546_v23 = vpop.xlane.xlu0 %1545 }
 0xfc0   :  { %v1550_v25 = vmul.f32 0.03125, %v1546_v23 }
 0xfc2   :  { %v1552_v29 = vsub.f32 %v3895_v20, %v1550_v25 }
 0xfc3   :  { %v1549_v19 = vpop.xlane.xlu0 %1548 }
 0xfc4   :  { %v1551_v0 = vmul.f32 0.03125, %v1549_v19  ;;  %v1554_v30 = vmul.f32 %v1552_v29, %v1552_v29 }
 0xfc6   :  { %v1553_v49 = vsub.f32 %v3900_v11, %v1551_v0  ;;  %v1556_v31 = vsel %vm127_vm0, %v1554_v30, 0.0 }
 0xfc7   :  { %1557 = vadd.xlane.f32.xlu0 %v1556_v31 }
 0xfc8   :  { %v1555_v32 = vmul.f32 %v1553_v49, %v1553_v49 }
 0xfca   :  { %v1559_v24 = vsel %vm127_vm0, %v1555_v32, 0.0 }
 0xfcb   :  { %1560 = vadd.xlane.f32.xlu0 %v1559_v24 }
0x1050   :  { %v1558_v28 = vpop.xlane.xlu0 %1557 }
0x1051   :  { %v1562_v1 = vmul.f32 0.03125, %v1558_v28 }
0x1053   :  { %v1564_v33 = vadd.f32 1e-05, %v1562_v1 }
0x1054   :  { %v1561_v34 = vpop.xlane.xlu0 %1560 }
0x1055   :  { %3364 = vrsqrt.f32 %v1564_v33  ;;  %v1563_v35 = vmul.f32 0.03125, %v1561_v34 }
0x1057   :  { %v1565_v37 = vadd.f32 1e-05, %v1563_v35 }
0x1059   :  { %3366 = vrsqrt.f32 %v1565_v37 }
0x1062   :  { %v3365_v40 = vpop.eup %3364 }
0x1063   :  { %v1568_v41 = vmul.f32 %v3365_v40, %v1552_v29 }
0x1065   :  { %v1576_v50 = vmul.f32 %v2862_v42, %v1568_v41 }
0x1066   :  { %v3367_v44 = vpop.eup %3366 }
0x1067   :  { %v1569_v48 = vmul.f32 %v3367_v44, %v1553_v49  ;;  %v1584_v36 = vadd.f32 %v2863_v47, %v1576_v50 }
0x1069   :  { %v1577_v52 = vmul.f32 %v2862_v42, %v1569_v48 }
0x106b   :  { %v1585_v38 = vadd.f32 %v2863_v47, %v1577_v52 }
0x106d   :  { %v1586_v53 = vpack.c.bf16 %v1585_v38, %v1584_v36 }
0x106f   :  { %3129 = vmatmul.mubr.msk.bf16.vlgmr.msra.gmra.mxu1 %vm127_vm0, %v1586_v53 }
0x112f   :  { %v3931_v61 = vpop.f32.mrf.mxu1 }
0x1130   :  { %1662 = vrot.lane.b32.xlu0 %v3931_v61, %s3418_s1  ;;  %v3940_v59 = vmul.f32 0.35355338, %v3931_v61 }
0x1131   :  { %v3130_v5 = vpop.f32.mrf.mxu1 }
0x1132   :  { %3136 = vmatprep.mubr.msk.f32.mxu1 %vm1666_vm6, %v3940_v59 }
0x1133   :  { %v3950_v22 = vpop.f32.mrf.mxu1 }
0x1134   :  { %1664 = vrot.lane.b32.xlu1 %v3950_v22, %s3418_s1  ;;  %v1659_v4 = vmul.f32 0.35355338, %v3950_v22  ;;  %s3428_s1 = smov 40  }
0x1135   :  { %v3131_v63 = vpop.f32.mrf.mxu1 }
0x11a2   :  { %v1663_v3 = vpop.permute.xlu0 %1662 }
0x11a6   :  { %v1665_v2 = vpop.permute.xlu1 %1664 }
0x11a7   :  { %3132 = vmatprep.subr.msk.mxu1 %vm1666_vm6, %v1665_v2 }
0x11a8   :  { %3133 = vmatpush3.xpose.msk.msra.mxu1 %vm1666_vm6, %v1665_v2 }
0x11a9   :  { %3134 = vmatprep.subr.msk.mxu1 %vm1666_vm6, %v1663_v3 }
0x11ac   :  { %3135 = vmatpush3.xpose.msk.msra.mxu1 %vm1666_vm6, %v1663_v3 }
0x11af   :  { %3137 = vmatmul.mubr.msk.f32.vlgmr.msra.gmra.mxu1 %vm1666_vm6, %v1659_v4 }
0x126f   :  { %v3138_v10 = vpop.f32.mrf.mxu1 }
0x1270   :  { %v1753_v12 = vsel %vm3944_vm9, %v3138_v10, -3.4028235e+38 }
0x1271   :  { %v1743_v13 = vpop.f32.mrf.mxu1  ;;  %v1757_v15 = vsel %vm316_vm2, %v1753_v12, -inf }
0x1272   :  { %v1752_v57 = vsel %vm3966_vm11, %v1743_v13, -3.4028235e+38  ;;  %1758 = vmax.xlane.f32.xlu0 %v1757_v15 }
0x1273   :  { %v1754_v58 = vsel %vm316_vm2, %v1752_v57, -inf }
0x1274   :  { %1755 = vmax.xlane.f32.xlu1 %v1754_v58 }
0x1285   :  { %1778 = vrot.lane.b32.xlu1 %v3950_v22, %s3415_s30 }
0x1288   :  { %1776 = vrot.lane.b32.xlu0 %v3931_v61, %s3415_s30  ;;  %s3426_s30 = smov 104  }
0x1289   :  { %1869 = vrot.lane.b32.xlu1 %v3950_v22, %s3423_s3 }
0x128c   :  { %2069 = vrot.lane.b32.xlu0 %v3931_v61, %s3420_s2 }
0x128d   :  { %2071 = vrot.lane.b32.xlu1 %v3950_v22, %s3420_s2 }
0x1290   :  { %1865 = vrot.lane.b32.xlu0 %v1659_v4, %s3424_s15 }
0x1291   :  { %1867 = vrot.lane.b32.xlu1 %v3931_v61, %s3423_s3 }
0x1294   :  { %2273 = vrot.lane.b32.xlu0 %v3950_v22, %s3425_s16 }
0x1295   :  { %1863 = vrot.lane.b32.xlu1 %v3940_v59, %s3424_s15 }
0x1298   :  { %2271 = vrot.lane.b32.xlu0 %v3931_v61, %s3425_s16 }
0x129c   :  { %2269 = vrot.lane.b32.xlu0 %v1659_v4, %s3426_s30 }
0x12fb   :  { %v1759_v6 = vpop.xlane.xlu0 %1758 }
0x12fc   :  { %v1761_v46 = vsub.f32 %v1753_v12, %v1759_v6 }
0x12fd   :  { %v1756_v17 = vpop.xlane.xlu1 %1755 }
0x12fe   :  { %v1764_v18 = vmul.f32 1.442695, %v1761_v46  ;;  %v1760_v16 = vsub.f32 %v1752_v57, %v1756_v17 }
0x12ff   :  { %v1777_v21 = vpop.permute.xlu0 %1776 }
0x1300   :  { %3368 = vpow2.f32 %v1764_v18  ;;  %v1762_v7 = vmul.f32 1.442695, %v1760_v16 }
0x1301   :  { %v1779_v9 = vpop.permute.xlu1 %1778 }
0x1302   :  { %3370 = vpow2.f32 %v1762_v7  ;;  %3139 = vmatprep.subr.mxu1 %v1779_v9 }
0x1303   :  { %v2070_v45 = vpop.permute.xlu0 %2069  ;;  %3140 = vmatpush3.msra.mxu1 %v1779_v9 }
0x1304   :  { %3141 = vmatprep.subr.mxu1 %v1777_v21 }
0x1305   :  { %3142 = vmatpush3.msra.mxu1 %v1777_v21  ;;  %v1870_v23 = vpop.permute.xlu1 %1869 }
0x1306   :  { %3146 = vmatprep.subr.msk.mxu1 %vm1666_vm6, %v1870_v23 }
0x1307   :  { %v1866_v25 = vpop.permute.xlu0 %1865 }
0x1309   :  { %v2072_v29 = vpop.permute.xlu1 %2071 }
0x130a   :  { %3160 = vmatprep.subr.msk.mxu0 %vm1666_vm6, %v2072_v29 }
0x130b   :  { %3161 = vmatpush3.xpose.msk.msra.mxu0 %vm1666_vm6, %v2072_v29  ;;  %v2274_v49 = vpop.permute.xlu0 %2273 }
0x130c   :  { %3162 = vmatprep.subr.msk.mxu0 %vm1666_vm6, %v2070_v45 }
0x130d   :  { %v3369_v19 = vpop.eup %3368  ;;  %v1868_v32 = vpop.permute.xlu1 %1867 }
0x130e   :  { %v1769_v0 = vsel %vm316_vm2, %v3369_v19, 0.0 }
0x130f   :  { %v3371_v30 = vpop.eup %3370  ;;  %1770 = vadd.xlane.f32.xlu1 %v1769_v0  ;;  %3163 = vmatpush3.xpose.msk.msra.mxu0 %vm1666_vm6, %v2070_v45  ;;  %v2272_v33 = vpop.permute.xlu0 %2271 }
0x1310   :  { %3174 = vmatprep.subr.msk.mxu0 %vm1666_vm6, %v2274_v49  ;;  %v1766_v31 = vsel %vm316_vm2, %v3371_v30, 0.0 }
0x1311   :  { %v1864_v24 = vpop.permute.xlu1 %1863 }
0x1313   :  { %1767 = vadd.xlane.f32.xlu1 %v1766_v31  ;;  %v2270_v41 = vpop.permute.xlu0 %2269 }
0x1324   :  { %2065 = vrot.lane.b32.xlu1 %v3940_v59, %s3416_s24 }
0x1328   :  { %2067 = vrot.lane.b32.xlu1 %v1659_v4, %s3416_s24  ;;  %s3427_s24 = smov 56  }
0x132c   :  { %2267 = vrot.lane.b32.xlu1 %v3940_v59, %s3426_s30 }
0x1398   :  { %v1771_v26 = vpop.xlane.xlu1 %1770 }
0x1399   :  { %3372 = vrcp.f32 %v1771_v26 }
0x139c   :  { %v1768_v27 = vpop.xlane.xlu1 %1767 }
0x139d   :  { %3374 = vrcp.f32 %v1768_v27 }
0x13a0   :  { %v2066_v28 = vpop.permute.xlu1 %2065 }
0x13a1   :  { %3164 = vmatprep.mubr.msk.f32.mxu0 %vm1666_vm6, %v2066_v28 }
0x13a4   :  { %v2068_v1 = vpop.permute.xlu1 %2067 }
0x13a5   :  { %3165 = vmatmul.mubr.msk.f32.vlgmr.msra.gmra.mxu0 %vm1666_vm6, %v2068_v1 }
0x13a6   :  { %3175 = vmatpush3.xpose.msk.msra.mxu0 %vm1666_vm6, %v2274_v49  ;;  %v3373_v35 = vpop.eup %3372 }
0x13a7   :  { %3176 = vmatprep.subr.msk.mxu0 %vm1666_vm6, %v2272_v33  ;;  %v1775_v42 = vmul.f32 %v3373_v35, %v3369_v19 }
0x13a8   :  { %v2268_v34 = vpop.permute.xlu1 %2267 }
0x13a9   :  { %3178 = vmatprep.mubr.msk.f32.mxu0 %vm1666_vm6, %v2268_v34 }
0x13aa   :  { %v3375_v37 = vpop.eup %3374  ;;  %3177 = vmatpush3.xpose.msk.msra.mxu0 %vm1666_vm6, %v2272_v33 }
0x13ab   :  { %v1774_v40 = vmul.f32 %v3375_v37, %v3371_v30  ;;  %3196 = vmatprep.subr.bf16.mxu0 %v3412_v14 }
0x13ad   :  { %3179 = vmatmul.mubr.msk.f32.vlgmr.msra.gmra.mxu0 %vm1666_vm6, %v2270_v41  ;;  %3143 = vmatprep.mubr.msk.f32.mxu1 %vm316_vm2, %v1774_v40 }
0x13ae   :  { %3144 = vmatmul.mubr.msk.f32.vlgmr.msra.gmra.mxu1 %vm316_vm2, %v1775_v42  ;;  %3200 = vmatprep.mubr.msk.bf16.mxu0 %vm3413_vm1, %v3412_v14 }
0x13af   :  { %3147 = vmatpush3.xpose.msk.msra.mxu1 %vm1666_vm6, %v1870_v23  ;;  %3150 = vmatprep.mubr.msk.f32.mxu1 %vm1666_vm6, %v1864_v24 }
0x13b0   :  { %3148 = vmatprep.subr.msk.mxu1 %vm1666_vm6, %v1868_v32 }
0x13b3   :  { %3149 = vmatpush3.xpose.msk.msra.mxu1 %vm1666_vm6, %v1868_v32 }
0x13b6   :  { %3151 = vmatmul.mubr.msk.f32.vlgmr.msra.gmra.mxu1 %vm1666_vm6, %v1866_v25 }
0x1465   :  { %v3166_v44 = vpop.f32.mrf.mxu0 }
0x1466   :  { %v2157_v59 = vsel %vm3944_vm9, %v3166_v44, -3.4028235e+38 }
0x1467   :  { %v2147_v50 = vpop.f32.mrf.mxu0  ;;  %v2161_v2 = vsel %vm316_vm2, %v2157_v59, -inf }
0x1468   :  { %v2156_v51 = vsel %vm3966_vm11, %v2147_v50, -3.4028235e+38 }
0x1469   :  { %v2158_v5 = vsel %vm316_vm2, %v2156_v51, -inf }
0x146d   :  { %v3180_v52 = vpop.f32.mrf.mxu0 }
0x146e   :  { %v4020_v48 = vpop.f32.mrf.mxu1  ;;  %v2359_v3 = vsel %vm3944_vm9, %v3180_v52, -3.4028235e+38 }
0x146f   :  { %v2349_v60 = vpop.f32.mrf.mxu0  ;;  %v2363_v43 = vsel %vm316_vm2, %v2359_v3, -inf }
0x1470   :  { %v4022_v47 = vpop.f32.mrf.mxu1  ;;  %v2358_v63 = vsel %vm3966_vm11, %v2349_v60, -3.4028235e+38 }
0x1471   :  { %v2360_v4 = vsel %vm316_vm2, %v2358_v63, -inf }
0x1476   :  { %v3152_v36 = vpop.f32.mrf.mxu1 }
0x1477   :  { %v1955_v38 = vsel %vm3944_vm9, %v3152_v36, -3.4028235e+38 }
0x1478   :  { %v1945_v53 = vpop.f32.mrf.mxu1  ;;  %v1959_v54 = vsel %vm316_vm2, %v1955_v38, -inf }
0x1479   :  { %v1954_v56 = vsel %vm3966_vm11, %v1945_v53, -3.4028235e+38  ;;  %1960 = vmax.xlane.f32.xlu0 %v1959_v54 }
0x147a   :  { %v1956_v62 = vsel %vm316_vm2, %v1954_v56, -inf }
0x147b   :  { %1957 = vmax.xlane.f32.xlu1 %v1956_v62 }
0x147d   :  { %2159 = vmax.xlane.f32.xlu0 %v2158_v5 }
0x147f   :  { %2162 = vmax.xlane.f32.xlu1 %v2161_v2  ;;  %v3300_v2 = vld [vmem:[%s4184_s18 + $0x8] sm:$0xff]  }
0x1481   :  { %2361 = vmax.xlane.f32.xlu0 %v2360_v4  ;;  %v3301_v4 = vld [vmem:[%s4184_s18] sm:$0xff]  }
0x1483   :  { %2364 = vmax.xlane.f32.xlu1 %v2363_v43 }
0x1502   :  { %v1961_v10 = vpop.xlane.xlu0 %1960 }
0x1503   :  { %v1963_v31 = vsub.f32 %v1955_v38, %v1961_v10 }
0x1504   :  { %v1958_v12 = vpop.xlane.xlu1 %1957 }
0x1505   :  { %v1962_v30 = vsub.f32 %v1954_v56, %v1958_v12  ;;  %v1966_v32 = vmul.f32 1.442695, %v1963_v31 }
0x1506   :  { %v2160_v13 = vpop.xlane.xlu0 %2159 }
0x1507   :  { %v2164_v15 = vsub.f32 %v2156_v51, %v2160_v13  ;;  %v1964_v49 = vmul.f32 1.442695, %v1962_v30 }
0x1508   :  { %v2163_v57 = vpop.xlane.xlu1 %2162 }
0x1509   :  { %v2166_v8 = vmul.f32 1.442695, %v2164_v15  ;;  %v2165_v58 = vsub.f32 %v2157_v59, %v2163_v57 }
0x150a   :  { %v2362_v6 = vpop.xlane.xlu0 %2361 }
0x150b   :  { %3376 = vpow2.f32 %v2166_v8  ;;  %v2168_v46 = vmul.f32 1.442695, %v2165_v58  ;;  %v2366_v17 = vsub.f32 %v2358_v63, %v2362_v6 }
0x150c   :  { %v2365_v39 = vpop.xlane.xlu1 %2364 }
0x150d   :  { %3378 = vpow2.f32 %v2168_v46  ;;  %v2368_v18 = vmul.f32 1.442695, %v2366_v17  ;;  %v2367_v16 = vsub.f32 %v2359_v3, %v2365_v39 }
0x150f   :  { %3380 = vpow2.f32 %v2368_v18  ;;  %v2370_v21 = vmul.f32 1.442695, %v2367_v16 }
0x1511   :  { %3382 = vpow2.f32 %v2370_v21 }
0x1512   :  { %3384 = vpow2.f32 %v1964_v49 }
0x1513   :  { %3386 = vpow2.f32 %v1966_v32 }
0x1518   :  { %v3377_v7 = vpop.eup %3376 }
0x1519   :  { %v2170_v9 = vsel %vm316_vm2, %v3377_v7, 0.0 }
0x151a   :  { %v4043_v45 = vpop.eup %3378  ;;  %2171 = vadd.xlane.f32.xlu0 %v2170_v9 }
0x151b   :  { %v2173_v23 = vsel %vm316_vm2, %v4043_v45, 0.0 }
0x151c   :  { %v4047_v25 = vpop.eup %3380  ;;  %2174 = vadd.xlane.f32.xlu1 %v2173_v23 }
0x151d   :  { %v2372_v29 = vsel %vm316_vm2, %v4047_v25, 0.0 }
0x151e   :  { %v4051_v19 = vpop.eup %3382  ;;  %2373 = vadd.xlane.f32.xlu0 %v2372_v29 }
0x151f   :  { %v2375_v0 = vsel %vm316_vm2, %v4051_v19, 0.0  ;;  %v3385_v24 = vpop.eup %3384 }
0x1520   :  { %2376 = vadd.xlane.f32.xlu1 %v2375_v0  ;;  %v1968_v26 = vsel %vm316_vm2, %v3385_v24, 0.0  ;;  %v3387_v27 = vpop.eup %3386 }
0x1521   :  { %v1971_v28 = vsel %vm316_vm2, %v3387_v27, 0.0 }
0x1531   :  { %1978 = vrot.lane.b32.xlu1 %v3931_v61, %s3427_s24 }
0x1534   :  { %1980 = vrot.lane.b32.xlu0 %v3950_v22, %s3427_s24 }
0x1535   :  { %2182 = vrot.lane.b32.xlu1 %v3950_v22, %s3417_s25 }
0x1553   :  { %1969 = vadd.xlane.f32.xlu0 %v1968_v26 }
0x1559   :  { %1972 = vadd.xlane.f32.xlu1 %v1971_v28 }
0x1569   :  { %2180 = vrot.lane.b32.xlu0 %v3931_v61, %s3417_s25 }
0x156a   :  { %2384 = vrot.lane.b32.xlu1 %v3950_v22, %s3428_s1 }
0x156d   :  { %2382 = vrot.lane.b32.xlu0 %v3931_v61, %s3428_s1 }
0x15a3   :  { %v2172_v1 = vpop.xlane.xlu0 %2171 }
0x15a5   :  { %v2175_v33 = vpop.xlane.xlu1 %2174 }
0x15a7   :  { %v2374_v34 = vpop.xlane.xlu0 %2373 }
0x15a9   :  { %v2377_v35 = vpop.xlane.xlu1 %2376 }
0x15ab   :  { %v1981_v37 = vpop.permute.xlu0 %1980 }
0x15ac   :  { %3153 = vmatprep.subr.mxu1 %v1981_v37 }
0x15ad   :  { %3154 = vmatpush3.msra.mxu1 %v1981_v37  ;;  %v1979_v40 = vpop.permute.xlu1 %1978 }
0x15ae   :  { %3155 = vmatprep.subr.mxu1 %v1979_v40 }
0x15af   :  { %3156 = vmatpush3.msra.mxu1 %v1979_v40 }
0x15b1   :  { %v2183_v41 = vpop.permute.xlu1 %2182 }
0x15b2   :  { %3167 = vmatprep.subr.mxu1 %v2183_v41 }
0x15dc   :  { %v1970_v42 = vpop.xlane.xlu0 %1969 }
0x15dd   :  { %3388 = vrcp.f32 %v1970_v42  ;;  %v3302_v42 = vld [vmem:[%s4185_s21 + $0x8] sm:$0xff]  }
0x15de   :  { %3390 = vrcp.f32 %v2172_v1  ;;  %3197 = vmatpush3.bf16.msra.mxu0 %v3302_v42 }
0x15df   :  { %3198 = vmatprep.subr.bf16.mxu0 %v3412_v14 }
0x15e0   :  { %v2181_v53 = vpop.permute.xlu0 %2180 }
0x15e2   :  { %v1973_v44 = vpop.xlane.xlu1 %1972 }
0x15e3   :  { %3392 = vrcp.f32 %v1973_v44  ;;  %v3303_v44 = vld [vmem:[%s4185_s21] sm:$0xff]  }
0x15e4   :  { %3394 = vrcp.f32 %v2175_v33  ;;  %v2383_v5 = vpop.permute.xlu0 %2382  ;;  %3199 = vmatpush3.bf16.msra.mxu0 %v3303_v44 }
0x15e5   :  { %3396 = vrcp.f32 %v2374_v34 }
0x15e6   :  { %3398 = vrcp.f32 %v2377_v35  ;;  %v2385_v62 = vpop.permute.xlu1 %2384 }
0x15ea   :  { %v3389_v61 = vpop.eup %3388 }
0x15eb   :  { %v1976_v22 = vmul.f32 %v3389_v61, %v3385_v24  ;;  %v3391_v50 = vpop.eup %3390 }
0x15ec   :  { %v2178_v54 = vmul.f32 %v3391_v50, %v3377_v7 }
0x15ed   :  { %3157 = vmatprep.mubr.msk.f32.mxu1 %vm316_vm2, %v1976_v22 }
0x15f0   :  { %v3393_v52 = vpop.eup %3392 }
0x15f1   :  { %v1977_v36 = vmul.f32 %v3393_v52, %v3387_v27  ;;  %v3395_v38 = vpop.eup %3394 }
0x15f2   :  { %v3397_v51 = vpop.eup %3396  ;;  %v2179_v56 = vmul.f32 %v3395_v38, %v4043_v45 }
0x15f3   :  { %3158 = vmatmul.mubr.msk.f32.vlgmr.msra.gmra.mxu1 %vm316_vm2, %v1977_v36  ;;  %v3399_v60 = vpop.eup %3398  ;;  %v2380_v59 = vmul.f32 %v3397_v51, %v4047_v25  ;;  %v2894_v51 = vld [vmem:[%s4186_s19] ss:$0 sm:$0xff] }
0x15f4   :  { %3168 = vmatpush3.msra.mxu1 %v2183_v41  ;;  %3171 = vmatprep.mubr.msk.f32.mxu1 %vm316_vm2, %v2178_v54  ;;  %v2381_v63 = vmul.f32 %v3399_v60, %v4051_v19 }
0x15f5   :  { %3169 = vmatprep.subr.mxu1 %v2181_v53 }
0x15f6   :  { %3170 = vmatpush3.msra.mxu1 %v2181_v53 }
0x15f7   :  { %3181 = vmatprep.subr.mxu1 %v2385_v62  ;;  %3172 = vmatmul.mubr.msk.f32.vlgmr.msra.gmra.mxu1 %vm316_vm2, %v2179_v56 }
0x15f8   :  { %3182 = vmatpush3.msra.mxu1 %v2385_v62  ;;  %3185 = vmatprep.mubr.msk.f32.mxu1 %vm316_vm2, %v2380_v59  ;;  %v2895_v59 = vld [vmem:[%s4187_s20] ss:$0 sm:$0xff] }
0x15f9   :  { %3183 = vmatprep.subr.mxu1 %v2383_v5 }
0x15fa   :  { %3184 = vmatpush3.msra.mxu1 %v2383_v5 }
0x15fb   :  { %3186 = vmatmul.mubr.msk.f32.vlgmr.msra.gmra.mxu1 %vm316_vm2, %v2381_v63  ;;  %3188 = vmatprep.subr.bf16.mxu1 %v3412_v14 }
0x15fc   :  { %3192 = vmatprep.mubr.msk.bf16.mxu1 %vm3413_vm1, %v3412_v14  ;;  %3189 = vmatpush3.bf16.msra.mxu1 %v3300_v2 }
0x15fd   :  { %3190 = vmatprep.subr.bf16.mxu1 %v3412_v14 }
0x1600   :  { %3191 = vmatpush3.bf16.msra.mxu1 %v3301_v4  ;;  %v3304_v4 = vld [vmem:[%s4188_s22 + $0x38] sm:$0xff]  }
0x1601   :  { %3204 = vmatprep.subr.bf16.mxu1 %v3412_v14 }
0x16b3   :  { %v3159_v3 = vpop.f32.mrf.mxu1 }
0x16b5   :  { %v2056_v43 = vpop.f32.mrf.mxu1 }
0x16b6   :  { %v3265_v10 = vpack.i.bf16 %v3159_v3, %v2056_v43  ;;  %v3305_v43 = vld [vmem:[%s4188_s22 + $0x30] sm:$0xff]  }
0x16b7   :  { %v3173_v12 = vpop.f32.mrf.mxu1 }
0x16b8   :  { %3266 = vrot.lane.b32.xlu1 %v3265_v10, %s3429_s12  ;;  %v3306_v10 = vld [vmem:[%s4188_s22 + $0x28] sm:$0xff]  }
0x16b9   :  { %v2258_v13 = vpop.f32.mrf.mxu1 }
0x16ba   :  { %v3270_v15 = vpack.i.bf16 %v3173_v12, %v2258_v13  ;;  %v3307_v12 = vld [vmem:[%s4188_s22 + $0x20] sm:$0xff]   ;;  %v3308_v13 = vld [vmem:[%s4188_s22 + $0x18] sm:$0xff]  }
0x16bb   :  { %v3187_v57 = vpop.f32.mrf.mxu1 }
0x16bc   :  { %3271 = vrot.lane.b32.xlu0 %v3270_v15, %s3421_s9  ;;  %v3309_v15 = vld [vmem:[%s4188_s22 + $0x10] sm:$0xff]  }
0x16bd   :  { %v2460_v8 = vpop.f32.mrf.mxu1 }
0x16be   :  { %v3275_v58 = vpack.i.bf16 %v3187_v57, %v2460_v8  ;;  %v3310_v57 = vld [vmem:[%s4188_s22 + $0x8] sm:$0xff]   ;;  %v3311_v8 = vld [vmem:[%s4188_s22] sm:$0xff]  }
0x16c0   :  { %3276 = vrot.lane.b32.xlu1 %v3275_v58, %s3430_s6 }
0x172a   :  { %v3267_v6 = vpop.permute.xlu1 %3266 }
0x172b   :  { %v3269_v17 = vunpack.i.h.bf16 %v3267_v6  ;;  %v3268_v39 = vunpack.i.l.bf16 %v3267_v6 }
0x172d   :  { %v2494_v7 = vsel %vm1666_vm6, %v4020_v48, %v3269_v17  ;;  %v2493_v9 = vsel %vm1666_vm6, %v4022_v47, %v3268_v39 }
0x172e   :  { %v3272_v46 = vpop.permute.xlu0 %3271 }
0x172f   :  { %v3274_v18 = vunpack.i.h.bf16 %v3272_v46  ;;  %v3273_v16 = vunpack.i.l.bf16 %v3272_v46 }
0x1731   :  { %v2495_v25 = vsel %vm316_vm2, %v2493_v9, %v3273_v16  ;;  %v2496_v29 = vsel %vm316_vm2, %v2494_v7, %v3274_v18 }
0x1732   :  { %v3277_v21 = vpop.permute.xlu1 %3276 }
0x1733   :  { %v3279_v45 = vunpack.i.h.bf16 %v3277_v21  ;;  %v3278_v23 = vunpack.i.l.bf16 %v3277_v21 }
0x1735   :  { %v2498_v19 = vsel %vm2497_vm7, %v2495_v25, %v3278_v23  ;;  %v2499_v0 = vsel %vm2497_vm7, %v2496_v29, %v3279_v45 }
0x1736   :  { %v2500_v30 = vpack.c.bf16 %v2499_v0, %v2498_v19 }
0x1738   :  { %3193 = vmatmul.mubr.msk.bf16.vlgmr.msra.gmra.mxu1 %vm127_vm0, %v2500_v30 }
0x1739   :  { %3220 = vmatprep.mubr.msk.bf16.mxu1 %vm3413_vm1, %v3412_v14  ;;  %3205 = vmatpush3.bf16.msra.mxu1 %v3304_v4 }
0x173a   :  { %3206 = vmatprep.subr.bf16.mxu1 %v3412_v14 }
0x173d   :  { %3207 = vmatpush3.bf16.msra.mxu1 %v3305_v43 }
0x173e   :  { %3208 = vmatprep.subr.bf16.mxu1 %v3412_v14 }
0x1741   :  { %3209 = vmatpush3.bf16.msra.mxu1 %v3306_v10 }
0x1742   :  { %3210 = vmatprep.subr.bf16.mxu1 %v3412_v14 }
0x1745   :  { %3211 = vmatpush3.bf16.msra.mxu1 %v3307_v12 }
0x1746   :  { %3212 = vmatprep.subr.bf16.mxu1 %v3412_v14 }
0x1749   :  { %3213 = vmatpush3.bf16.msra.mxu1 %v3308_v13 }
0x174a   :  { %3214 = vmatprep.subr.bf16.mxu1 %v3412_v14 }
0x174d   :  { %3215 = vmatpush3.bf16.msra.mxu1 %v3309_v15 }
0x174e   :  { %3216 = vmatprep.subr.bf16.mxu1 %v3412_v14 }
0x1751   :  { %3217 = vmatpush3.bf16.msra.mxu1 %v3310_v57 }
0x1752   :  { %3218 = vmatprep.subr.bf16.mxu1 %v3412_v14 }
0x1755   :  { %3219 = vmatpush3.bf16.msra.mxu1 %v3311_v8 }
0x17f8   :  { %v2550_v49 = vpop.f32.mrf.mxu1 }
0x17f9   :  { %v4096_v48 = vadd.f32 %v2550_v49, %v3895_v20 }
0x17fa   :  { %v3194_v31 = vpop.f32.mrf.mxu1 }
0x17fb   :  { %v2559_v47 = vsel %vm127_vm0, %v4096_v48, 0.0 }
0x17fc   :  { %2560 = vadd.xlane.f32.xlu0 %v2559_v47  ;;  %v2553_v32 = vpop.f32.mrf.mxu1 }
0x17fd   :  { %v4101_v24 = vadd.f32 %v2553_v32, %v3900_v11 }
0x17fe   :  { %v3195_v26 = vpop.f32.mrf.mxu1 }
0x17ff   :  { %v2562_v27 = vsel %vm127_vm0, %v4101_v24, 0.0 }
0x1800   :  { %2563 = vadd.xlane.f32.xlu1 %v2562_v27 }
0x1885   :  { %v2561_v28 = vpop.xlane.xlu0 %2560 }
0x1886   :  { %v2565_v1 = vmul.f32 0.03125, %v2561_v28 }
0x1888   :  { %v2567_v33 = vsub.f32 %v4096_v48, %v2565_v1 }
0x1889   :  { %v2564_v20 = vpop.xlane.xlu1 %2563 }
0x188a   :  { %v2566_v34 = vmul.f32 0.03125, %v2564_v20  ;;  %v2569_v35 = vmul.f32 %v2567_v33, %v2567_v33 }
0x188c   :  { %v2568_v37 = vsub.f32 %v4101_v24, %v2566_v34  ;;  %v2571_v40 = vsel %vm127_vm0, %v2569_v35, 0.0 }
0x188d   :  { %2572 = vadd.xlane.f32.xlu0 %v2571_v40 }
0x188e   :  { %v2570_v41 = vmul.f32 %v2568_v37, %v2568_v37 }
0x1890   :  { %v2574_v11 = vsel %vm127_vm0, %v2570_v41, 0.0 }
0x1891   :  { %2575 = vadd.xlane.f32.xlu0 %v2574_v11 }
0x1916   :  { %v2573_v61 = vpop.xlane.xlu0 %2572 }
0x1917   :  { %v2577_v22 = vmul.f32 0.03125, %v2573_v61 }
0x1919   :  { %v2579_v50 = vadd.f32 1e-05, %v2577_v22 }
0x191a   :  { %v2576_v52 = vpop.xlane.xlu0 %2575 }
0x191b   :  { %3400 = vrsqrt.f32 %v2579_v50  ;;  %v2578_v36 = vmul.f32 0.03125, %v2576_v52 }
0x191d   :  { %v2580_v38 = vadd.f32 1e-05, %v2578_v36 }
0x191f   :  { %3402 = vrsqrt.f32 %v2580_v38 }
0x1928   :  { %v3401_v53 = vpop.eup %3400 }
0x1929   :  { %v2583_v54 = vmul.f32 %v3401_v53, %v2567_v33 }
0x192b   :  { %v2591_v62 = vmul.f32 %v2894_v51, %v2583_v54 }
0x192c   :  { %v3403_v56 = vpop.eup %3402 }
0x192d   :  { %v2584_v60 = vmul.f32 %v3403_v56, %v2568_v37  ;;  %v2599_v63 = vadd.f32 %v2895_v59, %v2591_v62 }
0x192f   :  { %v2592_v5 = vmul.f32 %v2894_v51, %v2584_v60 }
0x1931   :  { %v2600_v2 = vadd.f32 %v2895_v59, %v2592_v5 }
0x1933   :  { %v2601_v3 = vpack.c.bf16 %v2600_v2, %v2599_v63 }
0x1935   :  { %3201 = vmatmul.mubr.msk.bf16.vlgmr.msra.gmra.mxu0 %vm127_vm0, %v2601_v3 }
0x19f5   :  { %v2651_v58 = vpop.f32.mrf.mxu0 }
0x19f6   :  { %v2660_v6 = vmul.f32 0.70710677, %v2651_v58  ;;  %v2658_v5 = vmul.f32 0.5, %v2651_v58 }
0x19f7   :  { %v3202_v46 = vpop.f32.mrf.mxu0 }
0x19f8   :  { %v2666_v17 = vand.u32 2147483647, %v2660_v6  ;;  %vm2662_vm1 = vcmp.lt.f32.partialorder %v2660_v6, 0.0 }
0x19f9   :  { %v2654_v39 = vpop.f32.mrf.mxu0  ;;  %v2664_v53 = vsel %vm2662_vm1, -1.0, %v3422_v55 }
0x19fa   :  { %v2668_v18 = vmul.f32 0.3275911, %v2666_v17  ;;  %v2661_v16 = vmul.f32 0.70710677, %v2654_v39  ;;  %v2694_v14 = vsub.f32 0.0, %v2666_v17  ;;  %v2659_v63 = vmul.f32 0.5, %v2654_v39 }
0x19fb   :  { %v3203_v21 = vpop.f32.mrf.mxu0 }
0x19fc   :  { %v2670_v7 = vadd.f32 1.0, %v2668_v18  ;;  %v2667_v9 = vand.u32 2147483647, %v2661_v16  ;;  %v2696_v25 = vmul.f32 %v2694_v14, %v2666_v17  ;;  %vm2663_vm2 = vcmp.lt.f32.partialorder %v2661_v16, 0.0 }
0x19fd   :  { %v2665_v60 = vsel %vm2663_vm2, -1.0, %v3422_v55 }
0x19fe   :  { %3404 = vrcp.f32 %v2670_v7  ;;  %v2669_v45 = vmul.f32 0.3275911, %v2667_v9  ;;  %v2695_v29 = vsub.f32 0.0, %v2667_v9  ;;  %v2698_v30 = vmul.f32 1.442695, %v2696_v25 }
0x1a00   :  { %v2671_v23 = vadd.f32 1.0, %v2669_v45  ;;  %v2697_v49 = vmul.f32 %v2695_v29, %v2667_v9 }
0x1a02   :  { %3406 = vrcp.f32 %v2671_v23  ;;  %v2700_v27 = vmul.f32 1.442695, %v2697_v49 }
0x1a03   :  { %3408 = vpow2.f32 %v2698_v30 }
0x1a04   :  { %3410 = vpow2.f32 %v2700_v27 }
0x1a0b   :  { %v3405_v19 = vpop.eup %3404 }
0x1a0c   :  { %v2676_v0 = vmul.f32 1.0614054, %v3405_v19 }
0x1a0e   :  { %v2678_v31 = vadd.f32 -1.4531521, %v2676_v0 }
0x1a0f   :  { %v3407_v47 = vpop.eup %3406 }
0x1a10   :  { %v2680_v32 = vmul.f32 %v3405_v19, %v2678_v31  ;;  %v2677_v26 = vmul.f32 1.0614054, %v3407_v47  ;;  %v3409_v61 = vpop.eup %3408 }
0x1a11   :  { %v3411_v38 = vpop.eup %3410 }
0x1a12   :  { %v2682_v28 = vadd.f32 1.4214138, %v2680_v32  ;;  %v2679_v1 = vadd.f32 -1.4531521, %v2677_v26 }
0x1a14   :  { %v2684_v33 = vmul.f32 %v3405_v19, %v2682_v28  ;;  %v2681_v20 = vmul.f32 %v3407_v47, %v2679_v1 }
0x1a16   :  { %v2686_v34 = vadd.f32 -0.28449672, %v2684_v33  ;;  %v2683_v35 = vadd.f32 1.4214138, %v2681_v20 }
0x1a18   :  { %v2688_v37 = vmul.f32 %v3405_v19, %v2686_v34  ;;  %v2685_v40 = vmul.f32 %v3407_v47, %v2683_v35 }
0x1a1a   :  { %v2690_v41 = vadd.f32 0.2548296, %v2688_v37  ;;  %v2687_v11 = vadd.f32 -0.28449672, %v2685_v40 }
0x1a1c   :  { %v2692_v42 = vmul.f32 %v3405_v19, %v2690_v41  ;;  %v2689_v44 = vmul.f32 %v3407_v47, %v2687_v11 }
0x1a1e   :  { %v2702_v22 = vmul.f32 %v3409_v61, %v2692_v42  ;;  %v2691_v50 = vadd.f32 0.2548296, %v2689_v44 }
0x1a20   :  { %v2704_v52 = vsub.f32 1.0, %v2702_v22  ;;  %v2693_v36 = vmul.f32 %v3407_v47, %v2691_v50 }
0x1a22   :  { %v2706_v54 = vmul.f32 %v2704_v52, %v2664_v53  ;;  %v2703_v51 = vmul.f32 %v3411_v38, %v2693_v36 }
0x1a24   :  { %v2705_v56 = vsub.f32 1.0, %v2703_v51  ;;  %v2708_v62 = vadd.f32 1.0, %v2706_v54 }
0x1a26   :  { %v2707_v59 = vmul.f32 %v2705_v56, %v2665_v60  ;;  %v2710_v3 = vmul.f32 %v2708_v62, %v2658_v5 }
0x1a28   :  { %v2709_v2 = vadd.f32 1.0, %v2707_v59 }
0x1a2a   :  { %v2711_v4 = vmul.f32 %v2709_v2, %v2659_v63 }
0x1a2c   :  { %v2712_v43 = vpack.c.bf16 %v2711_v4, %v2710_v3 }
0x1a2e   :  { %3221 = vmatmul.mubr.bf16.vlgmr.msra.gmra.mxu1 %v2712_v43 }
0x1aee   :  { %v2795_v10 = vpop.f32.mrf.mxu1 }
0x1aef   :  { %v2802_v12 = vadd.f32 %v2795_v10, %v4096_v48 }
0x1af0   :  { %v3222_v13 = vpop.f32.mrf.mxu1 }
0x1af1   :  { %2804 = vst.msk [vmem:[%s4189_s23] sm:$0xff] %vm127_vm0, %v2802_v12 }
0x1af2   :  { %v2798_v15 = vpop.f32.mrf.mxu1 }
0x1af3   :  { %v2803_v55 = vadd.f32 %v2798_v15, %v4101_v24 }
0x1af4   :  { %v3223_v57 = vpop.f32.mrf.mxu1 }
0x1af5   :  { %2805 = vst.msk [vmem:[%s4189_s23 + $0x8] sm:$0xff] %vm127_vm0, %v2803_v55 }

</bundles_post_ra>
